<compile_context>
chip_gen: v6e
topology: v6e:2x2x1
jax: 0.10.0
libtpu: 0.0.40
codegen_flags: <defaults>
</compile_context>

<pallas_src>
import jax
import jax.numpy as jnp
from jax.experimental import pallas as pl
from jax.experimental.pallas import tpu as pltpu

LANE = 128
EPS = 1e-5
SLOPE = 0.2


def _round_up(v, m):
    return ((v + m - 1) // m) * m


# ----------------------------------------------------------------------------
# Pallas kernels
# ----------------------------------------------------------------------------
def _conv_lrelu_kernel(a_ref, b_ref, o_ref):
    """o = LeakyReLU_{0.2}(A @ B); A, B bf16, f32 accumulation + epilogue."""
    acc = jnp.dot(a_ref[...], b_ref[...], preferred_element_type=jnp.float32)
    o_ref[...] = jnp.where(acc >= 0.0, acc, SLOPE * acc).astype(o_ref.dtype)


def _conv_bn_lrelu_kernel(a_ref, b_ref, g_ref, bt_ref, o_ref):
    """Fused Conv (matmul) + BatchNorm(batch stats) + LeakyReLU.

    The whole (M, Cout) output is resident, so the per-channel mean / biased
    variance over N*H*W are computed in the kernel epilogue (f32 throughout).
    """
    acc = jnp.dot(a_ref[...], b_ref[...], preferred_element_type=jnp.float32)
    mean = jnp.mean(acc, axis=0, keepdims=True)
    var = jnp.mean((acc - mean) * (acc - mean), axis=0, keepdims=True)
    y = (acc - mean) * (g_ref[...] / jnp.sqrt(var + EPS)) + bt_ref[...]
    o_ref[...] = jnp.where(y >= 0.0, y, SLOPE * y).astype(o_ref.dtype)


def _conv_bn_lrelu_head_kernel(a_ref, b_ref, g_ref, bt_ref, w5_ref, s_ref, o_ref):
    """Layer 4 (Conv+BN+LReLU) fused with the layer-5 4x4/s1/p0 Conv + Sigmoid.

    The 4x4xC map stays in VMEM; the head is a per-sample full contraction done
    as elementwise multiply (VPU) + a tiny sample-selection matmul + lane
    reduction, followed by the sigmoid.  Output: (N, 1) probabilities.
    """
    acc = jnp.dot(a_ref[...], b_ref[...], preferred_element_type=jnp.float32)
    mean = jnp.mean(acc, axis=0, keepdims=True)
    var = jnp.mean((acc - mean) * (acc - mean), axis=0, keepdims=True)
    y = (acc - mean) * (g_ref[...] / jnp.sqrt(var + EPS)) + bt_ref[...]
    y = jnp.where(y >= 0.0, y, SLOPE * y)                 # (M, C) f32
    prod = y * w5_ref[...]                                # (M, C) f32
    per_sample = jnp.dot(s_ref[...], prod,                # (N, C): sum rows of
                         preferred_element_type=jnp.float32)  # each sample
    logits = jnp.sum(per_sample, axis=1, keepdims=True)   # (N, 1)
    o_ref[...] = 1.0 / (1.0 + jnp.exp(-logits))


# ----------------------------------------------------------------------------
# pallas_call wrappers
# ----------------------------------------------------------------------------
def _pick_tm(m, row_bytes, vmem_budget=8 << 20):
    """M tile for the layer-1 matmul: prefer >= 2 grid steps (both v7x cores)
    and keep the double-buffered per-step A+out footprint within the budget."""
    if m % 256 != 0:
        return m
    tm = m // 2
    while tm > 128 and (tm // 2) % 128 == 0 and 2 * 2 * tm * row_bytes > vmem_budget:
        tm //= 2
    return tm


def conv_lrelu(a, b):
    m, k = a.shape
    _, c = b.shape
    tm = _pick_tm(m, k * a.dtype.itemsize + c * 2)
    return pl.pallas_call(
        _conv_lrelu_kernel,
        out_shape=jax.ShapeDtypeStruct((m, c), jnp.bfloat16),
        grid=(m // tm,),
        in_specs=[
            pl.BlockSpec((tm, k), lambda i: (i, 0)),
            pl.BlockSpec((k, c), lambda i: (0, 0)),
        ],
        out_specs=pl.BlockSpec((tm, c), lambda i: (i, 0)),
        compiler_params=pltpu.CompilerParams(dimension_semantics=("parallel",)),
    )(a, b)


def conv_bn_lrelu(a, b, gamma, beta):
    m, k = a.shape
    _, c = b.shape
    return pl.pallas_call(
        _conv_bn_lrelu_kernel,
        out_shape=jax.ShapeDtypeStruct((m, c), jnp.bfloat16),
        grid=(1,),
        in_specs=[
            pl.BlockSpec((m, k), lambda i: (0, 0)),
            pl.BlockSpec((k, c), lambda i: (0, 0)),
            pl.BlockSpec((1, c), lambda i: (0, 0)),
            pl.BlockSpec((1, c), lambda i: (0, 0)),
        ],
        out_specs=pl.BlockSpec((m, c), lambda i: (0, 0)),
        compiler_params=pltpu.CompilerParams(dimension_semantics=("arbitrary",)),
    )(a, b, gamma, beta)


def conv_bn_lrelu_sigmoid_head(a, b, gamma, beta, w5t, sel):
    m, k = a.shape
    _, c = b.shape
    n = sel.shape[0]
    return pl.pallas_call(
        _conv_bn_lrelu_head_kernel,
        out_shape=jax.ShapeDtypeStruct((n, 1), jnp.float32),
        grid=(1,),
        in_specs=[
            pl.BlockSpec((m, k), lambda i: (0, 0)),
            pl.BlockSpec((k, c), lambda i: (0, 0)),
            pl.BlockSpec((1, c), lambda i: (0, 0)),
            pl.BlockSpec((1, c), lambda i: (0, 0)),
            pl.BlockSpec((m, c), lambda i: (0, 0)),
            pl.BlockSpec((n, m), lambda i: (0, 0)),
        ],
        out_specs=pl.BlockSpec((n, 1), lambda i: (0, 0)),
        compiler_params=pltpu.CompilerParams(dimension_semantics=("arbitrary",)),
    )(a, b, gamma, beta, w5t, sel)


# ----------------------------------------------------------------------------
# Plain-JAX glue: im2col + weight packing (channel-padded, bf16)
# ----------------------------------------------------------------------------
def im2col(x_nhwc, kh, kw, stride, pad):
    n, h, w, c = x_nhwc.shape
    xp = jnp.pad(x_nhwc, ((0, 0), (pad, pad), (pad, pad), (0, 0)))
    oh = (h + 2 * pad - kh) // stride + 1
    ow = (w + 2 * pad - kw) // stride + 1
    patches = []
    for i in range(kh):
        for j in range(kw):
            patches.append(
                xp[:, i:i + stride * oh:stride, j:j + stride * ow:stride, :]
            )
    p = jnp.stack(patches, axis=3)  # (N, OH, OW, KH*KW, C)
    return p.reshape(n * oh * ow, kh * kw * c), oh, ow


def _weight_to_b(w_oihw, cin_pad, cout_pad):
    """(Cout, Cin, KH, KW) -> bf16 (KH*KW*cin_pad, cout_pad), zero padded."""
    cout, cin, kh, kw = w_oihw.shape
    b = jnp.transpose(w_oihw, (2, 3, 1, 0))  # (KH, KW, Cin, Cout)
    b = jnp.pad(b, ((0, 0), (0, 0), (0, cin_pad - cin), (0, cout_pad - cout)))
    return b.reshape(kh * kw * cin_pad, cout_pad).astype(jnp.bfloat16)


# ----------------------------------------------------------------------------
# Discriminator forward (Conv-LReLU, 2x [Conv-BN-LReLU], fused tail)
# ----------------------------------------------------------------------------
def discriminator_forward(x_nchw, params):
    x = jnp.transpose(x_nchw, (0, 2, 3, 1)).astype(jnp.float32)  # NCHW -> NHWC
    n = x.shape[0]

    # ---- layer 1: Conv(nc, ndf, 4, 2, 1) + LeakyReLU(0.2) ----
    w1 = params["w1"]
    ndf, nc_real = w1.shape[0], w1.shape[1]
    cin_pad = 8                                   # K = 4*4*8 = 128 (lane aligned)
    c1 = _round_up(ndf, LANE)
    xpad = jnp.pad(x, ((0, 0), (0, 0), (0, 0), (0, cin_pad - nc_real)))
    a, oh, ow = im2col(xpad.astype(jnp.bfloat16), 4, 4, 2, 1)
    y = conv_lrelu(a, _weight_to_b(w1, cin_pad, c1))     # (M, 128) bf16
    x = y.reshape(n, oh, ow, c1)

    # ---- layers 2..4: fused Conv + BatchNorm(train stats) + LeakyReLU ----
    # (layer 4 additionally fuses the final 4x4/s1/p0 Conv + Sigmoid head)
    for idx in (2, 3, 4):
        w = params[f"w{idx}"]
        cout = w.shape[0]
        cpad = _round_up(cout, LANE)
        a, oh, ow = im2col(x, 4, 4, 2, 1)                # x channels already padded
        b = _weight_to_b(w, x.shape[-1], cpad)
        g = jnp.pad(params[f"g{idx}"], (0, cpad - cout),
                    constant_values=1.0).reshape(1, cpad).astype(jnp.float32)
        bt = jnp.pad(params[f"b{idx}"], (0, cpad - cout)
                     ).reshape(1, cpad).astype(jnp.float32)
        if idx < 4:
            y = conv_bn_lrelu(a, b, g, bt)               # (M, cpad) bf16
            x = y.reshape(n, oh, ow, cpad)
        else:
            # ---- fused layer 5: Conv(ndf*8, 1, 4, 1, 0) + Sigmoid ----
            w5 = params["w5"]                            # (1, ndf*8, 4, 4)
            assert (oh, ow) == (w5.shape[2], w5.shape[3]), "head expects 4x4 map"
            w5m = jnp.transpose(w5, (2, 3, 1, 0))        # (4, 4, Cin, 1)
            w5m = jnp.pad(w5m, ((0, 0), (0, 0), (0, cpad - w5.shape[1]), (0, 0)))
            w5m = w5m.reshape(oh * ow, cpad).astype(jnp.float32)
            w5t = jnp.tile(w5m, (n, 1))                  # (n*oh*ow, cpad)
            sel = jnp.repeat(jnp.eye(n, dtype=jnp.float32), oh * ow, axis=1)
            out = conv_bn_lrelu_sigmoid_head(a, b, g, bt, w5t, sel)  # (n, 1)
            return out.reshape(-1)                       # .view(-1,1).squeeze(1)


# ----------------------------------------------------------------------------
# Pure-JAX reference (mirrors the bf16-matmul / f32-epilogue math)
# ----------------------------------------------------------------------------
def _ref_forward(x_nchw, params):
    lrelu = lambda v: jnp.where(v >= 0, v, SLOPE * v)

    def conv_bf16(x_bf16, w, stride, pad):
        cout, cin, kh, kw = w.shape
        a, oh, ow = im2col(x_bf16, kh, kw, stride, pad)
        b = jnp.transpose(w, (2, 3, 1, 0)).reshape(kh * kw * cin, cout)
        return jnp.dot(a, b.astype(jnp.bfloat16),
                       preferred_element_type=jnp.float32), oh, ow

    x = jnp.transpose(x_nchw, (0, 2, 3, 1)).astype(jnp.bfloat16)
    n = x.shape[0]
    y, oh, ow = conv_bf16(x, params["w1"], 2, 1)
    x = lrelu(y).astype(jnp.bfloat16).reshape(n, oh, ow, -1)
    for idx in (2, 3, 4):
        w, g, b = params[f"w{idx}"], params[f"g{idx}"], params[f"b{idx}"]
        y, oh, ow = conv_bf16(x, w, 2, 1)
        mean, var = jnp.mean(y, axis=0), jnp.var(y, axis=0)     # biased (PyTorch BN)
        y = lrelu((y - mean) / jnp.sqrt(var + EPS) * g + b)     # f32
        x = y.astype(jnp.bfloat16).reshape(n, oh, ow, -1)
    # head in f32, exactly as in the fused kernel
    x4 = y.reshape(n, oh, ow, -1)
    a5, _, _ = im2col(x4, 4, 4, 1, 0)
    b5 = jnp.transpose(params["w5"], (2, 3, 1, 0)).reshape(-1, 1)
    return jax.nn.sigmoid(a5 @ b5).reshape(-1)


# ----------------------------------------------------------------------------
# Main
# ----------------------------------------------------------------------------
if __name__ == "__main__":
    # Small, module-consistent shapes: nc=3 channels, ndf=16 (scaled-down
    # width), 64x64 spatial so the final 4x4/s1/p0 conv yields a 1x1 map.
    nc, ndf = 3, 16
    batch, hw = 2, 64

    key = jax.random.PRNGKey(0)
    k = jax.random.split(key, 10)
    params = {
        "w1": 0.02 * jax.random.normal(k[0], (ndf, nc, 4, 4), jnp.float32),
        "w2": 0.02 * jax.random.normal(k[1], (ndf * 2, ndf, 4, 4), jnp.float32),
        "g2": 1.0 + 0.1 * jax.random.normal(k[2], (ndf * 2,), jnp.float32),
        "b2": 0.1 * jax.random.normal(k[3], (ndf * 2,), jnp.float32),
        "w3": 0.02 * jax.random.normal(k[4], (ndf * 4, ndf * 2, 4, 4), jnp.float32),
        "g3": jnp.ones((ndf * 4,), jnp.float32),
        "b3": jnp.zeros((ndf * 4,), jnp.float32),
        "w4": 0.02 * jax.random.normal(k[5], (ndf * 8, ndf * 4, 4, 4), jnp.float32),
        "g4": jnp.ones((ndf * 8,), jnp.float32),
        "b4": jnp.zeros((ndf * 8,), jnp.float32),
        "w5": 0.02 * jax.random.normal(k[6], (1, ndf * 8, 4, 4), jnp.float32),
    }
    x = jax.random.normal(k[7], (batch, nc, hw, hw), jnp.float32)

    fwd = jax.jit(discriminator_forward)
    out = jax.block_until_ready(fwd(x, params))

    ref = _ref_forward(x, params)
    assert out.shape == (batch,), out.shape
    assert jnp.allclose(out, ref, atol=2e-3, rtol=2e-3), (out, ref)

    print("KERNEL_OK")
</pallas_src>

<mosaic_0001>
module attributes {stable_mosaic.version = 11 : i64} {
  func.func @_conv_lrelu_kernel(%arg0: i32, %arg1: memref<1024x128xbf16, #tpu.memory_space<vmem>>, %arg2: memref<128x128xbf16, #tpu.memory_space<vmem>>, %arg3: memref<1024x128xbf16, #tpu.memory_space<vmem>>) attributes {dimension_semantics = [#tpu.dimension_semantics<parallel>], iteration_bounds = array<i64: 2>, scalar_prefetch = 0 : i64, scratch_operands = 0 : i64, tpu.core_type = #tpu.core_type<tc>, window_params = [{transform_indices = @transform_0, window_bounds = array<i64: 1024, 128>}, {pipeline_mode = #tpu.pipeline_mode<synchronous>, transform_indices = @transform_1, window_bounds = array<i64: 128, 128>}, {transform_indices = @transform_2, window_bounds = array<i64: 1024, 128>}]} {
    %c0 = arith.constant 0 : index
    %c0_0 = arith.constant 0 : index
    %0 = vector.load %arg1[%c0, %c0_0] : memref<1024x128xbf16, #tpu.memory_space<vmem>>, vector<1024x128xbf16>
    %c0_1 = arith.constant 0 : index
    %c0_2 = arith.constant 0 : index
    %1 = vector.load %arg2[%c0_1, %c0_2] : memref<128x128xbf16, #tpu.memory_space<vmem>>, vector<128x128xbf16>
    %cst = arith.constant dense<0.000000e+00> : vector<1024x128xf32>
    %2 = tpu.matmul %0, %1, %cst {dimension_numbers = #tpu.dot_dimension_numbers<[1], [0], [0], [1], [0, 0, 1, 1], [], []>} : vector<1024x128xbf16>, vector<128x128xbf16>, vector<1024x128xf32> -> vector<1024x128xf32>
    %cst_3 = arith.constant 0.000000e+00 : f32
    %3 = vector.broadcast %cst_3 : f32 to vector<1024x128xf32>
    %4 = arith.cmpf oge, %2, %3 : vector<1024x128xf32>
    %cst_4 = arith.constant 2.000000e-01 : f32
    %5 = vector.broadcast %cst_4 : f32 to vector<1024x128xf32>
    %6 = arith.mulf %5, %2 : vector<1024x128xf32>
    %7 = arith.select %4, %2, %6 : vector<1024x128xi1>, vector<1024x128xf32>
    %8 = arith.truncf %7 : vector<1024x128xf32> to vector<1024x128xbf16>
    %c0_5 = arith.constant 0 : index
    %c0_6 = arith.constant 0 : index
    %9 = vector.load %arg3[%c0_5, %c0_6] : memref<1024x128xbf16, #tpu.memory_space<vmem>>, vector<1024x128xbf16>
    tpu.vector_store %arg3[%c0_5, %c0_6], %8 {strides = array<i32>} : memref<1024x128xbf16, #tpu.memory_space<vmem>>, vector<1024x128xbf16>,
    return
  }
  func.func @transform_0(%arg0: i32) -> (i32, i32) {
    %c0_i32 = arith.constant 0 : i32
    %c0_i32_0 = arith.constant 0 : i32
    return %arg0, %c0_i32 : i32, i32
  }
  func.func @transform_1(%arg0: i32) -> (i32, i32) {
    %c0_i32 = arith.constant 0 : i32
    %c0_i32_0 = arith.constant 0 : i32
    %c0_i32_1 = arith.constant 0 : i32
    return %c0_i32, %c0_i32_0 : i32, i32
  }
  func.func @transform_2(%arg0: i32) -> (i32, i32) {
    %c0_i32 = arith.constant 0 : i32
    %c0_i32_0 = arith.constant 0 : i32
    return %arg0, %c0_i32 : i32, i32
  }
}

module attributes {stable_mosaic.version = 11 : i64} {
  func.func @_conv_bn_lrelu_kernel(%arg0: i32, %arg1: memref<512x2048xbf16, #tpu.memory_space<vmem>>, %arg2: memref<2048x128xbf16, #tpu.memory_space<vmem>>, %arg3: memref<1x128xf32, #tpu.memory_space<vmem>>, %arg4: memref<1x128xf32, #tpu.memory_space<vmem>>, %arg5: memref<512x128xbf16, #tpu.memory_space<vmem>>) attributes {dimension_semantics = [#tpu.dimension_semantics<arbitrary>], iteration_bounds = array<i64: 1>, scalar_prefetch = 0 : i64, scratch_operands = 0 : i64, tpu.core_type = #tpu.core_type<tc>, window_params = [{pipeline_mode = #tpu.pipeline_mode<synchronous>, transform_indices = @transform_0, window_bounds = array<i64: 512, 2048>}, {pipeline_mode = #tpu.pipeline_mode<synchronous>, transform_indices = @transform_1, window_bounds = array<i64: 2048, 128>}, {pipeline_mode = #tpu.pipeline_mode<synchronous>, transform_indices = @transform_2, window_bounds = array<i64: 1, 128>}, {pipeline_mode = #tpu.pipeline_mode<synchronous>, transform_indices = @transform_3, window_bounds = array<i64: 1, 128>}, {pipeline_mode = #tpu.pipeline_mode<synchronous>, transform_indices = @transform_4, window_bounds = array<i64: 512, 128>}]} {
    %c0 = arith.constant 0 : index
    %c0_0 = arith.constant 0 : index
    %0 = vector.load %arg1[%c0, %c0_0] : memref<512x2048xbf16, #tpu.memory_space<vmem>>, vector<512x2048xbf16>
    %c0_1 = arith.constant 0 : index
    %c0_2 = arith.constant 0 : index
    %1 = vector.load %arg2[%c0_1, %c0_2] : memref<2048x128xbf16, #tpu.memory_space<vmem>>, vector<2048x128xbf16>
    %cst = arith.constant dense<0.000000e+00> : vector<512x128xf32>
    %2 = tpu.matmul %0, %1, %cst {dimension_numbers = #tpu.dot_dimension_numbers<[1], [0], [0], [1], [0, 0, 1, 1], [], []>} : vector<512x2048xbf16>, vector<2048x128xbf16>, vector<512x128xf32> -> vector<512x128xf32>
    %cst_3 = arith.constant dense<0.000000e+00> : vector<128xf32>
    %3 = vector.multi_reduction <add>, %2, %cst_3 [0] : vector<512x128xf32> to vector<128xf32>
    %4 = vector.shape_cast %3 : vector<128xf32> to vector<1x128xf32>
    %cst_4 = arith.constant 5.120000e+02 : f32
    %5 = vector.broadcast %cst_4 : f32 to vector<1x128xf32>
    %6 = arith.divf %4, %5 : vector<1x128xf32>
    %7 = vector.broadcast %6 : vector<1x128xf32> to vector<512x128xf32>
    %8 = arith.subf %2, %7 : vector<512x128xf32>
    %9 = vector.broadcast %6 : vector<1x128xf32> to vector<512x128xf32>
    %10 = arith.subf %2, %9 : vector<512x128xf32>
    %11 = arith.mulf %8, %10 : vector<512x128xf32>
    %cst_5 = arith.constant dense<0.000000e+00> : vector<128xf32>
    %12 = vector.multi_reduction <add>, %11, %cst_5 [0] : vector<512x128xf32> to vector<128xf32>
    %13 = vector.shape_cast %12 : vector<128xf32> to vector<1x128xf32>
    %cst_6 = arith.constant 5.120000e+02 : f32
    %14 = vector.broadcast %cst_6 : f32 to vector<1x128xf32>
    %15 = arith.divf %13, %14 : vector<1x128xf32>
    %16 = vector.broadcast %6 : vector<1x128xf32> to vector<512x128xf32>
    %17 = arith.subf %2, %16 : vector<512x128xf32>
    %c0_7 = arith.constant 0 : index
    %c0_8 = arith.constant 0 : index
    %18 = vector.load %arg3[%c0_7, %c0_8] : memref<1x128xf32, #tpu.memory_space<vmem>>, vector<1x128xf32>
    %cst_9 = arith.constant 9.99999974E-6 : f32
    %19 = vector.broadcast %cst_9 : f32 to vector<1x128xf32>
    %20 = arith.addf %15, %19 : vector<1x128xf32>
    %21 = math.sqrt %20 : vector<1x128xf32>
    %22 = arith.divf %18, %21 : vector<1x128xf32>
    %23 = vector.broadcast %22 : vector<1x128xf32> to vector<512x128xf32>
    %24 = arith.mulf %17, %23 : vector<512x128xf32>
    %c0_10 = arith.constant 0 : index
    %c0_11 = arith.constant 0 : index
    %25 = vector.load %arg4[%c0_10, %c0_11] : memref<1x128xf32, #tpu.memory_space<vmem>>, vector<1x128xf32>
    %26 = vector.broadcast %25 : vector<1x128xf32> to vector<512x128xf32>
    %27 = arith.addf %24, %26 : vector<512x128xf32>
    %cst_12 = arith.constant 0.000000e+00 : f32
    %28 = vector.broadcast %cst_12 : f32 to vector<512x128xf32>
    %29 = arith.cmpf oge, %27, %28 : vector<512x128xf32>
    %cst_13 = arith.constant 2.000000e-01 : f32
    %30 = vector.broadcast %cst_13 : f32 to vector<512x128xf32>
    %31 = arith.mulf %30, %27 : vector<512x128xf32>
    %32 = arith.select %29, %27, %31 : vector<512x128xi1>, vector<512x128xf32>
    %33 = arith.truncf %32 : vector<512x128xf32> to vector<512x128xbf16>
    %c0_14 = arith.constant 0 : index
    %c0_15 = arith.constant 0 : index
    %34 = vector.load %arg5[%c0_14, %c0_15] : memref<512x128xbf16, #tpu.memory_space<vmem>>, vector<512x128xbf16>
    tpu.vector_store %arg5[%c0_14, %c0_15], %33 {strides = array<i32>} : memref<512x128xbf16, #tpu.memory_space<vmem>>, vector<512x128xbf16>,
    return
  }
  func.func @transform_0(%arg0: i32) -> (i32, i32) {
    %c0_i32 = arith.constant 0 : i32
    %c0_i32_0 = arith.constant 0 : i32
    %c0_i32_1 = arith.constant 0 : i32
    return %c0_i32, %c0_i32_0 : i32, i32
  }
  func.func @transform_1(%arg0: i32) -> (i32, i32) {
    %c0_i32 = arith.constant 0 : i32
    %c0_i32_0 = arith.constant 0 : i32
    %c0_i32_1 = arith.constant 0 : i32
    return %c0_i32, %c0_i32_0 : i32, i32
  }
  func.func @transform_2(%arg0: i32) -> (i32, i32) {
    %c0_i32 = arith.constant 0 : i32
    %c0_i32_0 = arith.constant 0 : i32
    %c0_i32_1 = arith.constant 0 : i32
    return %c0_i32, %c0_i32_0 : i32, i32
  }
  func.func @transform_3(%arg0: i32) -> (i32, i32) {
    %c0_i32 = arith.constant 0 : i32
    %c0_i32_0 = arith.constant 0 : i32
    %c0_i32_1 = arith.constant 0 : i32
    return %c0_i32, %c0_i32_0 : i32, i32
  }
  func.func @transform_4(%arg0: i32) -> (i32, i32) {
    %c0_i32 = arith.constant 0 : i32
    %c0_i32_0 = arith.constant 0 : i32
    %c0_i32_1 = arith.constant 0 : i32
    return %c0_i32, %c0_i32_0 : i32, i32
  }
}

module attributes {stable_mosaic.version = 11 : i64} {
  func.func @_conv_bn_lrelu_kernel(%arg0: i32, %arg1: memref<128x2048xbf16, #tpu.memory_space<vmem>>, %arg2: memref<2048x128xbf16, #tpu.memory_space<vmem>>, %arg3: memref<1x128xf32, #tpu.memory_space<vmem>>, %arg4: memref<1x128xf32, #tpu.memory_space<vmem>>, %arg5: memref<128x128xbf16, #tpu.memory_space<vmem>>) attributes {dimension_semantics = [#tpu.dimension_semantics<arbitrary>], iteration_bounds = array<i64: 1>, scalar_prefetch = 0 : i64, scratch_operands = 0 : i64, tpu.core_type = #tpu.core_type<tc>, window_params = [{pipeline_mode = #tpu.pipeline_mode<synchronous>, transform_indices = @transform_0, window_bounds = array<i64: 128, 2048>}, {pipeline_mode = #tpu.pipeline_mode<synchronous>, transform_indices = @transform_1, window_bounds = array<i64: 2048, 128>}, {pipeline_mode = #tpu.pipeline_mode<synchronous>, transform_indices = @transform_2, window_bounds = array<i64: 1, 128>}, {pipeline_mode = #tpu.pipeline_mode<synchronous>, transform_indices = @transform_3, window_bounds = array<i64: 1, 128>}, {pipeline_mode = #tpu.pipeline_mode<synchronous>, transform_indices = @transform_4, window_bounds = array<i64: 128, 128>}]} {
    %c0 = arith.constant 0 : index
    %c0_0 = arith.constant 0 : index
    %0 = vector.load %arg1[%c0, %c0_0] : memref<128x2048xbf16, #tpu.memory_space<vmem>>, vector<128x2048xbf16>
    %c0_1 = arith.constant 0 : index
    %c0_2 = arith.constant 0 : index
    %1 = vector.load %arg2[%c0_1, %c0_2] : memref<2048x128xbf16, #tpu.memory_space<vmem>>, vector<2048x128xbf16>
    %cst = arith.constant dense<0.000000e+00> : vector<128x128xf32>
    %2 = tpu.matmul %0, %1, %cst {dimension_numbers = #tpu.dot_dimension_numbers<[1], [0], [0], [1], [0, 0, 1, 1], [], []>} : vector<128x2048xbf16>, vector<2048x128xbf16>, vector<128x128xf32> -> vector<128x128xf32>
    %cst_3 = arith.constant dense<0.000000e+00> : vector<128xf32>
    %3 = vector.multi_reduction <add>, %2, %cst_3 [0] : vector<128x128xf32> to vector<128xf32>
    %4 = vector.shape_cast %3 : vector<128xf32> to vector<1x128xf32>
    %cst_4 = arith.constant 1.280000e+02 : f32
    %5 = vector.broadcast %cst_4 : f32 to vector<1x128xf32>
    %6 = arith.divf %4, %5 : vector<1x128xf32>
    %7 = vector.broadcast %6 : vector<1x128xf32> to vector<128x128xf32>
    %8 = arith.subf %2, %7 : vector<128x128xf32>
    %9 = vector.broadcast %6 : vector<1x128xf32> to vector<128x128xf32>
    %10 = arith.subf %2, %9 : vector<128x128xf32>
    %11 = arith.mulf %8, %10 : vector<128x128xf32>
    %cst_5 = arith.constant dense<0.000000e+00> : vector<128xf32>
    %12 = vector.multi_reduction <add>, %11, %cst_5 [0] : vector<128x128xf32> to vector<128xf32>
    %13 = vector.shape_cast %12 : vector<128xf32> to vector<1x128xf32>
    %cst_6 = arith.constant 1.280000e+02 : f32
    %14 = vector.broadcast %cst_6 : f32 to vector<1x128xf32>
    %15 = arith.divf %13, %14 : vector<1x128xf32>
    %16 = vector.broadcast %6 : vector<1x128xf32> to vector<128x128xf32>
    %17 = arith.subf %2, %16 : vector<128x128xf32>
    %c0_7 = arith.constant 0 : index
    %c0_8 = arith.constant 0 : index
    %18 = vector.load %arg3[%c0_7, %c0_8] : memref<1x128xf32, #tpu.memory_space<vmem>>, vector<1x128xf32>
    %cst_9 = arith.constant 9.99999974E-6 : f32
    %19 = vector.broadcast %cst_9 : f32 to vector<1x128xf32>
    %20 = arith.addf %15, %19 : vector<1x128xf32>
    %21 = math.sqrt %20 : vector<1x128xf32>
    %22 = arith.divf %18, %21 : vector<1x128xf32>
    %23 = vector.broadcast %22 : vector<1x128xf32> to vector<128x128xf32>
    %24 = arith.mulf %17, %23 : vector<128x128xf32>
    %c0_10 = arith.constant 0 : index
    %c0_11 = arith.constant 0 : index
    %25 = vector.load %arg4[%c0_10, %c0_11] : memref<1x128xf32, #tpu.memory_space<vmem>>, vector<1x128xf32>
    %26 = vector.broadcast %25 : vector<1x128xf32> to vector<128x128xf32>
    %27 = arith.addf %24, %26 : vector<128x128xf32>
    %cst_12 = arith.constant 0.000000e+00 : f32
    %28 = vector.broadcast %cst_12 : f32 to vector<128x128xf32>
    %29 = arith.cmpf oge, %27, %28 : vector<128x128xf32>
    %cst_13 = arith.constant 2.000000e-01 : f32
    %30 = vector.broadcast %cst_13 : f32 to vector<128x128xf32>
    %31 = arith.mulf %30, %27 : vector<128x128xf32>
    %32 = arith.select %29, %27, %31 : vector<128x128xi1>, vector<128x128xf32>
    %33 = arith.truncf %32 : vector<128x128xf32> to vector<128x128xbf16>
    %c0_14 = arith.constant 0 : index
    %c0_15 = arith.constant 0 : index
    %34 = vector.load %arg5[%c0_14, %c0_15] : memref<128x128xbf16, #tpu.memory_space<vmem>>, vector<128x128xbf16>
    tpu.vector_store %arg5[%c0_14, %c0_15], %33 {strides = array<i32>} : memref<128x128xbf16, #tpu.memory_space<vmem>>, vector<128x128xbf16>,
    return
  }
  func.func @transform_0(%arg0: i32) -> (i32, i32) {
    %c0_i32 = arith.constant 0 : i32
    %c0_i32_0 = arith.constant 0 : i32
    %c0_i32_1 = arith.constant 0 : i32
    return %c0_i32, %c0_i32_0 : i32, i32
  }
  func.func @transform_1(%arg0: i32) -> (i32, i32) {
    %c0_i32 = arith.constant 0 : i32
    %c0_i32_0 = arith.constant 0 : i32
    %c0_i32_1 = arith.constant 0 : i32
    return %c0_i32, %c0_i32_0 : i32, i32
  }
  func.func @transform_2(%arg0: i32) -> (i32, i32) {
    %c0_i32 = arith.constant 0 : i32
    %c0_i32_0 = arith.constant 0 : i32
    %c0_i32_1 = arith.constant 0 : i32
    return %c0_i32, %c0_i32_0 : i32, i32
  }
  func.func @transform_3(%arg0: i32) -> (i32, i32) {
    %c0_i32 = arith.constant 0 : i32
    %c0_i32_0 = arith.constant 0 : i32
    %c0_i32_1 = arith.constant 0 : i32
    return %c0_i32, %c0_i32_0 : i32, i32
  }
  func.func @transform_4(%arg0: i32) -> (i32, i32) {
    %c0_i32 = arith.constant 0 : i32
    %c0_i32_0 = arith.constant 0 : i32
    %c0_i32_1 = arith.constant 0 : i32
    return %c0_i32, %c0_i32_0 : i32, i32
  }
}

module attributes {stable_mosaic.version = 11 : i64} {
  func.func @_conv_bn_lrelu_head_kernel(%arg0: i32, %arg1: memref<32x2048xbf16, #tpu.memory_space<vmem>>, %arg2: memref<2048x128xbf16, #tpu.memory_space<vmem>>, %arg3: memref<1x128xf32, #tpu.memory_space<vmem>>, %arg4: memref<1x128xf32, #tpu.memory_space<vmem>>, %arg5: memref<32x128xf32, #tpu.memory_space<vmem>>, %arg6: memref<2x32xf32, #tpu.memory_space<vmem>>, %arg7: memref<2x1xf32, #tpu.memory_space<vmem>>) attributes {dimension_semantics = [#tpu.dimension_semantics<arbitrary>], iteration_bounds = array<i64: 1>, scalar_prefetch = 0 : i64, scratch_operands = 0 : i64, tpu.core_type = #tpu.core_type<tc>, window_params = [{pipeline_mode = #tpu.pipeline_mode<synchronous>, transform_indices = @transform_0, window_bounds = array<i64: 32, 2048>}, {pipeline_mode = #tpu.pipeline_mode<synchronous>, transform_indices = @transform_1, window_bounds = array<i64: 2048, 128>}, {pipeline_mode = #tpu.pipeline_mode<synchronous>, transform_indices = @transform_2, window_bounds = array<i64: 1, 128>}, {pipeline_mode = #tpu.pipeline_mode<synchronous>, transform_indices = @transform_3, window_bounds = array<i64: 1, 128>}, {pipeline_mode = #tpu.pipeline_mode<synchronous>, transform_indices = @transform_4, window_bounds = array<i64: 32, 128>}, {pipeline_mode = #tpu.pipeline_mode<synchronous>, transform_indices = @transform_5, window_bounds = array<i64: 2, 32>}, {pipeline_mode = #tpu.pipeline_mode<synchronous>, transform_indices = @transform_6, window_bounds = array<i64: 2, 1>}]} {
    %c0 = arith.constant 0 : index
    %c0_0 = arith.constant 0 : index
    %0 = vector.load %arg1[%c0, %c0_0] : memref<32x2048xbf16, #tpu.memory_space<vmem>>, vector<32x2048xbf16>
    %c0_1 = arith.constant 0 : index
    %c0_2 = arith.constant 0 : index
    %1 = vector.load %arg2[%c0_1, %c0_2] : memref<2048x128xbf16, #tpu.memory_space<vmem>>, vector<2048x128xbf16>
    %cst = arith.constant dense<0.000000e+00> : vector<32x128xf32>
    %2 = tpu.matmul %0, %1, %cst {dimension_numbers = #tpu.dot_dimension_numbers<[1], [0], [0], [1], [0, 0, 1, 1], [], []>} : vector<32x2048xbf16>, vector<2048x128xbf16>, vector<32x128xf32> -> vector<32x128xf32>
    %cst_3 = arith.constant dense<0.000000e+00> : vector<128xf32>
    %3 = vector.multi_reduction <add>, %2, %cst_3 [0] : vector<32x128xf32> to vector<128xf32>
    %4 = vector.shape_cast %3 : vector<128xf32> to vector<1x128xf32>
    %cst_4 = arith.constant 3.200000e+01 : f32
    %5 = vector.broadcast %cst_4 : f32 to vector<1x128xf32>
    %6 = arith.divf %4, %5 : vector<1x128xf32>
    %7 = vector.broadcast %6 : vector<1x128xf32> to vector<32x128xf32>
    %8 = arith.subf %2, %7 : vector<32x128xf32>
    %9 = vector.broadcast %6 : vector<1x128xf32> to vector<32x128xf32>
    %10 = arith.subf %2, %9 : vector<32x128xf32>
    %11 = arith.mulf %8, %10 : vector<32x128xf32>
    %cst_5 = arith.constant dense<0.000000e+00> : vector<128xf32>
    %12 = vector.multi_reduction <add>, %11, %cst_5 [0] : vector<32x128xf32> to vector<128xf32>
    %13 = vector.shape_cast %12 : vector<128xf32> to vector<1x128xf32>
    %cst_6 = arith.constant 3.200000e+01 : f32
    %14 = vector.broadcast %cst_6 : f32 to vector<1x128xf32>
    %15 = arith.divf %13, %14 : vector<1x128xf32>
    %16 = vector.broadcast %6 : vector<1x128xf32> to vector<32x128xf32>
    %17 = arith.subf %2, %16 : vector<32x128xf32>
    %c0_7 = arith.constant 0 : index
    %c0_8 = arith.constant 0 : index
    %18 = vector.load %arg3[%c0_7, %c0_8] : memref<1x128xf32, #tpu.memory_space<vmem>>, vector<1x128xf32>
    %cst_9 = arith.constant 9.99999974E-6 : f32
    %19 = vector.broadcast %cst_9 : f32 to vector<1x128xf32>
    %20 = arith.addf %15, %19 : vector<1x128xf32>
    %21 = math.sqrt %20 : vector<1x128xf32>
    %22 = arith.divf %18, %21 : vector<1x128xf32>
    %23 = vector.broadcast %22 : vector<1x128xf32> to vector<32x128xf32>
    %24 = arith.mulf %17, %23 : vector<32x128xf32>
    %c0_10 = arith.constant 0 : index
    %c0_11 = arith.constant 0 : index
    %25 = vector.load %arg4[%c0_10, %c0_11] : memref<1x128xf32, #tpu.memory_space<vmem>>, vector<1x128xf32>
    %26 = vector.broadcast %25 : vector<1x128xf32> to vector<32x128xf32>
    %27 = arith.addf %24, %26 : vector<32x128xf32>
    %cst_12 = arith.constant 0.000000e+00 : f32
    %28 = vector.broadcast %cst_12 : f32 to vector<32x128xf32>
    %29 = arith.cmpf oge, %27, %28 : vector<32x128xf32>
    %cst_13 = arith.constant 2.000000e-01 : f32
    %30 = vector.broadcast %cst_13 : f32 to vector<32x128xf32>
    %31 = arith.mulf %30, %27 : vector<32x128xf32>
    %32 = arith.select %29, %27, %31 : vector<32x128xi1>, vector<32x128xf32>
    %c0_14 = arith.constant 0 : index
    %c0_15 = arith.constant 0 : index
    %33 = vector.load %arg5[%c0_14, %c0_15] : memref<32x128xf32, #tpu.memory_space<vmem>>, vector<32x128xf32>
    %34 = arith.mulf %32, %33 : vector<32x128xf32>
    %c0_16 = arith.constant 0 : index
    %c0_17 = arith.constant 0 : index
    %35 = vector.load %arg6[%c0_16, %c0_17] : memref<2x32xf32, #tpu.memory_space<vmem>>, vector<2x32xf32>
    %cst_18 = arith.constant dense<0.000000e+00> : vector<2x128xf32>
    %36 = tpu.matmul %35, %34, %cst_18 {dimension_numbers = #tpu.dot_dimension_numbers<[1], [0], [0], [1], [0, 0, 1, 1], [], []>} : vector<2x32xf32>, vector<32x128xf32>, vector<2x128xf32> -> vector<2x128xf32>
    %cst_19 = arith.constant dense<0.000000e+00> : vector<2xf32>
    %37 = vector.multi_reduction <add>, %36, %cst_19 [1] : vector<2x128xf32> to vector<2xf32>
    %38 = vector.shape_cast %37 : vector<2xf32> to vector<2x1xf32>
    %cst_20 = arith.constant 0.000000e+00 : f32
    %39 = vector.broadcast %cst_20 : f32 to vector<2x1xf32>
    %40 = arith.subf %39, %38 : vector<2x1xf32>
    %41 = math.exp %40 : vector<2x1xf32>
    %cst_21 = arith.constant 1.000000e+00 : f32
    %42 = vector.broadcast %cst_21 : f32 to vector<2x1xf32>
    %43 = arith.addf %42, %41 : vector<2x1xf32>
    %cst_22 = arith.constant 1.000000e+00 : f32
    %44 = vector.broadcast %cst_22 : f32 to vector<2x1xf32>
    %45 = arith.divf %44, %43 : vector<2x1xf32>
    %c0_23 = arith.constant 0 : index
    %c0_24 = arith.constant 0 : index
    %46 = vector.load %arg7[%c0_23, %c0_24] : memref<2x1xf32, #tpu.memory_space<vmem>>, vector<2x1xf32>
    tpu.vector_store %arg7[%c0_23, %c0_24], %45 {strides = array<i32>} : memref<2x1xf32, #tpu.memory_space<vmem>>, vector<2x1xf32>,
    return
  }
  func.func @transform_0(%arg0: i32) -> (i32, i32) {
    %c0_i32 = arith.constant 0 : i32
    %c0_i32_0 = arith.constant 0 : i32
    %c0_i32_1 = arith.constant 0 : i32
    return %c0_i32, %c0_i32_0 : i32, i32
  }
  func.func @transform_1(%arg0: i32) -> (i32, i32) {
    %c0_i32 = arith.constant 0 : i32
    %c0_i32_0 = arith.constant 0 : i32
    %c0_i32_1 = arith.constant 0 : i32
    return %c0_i32, %c0_i32_0 : i32, i32
  }
  func.func @transform_2(%arg0: i32) -> (i32, i32) {
    %c0_i32 = arith.constant 0 : i32
    %c0_i32_0 = arith.constant 0 : i32
    %c0_i32_1 = arith.constant 0 : i32
    return %c0_i32, %c0_i32_0 : i32, i32
  }
  func.func @transform_3(%arg0: i32) -> (i32, i32) {
    %c0_i32 = arith.constant 0 : i32
    %c0_i32_0 = arith.constant 0 : i32
    %c0_i32_1 = arith.constant 0 : i32
    return %c0_i32, %c0_i32_0 : i32, i32
  }
  func.func @transform_4(%arg0: i32) -> (i32, i32) {
    %c0_i32 = arith.constant 0 : i32
    %c0_i32_0 = arith.constant 0 : i32
    %c0_i32_1 = arith.constant 0 : i32
    return %c0_i32, %c0_i32_0 : i32, i32
  }
  func.func @transform_5(%arg0: i32) -> (i32, i32) {
    %c0_i32 = arith.constant 0 : i32
    %c0_i32_0 = arith.constant 0 : i32
    %c0_i32_1 = arith.constant 0 : i32
    return %c0_i32, %c0_i32_0 : i32, i32
  }
  func.func @transform_6(%arg0: i32) -> (i32, i32) {
    %c0_i32 = arith.constant 0 : i32
    %c0_i32_0 = arith.constant 0 : i32
    %c0_i32_1 = arith.constant 0 : i32
    return %c0_i32, %c0_i32_0 : i32, i32
  }
}

</mosaic_0001>

<bundles_post_ra>
// kernel: discriminator_forward.4
= control target key start
LH: loop header
LB: loop body
LE: loop exit
PB: predicated region body
PF: predicated region fallthrough
CT: control target
= control target key end

     0   :  { %s3406_s9 = smov 0   ;;  %s3603_s0 = inlined_call_operand.vmem [shape: bf16[2048,128], index: 0, kind: input, shape index: {}]   ;;  %s3604_s1 = inlined_call_operand.vmem [shape: bf16[128,128], index: 1, kind: input, shape index: {}]   ;;  %s3605_s2 = inlined_call_operand.vmem [shape: bf16[2048,128], index: 2, kind: output, shape index: {}]  }
   0x1 LB: > { %s2349_s10 = sadd.s32 4294967295, %s3389_s9   ;;  %p2353_p0 = scmp.ge.s32.totalorder %s3389_s9, 1  ;;  %s3389_s9 = sphi %s3406_s9, %s12_s9  }
   0x2   : > { %p113_p1 = scmp.lt.s32.totalorder %s3389_s9, 3 }
   0x4   : > { %p114_p2 = pnand %p2353_p0, %p113_p1 }
   0x5   : > { %s2354_s13 = sshll.u32 (!%p114_p2), %s2349_s10, 7 }
   0x6   : > { %117 = sbr.rel (%p114_p2) target bundleno = 370 (0x172), region = 28  ;;  %p136_p3 = scmp.lt.s32.totalorder (!%p114_p2), %s2354_s13, 255 }
   0xb   : > { %v3311_v0 = vld [vmem:[%s3604_s1 + $0x38] sm:$0xff]   ;;  %v3312_v1 = vld [vmem:[%s3604_s1 + $0x30] sm:$0xff]   ;;  %s3607_s13 = smov (!%p136_p3, %s2354_s13), 255  ;;  %v3313_v2 = vld [vmem:[%s3604_s1 + $0x28] sm:$0xff]  }
   0xc   : > { %3143 = vmatprep.subr.bf16.mxu0 %v3311_v0  ;;  %3287 = vmatprep.subr.bf16.mxu1 %v3311_v0  ;;  %s2355_s18 = sshll.u32 %s3607_s13, 2  ;;  %v3314_v3 = vld [vmem:[%s3604_s1 + $0x20] sm:$0xff]   ;;  %v3315_v6 = vld [vmem:[%s3604_s1 + $0x18] sm:$0xff]   ;;  %v3316_v7 = vld [vmem:[%s3604_s1 + $0x10] sm:$0xff]  }
   0xd   : > { %3144 = vmatpush3.bf16.msra.mxu0 %v3311_v0  ;;  %3295 = vmatpush3.bf16.msra.mxu1 %v3311_v0  ;;  %s3431_s21 = scalar_lea.vmem %s3603_s0, %s2355_s18  ;;  %v3317_v8 = vld [vmem:[%s3604_s1 + $0x8] sm:$0xff]   ;;  %v3318_v9 = vld [vmem:[%s3604_s1] sm:$0xff]   ;;  %s3517_s6 = scalar_lea.vmem %s3605_s2, %s2355_s18 }
   0xe   : > { %3145 = vmatprep.subr.bf16.mxu0 %v3312_v1  ;;  %3288 = vmatprep.subr.bf16.mxu1 %v3312_v1  ;;  %v3319_v4 = vld [vmem:[%s3431_s21] sm:$0xff]   ;;  %v3321_v10 = vld [vmem:[%s3431_s21 + $0x8] sm:$0xff]   ;;  %v3323_v12 = vld [vmem:[%s3431_s21 + $0x10] sm:$0xff]  }
   0xf   : > { %v3320_v5 = vld [vmem:[%s3431_s21 + $0x100] sm:$0xff]   ;;  %3159 = vmatprep.mubr.bf16.mxu0 %v3319_v4  ;;  %v3322_v11 = vld [vmem:[%s3431_s21 + $0x108] sm:$0xff]   ;;  %v3324_v13 = vld [vmem:[%s3431_s21 + $0x110] sm:$0xff]  }
  0x10   : > { %3223 = vmatprep.mubr.bf16.mxu1 %v3320_v5  ;;  %v3325_v14 = vld [vmem:[%s3431_s21 + $0x18] sm:$0xff]   ;;  %v3327_v16 = vld [vmem:[%s3431_s21 + $0x20] sm:$0xff]   ;;  %v3329_v18 = vld [vmem:[%s3431_s21 + $0x28] sm:$0xff]  }
  0x11   : > { %3146 = vmatpush3.bf16.msra.mxu0 %v3312_v1  ;;  %3296 = vmatpush3.bf16.msra.mxu1 %v3312_v1  ;;  %v3326_v15 = vld [vmem:[%s3431_s21 + $0x118] sm:$0xff]   ;;  %v3328_v17 = vld [vmem:[%s3431_s21 + $0x120] sm:$0xff]   ;;  %v3330_v19 = vld [vmem:[%s3431_s21 + $0x128] sm:$0xff]  }
  0x12   : > { %3147 = vmatprep.subr.bf16.mxu0 %v3313_v2  ;;  %3289 = vmatprep.subr.bf16.mxu1 %v3313_v2  ;;  %v3331_v20 = vld [vmem:[%s3431_s21 + $0x30] sm:$0xff]   ;;  %v3333_v22 = vld [vmem:[%s3431_s21 + $0x38] sm:$0xff]   ;;  %v3335_v24 = vld [vmem:[%s3431_s21 + $0x40] sm:$0xff]  }
  0x13   : > { %v3332_v21 = vld [vmem:[%s3431_s21 + $0x130] sm:$0xff]   ;;  %v3334_v23 = vld [vmem:[%s3431_s21 + $0x138] sm:$0xff]   ;;  %v3336_v25 = vld [vmem:[%s3431_s21 + $0x140] sm:$0xff]  }
  0x14   : > { %v3337_v26 = vld [vmem:[%s3431_s21 + $0x48] sm:$0xff]   ;;  %v3339_v28 = vld [vmem:[%s3431_s21 + $0x50] sm:$0xff]   ;;  %v3341_v30 = vld [vmem:[%s3431_s21 + $0x58] sm:$0xff]  }
  0x15   : > { %3148 = vmatpush3.bf16.msra.mxu0 %v3313_v2  ;;  %3297 = vmatpush3.bf16.msra.mxu1 %v3313_v2  ;;  %v3338_v27 = vld [vmem:[%s3431_s21 + $0x148] sm:$0xff]   ;;  %v3340_v29 = vld [vmem:[%s3431_s21 + $0x150] sm:$0xff]   ;;  %v3342_v31 = vld [vmem:[%s3431_s21 + $0x158] sm:$0xff]  }
  0x16   : > { %3149 = vmatprep.subr.bf16.mxu0 %v3314_v3  ;;  %3290 = vmatprep.subr.bf16.mxu1 %v3314_v3  ;;  %v3343_v32 = vld [vmem:[%s3431_s21 + $0x60] sm:$0xff]   ;;  %v3345_v34 = vld [vmem:[%s3431_s21 + $0x68] sm:$0xff]   ;;  %v3347_v36 = vld [vmem:[%s3431_s21 + $0x70] sm:$0xff]  }
  0x17   : > { %v3344_v33 = vld [vmem:[%s3431_s21 + $0x160] sm:$0xff]   ;;  %v3346_v35 = vld [vmem:[%s3431_s21 + $0x168] sm:$0xff]   ;;  %v3348_v37 = vld [vmem:[%s3431_s21 + $0x170] sm:$0xff]  }
  0x18   : > { %v3349_v38 = vld [vmem:[%s3431_s21 + $0x78] sm:$0xff]   ;;  %v3351_v40 = vld [vmem:[%s3431_s21 + $0x80] sm:$0xff]   ;;  %v3353_v42 = vld [vmem:[%s3431_s21 + $0x88] sm:$0xff]  }
  0x19   : > { %3150 = vmatpush3.bf16.msra.mxu0 %v3314_v3  ;;  %3298 = vmatpush3.bf16.msra.mxu1 %v3314_v3  ;;  %v3350_v39 = vld [vmem:[%s3431_s21 + $0x178] sm:$0xff]   ;;  %v3352_v41 = vld [vmem:[%s3431_s21 + $0x180] sm:$0xff]   ;;  %v3354_v43 = vld [vmem:[%s3431_s21 + $0x188] sm:$0xff]  }
  0x1a   : > { %3151 = vmatprep.subr.bf16.mxu0 %v3315_v6  ;;  %3291 = vmatprep.subr.bf16.mxu1 %v3315_v6  ;;  %v3355_v44 = vld [vmem:[%s3431_s21 + $0x90] sm:$0xff]   ;;  %v3357_v46 = vld [vmem:[%s3431_s21 + $0x98] sm:$0xff]   ;;  %v3359_v48 = vld [vmem:[%s3431_s21 + $0xa0] sm:$0xff]  }
  0x1b   : > { %v3356_v45 = vld [vmem:[%s3431_s21 + $0x190] sm:$0xff]   ;;  %v3358_v47 = vld [vmem:[%s3431_s21 + $0x198] sm:$0xff]   ;;  %v3360_v49 = vld [vmem:[%s3431_s21 + $0x1a0] sm:$0xff]  }
  0x1c   : > { %v3361_v50 = vld [vmem:[%s3431_s21 + $0xa8] sm:$0xff]   ;;  %v3363_v52 = vld [vmem:[%s3431_s21 + $0xb0] sm:$0xff]   ;;  %v3365_v54 = vld [vmem:[%s3431_s21 + $0xb8] sm:$0xff]  }
  0x1d   : > { %3152 = vmatpush3.bf16.msra.mxu0 %v3315_v6  ;;  %3299 = vmatpush3.bf16.msra.mxu1 %v3315_v6  ;;  %v3362_v51 = vld [vmem:[%s3431_s21 + $0x1a8] sm:$0xff]   ;;  %v3364_v53 = vld [vmem:[%s3431_s21 + $0x1b0] sm:$0xff]   ;;  %v3366_v55 = vld [vmem:[%s3431_s21 + $0x1b8] sm:$0xff]  }
  0x1e   : > { %3153 = vmatprep.subr.bf16.mxu0 %v3316_v7  ;;  %3292 = vmatprep.subr.bf16.mxu1 %v3316_v7  ;;  %v3367_v56 = vld [vmem:[%s3431_s21 + $0xc0] sm:$0xff]   ;;  %v3369_v58 = vld [vmem:[%s3431_s21 + $0xc8] sm:$0xff]   ;;  %v3371_v60 = vld [vmem:[%s3431_s21 + $0xd0] sm:$0xff]  }
  0x1f   : > { %v3368_v57 = vld [vmem:[%s3431_s21 + $0x1c0] sm:$0xff]   ;;  %v3370_v59 = vld [vmem:[%s3431_s21 + $0x1c8] sm:$0xff]   ;;  %v3372_v61 = vld [vmem:[%s3431_s21 + $0x1d0] sm:$0xff]  }
  0x20   : > { %v3373_v62 = vld [vmem:[%s3431_s21 + $0xd8] sm:$0xff]   ;;  %v3375_v0 = vld [vmem:[%s3431_s21 + $0xe0] sm:$0xff]   ;;  %v3377_v2 = vld [vmem:[%s3431_s21 + $0xe8] sm:$0xff]  }
  0x21   : > { %3154 = vmatpush3.bf16.msra.mxu0 %v3316_v7  ;;  %3300 = vmatpush3.bf16.msra.mxu1 %v3316_v7  ;;  %v3374_v63 = vld [vmem:[%s3431_s21 + $0x1d8] sm:$0xff]   ;;  %v3376_v1 = vld [vmem:[%s3431_s21 + $0x1e0] sm:$0xff]   ;;  %v3378_v3 = vld [vmem:[%s3431_s21 + $0x1e8] sm:$0xff]  }
  0x22   : > { %3155 = vmatprep.subr.bf16.mxu0 %v3317_v8  ;;  %3293 = vmatprep.subr.bf16.mxu1 %v3317_v8  ;;  %v3379_v4 = vld [vmem:[%s3431_s21 + $0xf0] sm:$0xff]   ;;  %v3381_v6 = vld [vmem:[%s3431_s21 + $0xf8] sm:$0xff]  }
  0x23   : > { %v3380_v5 = vld [vmem:[%s3431_s21 + $0x1f0] sm:$0xff]   ;;  %v3382_v7 = vld [vmem:[%s3431_s21 + $0x1f8] sm:$0xff]  }
  0x25   : > { %3156 = vmatpush3.bf16.msra.mxu0 %v3317_v8  ;;  %3301 = vmatpush3.bf16.msra.mxu1 %v3317_v8 }
  0x26   : > { %3157 = vmatprep.subr.bf16.mxu0 %v3318_v9  ;;  %3294 = vmatprep.subr.bf16.mxu1 %v3318_v9 }
  0x29   : > { %3158 = vmatpush3.bf16.msra.mxu0 %v3318_v9  ;;  %3302 = vmatpush3.bf16.msra.mxu1 %v3318_v9 }
  0x2c   : > { %3160 = vmatmul.mubr.bf16.vlgmr.msra.gmra.mxu0 %v3321_v10  ;;  %3224 = vmatmul.mubr.bf16.vlgmr.msra.gmra.mxu1 %v3322_v11 }
  0x2d   : > { %3163 = vmatprep.mubr.bf16.mxu0 %v3323_v12  ;;  %3227 = vmatprep.mubr.bf16.mxu1 %v3324_v13 }
  0x34   : > { %3164 = vmatmul.mubr.bf16.gmra.mxu0 %v3325_v14  ;;  %3228 = vmatmul.mubr.bf16.gmra.mxu1 %v3326_v15 }
  0x35   : > { %3167 = vmatprep.mubr.bf16.mxu0 %v3327_v16  ;;  %3231 = vmatprep.mubr.bf16.mxu1 %v3328_v17 }
  0x3c   : > { %3168 = vmatmul.mubr.bf16.gmra.mxu0 %v3329_v18  ;;  %3232 = vmatmul.mubr.bf16.gmra.mxu1 %v3330_v19 }
  0x3d   : > { %3171 = vmatprep.mubr.bf16.mxu0 %v3331_v20  ;;  %3235 = vmatprep.mubr.bf16.mxu1 %v3332_v21 }
  0x44   : > { %3172 = vmatmul.mubr.bf16.gmra.mxu0 %v3333_v22  ;;  %3236 = vmatmul.mubr.bf16.gmra.mxu1 %v3334_v23 }
  0x45   : > { %3175 = vmatprep.mubr.bf16.mxu0 %v3335_v24  ;;  %3239 = vmatprep.mubr.bf16.mxu1 %v3336_v25 }
  0x4c   : > { %3176 = vmatmul.mubr.bf16.gmra.mxu0 %v3337_v26  ;;  %3240 = vmatmul.mubr.bf16.gmra.mxu1 %v3338_v27 }
  0x4d   : > { %3179 = vmatprep.mubr.bf16.mxu0 %v3339_v28  ;;  %3243 = vmatprep.mubr.bf16.mxu1 %v3340_v29 }
  0x54   : > { %3180 = vmatmul.mubr.bf16.gmra.mxu0 %v3341_v30  ;;  %3244 = vmatmul.mubr.bf16.gmra.mxu1 %v3342_v31 }
  0x55   : > { %3183 = vmatprep.mubr.bf16.mxu0 %v3343_v32  ;;  %3247 = vmatprep.mubr.bf16.mxu1 %v3344_v33 }
  0x5c   : > { %3184 = vmatmul.mubr.bf16.gmra.mxu0 %v3345_v34  ;;  %3248 = vmatmul.mubr.bf16.gmra.mxu1 %v3346_v35 }
  0x5d   : > { %3187 = vmatprep.mubr.bf16.mxu0 %v3347_v36  ;;  %3251 = vmatprep.mubr.bf16.mxu1 %v3348_v37 }
  0x64   : > { %3188 = vmatmul.mubr.bf16.gmra.mxu0 %v3349_v38  ;;  %3252 = vmatmul.mubr.bf16.gmra.mxu1 %v3350_v39 }
  0x65   : > { %3191 = vmatprep.mubr.bf16.mxu0 %v3351_v40  ;;  %3255 = vmatprep.mubr.bf16.mxu1 %v3352_v41 }
  0x6c   : > { %3192 = vmatmul.mubr.bf16.gmra.mxu0 %v3353_v42  ;;  %3256 = vmatmul.mubr.bf16.gmra.mxu1 %v3354_v43 }
  0x6d   : > { %3195 = vmatprep.mubr.bf16.mxu0 %v3355_v44  ;;  %3259 = vmatprep.mubr.bf16.mxu1 %v3356_v45 }
  0x74   : > { %3196 = vmatmul.mubr.bf16.gmra.mxu0 %v3357_v46  ;;  %3260 = vmatmul.mubr.bf16.gmra.mxu1 %v3358_v47 }
  0x75   : > { %3199 = vmatprep.mubr.bf16.mxu0 %v3359_v48  ;;  %3263 = vmatprep.mubr.bf16.mxu1 %v3360_v49 }
  0x7c   : > { %3200 = vmatmul.mubr.bf16.gmra.mxu0 %v3361_v50  ;;  %3264 = vmatmul.mubr.bf16.gmra.mxu1 %v3362_v51 }
  0x7d   : > { %3203 = vmatprep.mubr.bf16.mxu0 %v3363_v52  ;;  %3267 = vmatprep.mubr.bf16.mxu1 %v3364_v53 }
  0x84   : > { %3204 = vmatmul.mubr.bf16.gmra.mxu0 %v3365_v54  ;;  %3268 = vmatmul.mubr.bf16.gmra.mxu1 %v3366_v55 }
  0x85   : > { %3207 = vmatprep.mubr.bf16.mxu0 %v3367_v56  ;;  %3271 = vmatprep.mubr.bf16.mxu1 %v3368_v57 }
  0x8c   : > { %3208 = vmatmul.mubr.bf16.gmra.mxu0 %v3369_v58  ;;  %3272 = vmatmul.mubr.bf16.gmra.mxu1 %v3370_v59 }
  0x8d   : > { %3211 = vmatprep.mubr.bf16.mxu0 %v3371_v60  ;;  %3275 = vmatprep.mubr.bf16.mxu1 %v3372_v61 }
  0x94   : > { %3212 = vmatmul.mubr.bf16.gmra.mxu0 %v3373_v62  ;;  %3276 = vmatmul.mubr.bf16.gmra.mxu1 %v3374_v63 }
  0x95   : > { %3215 = vmatprep.mubr.bf16.mxu0 %v3375_v0  ;;  %3279 = vmatprep.mubr.bf16.mxu1 %v3376_v1 }
  0x9c   : > { %3216 = vmatmul.mubr.bf16.gmra.mxu0 %v3377_v2  ;;  %3280 = vmatmul.mubr.bf16.gmra.mxu1 %v3378_v3 }
  0x9d   : > { %3219 = vmatprep.mubr.bf16.mxu0 %v3379_v4  ;;  %3283 = vmatprep.mubr.bf16.mxu1 %v3380_v5 }
  0xa4   : > { %3220 = vmatmul.mubr.bf16.gmra.mxu0 %v3381_v6  ;;  %3284 = vmatmul.mubr.bf16.gmra.mxu1 %v3382_v7 }
  0xec   : > { %v3161_v8 = vpop.f32.mrf.mxu0  ;;  %v3225_v9 = vpop.f32.mrf.mxu1 }
  0xed   : > { %vm1271_vm0 = vcmp.ge.f32.partialorder %v3161_v8, 0.0  ;;  %v1399_v10 = vmul.f32 0.2, %v3161_v8  ;;  %v1463_v11 = vmul.f32 0.2, %v3225_v9  ;;  %vm1335_vm1 = vcmp.ge.f32.partialorder %v3225_v9, 0.0 }
  0xee   : > { %v758_v12 = vpop.f32.mrf.mxu0  ;;  %v1014_v13 = vpop.f32.mrf.mxu1 }
  0xef   : > { %v1527_v14 = vsel %vm1271_vm0, %v3161_v8, %v1399_v10  ;;  %v1397_v15 = vmul.f32 0.2, %v758_v12  ;;  %vm1269_vm2 = vcmp.ge.f32.partialorder %v758_v12, 0.0  ;;  %v1591_v19 = vsel %vm1335_vm1, %v3225_v9, %v1463_v11 }
  0xf0   : > { %v3162_v16 = vpop.f32.mrf.mxu0  ;;  %v3226_v17 = vpop.f32.mrf.mxu1  ;;  %vm1333_vm5 = vcmp.ge.f32.partialorder %v1014_v13, 0.0  ;;  %v1461_v20 = vmul.f32 0.2, %v1014_v13 }
  0xf1   : > { %vm1272_vm3 = vcmp.ge.f32.partialorder %v3162_v16, 0.0  ;;  %v1400_v18 = vmul.f32 0.2, %v3162_v16  ;;  %vm1336_vm4 = vcmp.ge.f32.partialorder %v3226_v17, 0.0  ;;  %v1464_v21 = vmul.f32 0.2, %v3226_v17 }
  0xf2   : > { %v761_v22 = vpop.f32.mrf.mxu0  ;;  %v1017_v23 = vpop.f32.mrf.mxu1  ;;  %v1525_v26 = vsel %vm1269_vm2, %v758_v12, %v1397_v15  ;;  %v1589_v35 = vsel %vm1333_vm5, %v1014_v13, %v1461_v20 }
  0xf3   : > { %v1528_v24 = vsel %vm1272_vm3, %v3162_v16, %v1400_v18  ;;  %vm1270_vm6 = vcmp.ge.f32.partialorder %v761_v22, 0.0  ;;  %v1398_v25 = vmul.f32 0.2, %v761_v22  ;;  %vm1334_vm7 = vcmp.ge.f32.partialorder %v1017_v23, 0.0 }
  0xf4   : > { %v2696_v27 = vpack.c.bf16 %v1528_v24, %v1527_v14  ;;  %v1592_v28 = vsel %vm1336_vm4, %v3226_v17, %v1464_v21  ;;  %v1462_v29 = vmul.f32 0.2, %v1017_v23  ;;  %v3165_v30 = vpop.f32.mrf.mxu0  ;;  %v3229_v31 = vpop.f32.mrf.mxu1 }
  0xf5   : > { %v2856_v32 = vpack.c.bf16 %v1592_v28, %v1591_v19  ;;  %v1526_v33 = vsel %vm1270_vm6, %v761_v22, %v1398_v25  ;;  %vm1275_vm8 = vcmp.ge.f32.partialorder %v3165_v30, 0.0  ;;  %v1403_v34 = vmul.f32 0.2, %v3165_v30 }
  0xf6   : > { %3008 = vst [vmem:[%s3517_s6 + $0x8] sm:$0xff] %v2696_v27   ;;  %v2691_v36 = vpack.c.bf16 %v1526_v33, %v1525_v26  ;;  %v1590_v37 = vsel %vm1334_vm7, %v1017_v23, %v1462_v29  ;;  %v1467_v38 = vmul.f32 0.2, %v3229_v31  ;;  %v774_v39 = vpop.f32.mrf.mxu0  ;;  %v1030_v40 = vpop.f32.mrf.mxu1  ;;  %vm1339_vm9 = vcmp.ge.f32.partialorder %v3229_v31, 0.0 }
  0xf7   : > { %3040 = vst [vmem:[%s3517_s6 + $0x108] sm:$0xff] %v2856_v32   ;;  %v2851_v41 = vpack.c.bf16 %v1590_v37, %v1589_v35  ;;  %v1531_v42 = vsel %vm1275_vm8, %v3165_v30, %v1403_v34  ;;  %v1401_v43 = vmul.f32 0.2, %v774_v39  ;;  %vm1273_vm10 = vcmp.ge.f32.partialorder %v774_v39, 0.0 }
  0xf8   : > { %2692 = vst [vmem:[%s3517_s6] sm:$0xff] %v2691_v36   ;;  %v3166_v44 = vpop.f32.mrf.mxu0  ;;  %v3230_v45 = vpop.f32.mrf.mxu1  ;;  %v1595_v47 = vsel %vm1339_vm9, %v3229_v31, %v1467_v38  ;;  %vm1337_vm13 = vcmp.ge.f32.partialorder %v1030_v40, 0.0  ;;  %v1465_v48 = vmul.f32 0.2, %v1030_v40 }
  0xf9   : > { %3039 = vst [vmem:[%s3517_s6 + $0x100] sm:$0xff] %v2851_v41   ;;  %vm1276_vm11 = vcmp.ge.f32.partialorder %v3166_v44, 0.0  ;;  %v1404_v46 = vmul.f32 0.2, %v3166_v44  ;;  %vm1340_vm12 = vcmp.ge.f32.partialorder %v3230_v45, 0.0  ;;  %v1529_v54 = vsel %vm1273_vm10, %v774_v39, %v1401_v43 }
  0xfa   : > { %v1468_v49 = vmul.f32 0.2, %v3230_v45  ;;  %v777_v50 = vpop.f32.mrf.mxu0  ;;  %v1033_v51 = vpop.f32.mrf.mxu1  ;;  %v1593_v63 = vsel %vm1337_vm13, %v1030_v40, %v1465_v48 }
  0xfb   : > { %v1532_v52 = vsel %vm1276_vm11, %v3166_v44, %v1404_v46  ;;  %vm1274_vm14 = vcmp.ge.f32.partialorder %v777_v50, 0.0  ;;  %v1402_v53 = vmul.f32 0.2, %v777_v50  ;;  %vm1338_vm15 = vcmp.ge.f32.partialorder %v1033_v51, 0.0 }
  0xfc   : > { %v2706_v55 = vpack.c.bf16 %v1532_v52, %v1531_v42  ;;  %v1596_v56 = vsel %vm1340_vm12, %v3230_v45, %v1468_v49  ;;  %v1466_v57 = vmul.f32 0.2, %v1033_v51  ;;  %v3169_v58 = vpop.f32.mrf.mxu0  ;;  %v3233_v59 = vpop.f32.mrf.mxu1 }
  0xfd   : > { %v2866_v60 = vpack.c.bf16 %v1596_v56, %v1595_v47  ;;  %v1530_v61 = vsel %vm1274_vm14, %v777_v50, %v1402_v53  ;;  %vm1279_vm0 = vcmp.ge.f32.partialorder %v3169_v58, 0.0  ;;  %v1407_v62 = vmul.f32 0.2, %v3169_v58 }
  0xfe   : > { %3010 = vst [vmem:[%s3517_s6 + $0x18] sm:$0xff] %v2706_v55   ;;  %v2701_v0 = vpack.c.bf16 %v1530_v61, %v1529_v54  ;;  %v1594_v1 = vsel %vm1338_vm15, %v1033_v51, %v1466_v57  ;;  %v1471_v2 = vmul.f32 0.2, %v3233_v59  ;;  %v790_v3 = vpop.f32.mrf.mxu0  ;;  %v1046_v4 = vpop.f32.mrf.mxu1  ;;  %vm1343_vm1 = vcmp.ge.f32.partialorder %v3233_v59, 0.0 }
  0xff   : > { %3042 = vst [vmem:[%s3517_s6 + $0x118] sm:$0xff] %v2866_v60   ;;  %v2861_v5 = vpack.c.bf16 %v1594_v1, %v1593_v63  ;;  %v1535_v6 = vsel %vm1279_vm0, %v3169_v58, %v1407_v62  ;;  %v1405_v7 = vmul.f32 0.2, %v790_v3  ;;  %vm1277_vm2 = vcmp.ge.f32.partialorder %v790_v3, 0.0 }
 0x100   : > { %3009 = vst [vmem:[%s3517_s6 + $0x10] sm:$0xff] %v2701_v0   ;;  %v3170_v8 = vpop.f32.mrf.mxu0  ;;  %v3234_v9 = vpop.f32.mrf.mxu1  ;;  %v1599_v11 = vsel %vm1343_vm1, %v3233_v59, %v1471_v2  ;;  %vm1341_vm5 = vcmp.ge.f32.partialorder %v1046_v4, 0.0  ;;  %v1469_v12 = vmul.f32 0.2, %v1046_v4 }
 0x101   : > { %3041 = vst [vmem:[%s3517_s6 + $0x110] sm:$0xff] %v2861_v5   ;;  %vm1280_vm3 = vcmp.ge.f32.partialorder %v3170_v8, 0.0  ;;  %v1408_v10 = vmul.f32 0.2, %v3170_v8  ;;  %vm1344_vm4 = vcmp.ge.f32.partialorder %v3234_v9, 0.0  ;;  %v1533_v18 = vsel %vm1277_vm2, %v790_v3, %v1405_v7 }
 0x102   : > { %v1472_v13 = vmul.f32 0.2, %v3234_v9  ;;  %v793_v14 = vpop.f32.mrf.mxu0  ;;  %v1049_v15 = vpop.f32.mrf.mxu1  ;;  %v1597_v27 = vsel %vm1341_vm5, %v1046_v4, %v1469_v12 }
 0x103   : > { %v1536_v16 = vsel %vm1280_vm3, %v3170_v8, %v1408_v10  ;;  %vm1278_vm6 = vcmp.ge.f32.partialorder %v793_v14, 0.0  ;;  %v1406_v17 = vmul.f32 0.2, %v793_v14  ;;  %vm1342_vm7 = vcmp.ge.f32.partialorder %v1049_v15, 0.0 }
 0x104   : > { %v2716_v19 = vpack.c.bf16 %v1536_v16, %v1535_v6  ;;  %v1600_v20 = vsel %vm1344_vm4, %v3234_v9, %v1472_v13  ;;  %v1470_v21 = vmul.f32 0.2, %v1049_v15  ;;  %v3173_v22 = vpop.f32.mrf.mxu0  ;;  %v3237_v23 = vpop.f32.mrf.mxu1 }
 0x105   : > { %v2876_v24 = vpack.c.bf16 %v1600_v20, %v1599_v11  ;;  %v1534_v25 = vsel %vm1278_vm6, %v793_v14, %v1406_v17  ;;  %vm1283_vm8 = vcmp.ge.f32.partialorder %v3173_v22, 0.0  ;;  %v1411_v26 = vmul.f32 0.2, %v3173_v22 }
 0x106   : > { %3012 = vst [vmem:[%s3517_s6 + $0x28] sm:$0xff] %v2716_v19   ;;  %v2711_v28 = vpack.c.bf16 %v1534_v25, %v1533_v18  ;;  %v1598_v29 = vsel %vm1342_vm7, %v1049_v15, %v1470_v21  ;;  %v1475_v30 = vmul.f32 0.2, %v3237_v23  ;;  %v806_v31 = vpop.f32.mrf.mxu0  ;;  %v1062_v32 = vpop.f32.mrf.mxu1  ;;  %vm1347_vm9 = vcmp.ge.f32.partialorder %v3237_v23, 0.0 }
 0x107   : > { %3044 = vst [vmem:[%s3517_s6 + $0x128] sm:$0xff] %v2876_v24   ;;  %v2871_v33 = vpack.c.bf16 %v1598_v29, %v1597_v27  ;;  %v1539_v34 = vsel %vm1283_vm8, %v3173_v22, %v1411_v26  ;;  %v1409_v35 = vmul.f32 0.2, %v806_v31  ;;  %vm1281_vm10 = vcmp.ge.f32.partialorder %v806_v31, 0.0 }
 0x108   : > { %3011 = vst [vmem:[%s3517_s6 + $0x20] sm:$0xff] %v2711_v28   ;;  %v3174_v36 = vpop.f32.mrf.mxu0  ;;  %v3238_v37 = vpop.f32.mrf.mxu1  ;;  %v1603_v39 = vsel %vm1347_vm9, %v3237_v23, %v1475_v30  ;;  %vm1345_vm13 = vcmp.ge.f32.partialorder %v1062_v32, 0.0  ;;  %v1473_v40 = vmul.f32 0.2, %v1062_v32 }
 0x109   : > { %3043 = vst [vmem:[%s3517_s6 + $0x120] sm:$0xff] %v2871_v33   ;;  %vm1284_vm11 = vcmp.ge.f32.partialorder %v3174_v36, 0.0  ;;  %v1412_v38 = vmul.f32 0.2, %v3174_v36  ;;  %vm1348_vm12 = vcmp.ge.f32.partialorder %v3238_v37, 0.0  ;;  %v1537_v46 = vsel %vm1281_vm10, %v806_v31, %v1409_v35 }
 0x10a   : > { %v1476_v41 = vmul.f32 0.2, %v3238_v37  ;;  %v809_v42 = vpop.f32.mrf.mxu0  ;;  %v1065_v43 = vpop.f32.mrf.mxu1  ;;  %v1601_v55 = vsel %vm1345_vm13, %v1062_v32, %v1473_v40 }
 0x10b   : > { %v1540_v44 = vsel %vm1284_vm11, %v3174_v36, %v1412_v38  ;;  %vm1282_vm14 = vcmp.ge.f32.partialorder %v809_v42, 0.0  ;;  %v1410_v45 = vmul.f32 0.2, %v809_v42  ;;  %vm1346_vm15 = vcmp.ge.f32.partialorder %v1065_v43, 0.0 }
 0x10c   : > { %v2726_v47 = vpack.c.bf16 %v1540_v44, %v1539_v34  ;;  %v1604_v48 = vsel %vm1348_vm12, %v3238_v37, %v1476_v41  ;;  %v1474_v49 = vmul.f32 0.2, %v1065_v43  ;;  %v3177_v50 = vpop.f32.mrf.mxu0  ;;  %v3241_v51 = vpop.f32.mrf.mxu1 }
 0x10d   : > { %v2886_v52 = vpack.c.bf16 %v1604_v48, %v1603_v39  ;;  %v1538_v53 = vsel %vm1282_vm14, %v809_v42, %v1410_v45  ;;  %vm1287_vm0 = vcmp.ge.f32.partialorder %v3177_v50, 0.0  ;;  %v1415_v54 = vmul.f32 0.2, %v3177_v50 }
 0x10e   : > { %3014 = vst [vmem:[%s3517_s6 + $0x38] sm:$0xff] %v2726_v47   ;;  %v2721_v56 = vpack.c.bf16 %v1538_v53, %v1537_v46  ;;  %v1602_v57 = vsel %vm1346_vm15, %v1065_v43, %v1474_v49  ;;  %v1479_v58 = vmul.f32 0.2, %v3241_v51  ;;  %v822_v59 = vpop.f32.mrf.mxu0  ;;  %v1078_v60 = vpop.f32.mrf.mxu1  ;;  %vm1351_vm1 = vcmp.ge.f32.partialorder %v3241_v51, 0.0 }
 0x10f   : > { %3046 = vst [vmem:[%s3517_s6 + $0x138] sm:$0xff] %v2886_v52   ;;  %v2881_v61 = vpack.c.bf16 %v1602_v57, %v1601_v55  ;;  %v1543_v62 = vsel %vm1287_vm0, %v3177_v50, %v1415_v54  ;;  %v1413_v63 = vmul.f32 0.2, %v822_v59  ;;  %vm1285_vm2 = vcmp.ge.f32.partialorder %v822_v59, 0.0 }
 0x110   : > { %3013 = vst [vmem:[%s3517_s6 + $0x30] sm:$0xff] %v2721_v56   ;;  %v3178_v0 = vpop.f32.mrf.mxu0  ;;  %v3242_v1 = vpop.f32.mrf.mxu1  ;;  %v1607_v3 = vsel %vm1351_vm1, %v3241_v51, %v1479_v58  ;;  %vm1349_vm5 = vcmp.ge.f32.partialorder %v1078_v60, 0.0  ;;  %v1477_v4 = vmul.f32 0.2, %v1078_v60 }
 0x111   : > { %3045 = vst [vmem:[%s3517_s6 + $0x130] sm:$0xff] %v2881_v61   ;;  %vm1288_vm3 = vcmp.ge.f32.partialorder %v3178_v0, 0.0  ;;  %v1416_v2 = vmul.f32 0.2, %v3178_v0  ;;  %vm1352_vm4 = vcmp.ge.f32.partialorder %v3242_v1, 0.0  ;;  %v1541_v10 = vsel %vm1285_vm2, %v822_v59, %v1413_v63 }
 0x112   : > { %v1480_v5 = vmul.f32 0.2, %v3242_v1  ;;  %v825_v6 = vpop.f32.mrf.mxu0  ;;  %v1081_v7 = vpop.f32.mrf.mxu1  ;;  %v1605_v19 = vsel %vm1349_vm5, %v1078_v60, %v1477_v4 }
 0x113   : > { %v1544_v8 = vsel %vm1288_vm3, %v3178_v0, %v1416_v2  ;;  %vm1286_vm6 = vcmp.ge.f32.partialorder %v825_v6, 0.0  ;;  %v1414_v9 = vmul.f32 0.2, %v825_v6  ;;  %vm1350_vm7 = vcmp.ge.f32.partialorder %v1081_v7, 0.0 }
 0x114   : > { %v2736_v11 = vpack.c.bf16 %v1544_v8, %v1543_v62  ;;  %v1608_v12 = vsel %vm1352_vm4, %v3242_v1, %v1480_v5  ;;  %v1478_v13 = vmul.f32 0.2, %v1081_v7  ;;  %v3181_v14 = vpop.f32.mrf.mxu0  ;;  %v3245_v15 = vpop.f32.mrf.mxu1 }
 0x115   : > { %v2896_v16 = vpack.c.bf16 %v1608_v12, %v1607_v3  ;;  %v1542_v17 = vsel %vm1286_vm6, %v825_v6, %v1414_v9  ;;  %vm1291_vm8 = vcmp.ge.f32.partialorder %v3181_v14, 0.0  ;;  %v1419_v18 = vmul.f32 0.2, %v3181_v14 }
 0x116   : > { %3016 = vst [vmem:[%s3517_s6 + $0x48] sm:$0xff] %v2736_v11   ;;  %v2731_v20 = vpack.c.bf16 %v1542_v17, %v1541_v10  ;;  %v1606_v21 = vsel %vm1350_vm7, %v1081_v7, %v1478_v13  ;;  %v1483_v22 = vmul.f32 0.2, %v3245_v15  ;;  %v838_v23 = vpop.f32.mrf.mxu0  ;;  %v1094_v24 = vpop.f32.mrf.mxu1  ;;  %vm1355_vm9 = vcmp.ge.f32.partialorder %v3245_v15, 0.0 }
 0x117   : > { %3048 = vst [vmem:[%s3517_s6 + $0x148] sm:$0xff] %v2896_v16   ;;  %v2891_v25 = vpack.c.bf16 %v1606_v21, %v1605_v19  ;;  %v1547_v26 = vsel %vm1291_vm8, %v3181_v14, %v1419_v18  ;;  %v1417_v27 = vmul.f32 0.2, %v838_v23  ;;  %vm1289_vm10 = vcmp.ge.f32.partialorder %v838_v23, 0.0 }
 0x118   : > { %3015 = vst [vmem:[%s3517_s6 + $0x40] sm:$0xff] %v2731_v20   ;;  %v3182_v28 = vpop.f32.mrf.mxu0  ;;  %v3246_v29 = vpop.f32.mrf.mxu1  ;;  %v1611_v31 = vsel %vm1355_vm9, %v3245_v15, %v1483_v22  ;;  %vm1353_vm13 = vcmp.ge.f32.partialorder %v1094_v24, 0.0  ;;  %v1481_v32 = vmul.f32 0.2, %v1094_v24 }
 0x119   : > { %3047 = vst [vmem:[%s3517_s6 + $0x140] sm:$0xff] %v2891_v25   ;;  %vm1292_vm11 = vcmp.ge.f32.partialorder %v3182_v28, 0.0  ;;  %v1420_v30 = vmul.f32 0.2, %v3182_v28  ;;  %vm1356_vm12 = vcmp.ge.f32.partialorder %v3246_v29, 0.0  ;;  %v1545_v38 = vsel %vm1289_vm10, %v838_v23, %v1417_v27 }
 0x11a   : > { %v1484_v33 = vmul.f32 0.2, %v3246_v29  ;;  %v841_v34 = vpop.f32.mrf.mxu0  ;;  %v1097_v35 = vpop.f32.mrf.mxu1  ;;  %v1609_v47 = vsel %vm1353_vm13, %v1094_v24, %v1481_v32 }
 0x11b   : > { %v1548_v36 = vsel %vm1292_vm11, %v3182_v28, %v1420_v30  ;;  %vm1290_vm14 = vcmp.ge.f32.partialorder %v841_v34, 0.0  ;;  %v1418_v37 = vmul.f32 0.2, %v841_v34  ;;  %vm1354_vm15 = vcmp.ge.f32.partialorder %v1097_v35, 0.0 }
 0x11c   : > { %v2746_v39 = vpack.c.bf16 %v1548_v36, %v1547_v26  ;;  %v1612_v40 = vsel %vm1356_vm12, %v3246_v29, %v1484_v33  ;;  %v1482_v41 = vmul.f32 0.2, %v1097_v35  ;;  %v3185_v42 = vpop.f32.mrf.mxu0  ;;  %v3249_v43 = vpop.f32.mrf.mxu1 }
 0x11d   : > { %v2906_v44 = vpack.c.bf16 %v1612_v40, %v1611_v31  ;;  %v1546_v45 = vsel %vm1290_vm14, %v841_v34, %v1418_v37  ;;  %vm1295_vm0 = vcmp.ge.f32.partialorder %v3185_v42, 0.0  ;;  %v1423_v46 = vmul.f32 0.2, %v3185_v42 }
 0x11e   : > { %3018 = vst [vmem:[%s3517_s6 + $0x58] sm:$0xff] %v2746_v39   ;;  %v2741_v48 = vpack.c.bf16 %v1546_v45, %v1545_v38  ;;  %v1610_v49 = vsel %vm1354_vm15, %v1097_v35, %v1482_v41  ;;  %v1487_v50 = vmul.f32 0.2, %v3249_v43  ;;  %v854_v51 = vpop.f32.mrf.mxu0  ;;  %v1110_v52 = vpop.f32.mrf.mxu1  ;;  %vm1359_vm1 = vcmp.ge.f32.partialorder %v3249_v43, 0.0 }
 0x11f   : > { %3050 = vst [vmem:[%s3517_s6 + $0x158] sm:$0xff] %v2906_v44   ;;  %v2901_v53 = vpack.c.bf16 %v1610_v49, %v1609_v47  ;;  %v1551_v54 = vsel %vm1295_vm0, %v3185_v42, %v1423_v46  ;;  %v1421_v55 = vmul.f32 0.2, %v854_v51  ;;  %vm1293_vm2 = vcmp.ge.f32.partialorder %v854_v51, 0.0 }
 0x120   : > { %3017 = vst [vmem:[%s3517_s6 + $0x50] sm:$0xff] %v2741_v48   ;;  %v3186_v56 = vpop.f32.mrf.mxu0  ;;  %v3250_v57 = vpop.f32.mrf.mxu1  ;;  %v1615_v59 = vsel %vm1359_vm1, %v3249_v43, %v1487_v50  ;;  %vm1357_vm5 = vcmp.ge.f32.partialorder %v1110_v52, 0.0  ;;  %v1485_v60 = vmul.f32 0.2, %v1110_v52 }
 0x121   : > { %3049 = vst [vmem:[%s3517_s6 + $0x150] sm:$0xff] %v2901_v53   ;;  %vm1296_vm3 = vcmp.ge.f32.partialorder %v3186_v56, 0.0  ;;  %v1424_v58 = vmul.f32 0.2, %v3186_v56  ;;  %vm1360_vm4 = vcmp.ge.f32.partialorder %v3250_v57, 0.0  ;;  %v1549_v2 = vsel %vm1293_vm2, %v854_v51, %v1421_v55 }
 0x122   : > { %v1488_v61 = vmul.f32 0.2, %v3250_v57  ;;  %v857_v62 = vpop.f32.mrf.mxu0  ;;  %v1113_v63 = vpop.f32.mrf.mxu1  ;;  %v1613_v11 = vsel %vm1357_vm5, %v1110_v52, %v1485_v60 }
 0x123   : > { %v1552_v0 = vsel %vm1296_vm3, %v3186_v56, %v1424_v58  ;;  %vm1294_vm6 = vcmp.ge.f32.partialorder %v857_v62, 0.0  ;;  %v1422_v1 = vmul.f32 0.2, %v857_v62  ;;  %vm1358_vm7 = vcmp.ge.f32.partialorder %v1113_v63, 0.0 }
 0x124   : > { %v2756_v3 = vpack.c.bf16 %v1552_v0, %v1551_v54  ;;  %v1616_v4 = vsel %vm1360_vm4, %v3250_v57, %v1488_v61  ;;  %v1486_v5 = vmul.f32 0.2, %v1113_v63  ;;  %v3189_v6 = vpop.f32.mrf.mxu0  ;;  %v3253_v7 = vpop.f32.mrf.mxu1 }
 0x125   : > { %v2916_v8 = vpack.c.bf16 %v1616_v4, %v1615_v59  ;;  %v1550_v9 = vsel %vm1294_vm6, %v857_v62, %v1422_v1  ;;  %vm1299_vm8 = vcmp.ge.f32.partialorder %v3189_v6, 0.0  ;;  %v1427_v10 = vmul.f32 0.2, %v3189_v6 }
 0x126   : > { %3020 = vst [vmem:[%s3517_s6 + $0x68] sm:$0xff] %v2756_v3   ;;  %v2751_v12 = vpack.c.bf16 %v1550_v9, %v1549_v2  ;;  %v1614_v13 = vsel %vm1358_vm7, %v1113_v63, %v1486_v5  ;;  %v1491_v14 = vmul.f32 0.2, %v3253_v7  ;;  %v870_v15 = vpop.f32.mrf.mxu0  ;;  %v1126_v16 = vpop.f32.mrf.mxu1  ;;  %vm1363_vm9 = vcmp.ge.f32.partialorder %v3253_v7, 0.0 }
 0x127   : > { %3052 = vst [vmem:[%s3517_s6 + $0x168] sm:$0xff] %v2916_v8   ;;  %v2911_v17 = vpack.c.bf16 %v1614_v13, %v1613_v11  ;;  %v1555_v18 = vsel %vm1299_vm8, %v3189_v6, %v1427_v10  ;;  %v1425_v19 = vmul.f32 0.2, %v870_v15  ;;  %vm1297_vm10 = vcmp.ge.f32.partialorder %v870_v15, 0.0 }
 0x128   : > { %3019 = vst [vmem:[%s3517_s6 + $0x60] sm:$0xff] %v2751_v12   ;;  %v3190_v20 = vpop.f32.mrf.mxu0  ;;  %v3254_v21 = vpop.f32.mrf.mxu1  ;;  %v1619_v23 = vsel %vm1363_vm9, %v3253_v7, %v1491_v14  ;;  %vm1361_vm13 = vcmp.ge.f32.partialorder %v1126_v16, 0.0  ;;  %v1489_v24 = vmul.f32 0.2, %v1126_v16 }
 0x129   : > { %3051 = vst [vmem:[%s3517_s6 + $0x160] sm:$0xff] %v2911_v17   ;;  %vm1300_vm11 = vcmp.ge.f32.partialorder %v3190_v20, 0.0  ;;  %v1428_v22 = vmul.f32 0.2, %v3190_v20  ;;  %vm1364_vm12 = vcmp.ge.f32.partialorder %v3254_v21, 0.0  ;;  %v1553_v30 = vsel %vm1297_vm10, %v870_v15, %v1425_v19 }
 0x12a   : > { %v1492_v25 = vmul.f32 0.2, %v3254_v21  ;;  %v873_v26 = vpop.f32.mrf.mxu0  ;;  %v1129_v27 = vpop.f32.mrf.mxu1  ;;  %v1617_v39 = vsel %vm1361_vm13, %v1126_v16, %v1489_v24 }
 0x12b   : > { %v1556_v28 = vsel %vm1300_vm11, %v3190_v20, %v1428_v22  ;;  %vm1298_vm14 = vcmp.ge.f32.partialorder %v873_v26, 0.0  ;;  %v1426_v29 = vmul.f32 0.2, %v873_v26  ;;  %vm1362_vm15 = vcmp.ge.f32.partialorder %v1129_v27, 0.0 }
 0x12c   : > { %v2766_v31 = vpack.c.bf16 %v1556_v28, %v1555_v18  ;;  %v1620_v32 = vsel %vm1364_vm12, %v3254_v21, %v1492_v25  ;;  %v1490_v33 = vmul.f32 0.2, %v1129_v27  ;;  %v3193_v34 = vpop.f32.mrf.mxu0  ;;  %v3257_v35 = vpop.f32.mrf.mxu1 }
 0x12d   : > { %v2926_v36 = vpack.c.bf16 %v1620_v32, %v1619_v23  ;;  %v1554_v37 = vsel %vm1298_vm14, %v873_v26, %v1426_v29  ;;  %vm1303_vm0 = vcmp.ge.f32.partialorder %v3193_v34, 0.0  ;;  %v1431_v38 = vmul.f32 0.2, %v3193_v34 }
 0x12e   : > { %3022 = vst [vmem:[%s3517_s6 + $0x78] sm:$0xff] %v2766_v31   ;;  %v2761_v40 = vpack.c.bf16 %v1554_v37, %v1553_v30  ;;  %v1618_v41 = vsel %vm1362_vm15, %v1129_v27, %v1490_v33  ;;  %v1495_v42 = vmul.f32 0.2, %v3257_v35  ;;  %v886_v43 = vpop.f32.mrf.mxu0  ;;  %v1142_v44 = vpop.f32.mrf.mxu1  ;;  %vm1367_vm1 = vcmp.ge.f32.partialorder %v3257_v35, 0.0 }
 0x12f   : > { %3054 = vst [vmem:[%s3517_s6 + $0x178] sm:$0xff] %v2926_v36   ;;  %v2921_v45 = vpack.c.bf16 %v1618_v41, %v1617_v39  ;;  %v1559_v46 = vsel %vm1303_vm0, %v3193_v34, %v1431_v38  ;;  %v1429_v47 = vmul.f32 0.2, %v886_v43  ;;  %vm1301_vm2 = vcmp.ge.f32.partialorder %v886_v43, 0.0 }
 0x130   : > { %3021 = vst [vmem:[%s3517_s6 + $0x70] sm:$0xff] %v2761_v40   ;;  %v3194_v48 = vpop.f32.mrf.mxu0  ;;  %v3258_v49 = vpop.f32.mrf.mxu1  ;;  %v1623_v51 = vsel %vm1367_vm1, %v3257_v35, %v1495_v42  ;;  %vm1365_vm5 = vcmp.ge.f32.partialorder %v1142_v44, 0.0  ;;  %v1493_v52 = vmul.f32 0.2, %v1142_v44 }
 0x131   : > { %3053 = vst [vmem:[%s3517_s6 + $0x170] sm:$0xff] %v2921_v45   ;;  %vm1304_vm3 = vcmp.ge.f32.partialorder %v3194_v48, 0.0  ;;  %v1432_v50 = vmul.f32 0.2, %v3194_v48  ;;  %vm1368_vm4 = vcmp.ge.f32.partialorder %v3258_v49, 0.0  ;;  %v1557_v58 = vsel %vm1301_vm2, %v886_v43, %v1429_v47 }
 0x132   : > { %v1496_v53 = vmul.f32 0.2, %v3258_v49  ;;  %v889_v54 = vpop.f32.mrf.mxu0  ;;  %v1145_v55 = vpop.f32.mrf.mxu1  ;;  %v1621_v3 = vsel %vm1365_vm5, %v1142_v44, %v1493_v52 }
 0x133   : > { %v1560_v56 = vsel %vm1304_vm3, %v3194_v48, %v1432_v50  ;;  %vm1302_vm6 = vcmp.ge.f32.partialorder %v889_v54, 0.0  ;;  %v1430_v57 = vmul.f32 0.2, %v889_v54  ;;  %vm1366_vm7 = vcmp.ge.f32.partialorder %v1145_v55, 0.0 }
 0x134   : > { %v2776_v59 = vpack.c.bf16 %v1560_v56, %v1559_v46  ;;  %v1624_v60 = vsel %vm1368_vm4, %v3258_v49, %v1496_v53  ;;  %v1494_v61 = vmul.f32 0.2, %v1145_v55  ;;  %v3197_v62 = vpop.f32.mrf.mxu0  ;;  %v3261_v63 = vpop.f32.mrf.mxu1 }
 0x135   : > { %v2936_v0 = vpack.c.bf16 %v1624_v60, %v1623_v51  ;;  %v1558_v1 = vsel %vm1302_vm6, %v889_v54, %v1430_v57  ;;  %vm1307_vm8 = vcmp.ge.f32.partialorder %v3197_v62, 0.0  ;;  %v1435_v2 = vmul.f32 0.2, %v3197_v62 }
 0x136   : > { %3024 = vst [vmem:[%s3517_s6 + $0x88] sm:$0xff] %v2776_v59   ;;  %v2771_v4 = vpack.c.bf16 %v1558_v1, %v1557_v58  ;;  %v1622_v5 = vsel %vm1366_vm7, %v1145_v55, %v1494_v61  ;;  %v1499_v6 = vmul.f32 0.2, %v3261_v63  ;;  %v902_v7 = vpop.f32.mrf.mxu0  ;;  %v1158_v8 = vpop.f32.mrf.mxu1  ;;  %vm1371_vm9 = vcmp.ge.f32.partialorder %v3261_v63, 0.0 }
 0x137   : > { %3056 = vst [vmem:[%s3517_s6 + $0x188] sm:$0xff] %v2936_v0   ;;  %v2931_v9 = vpack.c.bf16 %v1622_v5, %v1621_v3  ;;  %v1563_v10 = vsel %vm1307_vm8, %v3197_v62, %v1435_v2  ;;  %v1433_v11 = vmul.f32 0.2, %v902_v7  ;;  %vm1305_vm10 = vcmp.ge.f32.partialorder %v902_v7, 0.0 }
 0x138   : > { %3023 = vst [vmem:[%s3517_s6 + $0x80] sm:$0xff] %v2771_v4   ;;  %v3198_v12 = vpop.f32.mrf.mxu0  ;;  %v3262_v13 = vpop.f32.mrf.mxu1  ;;  %v1627_v15 = vsel %vm1371_vm9, %v3261_v63, %v1499_v6  ;;  %vm1369_vm13 = vcmp.ge.f32.partialorder %v1158_v8, 0.0  ;;  %v1497_v16 = vmul.f32 0.2, %v1158_v8 }
 0x139   : > { %3055 = vst [vmem:[%s3517_s6 + $0x180] sm:$0xff] %v2931_v9   ;;  %vm1308_vm11 = vcmp.ge.f32.partialorder %v3198_v12, 0.0  ;;  %v1436_v14 = vmul.f32 0.2, %v3198_v12  ;;  %vm1372_vm12 = vcmp.ge.f32.partialorder %v3262_v13, 0.0  ;;  %v1561_v22 = vsel %vm1305_vm10, %v902_v7, %v1433_v11 }
 0x13a   : > { %v1500_v17 = vmul.f32 0.2, %v3262_v13  ;;  %v905_v18 = vpop.f32.mrf.mxu0  ;;  %v1161_v19 = vpop.f32.mrf.mxu1  ;;  %v1625_v31 = vsel %vm1369_vm13, %v1158_v8, %v1497_v16 }
 0x13b   : > { %v1564_v20 = vsel %vm1308_vm11, %v3198_v12, %v1436_v14  ;;  %vm1306_vm14 = vcmp.ge.f32.partialorder %v905_v18, 0.0  ;;  %v1434_v21 = vmul.f32 0.2, %v905_v18  ;;  %vm1370_vm15 = vcmp.ge.f32.partialorder %v1161_v19, 0.0 }
 0x13c   : > { %v2786_v23 = vpack.c.bf16 %v1564_v20, %v1563_v10  ;;  %v1628_v24 = vsel %vm1372_vm12, %v3262_v13, %v1500_v17  ;;  %v1498_v25 = vmul.f32 0.2, %v1161_v19  ;;  %v3201_v26 = vpop.f32.mrf.mxu0  ;;  %v3265_v27 = vpop.f32.mrf.mxu1 }
 0x13d   : > { %v2946_v28 = vpack.c.bf16 %v1628_v24, %v1627_v15  ;;  %v1562_v29 = vsel %vm1306_vm14, %v905_v18, %v1434_v21  ;;  %vm1311_vm0 = vcmp.ge.f32.partialorder %v3201_v26, 0.0  ;;  %v1439_v30 = vmul.f32 0.2, %v3201_v26 }
 0x13e   : > { %3026 = vst [vmem:[%s3517_s6 + $0x98] sm:$0xff] %v2786_v23   ;;  %v2781_v32 = vpack.c.bf16 %v1562_v29, %v1561_v22  ;;  %v1626_v33 = vsel %vm1370_vm15, %v1161_v19, %v1498_v25  ;;  %v1503_v34 = vmul.f32 0.2, %v3265_v27  ;;  %v918_v35 = vpop.f32.mrf.mxu0  ;;  %v1174_v36 = vpop.f32.mrf.mxu1  ;;  %vm1375_vm1 = vcmp.ge.f32.partialorder %v3265_v27, 0.0 }
 0x13f   : > { %3058 = vst [vmem:[%s3517_s6 + $0x198] sm:$0xff] %v2946_v28   ;;  %v2941_v37 = vpack.c.bf16 %v1626_v33, %v1625_v31  ;;  %v1567_v38 = vsel %vm1311_vm0, %v3201_v26, %v1439_v30  ;;  %v1437_v39 = vmul.f32 0.2, %v918_v35  ;;  %vm1309_vm2 = vcmp.ge.f32.partialorder %v918_v35, 0.0 }
 0x140   : > { %3025 = vst [vmem:[%s3517_s6 + $0x90] sm:$0xff] %v2781_v32   ;;  %v3202_v40 = vpop.f32.mrf.mxu0  ;;  %v3266_v41 = vpop.f32.mrf.mxu1  ;;  %v1631_v43 = vsel %vm1375_vm1, %v3265_v27, %v1503_v34  ;;  %vm1373_vm5 = vcmp.ge.f32.partialorder %v1174_v36, 0.0  ;;  %v1501_v44 = vmul.f32 0.2, %v1174_v36 }
 0x141   : > { %3057 = vst [vmem:[%s3517_s6 + $0x190] sm:$0xff] %v2941_v37   ;;  %vm1312_vm3 = vcmp.ge.f32.partialorder %v3202_v40, 0.0  ;;  %v1440_v42 = vmul.f32 0.2, %v3202_v40  ;;  %vm1376_vm4 = vcmp.ge.f32.partialorder %v3266_v41, 0.0  ;;  %v1565_v50 = vsel %vm1309_vm2, %v918_v35, %v1437_v39 }
 0x142   : > { %v1504_v45 = vmul.f32 0.2, %v3266_v41  ;;  %v921_v46 = vpop.f32.mrf.mxu0  ;;  %v1177_v47 = vpop.f32.mrf.mxu1  ;;  %v1629_v59 = vsel %vm1373_vm5, %v1174_v36, %v1501_v44 }
 0x143   : > { %v1568_v48 = vsel %vm1312_vm3, %v3202_v40, %v1440_v42  ;;  %vm1310_vm6 = vcmp.ge.f32.partialorder %v921_v46, 0.0  ;;  %v1438_v49 = vmul.f32 0.2, %v921_v46  ;;  %vm1374_vm7 = vcmp.ge.f32.partialorder %v1177_v47, 0.0 }
 0x144   : > { %v2796_v51 = vpack.c.bf16 %v1568_v48, %v1567_v38  ;;  %v1632_v52 = vsel %vm1376_vm4, %v3266_v41, %v1504_v45  ;;  %v1502_v53 = vmul.f32 0.2, %v1177_v47  ;;  %v3205_v54 = vpop.f32.mrf.mxu0  ;;  %v3269_v55 = vpop.f32.mrf.mxu1 }
 0x145   : > { %v2956_v56 = vpack.c.bf16 %v1632_v52, %v1631_v43  ;;  %v1566_v57 = vsel %vm1310_vm6, %v921_v46, %v1438_v49  ;;  %vm1315_vm8 = vcmp.ge.f32.partialorder %v3205_v54, 0.0  ;;  %v1443_v58 = vmul.f32 0.2, %v3205_v54 }
 0x146   : > { %3028 = vst [vmem:[%s3517_s6 + $0xa8] sm:$0xff] %v2796_v51   ;;  %v2791_v60 = vpack.c.bf16 %v1566_v57, %v1565_v50  ;;  %v1630_v61 = vsel %vm1374_vm7, %v1177_v47, %v1502_v53  ;;  %v1507_v62 = vmul.f32 0.2, %v3269_v55  ;;  %v934_v63 = vpop.f32.mrf.mxu0  ;;  %v1190_v0 = vpop.f32.mrf.mxu1  ;;  %vm1379_vm9 = vcmp.ge.f32.partialorder %v3269_v55, 0.0 }
 0x147   : > { %3060 = vst [vmem:[%s3517_s6 + $0x1a8] sm:$0xff] %v2956_v56   ;;  %v2951_v1 = vpack.c.bf16 %v1630_v61, %v1629_v59  ;;  %v1571_v2 = vsel %vm1315_vm8, %v3205_v54, %v1443_v58  ;;  %v1441_v3 = vmul.f32 0.2, %v934_v63  ;;  %vm1313_vm10 = vcmp.ge.f32.partialorder %v934_v63, 0.0 }
 0x148   : > { %3027 = vst [vmem:[%s3517_s6 + $0xa0] sm:$0xff] %v2791_v60   ;;  %v3206_v4 = vpop.f32.mrf.mxu0  ;;  %v3270_v5 = vpop.f32.mrf.mxu1  ;;  %v1635_v7 = vsel %vm1379_vm9, %v3269_v55, %v1507_v62  ;;  %vm1377_vm13 = vcmp.ge.f32.partialorder %v1190_v0, 0.0  ;;  %v1505_v8 = vmul.f32 0.2, %v1190_v0 }
 0x149   : > { %3059 = vst [vmem:[%s3517_s6 + $0x1a0] sm:$0xff] %v2951_v1   ;;  %vm1316_vm11 = vcmp.ge.f32.partialorder %v3206_v4, 0.0  ;;  %v1444_v6 = vmul.f32 0.2, %v3206_v4  ;;  %vm1380_vm12 = vcmp.ge.f32.partialorder %v3270_v5, 0.0  ;;  %v1569_v14 = vsel %vm1313_vm10, %v934_v63, %v1441_v3 }
 0x14a   : > { %v1508_v9 = vmul.f32 0.2, %v3270_v5  ;;  %v937_v10 = vpop.f32.mrf.mxu0  ;;  %v1193_v11 = vpop.f32.mrf.mxu1  ;;  %v1633_v23 = vsel %vm1377_vm13, %v1190_v0, %v1505_v8 }
 0x14b   : > { %v1572_v12 = vsel %vm1316_vm11, %v3206_v4, %v1444_v6  ;;  %vm1314_vm14 = vcmp.ge.f32.partialorder %v937_v10, 0.0  ;;  %v1442_v13 = vmul.f32 0.2, %v937_v10  ;;  %vm1378_vm15 = vcmp.ge.f32.partialorder %v1193_v11, 0.0 }
 0x14c   : > { %v2806_v15 = vpack.c.bf16 %v1572_v12, %v1571_v2  ;;  %v1636_v16 = vsel %vm1380_vm12, %v3270_v5, %v1508_v9  ;;  %v1506_v17 = vmul.f32 0.2, %v1193_v11  ;;  %v3209_v18 = vpop.f32.mrf.mxu0  ;;  %v3273_v19 = vpop.f32.mrf.mxu1 }
 0x14d   : > { %v2966_v20 = vpack.c.bf16 %v1636_v16, %v1635_v7  ;;  %v1570_v21 = vsel %vm1314_vm14, %v937_v10, %v1442_v13  ;;  %vm1319_vm0 = vcmp.ge.f32.partialorder %v3209_v18, 0.0  ;;  %v1447_v22 = vmul.f32 0.2, %v3209_v18 }
 0x14e   : > { %3030 = vst [vmem:[%s3517_s6 + $0xb8] sm:$0xff] %v2806_v15   ;;  %v2801_v24 = vpack.c.bf16 %v1570_v21, %v1569_v14  ;;  %v1634_v25 = vsel %vm1378_vm15, %v1193_v11, %v1506_v17  ;;  %v1511_v26 = vmul.f32 0.2, %v3273_v19  ;;  %v950_v27 = vpop.f32.mrf.mxu0  ;;  %v1206_v28 = vpop.f32.mrf.mxu1  ;;  %vm1383_vm1 = vcmp.ge.f32.partialorder %v3273_v19, 0.0 }
 0x14f   : > { %3062 = vst [vmem:[%s3517_s6 + $0x1b8] sm:$0xff] %v2966_v20   ;;  %v2961_v29 = vpack.c.bf16 %v1634_v25, %v1633_v23  ;;  %v1575_v30 = vsel %vm1319_vm0, %v3209_v18, %v1447_v22  ;;  %v1445_v31 = vmul.f32 0.2, %v950_v27  ;;  %vm1317_vm2 = vcmp.ge.f32.partialorder %v950_v27, 0.0 }
 0x150   : > { %3029 = vst [vmem:[%s3517_s6 + $0xb0] sm:$0xff] %v2801_v24   ;;  %v3210_v32 = vpop.f32.mrf.mxu0  ;;  %v3274_v33 = vpop.f32.mrf.mxu1  ;;  %v1639_v35 = vsel %vm1383_vm1, %v3273_v19, %v1511_v26  ;;  %vm1381_vm5 = vcmp.ge.f32.partialorder %v1206_v28, 0.0  ;;  %v1509_v36 = vmul.f32 0.2, %v1206_v28 }
 0x151   : > { %3061 = vst [vmem:[%s3517_s6 + $0x1b0] sm:$0xff] %v2961_v29   ;;  %vm1320_vm3 = vcmp.ge.f32.partialorder %v3210_v32, 0.0  ;;  %v1448_v34 = vmul.f32 0.2, %v3210_v32  ;;  %vm1384_vm4 = vcmp.ge.f32.partialorder %v3274_v33, 0.0  ;;  %v1573_v42 = vsel %vm1317_vm2, %v950_v27, %v1445_v31 }
 0x152   : > { %v1512_v37 = vmul.f32 0.2, %v3274_v33  ;;  %v953_v38 = vpop.f32.mrf.mxu0  ;;  %v1209_v39 = vpop.f32.mrf.mxu1  ;;  %v1637_v51 = vsel %vm1381_vm5, %v1206_v28, %v1509_v36 }
 0x153   : > { %v1576_v40 = vsel %vm1320_vm3, %v3210_v32, %v1448_v34  ;;  %vm1318_vm6 = vcmp.ge.f32.partialorder %v953_v38, 0.0  ;;  %v1446_v41 = vmul.f32 0.2, %v953_v38  ;;  %vm1382_vm7 = vcmp.ge.f32.partialorder %v1209_v39, 0.0 }
 0x154   : > { %v2816_v43 = vpack.c.bf16 %v1576_v40, %v1575_v30  ;;  %v1640_v44 = vsel %vm1384_vm4, %v3274_v33, %v1512_v37  ;;  %v1510_v45 = vmul.f32 0.2, %v1209_v39  ;;  %v3213_v46 = vpop.f32.mrf.mxu0  ;;  %v3277_v47 = vpop.f32.mrf.mxu1 }
 0x155   : > { %v2976_v48 = vpack.c.bf16 %v1640_v44, %v1639_v35  ;;  %v1574_v49 = vsel %vm1318_vm6, %v953_v38, %v1446_v41  ;;  %vm1323_vm8 = vcmp.ge.f32.partialorder %v3213_v46, 0.0  ;;  %v1451_v50 = vmul.f32 0.2, %v3213_v46 }
 0x156   : > { %3032 = vst [vmem:[%s3517_s6 + $0xc8] sm:$0xff] %v2816_v43   ;;  %v2811_v52 = vpack.c.bf16 %v1574_v49, %v1573_v42  ;;  %v1638_v53 = vsel %vm1382_vm7, %v1209_v39, %v1510_v45  ;;  %v1515_v54 = vmul.f32 0.2, %v3277_v47  ;;  %v966_v55 = vpop.f32.mrf.mxu0  ;;  %v1222_v56 = vpop.f32.mrf.mxu1  ;;  %vm1387_vm9 = vcmp.ge.f32.partialorder %v3277_v47, 0.0 }
 0x157   : > { %3064 = vst [vmem:[%s3517_s6 + $0x1c8] sm:$0xff] %v2976_v48   ;;  %v2971_v57 = vpack.c.bf16 %v1638_v53, %v1637_v51  ;;  %v1579_v58 = vsel %vm1323_vm8, %v3213_v46, %v1451_v50  ;;  %v1449_v59 = vmul.f32 0.2, %v966_v55  ;;  %vm1321_vm10 = vcmp.ge.f32.partialorder %v966_v55, 0.0 }
 0x158   : > { %3031 = vst [vmem:[%s3517_s6 + $0xc0] sm:$0xff] %v2811_v52   ;;  %v3214_v60 = vpop.f32.mrf.mxu0  ;;  %v3278_v61 = vpop.f32.mrf.mxu1  ;;  %v1643_v63 = vsel %vm1387_vm9, %v3277_v47, %v1515_v54  ;;  %vm1385_vm13 = vcmp.ge.f32.partialorder %v1222_v56, 0.0  ;;  %v1513_v0 = vmul.f32 0.2, %v1222_v56 }
 0x159   : > { %3063 = vst [vmem:[%s3517_s6 + $0x1c0] sm:$0xff] %v2971_v57   ;;  %vm1324_vm11 = vcmp.ge.f32.partialorder %v3214_v60, 0.0  ;;  %v1452_v62 = vmul.f32 0.2, %v3214_v60  ;;  %vm1388_vm12 = vcmp.ge.f32.partialorder %v3278_v61, 0.0  ;;  %v1577_v6 = vsel %vm1321_vm10, %v966_v55, %v1449_v59 }
 0x15a   : > { %v1516_v1 = vmul.f32 0.2, %v3278_v61  ;;  %v969_v2 = vpop.f32.mrf.mxu0  ;;  %v1225_v3 = vpop.f32.mrf.mxu1  ;;  %v1641_v15 = vsel %vm1385_vm13, %v1222_v56, %v1513_v0 }
 0x15b   : > { %v1580_v4 = vsel %vm1324_vm11, %v3214_v60, %v1452_v62  ;;  %vm1322_vm14 = vcmp.ge.f32.partialorder %v969_v2, 0.0  ;;  %v1450_v5 = vmul.f32 0.2, %v969_v2  ;;  %vm1386_vm15 = vcmp.ge.f32.partialorder %v1225_v3, 0.0 }
 0x15c   : > { %v2826_v7 = vpack.c.bf16 %v1580_v4, %v1579_v58  ;;  %v1644_v8 = vsel %vm1388_vm12, %v3278_v61, %v1516_v1  ;;  %v1514_v9 = vmul.f32 0.2, %v1225_v3  ;;  %v3217_v10 = vpop.f32.mrf.mxu0  ;;  %v3281_v11 = vpop.f32.mrf.mxu1 }
 0x15d   : > { %v2986_v12 = vpack.c.bf16 %v1644_v8, %v1643_v63  ;;  %v1578_v13 = vsel %vm1322_vm14, %v969_v2, %v1450_v5  ;;  %vm1327_vm0 = vcmp.ge.f32.partialorder %v3217_v10, 0.0  ;;  %v1455_v14 = vmul.f32 0.2, %v3217_v10 }
 0x15e   : > { %3034 = vst [vmem:[%s3517_s6 + $0xd8] sm:$0xff] %v2826_v7   ;;  %v2821_v16 = vpack.c.bf16 %v1578_v13, %v1577_v6  ;;  %v1642_v17 = vsel %vm1386_vm15, %v1225_v3, %v1514_v9  ;;  %v1519_v18 = vmul.f32 0.2, %v3281_v11  ;;  %v982_v19 = vpop.f32.mrf.mxu0  ;;  %v1238_v20 = vpop.f32.mrf.mxu1  ;;  %vm1391_vm1 = vcmp.ge.f32.partialorder %v3281_v11, 0.0 }
 0x15f   : > { %3066 = vst [vmem:[%s3517_s6 + $0x1d8] sm:$0xff] %v2986_v12   ;;  %v2981_v21 = vpack.c.bf16 %v1642_v17, %v1641_v15  ;;  %v1583_v22 = vsel %vm1327_vm0, %v3217_v10, %v1455_v14  ;;  %v1453_v23 = vmul.f32 0.2, %v982_v19  ;;  %vm1325_vm2 = vcmp.ge.f32.partialorder %v982_v19, 0.0 }
 0x160   : > { %3033 = vst [vmem:[%s3517_s6 + $0xd0] sm:$0xff] %v2821_v16   ;;  %v3218_v24 = vpop.f32.mrf.mxu0  ;;  %v3282_v25 = vpop.f32.mrf.mxu1  ;;  %v1647_v27 = vsel %vm1391_vm1, %v3281_v11, %v1519_v18  ;;  %vm1389_vm5 = vcmp.ge.f32.partialorder %v1238_v20, 0.0  ;;  %v1517_v28 = vmul.f32 0.2, %v1238_v20 }
 0x161   : > { %3065 = vst [vmem:[%s3517_s6 + $0x1d0] sm:$0xff] %v2981_v21   ;;  %vm1328_vm3 = vcmp.ge.f32.partialorder %v3218_v24, 0.0  ;;  %v1456_v26 = vmul.f32 0.2, %v3218_v24  ;;  %vm1392_vm4 = vcmp.ge.f32.partialorder %v3282_v25, 0.0  ;;  %v1581_v34 = vsel %vm1325_vm2, %v982_v19, %v1453_v23 }
 0x162   : > { %v1520_v29 = vmul.f32 0.2, %v3282_v25  ;;  %v985_v30 = vpop.f32.mrf.mxu0  ;;  %v1241_v31 = vpop.f32.mrf.mxu1  ;;  %v1645_v43 = vsel %vm1389_vm5, %v1238_v20, %v1517_v28 }
 0x163   : > { %v1584_v32 = vsel %vm1328_vm3, %v3218_v24, %v1456_v26  ;;  %vm1326_vm6 = vcmp.ge.f32.partialorder %v985_v30, 0.0  ;;  %v1454_v33 = vmul.f32 0.2, %v985_v30  ;;  %vm1390_vm7 = vcmp.ge.f32.partialorder %v1241_v31, 0.0 }
 0x164   : > { %v2836_v35 = vpack.c.bf16 %v1584_v32, %v1583_v22  ;;  %v1648_v36 = vsel %vm1392_vm4, %v3282_v25, %v1520_v29  ;;  %v1518_v37 = vmul.f32 0.2, %v1241_v31  ;;  %v3221_v38 = vpop.f32.mrf.mxu0  ;;  %v3285_v39 = vpop.f32.mrf.mxu1 }
 0x165   : > { %v2996_v40 = vpack.c.bf16 %v1648_v36, %v1647_v27  ;;  %v1582_v41 = vsel %vm1326_vm6, %v985_v30, %v1454_v33  ;;  %vm1331_vm8 = vcmp.ge.f32.partialorder %v3221_v38, 0.0  ;;  %v1459_v42 = vmul.f32 0.2, %v3221_v38 }
 0x166   : > { %3036 = vst [vmem:[%s3517_s6 + $0xe8] sm:$0xff] %v2836_v35   ;;  %v2831_v44 = vpack.c.bf16 %v1582_v41, %v1581_v34  ;;  %v1646_v45 = vsel %vm1390_vm7, %v1241_v31, %v1518_v37  ;;  %v998_v46 = vpop.f32.mrf.mxu0  ;;  %v1254_v47 = vpop.f32.mrf.mxu1  ;;  %vm1395_vm9 = vcmp.ge.f32.partialorder %v3285_v39, 0.0  ;;  %v1523_v50 = vmul.f32 0.2, %v3285_v39 }
 0x167   : > { %3068 = vst [vmem:[%s3517_s6 + $0x1e8] sm:$0xff] %v2996_v40   ;;  %v2991_v48 = vpack.c.bf16 %v1646_v45, %v1645_v43  ;;  %v1587_v49 = vsel %vm1331_vm8, %v3221_v38, %v1459_v42  ;;  %v1457_v53 = vmul.f32 0.2, %v998_v46  ;;  %vm1329_vm12 = vcmp.ge.f32.partialorder %v998_v46, 0.0 }
 0x168   : > { %3035 = vst [vmem:[%s3517_s6 + $0xe0] sm:$0xff] %v2831_v44   ;;  %v3222_v51 = vpop.f32.mrf.mxu0  ;;  %v3286_v52 = vpop.f32.mrf.mxu1  ;;  %vm1393_vm13 = vcmp.ge.f32.partialorder %v1254_v47, 0.0  ;;  %v1521_v55 = vmul.f32 0.2, %v1254_v47  ;;  %v1651_v61 = vsel %vm1395_vm9, %v3285_v39, %v1523_v50 }
 0x169   : > { %3067 = vst [vmem:[%s3517_s6 + $0x1e0] sm:$0xff] %v2991_v48   ;;  %vm1332_vm10 = vcmp.ge.f32.partialorder %v3222_v51, 0.0  ;;  %v1460_v54 = vmul.f32 0.2, %v3222_v51  ;;  %vm1396_vm11 = vcmp.ge.f32.partialorder %v3286_v52, 0.0  ;;  %v1585_v1 = vsel %vm1329_vm12, %v998_v46, %v1457_v53 }
 0x16a   : > { %v1524_v56 = vmul.f32 0.2, %v3286_v52  ;;  %v1001_v57 = vpop.f32.mrf.mxu0  ;;  %v1257_v58 = vpop.f32.mrf.mxu1  ;;  %v1649_v4 = vsel %vm1393_vm13, %v1254_v47, %v1521_v55 }
 0x16b   : > { %v1588_v59 = vsel %vm1332_vm10, %v3222_v51, %v1460_v54  ;;  %vm1330_vm14 = vcmp.ge.f32.partialorder %v1001_v57, 0.0  ;;  %v1458_v60 = vmul.f32 0.2, %v1001_v57  ;;  %vm1394_vm15 = vcmp.ge.f32.partialorder %v1257_v58, 0.0 }
 0x16c   : > { %v2846_v62 = vpack.c.bf16 %v1588_v59, %v1587_v49  ;;  %v1652_v63 = vsel %vm1396_vm11, %v3286_v52, %v1524_v56  ;;  %v1522_v0 = vmul.f32 0.2, %v1257_v58 }
 0x16d   : > { %v3006_v2 = vpack.c.bf16 %v1652_v63, %v1651_v61  ;;  %v1586_v3 = vsel %vm1330_vm14, %v1001_v57, %v1458_v60 }
 0x16e   : > { %3038 = vst [vmem:[%s3517_s6 + $0xf8] sm:$0xff] %v2846_v62   ;;  %v2841_v5 = vpack.c.bf16 %v1586_v3, %v1585_v1  ;;  %v1650_v6 = vsel %vm1394_vm15, %v1257_v58, %v1522_v0 }
 0x16f   : > { %3070 = vst [vmem:[%s3517_s6 + $0x1f8] sm:$0xff] %v3006_v2   ;;  %v3001_v7 = vpack.c.bf16 %v1650_v6, %v1649_v4 }
 0x170   : > { %3037 = vst [vmem:[%s3517_s6 + $0xf0] sm:$0xff] %v2841_v5  }
 0x171   : > { %3069 = vst [vmem:[%s3517_s6 + $0x1f0] sm:$0xff] %v3001_v7  }
 0x172 PF: > { %s12_s9 = sadd.s32 1, %s3389_s9  }
 0x173   : > { %p9_p4 = scmp.ge.s32.totalorder %s12_s9, 4  }
 0x175   :  { %11 = sbr.rel (!%p9_p4) target bundleno = 1 (0x1), region = 58 }

// kernel: discriminator_forward.5
= control target key start
LH: loop header
LB: loop body
LE: loop exit
PB: predicated region body
PF: predicated region fallthrough
CT: control target
= control target key end

     0   :  { %v12956_v0 = vmov 0   ;;  %s12951_s1 = inlined_call_operand.vmem [shape: bf16[2048,128], index: 1, kind: input, shape index: {}]   ;;  %s12952_s0 = inlined_call_operand.vmem [shape: bf16[512,2048], index: 0, kind: input, shape index: {}]   ;;  %s12953_s2 = inlined_call_operand.vmem [shape: f32[1,128], index: 2, kind: input, shape index: {}]   ;;  %s12954_s3 = inlined_call_operand.vmem [shape: f32[1,128], index: 3, kind: input, shape index: {}]   ;;  %s12955_s4 = inlined_call_operand.vmem [shape: bf16[512,128], index: 4, kind: output, shape index: {}]  }
   0x1   :  { %4114 = vmatprep.subr.bf16.mxu0 %v12956_v0  ;;  %4403 = vmatprep.subr.bf16.mxu1 %v12956_v0  ;;  %v8324_v1 = vld [vmem:[%s12951_s1 + $0x38] sm:$0xff]   ;;  %v8326_v3 = vld [vmem:[%s12951_s1 + $0x30] sm:$0xff]   ;;  %v8328_v5 = vld [vmem:[%s12951_s1 + $0x28] sm:$0xff]  }
   0x2   :  { %v8325_v2 = vld [vmem:[%s12951_s1 + $0xb8] sm:$0xff]   ;;  %4115 = vmatpush1.bf16.msra.mxu0 %v8324_v1  ;;  %v8327_v4 = vld [vmem:[%s12951_s1 + $0xb0] sm:$0xff]   ;;  %v8329_v6 = vld [vmem:[%s12951_s1 + $0xa8] sm:$0xff]  }
   0x3   :  { %4404 = vmatpush1.bf16.msra.mxu1 %v8325_v2  ;;  %4116 = vmatprep.subr.bf16.mxu0 %v12956_v0  ;;  %v8330_v7 = vld [vmem:[%s12951_s1 + $0x20] sm:$0xff]   ;;  %v8332_v9 = vld [vmem:[%s12951_s1 + $0x18] sm:$0xff]   ;;  %v8334_v11 = vld [vmem:[%s12951_s1 + $0x10] sm:$0xff]  }
   0x4   :  { %4405 = vmatprep.subr.bf16.mxu1 %v12956_v0  ;;  %v8331_v8 = vld [vmem:[%s12951_s1 + $0xa0] sm:$0xff]   ;;  %v8333_v10 = vld [vmem:[%s12951_s1 + $0x98] sm:$0xff]   ;;  %v8335_v12 = vld [vmem:[%s12951_s1 + $0x90] sm:$0xff]  }
   0x5   :  { %v8336_v13 = vld [vmem:[%s12951_s1 + $0x8] sm:$0xff]   ;;  %v8338_v15 = vld [vmem:[%s12951_s1] sm:$0xff]   ;;  %v8340_v17 = vld [vmem:[%s12951_s1 + $0x78] sm:$0xff]  }
   0x6   :  { %4117 = vmatpush1.bf16.msra.mxu0 %v8326_v3  ;;  %v8337_v14 = vld [vmem:[%s12951_s1 + $0x88] sm:$0xff]   ;;  %v8339_v16 = vld [vmem:[%s12951_s1 + $0x80] sm:$0xff]   ;;  %v8341_v18 = vld [vmem:[%s12951_s1 + $0xf8] sm:$0xff]  }
   0x7   :  { %4406 = vmatpush1.bf16.msra.mxu1 %v8327_v4  ;;  %4118 = vmatprep.subr.bf16.mxu0 %v12956_v0  ;;  %v8557_v19 = vld [vmem:[%s12952_s0] sm:$0xff]  ;;  %v8567_v21 = vld [vmem:[%s12952_s0 + $0x8] sm:$0xff]  ;;  %v8342_v24 = vld [vmem:[%s12951_s1 + $0x70] sm:$0xff]  }
   0x8   :  { %4407 = vmatprep.subr.bf16.mxu1 %v12956_v0  ;;  %v8562_v20 = vld [vmem:[%s12952_s0 + $0x40] sm:$0xff]  ;;  %v8574_v23 = vld [vmem:[%s12952_s0 + $0x48] sm:$0xff]  ;;  %v8343_v26 = vld [vmem:[%s12951_s1 + $0xf0] sm:$0xff]  }
   0x9   :  { %v7364_v22 = vcombine.high %v8557_v19, %v8562_v20  ;;  %v7366_v25 = vcombine.high %v8567_v21, %v8574_v23  ;;  %v8344_v27 = vld [vmem:[%s12951_s1 + $0x68] sm:$0xff]   ;;  %v8346_v29 = vld [vmem:[%s12951_s1 + $0x60] sm:$0xff]   ;;  %v8348_v31 = vld [vmem:[%s12951_s1 + $0x58] sm:$0xff]   ;;  %v7363_v42 = vcombine.low %v8557_v19, %v8562_v20  ;;  %v7365_v44 = vcombine.low %v8567_v21, %v8574_v23 }
   0xa   :  { %4119 = vmatpush1.bf16.msra.mxu0 %v8328_v5  ;;  %v8345_v28 = vld [vmem:[%s12951_s1 + $0xe8] sm:$0xff]   ;;  %v8347_v30 = vld [vmem:[%s12951_s1 + $0xe0] sm:$0xff]   ;;  %v8349_v32 = vld [vmem:[%s12951_s1 + $0xd8] sm:$0xff]  }
   0xb   :  { %4408 = vmatpush1.bf16.msra.mxu1 %v8329_v6  ;;  %4120 = vmatprep.subr.bf16.mxu0 %v12956_v0  ;;  %v8350_v33 = vld [vmem:[%s12951_s1 + $0x50] sm:$0xff]   ;;  %v8352_v35 = vld [vmem:[%s12951_s1 + $0x48] sm:$0xff]   ;;  %v8354_v37 = vld [vmem:[%s12951_s1 + $0x40] sm:$0xff]  }
   0xc   :  { %4409 = vmatprep.subr.bf16.mxu1 %v12956_v0  ;;  %4146 = vmatprep.mubr.bf16.mxu0 %v7364_v22  ;;  %v8351_v34 = vld [vmem:[%s12951_s1 + $0xd0] sm:$0xff]   ;;  %v8353_v36 = vld [vmem:[%s12951_s1 + $0xc8] sm:$0xff]   ;;  %v8355_v38 = vld [vmem:[%s12951_s1 + $0xc0] sm:$0xff]  }
   0xd   :  { %4435 = vmatprep.mubr.bf16.mxu1 %v7366_v25  ;;  %v34_v39 = vld [vmem:[%s12952_s0 + $0x80] sm:$0xff]  ;;  %v35_v41 = vld [vmem:[%s12952_s0 + $0x88] sm:$0xff]  ;;  %v8356_v45 = vld [vmem:[%s12951_s1 + $0x138] sm:$0xff]  }
   0xe   :  { %4121 = vmatpush1.bf16.msra.mxu0 %v8330_v7  ;;  %v42_v40 = vld [vmem:[%s12952_s0 + $0xc0] sm:$0xff]  ;;  %v43_v43 = vld [vmem:[%s12952_s0 + $0xc8] sm:$0xff]  ;;  %v8357_v46 = vld [vmem:[%s12951_s1 + $0x1b8] sm:$0xff]  }
   0xf   :  { %4410 = vmatpush1.bf16.msra.mxu1 %v8331_v8  ;;  %4122 = vmatprep.subr.bf16.mxu0 %v12956_v0  ;;  %v7380_v47 = vcombine.high %v34_v39, %v42_v40  ;;  %v7382_v48 = vcombine.high %v35_v41, %v43_v43  ;;  %v50_v49 = vld [vmem:[%s12952_s0 + $0x100] sm:$0xff]  ;;  %v8358_v51 = vld [vmem:[%s12951_s1 + $0x130] sm:$0xff]   ;;  %v51_v53 = vld [vmem:[%s12952_s0 + $0x108] sm:$0xff]  ;;  %v7379_v55 = vcombine.low %v34_v39, %v42_v40 }
  0x10   :  { %4411 = vmatprep.subr.bf16.mxu1 %v12956_v0  ;;  %v58_v50 = vld [vmem:[%s12952_s0 + $0x140] sm:$0xff]  ;;  %v8359_v52 = vld [vmem:[%s12951_s1 + $0x1b0] sm:$0xff]   ;;  %v59_v54 = vld [vmem:[%s12952_s0 + $0x148] sm:$0xff]  ;;  %v7381_v56 = vcombine.low %v35_v41, %v43_v43 }
  0x11   :  { %v7396_v57 = vcombine.high %v50_v49, %v58_v50  ;;  %v7398_v58 = vcombine.high %v51_v53, %v59_v54  ;;  %v8360_v59 = vld [vmem:[%s12951_s1 + $0x128] sm:$0xff]   ;;  %v66_v61 = vld [vmem:[%s12952_s0 + $0x180] sm:$0xff]  ;;  %v7395_v4 = vcombine.low %v50_v49, %v58_v50  ;;  %v8364_v5 = vld [vmem:[%s12951_s1 + $0x118] sm:$0xff]   ;;  %v7397_v6 = vcombine.low %v51_v53, %v59_v54 }
  0x12   :  { %4123 = vmatpush1.bf16.msra.mxu0 %v8332_v9  ;;  %v8361_v60 = vld [vmem:[%s12951_s1 + $0x1a8] sm:$0xff]   ;;  %v74_v62 = vld [vmem:[%s12952_s0 + $0x1c0] sm:$0xff]  ;;  %v8365_v8 = vld [vmem:[%s12951_s1 + $0x198] sm:$0xff]  }
  0x13   :  { %4412 = vmatpush1.bf16.msra.mxu1 %v8333_v10  ;;  %4124 = vmatprep.subr.bf16.mxu0 %v12956_v0  ;;  %v67_v63 = vld [vmem:[%s12952_s0 + $0x188] sm:$0xff]  ;;  %v8362_v2 = vld [vmem:[%s12951_s1 + $0x120] sm:$0xff]   ;;  %v7412_v7 = vcombine.high %v66_v61, %v74_v62  ;;  %v8375_v39 = vld [vmem:[%s12951_s1 + $0x1f0] sm:$0xff]  }
  0x14   :  { %4413 = vmatprep.subr.bf16.mxu1 %v12956_v0  ;;  %v75_v1 = vld [vmem:[%s12952_s0 + $0x1c8] sm:$0xff]  ;;  %v8363_v3 = vld [vmem:[%s12951_s1 + $0x1a0] sm:$0xff]  }
  0x15   :  { %v7414_v9 = vcombine.high %v67_v63, %v75_v1  ;;  %v82_v10 = vld [vmem:[%s12952_s0 + $0x200] sm:$0xff]  ;;  %v8369_v20 = vld [vmem:[%s12951_s1 + $0x188] sm:$0xff]  }
  0x16   :  { %4125 = vmatpush1.bf16.msra.mxu0 %v8334_v11  ;;  %v90_v11 = vld [vmem:[%s12952_s0 + $0x240] sm:$0xff]  ;;  %v107_v25 = vld [vmem:[%s12952_s0 + $0x2c8] sm:$0xff] }
  0x17   :  { %4414 = vmatpush1.bf16.msra.mxu1 %v8335_v12  ;;  %4126 = vmatprep.subr.bf16.mxu0 %v12956_v0  ;;  %v83_v12 = vld [vmem:[%s12952_s0 + $0x208] sm:$0xff]  ;;  %v7428_v19 = vcombine.high %v82_v10, %v90_v11  ;;  %v98_v22 = vld [vmem:[%s12952_s0 + $0x280] sm:$0xff] }
  0x18   :  { %4415 = vmatprep.subr.bf16.mxu1 %v12956_v0  ;;  %v106_v23 = vld [vmem:[%s12952_s0 + $0x2c0] sm:$0xff]  ;;  %v8376_v41 = vld [vmem:[%s12951_s1 + $0x168] sm:$0xff]  }
  0x19   :  { %v7443_v40 = vcombine.low %v98_v22, %v106_v23  ;;  %v139_v49 = vld [vmem:[%s12952_s0 + $0x3c8] sm:$0xff]  ;;  %v146_v54 = vld [vmem:[%s12952_s0 + $0x400] sm:$0xff] }
  0x1a   :  { %4127 = vmatpush1.bf16.msra.mxu0 %v8336_v13  ;;  %v91_v13 = vld [vmem:[%s12952_s0 + $0x248] sm:$0xff] }
  0x1b   :  { %4416 = vmatpush1.bf16.msra.mxu1 %v8337_v14  ;;  %4128 = vmatprep.subr.bf16.mxu0 %v12956_v0  ;;  %v8366_v14 = vld [vmem:[%s12951_s1 + $0x110] sm:$0xff]   ;;  %v7430_v21 = vcombine.high %v83_v12, %v91_v13 }
  0x1c   :  { %4417 = vmatprep.subr.bf16.mxu1 %v12956_v0 }
  0x1e   :  { %4129 = vmatpush1.bf16.msra.mxu0 %v8338_v15  ;;  %v8367_v15 = vld [vmem:[%s12951_s1 + $0x190] sm:$0xff]  }
  0x1f   :  { %4418 = vmatpush1.bf16.msra.mxu1 %v8339_v16  ;;  %4130 = vmatprep.subr.bf16.mxu0 %v12956_v0  ;;  %v7411_v16 = vcombine.low %v66_v61, %v74_v62 }
  0x20   :  { %4419 = vmatprep.subr.bf16.mxu1 %v12956_v0 }
  0x22   :  { %4131 = vmatpush2.bf16.msra.mxu0 %v8340_v17  ;;  %v8368_v17 = vld [vmem:[%s12951_s1 + $0x108] sm:$0xff]  }
  0x23   :  { %4420 = vmatpush2.bf16.msra.mxu1 %v8341_v18  ;;  %4132 = vmatprep.subr.bf16.mxu0 %v12956_v0  ;;  %v7413_v18 = vcombine.low %v67_v63, %v75_v1  ;;  %v162_v1 = vld [vmem:[%s12952_s0 + $0x480] sm:$0xff] }
  0x24   :  { %4421 = vmatprep.subr.bf16.mxu1 %v12956_v0 }
  0x26   :  { %4133 = vmatpush2.bf16.msra.mxu0 %v8342_v24  ;;  %v99_v24 = vld [vmem:[%s12952_s0 + $0x288] sm:$0xff] }
  0x27   :  { %4422 = vmatpush2.bf16.msra.mxu1 %v8343_v26  ;;  %4134 = vmatprep.subr.bf16.mxu0 %v12956_v0  ;;  %v8370_v26 = vld [vmem:[%s12951_s1 + $0x100] sm:$0xff]  }
  0x28   :  { %4423 = vmatprep.subr.bf16.mxu1 %v12956_v0 }
  0x2a   :  { %4135 = vmatpush2.bf16.msra.mxu0 %v8344_v27  ;;  %v8371_v27 = vld [vmem:[%s12951_s1 + $0x180] sm:$0xff]  }
  0x2b   :  { %4424 = vmatpush2.bf16.msra.mxu1 %v8345_v28  ;;  %4136 = vmatprep.subr.bf16.mxu0 %v12956_v0  ;;  %v7427_v28 = vcombine.low %v82_v10, %v90_v11  ;;  %v186_v10 = vld [vmem:[%s12952_s0 + $0x540] sm:$0xff]  ;;  %v179_v11 = vld [vmem:[%s12952_s0 + $0x508] sm:$0xff] }
  0x2c   :  { %4425 = vmatprep.subr.bf16.mxu1 %v12956_v0 }
  0x2e   :  { %4137 = vmatpush2.bf16.msra.mxu0 %v8346_v29  ;;  %v8372_v29 = vld [vmem:[%s12951_s1 + $0x178] sm:$0xff]  }
  0x2f   :  { %4426 = vmatpush2.bf16.msra.mxu1 %v8347_v30  ;;  %4138 = vmatprep.subr.bf16.mxu0 %v12956_v0  ;;  %v7429_v30 = vcombine.low %v83_v12, %v91_v13  ;;  %v187_v12 = vld [vmem:[%s12952_s0 + $0x548] sm:$0xff]  ;;  %v8380_v13 = vld [vmem:[%s12951_s1 + $0x158] sm:$0xff]  }
  0x30   :  { %4427 = vmatprep.subr.bf16.mxu1 %v12956_v0 }
  0x32   :  { %4139 = vmatpush2.bf16.msra.mxu0 %v8348_v31  ;;  %v7444_v31 = vcombine.high %v98_v22, %v106_v23  ;;  %v203_v22 = vld [vmem:[%s12952_s0 + $0x5c8] sm:$0xff] }
  0x33   :  { %4428 = vmatpush2.bf16.msra.mxu1 %v8349_v32  ;;  %4140 = vmatprep.subr.bf16.mxu0 %v12956_v0  ;;  %v8373_v32 = vld [vmem:[%s12951_s1 + $0x1f8] sm:$0xff]  }
  0x34   :  { %4429 = vmatprep.subr.bf16.mxu1 %v12956_v0 }
  0x36   :  { %4141 = vmatpush2.bf16.msra.mxu0 %v8350_v33  ;;  %v7446_v33 = vcombine.high %v99_v24, %v107_v25 }
  0x37   :  { %4430 = vmatpush2.bf16.msra.mxu1 %v8351_v34  ;;  %4142 = vmatprep.subr.bf16.mxu0 %v12956_v0  ;;  %v114_v34 = vld [vmem:[%s12952_s0 + $0x300] sm:$0xff] }
  0x38   :  { %4431 = vmatprep.subr.bf16.mxu1 %v12956_v0 }
  0x3a   :  { %4143 = vmatpush2.bf16.msra.mxu0 %v8352_v35  ;;  %v122_v35 = vld [vmem:[%s12952_s0 + $0x340] sm:$0xff] }
  0x3b   :  { %4432 = vmatpush2.bf16.msra.mxu1 %v8353_v36  ;;  %4144 = vmatprep.subr.bf16.mxu0 %v12956_v0  ;;  %v115_v36 = vld [vmem:[%s12952_s0 + $0x308] sm:$0xff]  ;;  %v7460_v43 = vcombine.high %v114_v34, %v122_v35  ;;  %v7459_v50 = vcombine.low %v114_v34, %v122_v35 }
  0x3c   :  { %4433 = vmatprep.subr.bf16.mxu1 %v12956_v0 }
  0x3e   :  { %4145 = vmatpush2.bf16.msra.mxu0 %v8354_v37  ;;  %v123_v37 = vld [vmem:[%s12952_s0 + $0x348] sm:$0xff] }
  0x3f   :  { %4434 = vmatpush2.bf16.msra.mxu1 %v8355_v38  ;;  %4692 = vmatprep.subr.bf16.mxu0 %v12956_v0  ;;  %v8374_v38 = vld [vmem:[%s12951_s1 + $0x170] sm:$0xff]  }
  0x40   :  { %4981 = vmatprep.subr.bf16.mxu1 %v12956_v0 }
  0x41   :  { %4147 = vmatmul.mubr.bf16.vlgmr.msra.gmra.mxu0 %v7363_v42  ;;  %v7445_v42 = vcombine.low %v99_v24, %v107_v25  ;;  %v7525_v24 = vcombine.low %v179_v11, %v187_v12 }
  0x42   :  { %4436 = vmatmul.mubr.bf16.vlgmr.msra.gmra.mxu1 %v7365_v44  ;;  %4693 = vmatpush1.bf16.msra.mxu0 %v8356_v45  ;;  %v8377_v44 = vld [vmem:[%s12951_s1 + $0x1e8] sm:$0xff]   ;;  %v7462_v45 = vcombine.high %v115_v36, %v123_v37 }
  0x43   :  { %4982 = vmatpush1.bf16.msra.mxu1 %v8357_v46  ;;  %4154 = vmatprep.mubr.bf16.mxu0 %v7380_v47  ;;  %v130_v46 = vld [vmem:[%s12952_s0 + $0x380] sm:$0xff] }
  0x44   :  { %4443 = vmatprep.mubr.bf16.mxu1 %v7382_v48  ;;  %4694 = vmatprep.subr.bf16.mxu0 %v12956_v0  ;;  %v138_v47 = vld [vmem:[%s12952_s0 + $0x3c0] sm:$0xff]  ;;  %v131_v48 = vld [vmem:[%s12952_s0 + $0x388] sm:$0xff] }
  0x45   :  { %4983 = vmatprep.subr.bf16.mxu1 %v12956_v0  ;;  %v7478_v53 = vcombine.high %v131_v48, %v139_v49  ;;  %v7477_v61 = vcombine.low %v131_v48, %v139_v49  ;;  %v243_v48 = vld [vmem:[%s12952_s0 + $0x708] sm:$0xff] }
  0x46   :  { %4695 = vmatpush1.bf16.msra.mxu0 %v8358_v51  ;;  %v7461_v51 = vcombine.low %v115_v36, %v123_v37  ;;  %v226_v37 = vld [vmem:[%s12952_s0 + $0x680] sm:$0xff]  ;;  %v251_v49 = vld [vmem:[%s12952_s0 + $0x748] sm:$0xff] }
  0x47   :  { %4984 = vmatpush1.bf16.msra.mxu1 %v8359_v52  ;;  %4696 = vmatprep.subr.bf16.mxu0 %v12956_v0  ;;  %v7476_v52 = vcombine.high %v130_v46, %v138_v47 }
  0x48   :  { %4985 = vmatprep.subr.bf16.mxu1 %v12956_v0 }
  0x49   :  { %4155 = vmatmul.mubr.bf16.gmra.mxu0 %v7379_v55  ;;  %v8378_v55 = vld [vmem:[%s12951_s1 + $0x160] sm:$0xff]  }
  0x4a   :  { %4444 = vmatmul.mubr.bf16.gmra.mxu1 %v7381_v56  ;;  %4162 = vmatprep.mubr.bf16.mxu0 %v7396_v57  ;;  %v8379_v56 = vld [vmem:[%s12951_s1 + $0x1e0] sm:$0xff]  }
  0x4b   :  { %4451 = vmatprep.mubr.bf16.mxu1 %v7398_v58  ;;  %4697 = vmatpush1.bf16.msra.mxu0 %v8360_v59  ;;  %v154_v57 = vld [vmem:[%s12952_s0 + $0x440] sm:$0xff]  ;;  %v147_v58 = vld [vmem:[%s12952_s0 + $0x408] sm:$0xff] }
  0x4c   :  { %4986 = vmatpush1.bf16.msra.mxu1 %v8361_v60  ;;  %4698 = vmatprep.subr.bf16.mxu0 %v12956_v0  ;;  %v155_v59 = vld [vmem:[%s12952_s0 + $0x448] sm:$0xff]  ;;  %v7475_v60 = vcombine.low %v130_v46, %v138_v47  ;;  %v7492_v62 = vcombine.high %v146_v54, %v154_v57  ;;  %v250_v46 = vld [vmem:[%s12952_s0 + $0x740] sm:$0xff] }
  0x4d   :  { %4987 = vmatprep.subr.bf16.mxu1 %v12956_v0  ;;  %v7494_v63 = vcombine.high %v147_v58, %v155_v59  ;;  %v8384_v47 = vld [vmem:[%s12951_s1 + $0x148] sm:$0xff]  }
  0x4f   :  { %4699 = vmatpush1.bf16.msra.mxu0 %v8362_v2  ;;  %v170_v2 = vld [vmem:[%s12952_s0 + $0x4c0] sm:$0xff] }
  0x50   :  { %4988 = vmatpush1.bf16.msra.mxu1 %v8363_v3  ;;  %4700 = vmatprep.subr.bf16.mxu0 %v12956_v0  ;;  %v163_v3 = vld [vmem:[%s12952_s0 + $0x488] sm:$0xff] }
  0x51   :  { %4163 = vmatmul.mubr.bf16.gmra.mxu0 %v7395_v4  ;;  %4989 = vmatprep.subr.bf16.mxu1 %v12956_v0  ;;  %v171_v4 = vld [vmem:[%s12952_s0 + $0x4c8] sm:$0xff] }
  0x52   :  { %4452 = vmatmul.mubr.bf16.gmra.mxu1 %v7397_v6  ;;  %4170 = vmatprep.mubr.bf16.mxu0 %v7412_v7  ;;  %v7493_v6 = vcombine.low %v147_v58, %v155_v59  ;;  %v7508_v7 = vcombine.high %v162_v1, %v170_v2  ;;  %v267_v58 = vld [vmem:[%s12952_s0 + $0x7c8] sm:$0xff] }
  0x53   :  { %4459 = vmatprep.mubr.bf16.mxu1 %v7414_v9  ;;  %4701 = vmatpush1.bf16.msra.mxu0 %v8364_v5  ;;  %v7491_v5 = vcombine.low %v146_v54, %v154_v57  ;;  %v178_v9 = vld [vmem:[%s12952_s0 + $0x500] sm:$0xff]  ;;  %v7590_v54 = vcombine.high %v243_v48, %v251_v49  ;;  %v259_v57 = vld [vmem:[%s12952_s0 + $0x788] sm:$0xff] }
  0x54   :  { %4990 = vmatpush1.bf16.msra.mxu1 %v8365_v8  ;;  %4702 = vmatprep.subr.bf16.mxu0 %v12956_v0  ;;  %v7510_v8 = vcombine.high %v163_v3, %v171_v4  ;;  %v7523_v23 = vcombine.low %v178_v9, %v186_v10 }
  0x55   :  { %4991 = vmatprep.subr.bf16.mxu1 %v12956_v0 }
  0x57   :  { %4703 = vmatpush1.bf16.msra.mxu0 %v8366_v14  ;;  %v8381_v14 = vld [vmem:[%s12951_s1 + $0x1d8] sm:$0xff]  }
  0x58   :  { %4992 = vmatpush1.bf16.msra.mxu1 %v8367_v15  ;;  %4704 = vmatprep.subr.bf16.mxu0 %v12956_v0  ;;  %v7507_v15 = vcombine.low %v162_v1, %v170_v2  ;;  %v282_v1 = vld [vmem:[%s12952_s0 + $0x840] sm:$0xff] }
  0x59   :  { %4171 = vmatmul.mubr.bf16.gmra.mxu0 %v7411_v16  ;;  %4993 = vmatprep.subr.bf16.mxu1 %v12956_v0  ;;  %v7509_v16 = vcombine.low %v163_v3, %v171_v4  ;;  %v8386_v2 = vld [vmem:[%s12951_s1 + $0x140] sm:$0xff]   ;;  %v275_v3 = vld [vmem:[%s12952_s0 + $0x808] sm:$0xff] }
  0x5a   :  { %4460 = vmatmul.mubr.bf16.gmra.mxu1 %v7413_v18  ;;  %4178 = vmatprep.mubr.bf16.mxu0 %v7428_v19  ;;  %v7526_v18 = vcombine.high %v179_v11, %v187_v12  ;;  %v194_v19 = vld [vmem:[%s12952_s0 + $0x580] sm:$0xff]  ;;  %v283_v4 = vld [vmem:[%s12952_s0 + $0x848] sm:$0xff] }
  0x5b   :  { %4467 = vmatprep.mubr.bf16.mxu1 %v7430_v21  ;;  %4705 = vmatpush1.bf16.msra.mxu0 %v8368_v17  ;;  %v7524_v17 = vcombine.high %v178_v9, %v186_v10  ;;  %v195_v21 = vld [vmem:[%s12952_s0 + $0x588] sm:$0xff]  ;;  %v7622_v9 = vcombine.high %v275_v3, %v283_v4  ;;  %v290_v10 = vld [vmem:[%s12952_s0 + $0x880] sm:$0xff] }
  0x5c   :  { %4994 = vmatpush1.bf16.msra.mxu1 %v8369_v20  ;;  %4706 = vmatprep.subr.bf16.mxu0 %v12956_v0  ;;  %v202_v20 = vld [vmem:[%s12952_s0 + $0x5c0] sm:$0xff]  ;;  %v7541_v34 = vcombine.low %v195_v21, %v203_v22  ;;  %v291_v12 = vld [vmem:[%s12952_s0 + $0x888] sm:$0xff] }
  0x5d   :  { %4995 = vmatprep.subr.bf16.mxu1 %v12956_v0  ;;  %v7540_v25 = vcombine.high %v194_v19, %v202_v20  ;;  %v298_v11 = vld [vmem:[%s12952_s0 + $0x8c0] sm:$0xff] }
  0x5f   :  { %4707 = vmatpush1.bf16.msra.mxu0 %v8370_v26  ;;  %v7542_v26 = vcombine.high %v195_v21, %v203_v22  ;;  %v315_v21 = vld [vmem:[%s12952_s0 + $0x948] sm:$0xff]  ;;  %v7635_v22 = vcombine.low %v290_v10, %v298_v11 }
  0x60   :  { %4996 = vmatpush1.bf16.msra.mxu1 %v8371_v27  ;;  %4708 = vmatprep.subr.bf16.mxu0 %v12956_v0  ;;  %v210_v27 = vld [vmem:[%s12952_s0 + $0x600] sm:$0xff] }
  0x61   :  { %4179 = vmatmul.mubr.bf16.gmra.mxu0 %v7427_v28  ;;  %4997 = vmatprep.subr.bf16.mxu1 %v12956_v0  ;;  %v218_v28 = vld [vmem:[%s12952_s0 + $0x640] sm:$0xff] }
  0x62   :  { %4468 = vmatmul.mubr.bf16.gmra.mxu1 %v7429_v30  ;;  %4186 = vmatprep.mubr.bf16.mxu0 %v7444_v31  ;;  %v211_v30 = vld [vmem:[%s12952_s0 + $0x608] sm:$0xff]  ;;  %v7556_v35 = vcombine.high %v210_v27, %v218_v28 }
  0x63   :  { %4475 = vmatprep.mubr.bf16.mxu1 %v7446_v33  ;;  %4709 = vmatpush2.bf16.msra.mxu0 %v8372_v29  ;;  %v8382_v29 = vld [vmem:[%s12951_s1 + $0x150] sm:$0xff]   ;;  %v219_v31 = vld [vmem:[%s12952_s0 + $0x648] sm:$0xff]  ;;  %v7539_v33 = vcombine.low %v194_v19, %v202_v20  ;;  %v314_v19 = vld [vmem:[%s12952_s0 + $0x940] sm:$0xff] }
  0x64   :  { %4998 = vmatpush2.bf16.msra.mxu1 %v8373_v32  ;;  %4710 = vmatprep.subr.bf16.mxu0 %v12956_v0  ;;  %v8383_v32 = vld [vmem:[%s12951_s1 + $0x1d0] sm:$0xff]   ;;  %v7558_v36 = vcombine.high %v211_v30, %v219_v31  ;;  %v307_v20 = vld [vmem:[%s12952_s0 + $0x908] sm:$0xff] }
  0x65   :  { %4999 = vmatprep.subr.bf16.mxu1 %v12956_v0 }
  0x67   :  { %4711 = vmatpush2.bf16.msra.mxu0 %v8374_v38  ;;  %v234_v38 = vld [vmem:[%s12952_s0 + $0x6c0] sm:$0xff] }
  0x68   :  { %5000 = vmatpush2.bf16.msra.mxu1 %v8375_v39  ;;  %4712 = vmatprep.subr.bf16.mxu0 %v12956_v0  ;;  %v227_v39 = vld [vmem:[%s12952_s0 + $0x688] sm:$0xff] }
  0x69   :  { %4187 = vmatmul.mubr.bf16.gmra.mxu0 %v7443_v40  ;;  %5001 = vmatprep.subr.bf16.mxu1 %v12956_v0  ;;  %v235_v40 = vld [vmem:[%s12952_s0 + $0x6c8] sm:$0xff] }
  0x6a   :  { %4476 = vmatmul.mubr.bf16.gmra.mxu1 %v7445_v42  ;;  %4194 = vmatprep.mubr.bf16.mxu0 %v7460_v43  ;;  %v7557_v42 = vcombine.low %v211_v30, %v219_v31  ;;  %v7572_v43 = vcombine.high %v226_v37, %v234_v38  ;;  %v7653_v31 = vcombine.low %v307_v20, %v315_v21 }
  0x6b   :  { %4483 = vmatprep.mubr.bf16.mxu1 %v7462_v45  ;;  %4713 = vmatpush2.bf16.msra.mxu0 %v8376_v41  ;;  %v7555_v41 = vcombine.low %v210_v27, %v218_v28  ;;  %v242_v45 = vld [vmem:[%s12952_s0 + $0x700] sm:$0xff]  ;;  %v323_v28 = vld [vmem:[%s12952_s0 + $0x988] sm:$0xff] }
  0x6c   :  { %5002 = vmatpush2.bf16.msra.mxu1 %v8377_v44  ;;  %4714 = vmatprep.subr.bf16.mxu0 %v12956_v0  ;;  %v7574_v44 = vcombine.high %v227_v39, %v235_v40  ;;  %v7587_v59 = vcombine.low %v242_v45, %v250_v46  ;;  %v330_v27 = vld [vmem:[%s12952_s0 + $0x9c0] sm:$0xff] }
  0x6d   :  { %5003 = vmatprep.subr.bf16.mxu1 %v12956_v0 }
  0x6f   :  { %4715 = vmatpush2.bf16.msra.mxu0 %v8378_v55  ;;  %v258_v55 = vld [vmem:[%s12952_s0 + $0x780] sm:$0xff] }
  0x70   :  { %5004 = vmatpush2.bf16.msra.mxu1 %v8379_v56  ;;  %4716 = vmatprep.subr.bf16.mxu0 %v12956_v0  ;;  %v266_v56 = vld [vmem:[%s12952_s0 + $0x7c0] sm:$0xff] }
  0x71   :  { %4195 = vmatmul.mubr.bf16.gmra.mxu0 %v7459_v50  ;;  %5005 = vmatprep.subr.bf16.mxu1 %v12956_v0  ;;  %v8385_v50 = vld [vmem:[%s12951_s1 + $0x1c8] sm:$0xff]  }
  0x72   :  { %4484 = vmatmul.mubr.bf16.gmra.mxu1 %v7461_v51  ;;  %4202 = vmatprep.mubr.bf16.mxu0 %v7476_v52  ;;  %v7571_v51 = vcombine.low %v226_v37, %v234_v38  ;;  %v7573_v52 = vcombine.low %v227_v39, %v235_v40  ;;  %v347_v37 = vld [vmem:[%s12952_s0 + $0xa48] sm:$0xff] }
  0x73   :  { %4491 = vmatprep.mubr.bf16.mxu1 %v7478_v53  ;;  %4717 = vmatpush2.bf16.msra.mxu0 %v8380_v13  ;;  %v7588_v53 = vcombine.high %v242_v45, %v250_v46  ;;  %v299_v13 = vld [vmem:[%s12952_s0 + $0x8c8] sm:$0xff] }
  0x74   :  { %5006 = vmatpush2.bf16.msra.mxu1 %v8381_v14  ;;  %4718 = vmatprep.subr.bf16.mxu0 %v12956_v0  ;;  %v363_v45 = vld [vmem:[%s12952_s0 + $0xac8] sm:$0xff] }
  0x75   :  { %5007 = vmatprep.subr.bf16.mxu1 %v12956_v0 }
  0x77   :  { %4719 = vmatpush2.bf16.msra.mxu0 %v8382_v29  ;;  %v331_v29 = vld [vmem:[%s12952_s0 + $0x9c8] sm:$0xff] }
  0x78   :  { %5008 = vmatpush2.bf16.msra.mxu1 %v8383_v32  ;;  %4720 = vmatprep.subr.bf16.mxu0 %v12956_v0  ;;  %v7669_v39 = vcombine.low %v323_v28, %v331_v29 }
  0x79   :  { %4203 = vmatmul.mubr.bf16.gmra.mxu0 %v7475_v60  ;;  %5009 = vmatprep.subr.bf16.mxu1 %v12956_v0  ;;  %v7589_v60 = vcombine.low %v243_v48, %v251_v49 }
  0x7a   :  { %4492 = vmatmul.mubr.bf16.gmra.mxu1 %v7477_v61  ;;  %4210 = vmatprep.mubr.bf16.mxu0 %v7492_v62  ;;  %v7604_v61 = vcombine.high %v258_v55, %v266_v56  ;;  %v7606_v62 = vcombine.high %v259_v57, %v267_v58 }
  0x7b   :  { %4499 = vmatprep.mubr.bf16.mxu1 %v7494_v63  ;;  %4721 = vmatpush2.bf16.msra.mxu0 %v8384_v47  ;;  %v274_v63 = vld [vmem:[%s12952_s0 + $0x800] sm:$0xff] }
  0x7c   :  { %5010 = vmatpush2.bf16.msra.mxu1 %v8385_v50  ;;  %4722 = vmatprep.subr.bf16.mxu0 %v12956_v0  ;;  %v7619_v14 = vcombine.low %v274_v63, %v282_v1  ;;  %v370_v50 = vld [vmem:[%s12952_s0 + $0xb00] sm:$0xff] }
  0x7d   :  { %5011 = vmatprep.subr.bf16.mxu1 %v12956_v0 }
  0x7f   :  { %4723 = vmatpush2.bf16.msra.mxu0 %v8386_v2 }
  0x80   :  { %5270 = vmatprep.subr.bf16.mxu0 %v12956_v0 }
  0x81   :  { %4211 = vmatmul.mubr.bf16.gmra.mxu0 %v7491_v5  ;;  %v8387_v5 = vld [vmem:[%s12951_s1 + $0x1c0] sm:$0xff]  }
  0x82   :  { %4500 = vmatmul.mubr.bf16.gmra.mxu1 %v7493_v6  ;;  %4218 = vmatprep.mubr.bf16.mxu0 %v7508_v7  ;;  %v7603_v6 = vcombine.low %v258_v55, %v266_v56  ;;  %v7605_v7 = vcombine.low %v259_v57, %v267_v58  ;;  %v386_v58 = vld [vmem:[%s12952_s0 + $0xb80] sm:$0xff] }
  0x83   :  { %4507 = vmatprep.mubr.bf16.mxu1 %v7510_v8  ;;  %v7620_v8 = vcombine.high %v274_v63, %v282_v1  ;;  %5012 = vmatpush2.bf16.msra.mxu1 %v8387_v5  ;;  %v403_v5 = vld [vmem:[%s12952_s0 + $0xc08] sm:$0xff] }
  0x84   :  { %5559 = vmatprep.subr.bf16.mxu1 %v12956_v0 }
  0x89   :  { %4219 = vmatmul.mubr.bf16.gmra.mxu0 %v7507_v15  ;;  %v7621_v15 = vcombine.low %v275_v3, %v283_v4  ;;  %v402_v3 = vld [vmem:[%s12952_s0 + $0xc00] sm:$0xff] }
  0x8a   :  { %4508 = vmatmul.mubr.bf16.gmra.mxu1 %v7509_v16  ;;  %4226 = vmatprep.mubr.bf16.mxu0 %v7524_v17  ;;  %v7636_v16 = vcombine.high %v290_v10, %v298_v11  ;;  %v7638_v17 = vcombine.high %v291_v12, %v299_v13  ;;  %v410_v4 = vld [vmem:[%s12952_s0 + $0xc40] sm:$0xff] }
  0x8b   :  { %4515 = vmatprep.mubr.bf16.mxu1 %v7526_v18  ;;  %v306_v18 = vld [vmem:[%s12952_s0 + $0x900] sm:$0xff] }
  0x8c   :  { %v7651_v30 = vcombine.low %v306_v18, %v314_v19  ;;  %v418_v11 = vld [vmem:[%s12952_s0 + $0xc80] sm:$0xff] }
  0x91   :  { %4227 = vmatmul.mubr.bf16.gmra.mxu0 %v7523_v23  ;;  %v7637_v23 = vcombine.low %v291_v12, %v299_v13  ;;  %v426_v12 = vld [vmem:[%s12952_s0 + $0xcc0] sm:$0xff]  ;;  %v419_v13 = vld [vmem:[%s12952_s0 + $0xc88] sm:$0xff] }
  0x92   :  { %4516 = vmatmul.mubr.bf16.gmra.mxu1 %v7525_v24  ;;  %4234 = vmatprep.mubr.bf16.mxu0 %v7540_v25  ;;  %v7652_v24 = vcombine.high %v306_v18, %v314_v19  ;;  %v7654_v25 = vcombine.high %v307_v20, %v315_v21 }
  0x93   :  { %4523 = vmatprep.mubr.bf16.mxu1 %v7542_v26  ;;  %v322_v26 = vld [vmem:[%s12952_s0 + $0x980] sm:$0xff] }
  0x94   :  { %v7668_v32 = vcombine.high %v322_v26, %v330_v27  ;;  %v7667_v38 = vcombine.low %v322_v26, %v330_v27  ;;  %v435_v26 = vld [vmem:[%s12952_s0 + $0xd08] sm:$0xff] }
  0x95   :  { %v443_v27 = vld [vmem:[%s12952_s0 + $0xd48] sm:$0xff] }
  0x99   :  { %4235 = vmatmul.mubr.bf16.gmra.mxu0 %v7539_v33  ;;  %v7670_v33 = vcombine.high %v323_v28, %v331_v29  ;;  %v7763_v29 = vcombine.low %v418_v11, %v426_v12 }
  0x9a   :  { %4524 = vmatmul.mubr.bf16.gmra.mxu1 %v7541_v34  ;;  %4242 = vmatprep.mubr.bf16.mxu0 %v7556_v35  ;;  %v338_v34 = vld [vmem:[%s12952_s0 + $0xa00] sm:$0xff] }
  0x9b   :  { %4531 = vmatprep.mubr.bf16.mxu1 %v7558_v36  ;;  %v346_v35 = vld [vmem:[%s12952_s0 + $0xa40] sm:$0xff]  ;;  %v339_v36 = vld [vmem:[%s12952_s0 + $0xa08] sm:$0xff] }
  0x9c   :  { %v7684_v40 = vcombine.high %v338_v34, %v346_v35  ;;  %v7683_v46 = vcombine.low %v338_v34, %v346_v35  ;;  %v7685_v47 = vcombine.low %v339_v36, %v347_v37  ;;  %v7782_v35 = vcombine.high %v435_v26, %v443_v27 }
  0xa1   :  { %4243 = vmatmul.mubr.bf16.gmra.mxu0 %v7555_v41  ;;  %v7686_v41 = vcombine.high %v339_v36, %v347_v37 }
  0xa2   :  { %4532 = vmatmul.mubr.bf16.gmra.mxu1 %v7557_v42  ;;  %4250 = vmatprep.mubr.bf16.mxu0 %v7572_v43  ;;  %v354_v42 = vld [vmem:[%s12952_s0 + $0xa80] sm:$0xff] }
  0xa3   :  { %4539 = vmatprep.mubr.bf16.mxu1 %v7574_v44  ;;  %v362_v43 = vld [vmem:[%s12952_s0 + $0xac0] sm:$0xff]  ;;  %v355_v44 = vld [vmem:[%s12952_s0 + $0xa88] sm:$0xff] }
  0xa4   :  { %v7700_v48 = vcombine.high %v354_v42, %v362_v43  ;;  %v7702_v49 = vcombine.high %v355_v44, %v363_v45  ;;  %v7701_v55 = vcombine.low %v355_v44, %v363_v45  ;;  %v451_v44 = vld [vmem:[%s12952_s0 + $0xd88] sm:$0xff] }
  0xa5   :  { %v459_v45 = vld [vmem:[%s12952_s0 + $0xdc8] sm:$0xff] }
  0xa9   :  { %4251 = vmatmul.mubr.bf16.gmra.mxu0 %v7571_v51  ;;  %v378_v51 = vld [vmem:[%s12952_s0 + $0xb40] sm:$0xff] }
  0xaa   :  { %4540 = vmatmul.mubr.bf16.gmra.mxu1 %v7573_v52  ;;  %4258 = vmatprep.mubr.bf16.mxu0 %v7588_v53  ;;  %v371_v52 = vld [vmem:[%s12952_s0 + $0xb08] sm:$0xff]  ;;  %v7716_v56 = vcombine.high %v370_v50, %v378_v51 }
  0xab   :  { %4547 = vmatprep.mubr.bf16.mxu1 %v7590_v54  ;;  %v379_v53 = vld [vmem:[%s12952_s0 + $0xb48] sm:$0xff]  ;;  %v7699_v54 = vcombine.low %v354_v42, %v362_v43  ;;  %v458_v42 = vld [vmem:[%s12952_s0 + $0xdc0] sm:$0xff] }
  0xac   :  { %v7718_v57 = vcombine.high %v371_v52, %v379_v53  ;;  %v7717_v63 = vcombine.low %v371_v52, %v379_v53  ;;  %v7798_v53 = vcombine.high %v451_v44, %v459_v45 }
  0xb1   :  { %4259 = vmatmul.mubr.bf16.gmra.mxu0 %v7587_v59  ;;  %v394_v59 = vld [vmem:[%s12952_s0 + $0xbc0] sm:$0xff] }
  0xb2   :  { %4548 = vmatmul.mubr.bf16.gmra.mxu1 %v7589_v60  ;;  %4266 = vmatprep.mubr.bf16.mxu0 %v7604_v61  ;;  %v387_v60 = vld [vmem:[%s12952_s0 + $0xb88] sm:$0xff]  ;;  %v7732_v1 = vcombine.high %v386_v58, %v394_v59 }
  0xb3   :  { %4555 = vmatprep.mubr.bf16.mxu1 %v7606_v62  ;;  %v395_v61 = vld [vmem:[%s12952_s0 + $0xbc8] sm:$0xff]  ;;  %v7715_v62 = vcombine.low %v370_v50, %v378_v51 }
  0xb4   :  { %v7734_v2 = vcombine.high %v387_v60, %v395_v61 }
  0xb9   :  { %4267 = vmatmul.mubr.bf16.gmra.mxu0 %v7603_v6  ;;  %v411_v6 = vld [vmem:[%s12952_s0 + $0xc48] sm:$0xff] }
  0xba   :  { %4556 = vmatmul.mubr.bf16.gmra.mxu1 %v7605_v7  ;;  %4274 = vmatprep.mubr.bf16.mxu0 %v7620_v8  ;;  %v7731_v7 = vcombine.low %v386_v58, %v394_v59  ;;  %v7733_v8 = vcombine.low %v387_v60, %v395_v61  ;;  %v7750_v10 = vcombine.high %v403_v5, %v411_v6  ;;  %v466_v59 = vld [vmem:[%s12952_s0 + $0xe00] sm:$0xff] }
  0xbb   :  { %4563 = vmatprep.mubr.bf16.mxu1 %v7622_v9  ;;  %v7748_v9 = vcombine.high %v402_v3, %v410_v4  ;;  %v474_v60 = vld [vmem:[%s12952_s0 + $0xe40] sm:$0xff] }
  0xc1   :  { %4275 = vmatmul.mubr.bf16.gmra.mxu0 %v7619_v14  ;;  %v427_v14 = vld [vmem:[%s12952_s0 + $0xcc8] sm:$0xff] }
  0xc2   :  { %4564 = vmatmul.mubr.bf16.gmra.mxu1 %v7621_v15  ;;  %4282 = vmatprep.mubr.bf16.mxu0 %v7636_v16  ;;  %v7747_v15 = vcombine.low %v402_v3, %v410_v4  ;;  %v7749_v16 = vcombine.low %v403_v5, %v411_v6  ;;  %v7766_v18 = vcombine.high %v419_v13, %v427_v14 }
  0xc3   :  { %4571 = vmatprep.mubr.bf16.mxu1 %v7638_v17  ;;  %v7764_v17 = vcombine.high %v418_v11, %v426_v12  ;;  %v7797_v4 = vcombine.low %v451_v44, %v459_v45  ;;  %v7812_v5 = vcombine.high %v466_v59, %v474_v60 }
  0xc9   :  { %4283 = vmatmul.mubr.bf16.gmra.mxu0 %v7635_v22 }
  0xca   :  { %4572 = vmatmul.mubr.bf16.gmra.mxu1 %v7637_v23  ;;  %4290 = vmatprep.mubr.bf16.mxu0 %v7652_v24  ;;  %v434_v23 = vld [vmem:[%s12952_s0 + $0xd00] sm:$0xff] }
  0xcb   :  { %4579 = vmatprep.mubr.bf16.mxu1 %v7654_v25  ;;  %v442_v24 = vld [vmem:[%s12952_s0 + $0xd40] sm:$0xff] }
  0xd1   :  { %4291 = vmatmul.mubr.bf16.gmra.mxu0 %v7651_v30 }
  0xd2   :  { %4580 = vmatmul.mubr.bf16.gmra.mxu1 %v7653_v31  ;;  %4298 = vmatprep.mubr.bf16.mxu0 %v7668_v32  ;;  %v7765_v31 = vcombine.low %v419_v13, %v427_v14  ;;  %v7780_v32 = vcombine.high %v434_v23, %v442_v24  ;;  %v482_v14 = vld [vmem:[%s12952_s0 + $0xe80] sm:$0xff] }
  0xd3   :  { %4587 = vmatprep.mubr.bf16.mxu1 %v7670_v33 }
  0xd9   :  { %4299 = vmatmul.mubr.bf16.gmra.mxu0 %v7667_v38 }
  0xda   :  { %4588 = vmatmul.mubr.bf16.gmra.mxu1 %v7669_v39  ;;  %4306 = vmatprep.mubr.bf16.mxu0 %v7684_v40 }
  0xdb   :  { %4595 = vmatprep.mubr.bf16.mxu1 %v7686_v41  ;;  %v450_v41 = vld [vmem:[%s12952_s0 + $0xd80] sm:$0xff] }
  0xdc   :  { %v7796_v50 = vcombine.high %v450_v41, %v458_v42 }
  0xe1   :  { %4307 = vmatmul.mubr.bf16.gmra.mxu0 %v7683_v46 }
  0xe2   :  { %4596 = vmatmul.mubr.bf16.gmra.mxu1 %v7685_v47  ;;  %4314 = vmatprep.mubr.bf16.mxu0 %v7700_v48  ;;  %v7779_v47 = vcombine.low %v434_v23, %v442_v24 }
  0xe3   :  { %4603 = vmatprep.mubr.bf16.mxu1 %v7702_v49  ;;  %v7781_v49 = vcombine.low %v435_v26, %v443_v27 }
  0xe9   :  { %4315 = vmatmul.mubr.bf16.gmra.mxu0 %v7699_v54 }
  0xea   :  { %4604 = vmatmul.mubr.bf16.gmra.mxu1 %v7701_v55  ;;  %4322 = vmatprep.mubr.bf16.mxu0 %v7716_v56 }
  0xeb   :  { %4611 = vmatprep.mubr.bf16.mxu1 %v7718_v57 }
  0xf1   :  { %4323 = vmatmul.mubr.bf16.gmra.mxu0 %v7715_v62  ;;  %v467_v62 = vld [vmem:[%s12952_s0 + $0xe08] sm:$0xff] }
  0xf2   :  { %4612 = vmatmul.mubr.bf16.gmra.mxu1 %v7717_v63  ;;  %4330 = vmatprep.mubr.bf16.mxu0 %v7732_v1  ;;  %v475_v63 = vld [vmem:[%s12952_s0 + $0xe48] sm:$0xff] }
  0xf3   :  { %4619 = vmatprep.mubr.bf16.mxu1 %v7734_v2  ;;  %v7795_v2 = vcombine.low %v450_v41, %v458_v42  ;;  %v7813_v23 = vcombine.low %v467_v62, %v475_v63 }
  0xf9   :  { %4331 = vmatmul.mubr.bf16.gmra.mxu0 %v7731_v7 }
  0xfa   :  { %4620 = vmatmul.mubr.bf16.gmra.mxu1 %v7733_v8  ;;  %4338 = vmatprep.mubr.bf16.mxu0 %v7748_v9  ;;  %v7814_v8 = vcombine.high %v467_v62, %v475_v63 }
  0xfb   :  { %4627 = vmatprep.mubr.bf16.mxu1 %v7750_v10 }
 0x101   :  { %v4148_v19 = vpop.f32.mrf.mxu0  ;;  %4339 = vmatmul.mubr.bf16.gmra.mxu0 %v7747_v15  ;;  %v490_v15 = vld [vmem:[%s12952_s0 + $0xec0] sm:$0xff] }
 0x102   :  { %v4437_v20 = vpop.f32.mrf.mxu1  ;;  %4628 = vmatmul.mubr.bf16.gmra.mxu1 %v7749_v16  ;;  %4346 = vmatprep.mubr.bf16.mxu0 %v7764_v17  ;;  %v483_v17 = vld [vmem:[%s12952_s0 + $0xe88] sm:$0xff]  ;;  %v7828_v24 = vcombine.high %v482_v14, %v490_v15  ;;  %v7827_v41 = vcombine.low %v482_v14, %v490_v15  ;;  %v21_v15 = vld [vmem:[%s12952_s0 + $0x18] sm:$0xff] }
 0x103   :  { %v9068_v21 = vadd.f32 %v4437_v20, %v4148_v19  ;;  %v4150_v22 = vpop.f32.mrf.mxu0  ;;  %4635 = vmatprep.mubr.bf16.mxu1 %v7766_v18  ;;  %v491_v18 = vld [vmem:[%s12952_s0 + $0xec8] sm:$0xff]  ;;  %v7811_v20 = vcombine.low %v466_v59, %v474_v60 }
 0x104   :  { %v4439_v25 = vpop.f32.mrf.mxu1  ;;  %v7830_v27 = vcombine.high %v483_v17, %v491_v18  ;;  %v523_v59 = vld [vmem:[%s12952_s0 + $0xfc8] sm:$0xff] }
 0x105   :  { %v4151_v28 = vpop.f32.mrf.mxu0 }
 0x106   :  { %v4440_v30 = vpop.f32.mrf.mxu1 }
 0x107   :  { %v9082_v33 = vadd.f32 %v4440_v30, %v4151_v28  ;;  %v4153_v34 = vpop.f32.mrf.mxu0 }
 0x108   :  { %v4442_v36 = vpop.f32.mrf.mxu1  ;;  %v498_v34 = vld [vmem:[%s12952_s0 + $0xf00] sm:$0xff] }
 0x109   :  { %v4156_v37 = vpop.f32.mrf.mxu0  ;;  %4347 = vmatmul.mubr.bf16.gmra.mxu0 %v7763_v29 }
 0x10a   :  { %v4445_v38 = vpop.f32.mrf.mxu1  ;;  %4636 = vmatmul.mubr.bf16.gmra.mxu1 %v7765_v31  ;;  %4354 = vmatprep.mubr.bf16.mxu0 %v7780_v32 }
 0x10b   :  { %v9084_v39 = vadd.f32 %v4445_v38, %v4156_v37  ;;  %v4158_v40 = vpop.f32.mrf.mxu0  ;;  %4643 = vmatprep.mubr.bf16.mxu1 %v7782_v35  ;;  %v506_v35 = vld [vmem:[%s12952_s0 + $0xf40] sm:$0xff]  ;;  %v499_v37 = vld [vmem:[%s12952_s0 + $0xf08] sm:$0xff] }
 0x10c   :  { %v4447_v43 = vpop.f32.mrf.mxu1  ;;  %v507_v38 = vld [vmem:[%s12952_s0 + $0xf48] sm:$0xff]  ;;  %v7844_v44 = vcombine.high %v498_v34, %v506_v35 }
 0x10d   :  { %v4159_v46 = vpop.f32.mrf.mxu0  ;;  %v7829_v43 = vcombine.low %v483_v17, %v491_v18  ;;  %v7845_v63 = vcombine.low %v499_v37, %v507_v38 }
 0x10e   :  { %v4448_v48 = vpop.f32.mrf.mxu1 }
 0x10f   :  { %v9098_v51 = vadd.f32 %v4448_v48, %v4159_v46  ;;  %v4161_v52 = vpop.f32.mrf.mxu0 }
 0x110   :  { %v4450_v54 = vpop.f32.mrf.mxu1 }
 0x111   :  { %v4164_v55 = vpop.f32.mrf.mxu0  ;;  %4355 = vmatmul.mubr.bf16.gmra.mxu0 %v7779_v47  ;;  %v7846_v47 = vcombine.high %v499_v37, %v507_v38  ;;  %v514_v54 = vld [vmem:[%s12952_s0 + $0xf80] sm:$0xff] }
 0x112   :  { %v4453_v56 = vpop.f32.mrf.mxu1  ;;  %4644 = vmatmul.mubr.bf16.gmra.mxu1 %v7781_v49  ;;  %4362 = vmatprep.mubr.bf16.mxu0 %v7796_v50 }
 0x113   :  { %v9100_v57 = vadd.f32 %v4453_v56, %v4164_v55  ;;  %v4166_v58 = vpop.f32.mrf.mxu0  ;;  %4651 = vmatprep.mubr.bf16.mxu1 %v7798_v53  ;;  %v522_v55 = vld [vmem:[%s12952_s0 + $0xfc0] sm:$0xff] }
 0x114   :  { %v4455_v61 = vpop.f32.mrf.mxu1  ;;  %v515_v58 = vld [vmem:[%s12952_s0 + $0xf88] sm:$0xff]  ;;  %v7859_v18 = vcombine.low %v514_v54, %v522_v55 }
 0x115   :  { %v4167_v1 = vpop.f32.mrf.mxu0  ;;  %v7843_v61 = vcombine.low %v498_v34, %v506_v35  ;;  %v36_v35 = vld [vmem:[%s12952_s0 + $0x90] sm:$0xff] }
 0x116   :  { %v4456_v3 = vpop.f32.mrf.mxu1 }
 0x117   :  { %v9114_v6 = vadd.f32 %v4456_v3, %v4167_v1  ;;  %v4169_v7 = vpop.f32.mrf.mxu0  ;;  %v7860_v1 = vcombine.high %v514_v54, %v522_v55 }
 0x118   :  { %v4458_v9 = vpop.f32.mrf.mxu1 }
 0x119   :  { %v4172_v10 = vpop.f32.mrf.mxu0  ;;  %4363 = vmatmul.mubr.bf16.gmra.mxu0 %v7795_v2 }
 0x11a   :  { %v4461_v11 = vpop.f32.mrf.mxu1  ;;  %4652 = vmatmul.mubr.bf16.gmra.mxu1 %v7797_v4  ;;  %4370 = vmatprep.mubr.bf16.mxu0 %v7812_v5  ;;  %v7862_v4 = vcombine.high %v515_v58, %v523_v59 }
 0x11b   :  { %v9116_v12 = vadd.f32 %v4461_v11, %v4172_v10  ;;  %v4174_v13 = vpop.f32.mrf.mxu0  ;;  %4659 = vmatprep.mubr.bf16.mxu1 %v7814_v8  ;;  %v20_v11 = vld [vmem:[%s12952_s0 + $0x10] sm:$0xff] }
 0x11c   :  { %v4463_v16 = vpop.f32.mrf.mxu1  ;;  %v28_v13 = vld [vmem:[%s12952_s0 + $0x50] sm:$0xff] }
 0x11d   :  { %v4175_v19 = vpop.f32.mrf.mxu0  ;;  %v29_v16 = vld [vmem:[%s12952_s0 + $0x58] sm:$0xff]  ;;  %v7367_v38 = vcombine.low %v20_v11, %v28_v13 }
 0x11e   :  { %v4464_v22 = vpop.f32.mrf.mxu1 }
 0x11f   :  { %v9130_v25 = vadd.f32 %v4464_v22, %v4175_v19  ;;  %v4177_v26 = vpop.f32.mrf.mxu0  ;;  %v7368_v22 = vcombine.high %v20_v11, %v28_v13 }
 0x120   :  { %v4466_v28 = vpop.f32.mrf.mxu1  ;;  %v7370_v26 = vcombine.high %v21_v15, %v29_v16 }
 0x121   :  { %v4180_v29 = vpop.f32.mrf.mxu0  ;;  %4371 = vmatmul.mubr.bf16.gmra.mxu0 %v7811_v20  ;;  %v7861_v20 = vcombine.low %v515_v58, %v523_v59 }
 0x122   :  { %v4469_v30 = vpop.f32.mrf.mxu1  ;;  %4660 = vmatmul.mubr.bf16.gmra.mxu1 %v7813_v23  ;;  %4378 = vmatprep.mubr.bf16.mxu0 %v7828_v24 }
 0x123   :  { %v9132_v31 = vadd.f32 %v4469_v30, %v4180_v29  ;;  %v4182_v32 = vpop.f32.mrf.mxu0  ;;  %4667 = vmatprep.mubr.bf16.mxu1 %v7830_v27 }
 0x124   :  { %v4471_v36 = vpop.f32.mrf.mxu1 }
 0x125   :  { %v4183_v40 = vpop.f32.mrf.mxu0  ;;  %v44_v36 = vld [vmem:[%s12952_s0 + $0xd0] sm:$0xff] }
 0x126   :  { %v4472_v42 = vpop.f32.mrf.mxu1 }
 0x127   :  { %v9146_v45 = vadd.f32 %v4472_v42, %v4183_v40  ;;  %v4185_v46 = vpop.f32.mrf.mxu0  ;;  %v37_v40 = vld [vmem:[%s12952_s0 + $0x98] sm:$0xff] }
 0x128   :  { %v4474_v48 = vpop.f32.mrf.mxu1 }
 0x129   :  { %v4188_v49 = vpop.f32.mrf.mxu0  ;;  %4379 = vmatmul.mubr.bf16.gmra.mxu0 %v7827_v41  ;;  %v45_v41 = vld [vmem:[%s12952_s0 + $0xd8] sm:$0xff] }
 0x12a   :  { %v4477_v50 = vpop.f32.mrf.mxu1  ;;  %4668 = vmatmul.mubr.bf16.gmra.mxu1 %v7829_v43  ;;  %4386 = vmatprep.mubr.bf16.mxu0 %v7844_v44  ;;  %v7369_v43 = vcombine.low %v21_v15, %v29_v16  ;;  %v8388_v44 = vld [vmem:[%s12951_s1 + $0x238] sm:$0xff]   ;;  %v8392_v15 = vld [vmem:[%s12951_s1 + $0x228] sm:$0xff]  }
 0x12b   :  { %v9148_v52 = vadd.f32 %v4477_v50, %v4188_v49  ;;  %v4190_v53 = vpop.f32.mrf.mxu0  ;;  %4675 = vmatprep.mubr.bf16.mxu1 %v7846_v47  ;;  %v8389_v48 = vld [vmem:[%s12951_s1 + $0x2b8] sm:$0xff]   ;;  %v7384_v49 = vcombine.high %v36_v35, %v44_v36 }
 0x12c   :  { %v4479_v56 = vpop.f32.mrf.mxu1  ;;  %v7386_v53 = vcombine.high %v37_v40, %v45_v41 }
 0x12d   :  { %v4191_v60 = vpop.f32.mrf.mxu0  ;;  %v8390_v56 = vld [vmem:[%s12951_s1 + $0x230] sm:$0xff]  }
 0x12e   :  { %v4480_v62 = vpop.f32.mrf.mxu1 }
 0x12f   :  { %v9162_v2 = vadd.f32 %v4480_v62, %v4191_v60  ;;  %v4193_v3 = vpop.f32.mrf.mxu0  ;;  %v52_v60 = vld [vmem:[%s12952_s0 + $0x110] sm:$0xff] }
 0x130   :  { %v4482_v5 = vpop.f32.mrf.mxu1  ;;  %v8391_v62 = vld [vmem:[%s12951_s1 + $0x2b0] sm:$0xff]   ;;  %v61_v3 = vld [vmem:[%s12952_s0 + $0x158] sm:$0xff] }
 0x131   :  { %v4196_v7 = vpop.f32.mrf.mxu0  ;;  %4387 = vmatmul.mubr.bf16.gmra.mxu0 %v7843_v61  ;;  %v60_v61 = vld [vmem:[%s12952_s0 + $0x150] sm:$0xff]  ;;  %v7383_v5 = vcombine.low %v36_v35, %v44_v36 }
 0x132   :  { %v4485_v8 = vpop.f32.mrf.mxu1  ;;  %4676 = vmatmul.mubr.bf16.gmra.mxu1 %v7845_v63  ;;  %4394 = vmatprep.mubr.bf16.mxu0 %v7860_v1  ;;  %v53_v1 = vld [vmem:[%s12952_s0 + $0x118] sm:$0xff]  ;;  %v7399_v36 = vcombine.low %v52_v60, %v60_v61 }
 0x133   :  { %v9164_v9 = vadd.f32 %v4485_v8, %v4196_v7  ;;  %v4198_v10 = vpop.f32.mrf.mxu0  ;;  %4683 = vmatprep.mubr.bf16.mxu1 %v7862_v4  ;;  %v7385_v8 = vcombine.low %v37_v40, %v45_v41 }
 0x134   :  { %v4487_v14 = vpop.f32.mrf.mxu1  ;;  %v7400_v10 = vcombine.high %v52_v60, %v60_v61  ;;  %v85_v61 = vld [vmem:[%s12952_s0 + $0x218] sm:$0xff] }
 0x135   :  { %v4199_v17 = vpop.f32.mrf.mxu0  ;;  %v7402_v14 = vcombine.high %v53_v1, %v61_v3 }
 0x136   :  { %v4488_v19 = vpop.f32.mrf.mxu1 }
 0x137   :  { %v9178_v23 = vadd.f32 %v4488_v19, %v4199_v17  ;;  %v4201_v24 = vpop.f32.mrf.mxu0  ;;  %v8393_v17 = vld [vmem:[%s12951_s1 + $0x2a8] sm:$0xff]  }
 0x138   :  { %v4490_v27 = vpop.f32.mrf.mxu1  ;;  %v68_v24 = vld [vmem:[%s12952_s0 + $0x190] sm:$0xff] }
 0x139   :  { %v4204_v28 = vpop.f32.mrf.mxu0  ;;  %4395 = vmatmul.mubr.bf16.gmra.mxu0 %v7859_v18  ;;  %v8394_v27 = vld [vmem:[%s12951_s1 + $0x220] sm:$0xff]  }
 0x13a   :  { %v4493_v29 = vpop.f32.mrf.mxu1  ;;  %4684 = vmatmul.mubr.bf16.gmra.mxu1 %v7861_v20  ;;  %4724 = vmatprep.mubr.bf16.mxu0 %v7368_v22 }
 0x13b   :  { %v9180_v30 = vadd.f32 %v4493_v29, %v4204_v28  ;;  %v4206_v32 = vpop.f32.mrf.mxu0  ;;  %5013 = vmatprep.mubr.bf16.mxu1 %v7370_v26  ;;  %v76_v26 = vld [vmem:[%s12952_s0 + $0x1d0] sm:$0xff]  ;;  %v69_v29 = vld [vmem:[%s12952_s0 + $0x198] sm:$0xff] }
 0x13c   :  { %v4495_v34 = vpop.f32.mrf.mxu1  ;;  %v77_v32 = vld [vmem:[%s12952_s0 + $0x1d8] sm:$0xff]  ;;  %v7416_v40 = vcombine.high %v68_v24, %v76_v26 }
 0x13d   :  { %v4207_v37 = vpop.f32.mrf.mxu0  ;;  %v8395_v34 = vld [vmem:[%s12951_s1 + $0x2a0] sm:$0xff]  }
 0x13e   :  { %v4496_v42 = vpop.f32.mrf.mxu1 }
 0x13f   :  { %v9197_v46 = vadd.f32 %v4496_v42, %v4207_v37  ;;  %v4209_v47 = vpop.f32.mrf.mxu0 }
 0x140   :  { %v4498_v50 = vpop.f32.mrf.mxu1 }
 0x141   :  { %v4212_v54 = vpop.f32.mrf.mxu0  ;;  %4725 = vmatmul.mubr.bf16.vlgmr.msra.gmra.mxu0 %v7367_v38  ;;  %v7401_v38 = vcombine.low %v53_v1, %v61_v3  ;;  %v7415_v3 = vcombine.low %v68_v24, %v76_v26  ;;  %v100_v24 = vld [vmem:[%s12952_s0 + $0x290] sm:$0xff] }
 0x142   :  { %v4501_v55 = vpop.f32.mrf.mxu1  ;;  %5014 = vmatmul.mubr.bf16.vlgmr.msra.gmra.mxu1 %v7369_v43  ;;  %5271 = vmatpush1.bf16.msra.mxu0 %v8388_v44  ;;  %v7418_v43 = vcombine.high %v69_v29, %v77_v32  ;;  %v8396_v44 = vld [vmem:[%s12951_s1 + $0x218] sm:$0xff]   ;;  %v108_v26 = vld [vmem:[%s12952_s0 + $0x2d0] sm:$0xff] }
 0x143   :  { %v9205_v58 = vadd.f32 %v4501_v55, %v4212_v54  ;;  %v4214_v59 = vpop.f32.mrf.mxu0  ;;  %5560 = vmatpush1.bf16.msra.mxu1 %v8389_v48  ;;  %4732 = vmatprep.mubr.bf16.mxu0 %v7384_v49  ;;  %v8397_v48 = vld [vmem:[%s12951_s1 + $0x298] sm:$0xff]   ;;  %v84_v55 = vld [vmem:[%s12952_s0 + $0x210] sm:$0xff] }
 0x144   :  { %v4503_v63 = vpop.f32.mrf.mxu1  ;;  %5021 = vmatprep.mubr.bf16.mxu1 %v7386_v53  ;;  %5272 = vmatprep.subr.bf16.mxu0 %v12956_v0  ;;  %v8398_v59 = vld [vmem:[%s12951_s1 + $0x210] sm:$0xff]  }
 0x145   :  { %v4215_v4 = vpop.f32.mrf.mxu0  ;;  %5561 = vmatprep.subr.bf16.mxu1 %v12956_v0  ;;  %v8399_v63 = vld [vmem:[%s12951_s1 + $0x290] sm:$0xff]  }
 0x146   :  { %v4504_v7 = vpop.f32.mrf.mxu1  ;;  %5273 = vmatpush1.bf16.msra.mxu0 %v8390_v56  ;;  %v92_v56 = vld [vmem:[%s12952_s0 + $0x250] sm:$0xff] }
 0x147   :  { %v9224_v11 = vadd.f32 %v4504_v7, %v4215_v4  ;;  %v4217_v13 = vpop.f32.mrf.mxu0  ;;  %5562 = vmatpush1.bf16.msra.mxu1 %v8391_v62  ;;  %5274 = vmatprep.subr.bf16.mxu0 %v12956_v0  ;;  %v93_v62 = vld [vmem:[%s12952_s0 + $0x258] sm:$0xff]  ;;  %v7432_v7 = vcombine.high %v84_v55, %v92_v56 }
 0x148   :  { %v4506_v16 = vpop.f32.mrf.mxu1  ;;  %5563 = vmatprep.subr.bf16.mxu1 %v12956_v0  ;;  %v7434_v13 = vcombine.high %v85_v61, %v93_v62 }
 0x149   :  { %v4220_v18 = vpop.f32.mrf.mxu0  ;;  %4733 = vmatmul.mubr.bf16.gmra.mxu0 %v7383_v5  ;;  %v7417_v5 = vcombine.low %v69_v29, %v77_v32  ;;  %v8401_v16 = vld [vmem:[%s12951_s1 + $0x288] sm:$0xff]   ;;  %v101_v29 = vld [vmem:[%s12952_s0 + $0x298] sm:$0xff] }
 0x14a   :  { %v4509_v19 = vpop.f32.mrf.mxu1  ;;  %5022 = vmatmul.mubr.bf16.gmra.mxu1 %v7385_v8  ;;  %4740 = vmatprep.mubr.bf16.mxu0 %v7400_v10  ;;  %v109_v32 = vld [vmem:[%s12952_s0 + $0x2d8] sm:$0xff] }
 0x14b   :  { %v9234_v20 = vadd.f32 %v4509_v19, %v4220_v18  ;;  %v4222_v22 = vpop.f32.mrf.mxu0  ;;  %5029 = vmatprep.mubr.bf16.mxu1 %v7402_v14  ;;  %5275 = vmatpush1.bf16.msra.mxu0 %v8392_v15  ;;  %v8400_v14 = vld [vmem:[%s12951_s1 + $0x208] sm:$0xff]  }
 0x14c   :  { %v4511_v28 = vpop.f32.mrf.mxu1  ;;  %5564 = vmatpush1.bf16.msra.mxu1 %v8393_v17  ;;  %5276 = vmatprep.subr.bf16.mxu0 %v12956_v0 }
 0x14d   :  { %v4223_v35 = vpop.f32.mrf.mxu0  ;;  %5565 = vmatprep.subr.bf16.mxu1 %v12956_v0 }
 0x14e   :  { %v4512_v37 = vpop.f32.mrf.mxu1 }
 0x14f   :  { %v9256_v41 = vadd.f32 %v4512_v37, %v4223_v35  ;;  %v4225_v42 = vpop.f32.mrf.mxu0  ;;  %5277 = vmatpush1.bf16.msra.mxu0 %v8394_v27  ;;  %v8402_v27 = vld [vmem:[%s12951_s1 + $0x200] sm:$0xff]  }
 0x150   :  { %v4514_v47 = vpop.f32.mrf.mxu1  ;;  %5566 = vmatpush1.bf16.msra.mxu1 %v8395_v34  ;;  %5278 = vmatprep.subr.bf16.mxu0 %v12956_v0  ;;  %v8403_v34 = vld [vmem:[%s12951_s1 + $0x280] sm:$0xff]  }
 0x151   :  { %v4228_v49 = vpop.f32.mrf.mxu0  ;;  %4741 = vmatmul.mubr.bf16.gmra.mxu0 %v7399_v36  ;;  %5567 = vmatprep.subr.bf16.mxu1 %v12956_v0  ;;  %v7431_v36 = vcombine.low %v84_v55, %v92_v56  ;;  %v8404_v47 = vld [vmem:[%s12951_s1 + $0x278] sm:$0xff]  }
 0x152   :  { %v4517_v50 = vpop.f32.mrf.mxu1  ;;  %5030 = vmatmul.mubr.bf16.gmra.mxu1 %v7401_v38  ;;  %4748 = vmatprep.mubr.bf16.mxu0 %v7416_v40  ;;  %v7433_v38 = vcombine.low %v85_v61, %v93_v62  ;;  %v7448_v40 = vcombine.high %v100_v24, %v108_v26  ;;  %v8406_v61 = vld [vmem:[%s12951_s1 + $0x270] sm:$0xff]  }
 0x153   :  { %v9266_v53 = vadd.f32 %v4517_v50, %v4228_v49  ;;  %v4230_v54 = vpop.f32.mrf.mxu0  ;;  %5037 = vmatprep.mubr.bf16.mxu1 %v7418_v43  ;;  %5279 = vmatpush1.bf16.msra.mxu0 %v8396_v44  ;;  %v7450_v44 = vcombine.high %v101_v29, %v109_v32  ;;  %v8405_v49 = vld [vmem:[%s12951_s1 + $0x2f8] sm:$0xff]  }
 0x154   :  { %v4519_v60 = vpop.f32.mrf.mxu1  ;;  %5568 = vmatpush1.bf16.msra.mxu1 %v8397_v48  ;;  %5280 = vmatprep.subr.bf16.mxu0 %v12956_v0 }
 0x155   :  { %v4231_v1 = vpop.f32.mrf.mxu0  ;;  %5569 = vmatprep.subr.bf16.mxu1 %v12956_v0  ;;  %v124_v60 = vld [vmem:[%s12952_s0 + $0x350] sm:$0xff] }
 0x156   :  { %v4520_v4 = vpop.f32.mrf.mxu1 }
 0x157   :  { %v9288_v8 = vadd.f32 %v4520_v4, %v4231_v1  ;;  %v4233_v10 = vpop.f32.mrf.mxu0  ;;  %5281 = vmatpush1.bf16.msra.mxu0 %v8398_v59  ;;  %v116_v59 = vld [vmem:[%s12952_s0 + $0x310] sm:$0xff]  ;;  %v125_v1 = vld [vmem:[%s12952_s0 + $0x358] sm:$0xff] }
 0x158   :  { %v4522_v15 = vpop.f32.mrf.mxu1  ;;  %5570 = vmatpush1.bf16.msra.mxu1 %v8399_v63  ;;  %5282 = vmatprep.subr.bf16.mxu0 %v12956_v0  ;;  %v117_v63 = vld [vmem:[%s12952_s0 + $0x318] sm:$0xff]  ;;  %v7449_v10 = vcombine.low %v101_v29, %v109_v32  ;;  %v132_v29 = vld [vmem:[%s12952_s0 + $0x390] sm:$0xff] }
 0x159   :  { %v4236_v17 = vpop.f32.mrf.mxu0  ;;  %4749 = vmatmul.mubr.bf16.gmra.mxu0 %v7415_v3  ;;  %5571 = vmatprep.subr.bf16.mxu1 %v12956_v0  ;;  %v8407_v3 = vld [vmem:[%s12951_s1 + $0x2f0] sm:$0xff]  }
 0x15a   :  { %v4525_v18 = vpop.f32.mrf.mxu1  ;;  %5038 = vmatmul.mubr.bf16.gmra.mxu1 %v7417_v5  ;;  %4756 = vmatprep.mubr.bf16.mxu0 %v7432_v7  ;;  %v7447_v5 = vcombine.low %v100_v24, %v108_v26  ;;  %v140_v32 = vld [vmem:[%s12952_s0 + $0x3d0] sm:$0xff] }
 0x15b   :  { %v9298_v19 = vadd.f32 %v4525_v18, %v4236_v17  ;;  %v4238_v22 = vpop.f32.mrf.mxu0  ;;  %5045 = vmatprep.mubr.bf16.mxu1 %v7434_v13  ;;  %5283 = vmatpush1.bf16.msra.mxu0 %v8400_v14  ;;  %v7464_v13 = vcombine.high %v116_v59, %v124_v60  ;;  %v8408_v17 = vld [vmem:[%s12951_s1 + $0x268] sm:$0xff]  }
 0x15c   :  { %v4527_v28 = vpop.f32.mrf.mxu1  ;;  %5572 = vmatpush1.bf16.msra.mxu1 %v8401_v16  ;;  %5284 = vmatprep.subr.bf16.mxu0 %v12956_v0  ;;  %v7466_v16 = vcombine.high %v117_v63, %v125_v1  ;;  %v8409_v22 = vld [vmem:[%s12951_s1 + $0x2e8] sm:$0xff]  }
 0x15d   :  { %v4239_v35 = vpop.f32.mrf.mxu0  ;;  %5573 = vmatprep.subr.bf16.mxu1 %v12956_v0 }
 0x15e   :  { %v4528_v37 = vpop.f32.mrf.mxu1 }
 0x15f   :  { %v9320_v42 = vadd.f32 %v4528_v37, %v4239_v35  ;;  %v4241_v43 = vpop.f32.mrf.mxu0  ;;  %5285 = vmatpush1.bf16.msra.mxu0 %v8402_v27  ;;  %v133_v35 = vld [vmem:[%s12952_s0 + $0x398] sm:$0xff] }
 0x160   :  { %v4530_v48 = vpop.f32.mrf.mxu1  ;;  %5574 = vmatpush1.bf16.msra.mxu1 %v8403_v34  ;;  %5286 = vmatprep.subr.bf16.mxu0 %v12956_v0  ;;  %v7465_v43 = vcombine.low %v117_v63, %v125_v1  ;;  %v8410_v63 = vld [vmem:[%s12951_s1 + $0x260] sm:$0xff]  }
 0x161   :  { %v4244_v50 = vpop.f32.mrf.mxu0  ;;  %4757 = vmatmul.mubr.bf16.gmra.mxu0 %v7431_v36  ;;  %5575 = vmatprep.subr.bf16.mxu1 %v12956_v0  ;;  %v141_v36 = vld [vmem:[%s12952_s0 + $0x3d8] sm:$0xff] }
 0x162   :  { %v4533_v54 = vpop.f32.mrf.mxu1  ;;  %5046 = vmatmul.mubr.bf16.gmra.mxu1 %v7433_v38  ;;  %4764 = vmatprep.mubr.bf16.mxu0 %v7448_v40  ;;  %v7463_v38 = vcombine.low %v116_v59, %v124_v60  ;;  %v148_v59 = vld [vmem:[%s12952_s0 + $0x410] sm:$0xff] }
 0x163   :  { %v9330_v55 = vadd.f32 %v4533_v54, %v4244_v50  ;;  %v4246_v56 = vpop.f32.mrf.mxu0  ;;  %5053 = vmatprep.mubr.bf16.mxu1 %v7450_v44  ;;  %5287 = vmatpush2.bf16.msra.mxu0 %v8404_v47  ;;  %v7480_v44 = vcombine.high %v132_v29, %v140_v32  ;;  %v156_v60 = vld [vmem:[%s12952_s0 + $0x450] sm:$0xff] }
 0x164   :  { %v4535_v62 = vpop.f32.mrf.mxu1  ;;  %5576 = vmatpush2.bf16.msra.mxu1 %v8405_v49  ;;  %5288 = vmatprep.subr.bf16.mxu0 %v12956_v0  ;;  %v7482_v49 = vcombine.high %v133_v35, %v141_v36 }
 0x165   :  { %v4247_v4 = vpop.f32.mrf.mxu0  ;;  %5577 = vmatprep.subr.bf16.mxu1 %v12956_v0 }
 0x166   :  { %v4536_v7 = vpop.f32.mrf.mxu1 }
 0x167   :  { %v9352_v14 = vadd.f32 %v4536_v7, %v4247_v4  ;;  %v4249_v15 = vpop.f32.mrf.mxu0  ;;  %5289 = vmatpush2.bf16.msra.mxu0 %v8406_v61  ;;  %v157_v4 = vld [vmem:[%s12952_s0 + $0x458] sm:$0xff] }
 0x168   :  { %v4538_v18 = vpop.f32.mrf.mxu1  ;;  %5578 = vmatpush2.bf16.msra.mxu1 %v8407_v3  ;;  %5290 = vmatprep.subr.bf16.mxu0 %v12956_v0  ;;  %v149_v3 = vld [vmem:[%s12952_s0 + $0x418] sm:$0xff]  ;;  %v7481_v15 = vcombine.low %v133_v35, %v141_v36  ;;  %v172_v35 = vld [vmem:[%s12952_s0 + $0x4d0] sm:$0xff] }
 0x169   :  { %v4252_v24 = vpop.f32.mrf.mxu0  ;;  %4765 = vmatmul.mubr.bf16.gmra.mxu0 %v7447_v5  ;;  %5579 = vmatprep.subr.bf16.mxu1 %v12956_v0  ;;  %v8411_v5 = vld [vmem:[%s12951_s1 + $0x2e0] sm:$0xff]  }
 0x16a   :  { %v4541_v26 = vpop.f32.mrf.mxu1  ;;  %5054 = vmatmul.mubr.bf16.gmra.mxu1 %v7449_v10  ;;  %4772 = vmatprep.mubr.bf16.mxu0 %v7464_v13  ;;  %v7479_v10 = vcombine.low %v132_v29, %v140_v32 }
 0x16b   :  { %v9362_v27 = vadd.f32 %v4541_v26, %v4252_v24  ;;  %v4254_v28 = vpop.f32.mrf.mxu0  ;;  %5061 = vmatprep.mubr.bf16.mxu1 %v7466_v16  ;;  %5291 = vmatpush2.bf16.msra.mxu0 %v8408_v17  ;;  %v7496_v16 = vcombine.high %v148_v59, %v156_v60 }
 0x16c   :  { %v4543_v34 = vpop.f32.mrf.mxu1  ;;  %5580 = vmatpush2.bf16.msra.mxu1 %v8409_v22  ;;  %5292 = vmatprep.subr.bf16.mxu0 %v12956_v0  ;;  %v7498_v22 = vcombine.high %v149_v3, %v157_v4 }
 0x16d   :  { %v4255_v37 = vpop.f32.mrf.mxu0  ;;  %5581 = vmatprep.subr.bf16.mxu1 %v12956_v0  ;;  %v164_v34 = vld [vmem:[%s12952_s0 + $0x490] sm:$0xff] }
 0x16e   :  { %v4544_v40 = vpop.f32.mrf.mxu1 }
 0x16f   :  { %v9378_v47 = vadd.f32 %v4544_v40, %v4255_v37  ;;  %v4257_v48 = vpop.f32.mrf.mxu0  ;;  %5293 = vmatpush2.bf16.msra.mxu0 %v8410_v63  ;;  %v165_v37 = vld [vmem:[%s12952_s0 + $0x498] sm:$0xff] }
 0x170   :  { %v4546_v50 = vpop.f32.mrf.mxu1  ;;  %5582 = vmatpush2.bf16.msra.mxu1 %v8411_v5  ;;  %5294 = vmatprep.subr.bf16.mxu0 %v12956_v0  ;;  %v7497_v48 = vcombine.low %v149_v3, %v157_v4  ;;  %v181_v3 = vld [vmem:[%s12952_s0 + $0x518] sm:$0xff] }
 0x171   :  { %v4260_v54 = vpop.f32.mrf.mxu0  ;;  %4773 = vmatmul.mubr.bf16.gmra.mxu0 %v7463_v38  ;;  %5583 = vmatprep.subr.bf16.mxu1 %v12956_v0  ;;  %v173_v38 = vld [vmem:[%s12952_s0 + $0x4d8] sm:$0xff] }
 0x172   :  { %v4549_v56 = vpop.f32.mrf.mxu1  ;;  %5062 = vmatmul.mubr.bf16.gmra.mxu1 %v7465_v43  ;;  %4780 = vmatprep.mubr.bf16.mxu0 %v7480_v44  ;;  %v7495_v43 = vcombine.low %v148_v59, %v156_v60  ;;  %v180_v59 = vld [vmem:[%s12952_s0 + $0x510] sm:$0xff] }
 0x173   :  { %v9380_v61 = vadd.f32 %v4549_v56, %v4260_v54  ;;  %v4262_v62 = vpop.f32.mrf.mxu0  ;;  %5069 = vmatprep.mubr.bf16.mxu1 %v7482_v49  ;;  %v7512_v49 = vcombine.high %v164_v34, %v172_v35  ;;  %v7514_v56 = vcombine.high %v165_v37, %v173_v38  ;;  %v188_v60 = vld [vmem:[%s12952_s0 + $0x550] sm:$0xff] }
 0x174   :  { %v4551_v1 = vpop.f32.mrf.mxu1 }
 0x175   :  { %v4263_v7 = vpop.f32.mrf.mxu0 }
 0x176   :  { %v4552_v13 = vpop.f32.mrf.mxu1 }
 0x177   :  { %v9401_v17 = vadd.f32 %v4552_v13, %v4263_v7  ;;  %v4265_v18 = vpop.f32.mrf.mxu0  ;;  %v8412_v13 = vld [vmem:[%s12951_s1 + $0x258] sm:$0xff]  }
 0x178   :  { %v4554_v24 = vpop.f32.mrf.mxu1  ;;  %v7511_v18 = vcombine.low %v164_v34, %v172_v35  ;;  %5295 = vmatpush2.bf16.msra.mxu0 %v8412_v13 }
 0x179   :  { %v4268_v26 = vpop.f32.mrf.mxu0  ;;  %4781 = vmatmul.mubr.bf16.gmra.mxu0 %v7479_v10  ;;  %v189_v10 = vld [vmem:[%s12952_s0 + $0x558] sm:$0xff]  ;;  %v7513_v24 = vcombine.low %v165_v37, %v173_v38  ;;  %5296 = vmatprep.subr.bf16.mxu0 %v12956_v0  ;;  %v196_v37 = vld [vmem:[%s12952_s0 + $0x590] sm:$0xff] }
 0x17a   :  { %v4557_v28 = vpop.f32.mrf.mxu1  ;;  %5070 = vmatmul.mubr.bf16.gmra.mxu1 %v7481_v15  ;;  %4788 = vmatprep.mubr.bf16.mxu0 %v7496_v16  ;;  %v8413_v15 = vld [vmem:[%s12951_s1 + $0x2d8] sm:$0xff]   ;;  %v204_v38 = vld [vmem:[%s12952_s0 + $0x5d0] sm:$0xff] }
 0x17b   :  { %v9404_v29 = vadd.f32 %v4557_v28, %v4268_v26  ;;  %v4270_v32 = vpop.f32.mrf.mxu0  ;;  %5077 = vmatprep.mubr.bf16.mxu1 %v7498_v22  ;;  %v7528_v26 = vcombine.high %v180_v59, %v188_v60  ;;  %5584 = vmatpush2.bf16.msra.mxu1 %v8413_v15 }
 0x17c   :  { %v4559_v36 = vpop.f32.mrf.mxu1  ;;  %5585 = vmatprep.subr.bf16.mxu1 %v12956_v0 }
 0x17d   :  { %v4271_v40 = vpop.f32.mrf.mxu0  ;;  %v7530_v36 = vcombine.high %v181_v3, %v189_v10 }
 0x17e   :  { %v4560_v44 = vpop.f32.mrf.mxu1 }
 0x17f   :  { %v9418_v50 = vadd.f32 %v4560_v44, %v4271_v40  ;;  %v4273_v54 = vpop.f32.mrf.mxu0 }
 0x180   :  { %v4562_v62 = vpop.f32.mrf.mxu1  ;;  %v205_v54 = vld [vmem:[%s12952_s0 + $0x5d8] sm:$0xff] }
 0x181   :  { %v4276_v63 = vpop.f32.mrf.mxu0  ;;  %4789 = vmatmul.mubr.bf16.gmra.mxu0 %v7495_v43  ;;  %v7527_v62 = vcombine.low %v180_v59, %v188_v60  ;;  %v212_v59 = vld [vmem:[%s12952_s0 + $0x610] sm:$0xff] }
 0x182   :  { %v4565_v1 = vpop.f32.mrf.mxu1  ;;  %5078 = vmatmul.mubr.bf16.gmra.mxu1 %v7497_v48  ;;  %4796 = vmatprep.mubr.bf16.mxu0 %v7512_v49  ;;  %v197_v49 = vld [vmem:[%s12952_s0 + $0x598] sm:$0xff]  ;;  %v220_v60 = vld [vmem:[%s12952_s0 + $0x650] sm:$0xff] }
 0x183   :  { %v9420_v5 = vadd.f32 %v4565_v1, %v4276_v63  ;;  %v4278_v7 = vpop.f32.mrf.mxu0  ;;  %5085 = vmatprep.mubr.bf16.mxu1 %v7514_v56  ;;  %v7529_v1 = vcombine.low %v181_v3, %v189_v10  ;;  %v7546_v15 = vcombine.high %v197_v49, %v205_v54  ;;  %v213_v3 = vld [vmem:[%s12952_s0 + $0x618] sm:$0xff] }
 0x184   :  { %v4567_v4 = vpop.f32.mrf.mxu1  ;;  %v7544_v7 = vcombine.high %v196_v37, %v204_v38 }
 0x185   :  { %v4279_v16 = vpop.f32.mrf.mxu0 }
 0x186   :  { %v4568_v22 = vpop.f32.mrf.mxu1 }
 0x187   :  { %v9440_v28 = vadd.f32 %v4568_v22, %v4279_v16  ;;  %v4281_v32 = vpop.f32.mrf.mxu0 }
 0x188   :  { %v4570_v40 = vpop.f32.mrf.mxu1  ;;  %v221_v32 = vld [vmem:[%s12952_s0 + $0x658] sm:$0xff] }
 0x189   :  { %v4284_v43 = vpop.f32.mrf.mxu0  ;;  %4797 = vmatmul.mubr.bf16.gmra.mxu0 %v7511_v18  ;;  %v8415_v40 = vld [vmem:[%s12951_s1 + $0x2d0] sm:$0xff]  }
 0x18a   :  { %v4573_v44 = vpop.f32.mrf.mxu1  ;;  %5086 = vmatmul.mubr.bf16.gmra.mxu1 %v7513_v24  ;;  %4804 = vmatprep.mubr.bf16.mxu0 %v7528_v26 }
 0x18b   :  { %v9444_v34 = vadd.f32 %v4573_v44, %v4284_v43  ;;  %v4286_v35 = vpop.f32.mrf.mxu0  ;;  %5093 = vmatprep.mubr.bf16.mxu1 %v7530_v36  ;;  %v8414_v36 = vld [vmem:[%s12951_s1 + $0x250] sm:$0xff]   ;;  %v7543_v44 = vcombine.low %v196_v37, %v204_v38  ;;  %5586 = vmatpush2.bf16.msra.mxu1 %v8415_v40  ;;  %v7561_v40 = vcombine.low %v213_v3, %v221_v32 }
 0x18c   :  { %v4575_v48 = vpop.f32.mrf.mxu1  ;;  %5297 = vmatpush2.bf16.msra.mxu0 %v8414_v36  ;;  %5587 = vmatprep.subr.bf16.mxu1 %v12956_v0 }
 0x18d   :  { %v4287_v56 = vpop.f32.mrf.mxu0  ;;  %v7545_v48 = vcombine.low %v197_v49, %v205_v54  ;;  %5298 = vmatprep.subr.bf16.mxu0 %v12956_v0  ;;  %v228_v49 = vld [vmem:[%s12952_s0 + $0x690] sm:$0xff] }
 0x18e   :  { %v4576_v63 = vpop.f32.mrf.mxu1  ;;  %v236_v54 = vld [vmem:[%s12952_s0 + $0x6d0] sm:$0xff] }
 0x18f   :  { %v9458_v4 = vadd.f32 %v4576_v63, %v4287_v56  ;;  %v4289_v13 = vpop.f32.mrf.mxu0  ;;  %v7560_v56 = vcombine.high %v212_v59, %v220_v60 }
 0x190   :  { %v4578_v16 = vpop.f32.mrf.mxu1 }
 0x191   :  { %v4292_v18 = vpop.f32.mrf.mxu0  ;;  %4805 = vmatmul.mubr.bf16.gmra.mxu0 %v7527_v62 }
 0x192   :  { %v4581_v22 = vpop.f32.mrf.mxu1  ;;  %5094 = vmatmul.mubr.bf16.gmra.mxu1 %v7529_v1  ;;  %4812 = vmatprep.mubr.bf16.mxu0 %v7544_v7  ;;  %v7562_v1 = vcombine.high %v213_v3, %v221_v32  ;;  %v245_v3 = vld [vmem:[%s12952_s0 + $0x718] sm:$0xff] }
 0x193   :  { %v9460_v24 = vadd.f32 %v4581_v22, %v4292_v18  ;;  %v4294_v26 = vpop.f32.mrf.mxu0  ;;  %5101 = vmatprep.mubr.bf16.mxu1 %v7546_v15  ;;  %v229_v18 = vld [vmem:[%s12952_s0 + $0x698] sm:$0xff] }
 0x194   :  { %v4583_v10 = vpop.f32.mrf.mxu1  ;;  %v237_v22 = vld [vmem:[%s12952_s0 + $0x6d8] sm:$0xff] }
 0x195   :  { %v4295_v43 = vpop.f32.mrf.mxu0  ;;  %v7559_v10 = vcombine.low %v212_v59, %v220_v60  ;;  %v244_v59 = vld [vmem:[%s12952_s0 + $0x710] sm:$0xff] }
 0x196   :  { %v4584_v35 = vpop.f32.mrf.mxu1  ;;  %v252_v60 = vld [vmem:[%s12952_s0 + $0x750] sm:$0xff] }
 0x197   :  { %v9480_v62 = vadd.f32 %v4584_v35, %v4295_v43  ;;  %v4297_v63 = vpop.f32.mrf.mxu0  ;;  %v7576_v43 = vcombine.high %v228_v49, %v236_v54 }
 0x198   :  { %v4586_v7 = vpop.f32.mrf.mxu1 }
 0x199   :  { %v4300_v13 = vpop.f32.mrf.mxu0  ;;  %4813 = vmatmul.mubr.bf16.gmra.mxu0 %v7543_v44 }
 0x19a   :  { %v4589_v15 = vpop.f32.mrf.mxu1  ;;  %5102 = vmatmul.mubr.bf16.gmra.mxu1 %v7545_v48  ;;  %4820 = vmatprep.mubr.bf16.mxu0 %v7560_v56  ;;  %v7578_v48 = vcombine.high %v229_v18, %v237_v22 }
 0x19b   :  { %v9484_v37 = vadd.f32 %v4589_v15, %v4300_v13  ;;  %v4302_v38 = vpop.f32.mrf.mxu0  ;;  %5109 = vmatprep.mubr.bf16.mxu1 %v7562_v1  ;;  %v253_v15 = vld [vmem:[%s12952_s0 + $0x758] sm:$0xff] }
 0x19c   :  { %v4591_v16 = vpop.f32.mrf.mxu1  ;;  %v8416_v38 = vld [vmem:[%s12951_s1 + $0x248] sm:$0xff]  }
 0x19d   :  { %v4303_v26 = vpop.f32.mrf.mxu0  ;;  %v8417_v16 = vld [vmem:[%s12951_s1 + $0x2c8] sm:$0xff]   ;;  %5299 = vmatpush2.bf16.msra.mxu0 %v8416_v38  ;;  %v261_v38 = vld [vmem:[%s12952_s0 + $0x798] sm:$0xff] }
 0x19e   :  { %v4592_v36 = vpop.f32.mrf.mxu1  ;;  %5588 = vmatpush2.bf16.msra.mxu1 %v8417_v16  ;;  %5300 = vmatprep.subr.bf16.mxu0 %v12956_v0  ;;  %v269_v16 = vld [vmem:[%s12952_s0 + $0x7d8] sm:$0xff] }
 0x19f   :  { %v9498_v44 = vadd.f32 %v4592_v36, %v4303_v26  ;;  %v4305_v35 = vpop.f32.mrf.mxu0  ;;  %5589 = vmatprep.subr.bf16.mxu1 %v12956_v0 }
 0x1a0   :  { %v4594_v56 = vpop.f32.mrf.mxu1 }
 0x1a1   :  { %v4308_v63 = vpop.f32.mrf.mxu0  ;;  %4821 = vmatmul.mubr.bf16.gmra.mxu0 %v7559_v10  ;;  %v7575_v10 = vcombine.low %v228_v49, %v236_v54  ;;  %v7594_v56 = vcombine.high %v245_v3, %v253_v15 }
 0x1a2   :  { %v4597_v1 = vpop.f32.mrf.mxu1  ;;  %5110 = vmatmul.mubr.bf16.gmra.mxu1 %v7561_v40  ;;  %4828 = vmatprep.mubr.bf16.mxu0 %v7576_v43  ;;  %v7577_v40 = vcombine.low %v229_v18, %v237_v22  ;;  %v7592_v43 = vcombine.high %v244_v59, %v252_v60  ;;  %v260_v18 = vld [vmem:[%s12952_s0 + $0x790] sm:$0xff] }
 0x1a3   :  { %v9500_v7 = vadd.f32 %v4597_v1, %v4308_v63  ;;  %v4310_v13 = vpop.f32.mrf.mxu0  ;;  %5117 = vmatprep.mubr.bf16.mxu1 %v7578_v48  ;;  %v268_v22 = vld [vmem:[%s12952_s0 + $0x7d0] sm:$0xff] }
 0x1a4   :  { %v4599_v32 = vpop.f32.mrf.mxu1 }
 0x1a5   :  { %v4311_v26 = vpop.f32.mrf.mxu0 }
 0x1a6   :  { %v4600_v36 = vpop.f32.mrf.mxu1 }
 0x1a7   :  { %v9520_v35 = vadd.f32 %v4600_v36, %v4311_v26  ;;  %v4313_v48 = vpop.f32.mrf.mxu0 }
 0x1a8   :  { %v4602_v63 = vpop.f32.mrf.mxu1 }
 0x1a9   :  { %v4316_v1 = vpop.f32.mrf.mxu0  ;;  %4829 = vmatmul.mubr.bf16.gmra.mxu0 %v7575_v10  ;;  %v7591_v10 = vcombine.low %v244_v59, %v252_v60  ;;  %v7610_v63 = vcombine.high %v261_v38, %v269_v16  ;;  %v276_v59 = vld [vmem:[%s12952_s0 + $0x810] sm:$0xff] }
 0x1aa   :  { %v4605_v13 = vpop.f32.mrf.mxu1  ;;  %5118 = vmatmul.mubr.bf16.gmra.mxu1 %v7577_v40  ;;  %4836 = vmatprep.mubr.bf16.mxu0 %v7592_v43  ;;  %v7593_v40 = vcombine.low %v245_v3, %v253_v15  ;;  %v7608_v43 = vcombine.high %v260_v18, %v268_v22  ;;  %v284_v60 = vld [vmem:[%s12952_s0 + $0x850] sm:$0xff]  ;;  %v277_v3 = vld [vmem:[%s12952_s0 + $0x818] sm:$0xff] }
 0x1ab   :  { %v9524_v49 = vadd.f32 %v4605_v13, %v4316_v1  ;;  %v4318_v54 = vpop.f32.mrf.mxu0  ;;  %5125 = vmatprep.mubr.bf16.mxu1 %v7594_v56 }
 0x1ac   :  { %v4607_v32 = vpop.f32.mrf.mxu1 }
 0x1ad   :  { %13031 = vst [vmem:[#allocation2_spill] sm:$0xff] %v9524_v49  ;;  %v4319_v26 = vpop.f32.mrf.mxu0 }
 0x1ae   :  { %v4608_v36 = vpop.f32.mrf.mxu1 }
 0x1af   :  { %v9538_v48 = vadd.f32 %v4608_v36, %v4319_v26  ;;  %v4321_v56 = vpop.f32.mrf.mxu0  ;;  %v285_v26 = vld [vmem:[%s12952_s0 + $0x858] sm:$0xff] }
 0x1b0   :  { %v4610_v1 = vpop.f32.mrf.mxu1  ;;  %v7609_v56 = vcombine.low %v261_v38, %v269_v16  ;;  %v292_v38 = vld [vmem:[%s12952_s0 + $0x890] sm:$0xff] }
 0x1b1   :  { %13032 = vst [vmem:[#allocation3_spill] sm:$0xff] %v9538_v48  ;;  %v4324_v13 = vpop.f32.mrf.mxu0  ;;  %4837 = vmatmul.mubr.bf16.gmra.mxu0 %v7591_v10  ;;  %v8419_v10 = vld [vmem:[%s12951_s1 + $0x2c0] sm:$0xff]   ;;  %v300_v16 = vld [vmem:[%s12952_s0 + $0x8d0] sm:$0xff] }
 0x1b2   :  { %v4613_v54 = vpop.f32.mrf.mxu1  ;;  %5126 = vmatmul.mubr.bf16.gmra.mxu1 %v7593_v40  ;;  %4844 = vmatprep.mubr.bf16.mxu0 %v7608_v43  ;;  %v7607_v40 = vcombine.low %v260_v18, %v268_v22 }
 0x1b3   :  { %v9540_v32 = vadd.f32 %v4613_v54, %v4324_v13  ;;  %v4326_v0 = vpop.f32.mrf.mxu0  ;;  %5133 = vmatprep.mubr.bf16.mxu1 %v7610_v63  ;;  %v7624_v63 = vcombine.high %v276_v59, %v284_v60  ;;  %5590 = vmatpush2.bf16.msra.mxu1 %v8419_v10  ;;  %v7626_v54 = vcombine.high %v277_v3, %v285_v26 }
 0x1b4   :  { %v4615_v15 = vpop.f32.mrf.mxu1  ;;  %v8418_v0 = vld [vmem:[%s12951_s1 + $0x240] sm:$0xff]   ;;  %v7623_v10 = vcombine.low %v276_v59, %v284_v60  ;;  %v308_v59 = vld [vmem:[%s12952_s0 + $0x910] sm:$0xff] }
 0x1b5   :  { %13033 = vst [vmem:[#allocation4_spill] sm:$0xff] %v9540_v32  ;;  %v4327_v36 = vpop.f32.mrf.mxu0  ;;  %5301 = vmatpush2.bf16.msra.mxu0 %v8418_v0  ;;  %v13035_v15 = vmov 0   ;;  %v316_v60 = vld [vmem:[%s12952_s0 + $0x950] sm:$0xff] }
 0x1b6   :  { %v4616_v43 = vpop.f32.mrf.mxu1  ;;  %5848 = vmatprep.subr.bf16.mxu0 %v13035_v15  ;;  %6137 = vmatprep.subr.bf16.mxu1 %v13035_v15 }
 0x1b7   :  { %v9560_v1 = vadd.f32 %v4616_v43, %v4327_v36  ;;  %v4329_v13 = vpop.f32.mrf.mxu0  ;;  %v7640_v43 = vcombine.high %v292_v38, %v300_v16 }
 0x1b8   :  { %v4618_v32 = vpop.f32.mrf.mxu1 }
 0x1b9   :  { %13034 = vst [vmem:[#allocation5_spill] sm:$0xff] %v9560_v1  ;;  %v4332_v48 = vpop.f32.mrf.mxu0  ;;  %4845 = vmatmul.mubr.bf16.gmra.mxu0 %v7607_v40  ;;  %v293_v32 = vld [vmem:[%s12952_s0 + $0x898] sm:$0xff]  ;;  %v7625_v40 = vcombine.low %v277_v3, %v285_v26 }
 0x1ba   :  { %v4621_v49 = vpop.f32.mrf.mxu1  ;;  %5134 = vmatmul.mubr.bf16.gmra.mxu1 %v7609_v56  ;;  %4852 = vmatprep.mubr.bf16.mxu0 %v7624_v63  ;;  %v309_v26 = vld [vmem:[%s12952_s0 + $0x918] sm:$0xff] }
 0x1bb   :  { %v9564_v18 = vadd.f32 %v4621_v49, %v4332_v48  ;;  %v4334_v22 = vpop.f32.mrf.mxu0  ;;  %5141 = vmatprep.mubr.bf16.mxu1 %v7626_v54  ;;  %v301_v49 = vld [vmem:[%s12952_s0 + $0x8d8] sm:$0xff] }
 0x1bc   :  { %v4623_v0 = vpop.f32.mrf.mxu1  ;;  %v7642_v13 = vcombine.high %v293_v32, %v301_v49 }
 0x1bd   :  { %13036 = vst [vmem:[#allocation6_spill] sm:$0xff] %v9564_v18  ;;  %v4335_v48 = vpop.f32.mrf.mxu0 }
 0x1be   :  { %v4624_v36 = vpop.f32.mrf.mxu1 }
 0x1bf   :  { %v9578_v56 = vadd.f32 %v4624_v36, %v4335_v48  ;;  %v4337_v63 = vpop.f32.mrf.mxu0  ;;  %v317_v48 = vld [vmem:[%s12952_s0 + $0x958] sm:$0xff] }
 0x1c0   :  { %v4626_v54 = vpop.f32.mrf.mxu1 }
 0x1c1   :  { %13037 = vst [vmem:[#allocation7_spill] sm:$0xff] %v9578_v56  ;;  %v4340_v22 = vpop.f32.mrf.mxu0  ;;  %4853 = vmatmul.mubr.bf16.gmra.mxu0 %v7623_v10  ;;  %v7658_v54 = vcombine.high %v309_v26, %v317_v48 }
 0x1c2   :  { %v4629_v0 = vpop.f32.mrf.mxu1  ;;  %5142 = vmatmul.mubr.bf16.gmra.mxu1 %v7625_v40  ;;  %4860 = vmatprep.mubr.bf16.mxu0 %v7640_v43  ;;  %v7641_v40 = vcombine.low %v293_v32, %v301_v49  ;;  %v7656_v43 = vcombine.high %v308_v59, %v316_v60  ;;  %v325_v49 = vld [vmem:[%s12952_s0 + $0x998] sm:$0xff] }
 0x1c3   :  { %v9580_v18 = vadd.f32 %v4629_v0, %v4340_v22  ;;  %v4342_v1 = vpop.f32.mrf.mxu0  ;;  %5149 = vmatprep.mubr.bf16.mxu1 %v7642_v13 }
 0x1c4   :  { %v4631_v3 = vpop.f32.mrf.mxu1  ;;  %v7639_v1 = vcombine.low %v292_v38, %v300_v16  ;;  %v324_v38 = vld [vmem:[%s12952_s0 + $0x990] sm:$0xff] }
 0x1c5   :  { %13038 = vst [vmem:[#allocation8_spill] sm:$0xff] %v9580_v18  ;;  %v4343_v10 = vpop.f32.mrf.mxu0  ;;  %v332_v16 = vld [vmem:[%s12952_s0 + $0x9d0] sm:$0xff] }
 0x1c6   :  { %v4632_v36 = vpop.f32.mrf.mxu1 }
 0x1c7   :  { %v9594_v63 = vadd.f32 %v4632_v36, %v4343_v10  ;;  %v4345_v13 = vpop.f32.mrf.mxu0  ;;  %v333_v10 = vld [vmem:[%s12952_s0 + $0x9d8] sm:$0xff] }
 0x1c8   :  { %v4634_v22 = vpop.f32.mrf.mxu1 }
 0x1c9   :  { %13039 = vst [vmem:[#allocation9_spill] sm:$0xff] %v9594_v63  ;;  %v4348_v0 = vpop.f32.mrf.mxu0  ;;  %4861 = vmatmul.mubr.bf16.gmra.mxu0 %v7639_v1  ;;  %v7674_v22 = vcombine.high %v325_v49, %v333_v10 }
 0x1ca   :  { %v4637_v3 = vpop.f32.mrf.mxu1  ;;  %5150 = vmatmul.mubr.bf16.gmra.mxu1 %v7641_v40  ;;  %4868 = vmatprep.mubr.bf16.mxu0 %v7656_v43  ;;  %v7657_v40 = vcombine.low %v309_v26, %v317_v48  ;;  %v7672_v43 = vcombine.high %v324_v38, %v332_v16  ;;  %v341_v48 = vld [vmem:[%s12952_s0 + $0xa18] sm:$0xff] }
 0x1cb   :  { %v9596_v18 = vadd.f32 %v4637_v3, %v4348_v0  ;;  %v4350_v56 = vpop.f32.mrf.mxu0  ;;  %5157 = vmatprep.mubr.bf16.mxu1 %v7658_v54 }
 0x1cc   :  { %v4639_v32 = vpop.f32.mrf.mxu1  ;;  %v7655_v56 = vcombine.low %v308_v59, %v316_v60  ;;  %v340_v59 = vld [vmem:[%s12952_s0 + $0xa10] sm:$0xff] }
 0x1cd   :  { %13040 = vst [vmem:[#allocation10_spill] sm:$0xff] %v9596_v18  ;;  %v4351_v1 = vpop.f32.mrf.mxu0  ;;  %v348_v60 = vld [vmem:[%s12952_s0 + $0xa50] sm:$0xff] }
 0x1ce   :  { %v4640_v36 = vpop.f32.mrf.mxu1 }
 0x1cf   :  { %v9610_v13 = vadd.f32 %v4640_v36, %v4351_v1  ;;  %v4353_v54 = vpop.f32.mrf.mxu0  ;;  %v349_v1 = vld [vmem:[%s12952_s0 + $0xa58] sm:$0xff] }
 0x1d0   :  { %v4642_v0 = vpop.f32.mrf.mxu1 }
 0x1d1   :  { %13041 = vst [vmem:[#allocation11_spill] sm:$0xff] %v9610_v13  ;;  %v4356_v3 = vpop.f32.mrf.mxu0  ;;  %4869 = vmatmul.mubr.bf16.gmra.mxu0 %v7655_v56  ;;  %v7690_v0 = vcombine.high %v341_v48, %v349_v1 }
 0x1d2   :  { %v4645_v32 = vpop.f32.mrf.mxu1  ;;  %5158 = vmatmul.mubr.bf16.gmra.mxu1 %v7657_v40  ;;  %4876 = vmatprep.mubr.bf16.mxu0 %v7672_v43  ;;  %v7673_v40 = vcombine.low %v325_v49, %v333_v10  ;;  %v7688_v43 = vcombine.high %v340_v59, %v348_v60  ;;  %v357_v10 = vld [vmem:[%s12952_s0 + $0xa98] sm:$0xff] }
 0x1d3   :  { %v9612_v18 = vadd.f32 %v4645_v32, %v4356_v3  ;;  %v4358_v63 = vpop.f32.mrf.mxu0  ;;  %5165 = vmatprep.mubr.bf16.mxu1 %v7674_v22 }
 0x1d4   :  { %v4647_v26 = vpop.f32.mrf.mxu1  ;;  %v7671_v63 = vcombine.low %v324_v38, %v332_v16  ;;  %v356_v38 = vld [vmem:[%s12952_s0 + $0xa90] sm:$0xff] }
 0x1d5   :  { %13042 = vst [vmem:[#allocation12_spill] sm:$0xff] %v9612_v18  ;;  %v4359_v56 = vpop.f32.mrf.mxu0  ;;  %v364_v16 = vld [vmem:[%s12952_s0 + $0xad0] sm:$0xff] }
 0x1d6   :  { %v4648_v36 = vpop.f32.mrf.mxu1 }
 0x1d7   :  { %v9626_v54 = vadd.f32 %v4648_v36, %v4359_v56  ;;  %v4361_v22 = vpop.f32.mrf.mxu0  ;;  %v365_v56 = vld [vmem:[%s12952_s0 + $0xad8] sm:$0xff] }
 0x1d8   :  { %v4650_v3 = vpop.f32.mrf.mxu1 }
 0x1d9   :  { %13043 = vst [vmem:[#allocation13_spill] sm:$0xff] %v9626_v54  ;;  %v4364_v32 = vpop.f32.mrf.mxu0  ;;  %4877 = vmatmul.mubr.bf16.gmra.mxu0 %v7671_v63  ;;  %v7706_v3 = vcombine.high %v357_v10, %v365_v56 }
 0x1da   :  { %v4653_v26 = vpop.f32.mrf.mxu1  ;;  %5166 = vmatmul.mubr.bf16.gmra.mxu1 %v7673_v40  ;;  %4884 = vmatprep.mubr.bf16.mxu0 %v7688_v43  ;;  %v7689_v40 = vcombine.low %v341_v48, %v349_v1  ;;  %v7704_v43 = vcombine.high %v356_v38, %v364_v16  ;;  %v373_v1 = vld [vmem:[%s12952_s0 + $0xb18] sm:$0xff] }
 0x1db   :  { %v9628_v18 = vadd.f32 %v4653_v26, %v4364_v32  ;;  %v4366_v13 = vpop.f32.mrf.mxu0  ;;  %5173 = vmatprep.mubr.bf16.mxu1 %v7690_v0 }
 0x1dc   :  { %v4655_v49 = vpop.f32.mrf.mxu1  ;;  %v7687_v13 = vcombine.low %v340_v59, %v348_v60  ;;  %v372_v59 = vld [vmem:[%s12952_s0 + $0xb10] sm:$0xff] }
 0x1dd   :  { %13044 = vst [vmem:[#allocation14_spill] sm:$0xff] %v9628_v18  ;;  %v4367_v63 = vpop.f32.mrf.mxu0  ;;  %v380_v60 = vld [vmem:[%s12952_s0 + $0xb50] sm:$0xff] }
 0x1de   :  { %v4656_v36 = vpop.f32.mrf.mxu1 }
 0x1df   :  { %v9642_v22 = vadd.f32 %v4656_v36, %v4367_v63  ;;  %v4369_v0 = vpop.f32.mrf.mxu0  ;;  %v381_v63 = vld [vmem:[%s12952_s0 + $0xb58] sm:$0xff] }
 0x1e0   :  { %v4658_v32 = vpop.f32.mrf.mxu1 }
 0x1e1   :  { %13045 = vst [vmem:[#allocation15_spill] sm:$0xff] %v9642_v22  ;;  %v4372_v26 = vpop.f32.mrf.mxu0  ;;  %4885 = vmatmul.mubr.bf16.gmra.mxu0 %v7687_v13  ;;  %v7722_v32 = vcombine.high %v373_v1, %v381_v63 }
 0x1e2   :  { %v4661_v49 = vpop.f32.mrf.mxu1  ;;  %5174 = vmatmul.mubr.bf16.gmra.mxu1 %v7689_v40  ;;  %4892 = vmatprep.mubr.bf16.mxu0 %v7704_v43  ;;  %v7705_v40 = vcombine.low %v357_v10, %v365_v56  ;;  %v7720_v43 = vcombine.high %v372_v59, %v380_v60  ;;  %v389_v56 = vld [vmem:[%s12952_s0 + $0xb98] sm:$0xff] }
 0x1e3   :  { %v9644_v18 = vadd.f32 %v4661_v49, %v4372_v26  ;;  %v4374_v54 = vpop.f32.mrf.mxu0  ;;  %5181 = vmatprep.mubr.bf16.mxu1 %v7706_v3 }
 0x1e4   :  { %v4663_v48 = vpop.f32.mrf.mxu1  ;;  %v7703_v54 = vcombine.low %v356_v38, %v364_v16  ;;  %v388_v38 = vld [vmem:[%s12952_s0 + $0xb90] sm:$0xff] }
 0x1e5   :  { %13046 = vst [vmem:[#allocation16_spill] sm:$0xff] %v9644_v18  ;;  %v4375_v13 = vpop.f32.mrf.mxu0  ;;  %v396_v16 = vld [vmem:[%s12952_s0 + $0xbd0] sm:$0xff] }
 0x1e6   :  { %v4664_v36 = vpop.f32.mrf.mxu1 }
 0x1e7   :  { %v9658_v0 = vadd.f32 %v4664_v36, %v4375_v13  ;;  %v4377_v3 = vpop.f32.mrf.mxu0  ;;  %v397_v13 = vld [vmem:[%s12952_s0 + $0xbd8] sm:$0xff] }
 0x1e8   :  { %v4666_v26 = vpop.f32.mrf.mxu1 }
 0x1e9   :  { %13047 = vst [vmem:[#allocation17_spill] sm:$0xff] %v9658_v0  ;;  %v4380_v49 = vpop.f32.mrf.mxu0  ;;  %4893 = vmatmul.mubr.bf16.gmra.mxu0 %v7703_v54  ;;  %v7738_v26 = vcombine.high %v389_v56, %v397_v13 }
 0x1ea   :  { %v4669_v48 = vpop.f32.mrf.mxu1  ;;  %5182 = vmatmul.mubr.bf16.gmra.mxu1 %v7705_v40  ;;  %4900 = vmatprep.mubr.bf16.mxu0 %v7720_v43  ;;  %v7721_v40 = vcombine.low %v373_v1, %v381_v63  ;;  %v7736_v43 = vcombine.high %v388_v38, %v396_v16  ;;  %v405_v63 = vld [vmem:[%s12952_s0 + $0xc18] sm:$0xff] }
 0x1eb   :  { %v9660_v18 = vadd.f32 %v4669_v48, %v4380_v49  ;;  %v4382_v22 = vpop.f32.mrf.mxu0  ;;  %5189 = vmatprep.mubr.bf16.mxu1 %v7722_v32 }
 0x1ec   :  { %v4671_v10 = vpop.f32.mrf.mxu1  ;;  %v7719_v22 = vcombine.low %v372_v59, %v380_v60  ;;  %v404_v59 = vld [vmem:[%s12952_s0 + $0xc10] sm:$0xff] }
 0x1ed   :  { %13048 = vst [vmem:[#allocation18_spill] sm:$0xff] %v9660_v18  ;;  %v4383_v54 = vpop.f32.mrf.mxu0  ;;  %v412_v60 = vld [vmem:[%s12952_s0 + $0xc50] sm:$0xff] }
 0x1ee   :  { %v4672_v36 = vpop.f32.mrf.mxu1 }
 0x1ef   :  { %v9674_v3 = vadd.f32 %v4672_v36, %v4383_v54  ;;  %v4385_v32 = vpop.f32.mrf.mxu0  ;;  %v413_v54 = vld [vmem:[%s12952_s0 + $0xc58] sm:$0xff] }
 0x1f0   :  { %v4674_v49 = vpop.f32.mrf.mxu1 }
 0x1f1   :  { %13049 = vst [vmem:[#allocation19_spill] sm:$0xff] %v9674_v3  ;;  %v4388_v48 = vpop.f32.mrf.mxu0  ;;  %4901 = vmatmul.mubr.bf16.gmra.mxu0 %v7719_v22  ;;  %v7754_v49 = vcombine.high %v405_v63, %v413_v54 }
 0x1f2   :  { %v4677_v10 = vpop.f32.mrf.mxu1  ;;  %5190 = vmatmul.mubr.bf16.gmra.mxu1 %v7721_v40  ;;  %4908 = vmatprep.mubr.bf16.mxu0 %v7736_v43  ;;  %v7737_v40 = vcombine.low %v389_v56, %v397_v13  ;;  %v7752_v43 = vcombine.high %v404_v59, %v412_v60  ;;  %v421_v13 = vld [vmem:[%s12952_s0 + $0xc98] sm:$0xff] }
 0x1f3   :  { %v9676_v18 = vadd.f32 %v4677_v10, %v4388_v48  ;;  %v4390_v0 = vpop.f32.mrf.mxu0  ;;  %5197 = vmatprep.mubr.bf16.mxu1 %v7738_v26 }
 0x1f4   :  { %v4679_v1 = vpop.f32.mrf.mxu1  ;;  %v7735_v0 = vcombine.low %v388_v38, %v396_v16  ;;  %v420_v38 = vld [vmem:[%s12952_s0 + $0xc90] sm:$0xff] }
 0x1f5   :  { %13050 = vst [vmem:[#allocation20_spill] sm:$0xff] %v9676_v18  ;;  %v4391_v22 = vpop.f32.mrf.mxu0  ;;  %v428_v16 = vld [vmem:[%s12952_s0 + $0xcd0] sm:$0xff] }
 0x1f6   :  { %v4680_v36 = vpop.f32.mrf.mxu1 }
 0x1f7   :  { %v9690_v32 = vadd.f32 %v4680_v36, %v4391_v22  ;;  %v4393_v26 = vpop.f32.mrf.mxu0  ;;  %v429_v22 = vld [vmem:[%s12952_s0 + $0xcd8] sm:$0xff] }
 0x1f8   :  { %v4682_v48 = vpop.f32.mrf.mxu1 }
 0x1f9   :  { %13051 = vst [vmem:[#allocation21_spill] sm:$0xff] %v9690_v32  ;;  %v4396_v10 = vpop.f32.mrf.mxu0  ;;  %4909 = vmatmul.mubr.bf16.gmra.mxu0 %v7735_v0  ;;  %v7770_v48 = vcombine.high %v421_v13, %v429_v22 }
 0x1fa   :  { %v4685_v1 = vpop.f32.mrf.mxu1  ;;  %5198 = vmatmul.mubr.bf16.gmra.mxu1 %v7737_v40  ;;  %4916 = vmatprep.mubr.bf16.mxu0 %v7752_v43  ;;  %v7753_v40 = vcombine.low %v405_v63, %v413_v54  ;;  %v7768_v43 = vcombine.high %v420_v38, %v428_v16 }
 0x1fb   :  { %v9692_v18 = vadd.f32 %v4685_v1, %v4396_v10  ;;  %v4398_v3 = vpop.f32.mrf.mxu0  ;;  %5205 = vmatprep.mubr.bf16.mxu1 %v7754_v49 }
 0x1fc   :  { %v4687_v56 = vpop.f32.mrf.mxu1  ;;  %v7751_v3 = vcombine.low %v404_v59, %v412_v60  ;;  %v436_v59 = vld [vmem:[%s12952_s0 + $0xd10] sm:$0xff] }
 0x1fd   :  { %13052 = vst [vmem:[#allocation22_spill] sm:$0xff] %v9692_v18  ;;  %v4399_v0 = vpop.f32.mrf.mxu0  ;;  %v444_v60 = vld [vmem:[%s12952_s0 + $0xd50] sm:$0xff] }
 0x1fe   :  { %v4688_v36 = vpop.f32.mrf.mxu1 }
 0x1ff   :  { %v9706_v26 = vadd.f32 %v4688_v36, %v4399_v0  ;;  %v4401_v49 = vpop.f32.mrf.mxu0 }
 0x200   :  { %v4690_v10 = vpop.f32.mrf.mxu1  ;;  %v7784_v49 = vcombine.high %v436_v59, %v444_v60 }
 0x201   :  { %13053 = vst [vmem:[#allocation23_spill] sm:$0xff] %v9706_v26  ;;  %v4726_v1 = vpop.f32.mrf.mxu0  ;;  %4917 = vmatmul.mubr.bf16.gmra.mxu0 %v7751_v3  ;;  %v7767_v3 = vcombine.low %v420_v38, %v428_v16  ;;  %v460_v38 = vld [vmem:[%s12952_s0 + $0xdd0] sm:$0xff] }
 0x202   :  { %v4727_v56 = vadd.f32 %v4726_v1, %v9068_v21  ;;  %v5015_v18 = vpop.f32.mrf.mxu1  ;;  %5206 = vmatmul.mubr.bf16.gmra.mxu1 %v7753_v40  ;;  %4924 = vmatprep.mubr.bf16.mxu0 %v7768_v43  ;;  %v437_v21 = vld [vmem:[%s12952_s0 + $0xd18] sm:$0xff]  ;;  %v7769_v43 = vcombine.low %v421_v13, %v429_v22 }
 0x203   :  { %v4728_v32 = vpop.f32.mrf.mxu0  ;;  %5213 = vmatprep.mubr.bf16.mxu1 %v7770_v48  ;;  %v461_v22 = vld [vmem:[%s12952_s0 + $0xdd8] sm:$0xff] }
 0x204   :  { %v9715_v63 = vadd.f32 %v5015_v18, %v4727_v56  ;;  %v5017_v54 = vpop.f32.mrf.mxu1  ;;  %v445_v32 = vld [vmem:[%s12952_s0 + $0xd58] sm:$0xff] }
 0x205   :  { %v4729_v0 = vpop.f32.mrf.mxu0  ;;  %v7786_v10 = vcombine.high %v437_v21, %v445_v32 }
 0x206   :  { %13054 = vst [vmem:[#allocation24_spill] sm:$0xff] %v9715_v63  ;;  %v4730_v36 = vadd.f32 %v4729_v0, %v9082_v33  ;;  %v5018_v40 = vpop.f32.mrf.mxu1  ;;  %v452_v33 = vld [vmem:[%s12952_s0 + $0xd90] sm:$0xff]  ;;  %v7783_v0 = vcombine.low %v436_v59, %v444_v60 }
 0x207   :  { %v4731_v48 = vpop.f32.mrf.mxu0  ;;  %v476_v59 = vld [vmem:[%s12952_s0 + $0xe50] sm:$0xff] }
 0x208   :  { %v9724_v18 = vadd.f32 %v5018_v40, %v4730_v36  ;;  %v5020_v1 = vpop.f32.mrf.mxu1  ;;  %v7785_v40 = vcombine.low %v437_v21, %v445_v32  ;;  %v477_v32 = vld [vmem:[%s12952_s0 + $0xe58] sm:$0xff] }
 0x209   :  { %v4734_v56 = vpop.f32.mrf.mxu0  ;;  %4925 = vmatmul.mubr.bf16.gmra.mxu0 %v7767_v3 }
 0x20a   :  { %v4735_v54 = vadd.f32 %v4734_v56, %v9084_v39  ;;  %v5023_v63 = vpop.f32.mrf.mxu1  ;;  %5214 = vmatmul.mubr.bf16.gmra.mxu1 %v7769_v43  ;;  %4932 = vmatprep.mubr.bf16.mxu0 %v7784_v49  ;;  %v453_v39 = vld [vmem:[%s12952_s0 + $0xd98] sm:$0xff]  ;;  %v7800_v43 = vcombine.high %v452_v33, %v460_v38 }
 0x20b   :  { %v4736_v26 = vpop.f32.mrf.mxu0  ;;  %5221 = vmatprep.mubr.bf16.mxu1 %v7786_v10  ;;  %v7802_v48 = vcombine.high %v453_v39, %v461_v22 }
 0x20c   :  { %v9733_v16 = vadd.f32 %v5023_v63, %v4735_v54  ;;  %v5025_v13 = vpop.f32.mrf.mxu1 }
 0x20d   :  { %v4737_v26 = vpop.f32.mrf.mxu0 }
 0x20e   :  { %v4738_v3 = vadd.f32 %v4737_v26, %v9098_v51  ;;  %v5026_v36 = vpop.f32.mrf.mxu1  ;;  %v468_v51 = vld [vmem:[%s12952_s0 + $0xe10] sm:$0xff] }
 0x20f   :  { %v4739_v49 = vpop.f32.mrf.mxu0 }
 0x210   :  { %v9742_v63 = vadd.f32 %v5026_v36, %v4738_v3  ;;  %v5028_v10 = vpop.f32.mrf.mxu1 }
 0x211   :  { %v4742_v1 = vpop.f32.mrf.mxu0  ;;  %4933 = vmatmul.mubr.bf16.gmra.mxu0 %v7783_v0  ;;  %v7799_v0 = vcombine.low %v452_v33, %v460_v38  ;;  %v492_v33 = vld [vmem:[%s12952_s0 + $0xed0] sm:$0xff] }
 0x212   :  { %v4743_v56 = vadd.f32 %v4742_v1, %v9100_v57  ;;  %v5031_v54 = vpop.f32.mrf.mxu1  ;;  %5222 = vmatmul.mubr.bf16.gmra.mxu1 %v7785_v40  ;;  %4940 = vmatprep.mubr.bf16.mxu0 %v7800_v43  ;;  %v469_v57 = vld [vmem:[%s12952_s0 + $0xe18] sm:$0xff]  ;;  %v7801_v40 = vcombine.low %v453_v39, %v461_v22  ;;  %v7816_v43 = vcombine.high %v468_v51, %v476_v59 }
 0x213   :  { %v4744_v13 = vpop.f32.mrf.mxu0  ;;  %5229 = vmatprep.mubr.bf16.mxu1 %v7802_v48  ;;  %v7818_v48 = vcombine.high %v469_v57, %v477_v32  ;;  %v493_v22 = vld [vmem:[%s12952_s0 + $0xed8] sm:$0xff] }
 0x214   :  { %v9751_v60 = vadd.f32 %v5031_v54, %v4743_v56  ;;  %v5033_v21 = vpop.f32.mrf.mxu1 }
 0x215   :  { %v4745_v26 = vpop.f32.mrf.mxu0 }
 0x216   :  { %v4746_v3 = vadd.f32 %v4745_v26, %v9114_v6  ;;  %v5034_v36 = vpop.f32.mrf.mxu1  ;;  %v484_v6 = vld [vmem:[%s12952_s0 + $0xe90] sm:$0xff] }
 0x217   :  { %v4747_v49 = vpop.f32.mrf.mxu0 }
 0x218   :  { %v9760_v10 = vadd.f32 %v5034_v36, %v4746_v3  ;;  %v5036_v1 = vpop.f32.mrf.mxu1 }
 0x219   :  { %v4750_v56 = vpop.f32.mrf.mxu0  ;;  %4941 = vmatmul.mubr.bf16.gmra.mxu0 %v7799_v0  ;;  %v7815_v0 = vcombine.low %v468_v51, %v476_v59  ;;  %v508_v51 = vld [vmem:[%s12952_s0 + $0xf50] sm:$0xff] }
 0x21a   :  { %v4751_v54 = vadd.f32 %v4750_v56, %v9116_v12  ;;  %v5039_v13 = vpop.f32.mrf.mxu1  ;;  %5230 = vmatmul.mubr.bf16.gmra.mxu1 %v7801_v40  ;;  %4948 = vmatprep.mubr.bf16.mxu0 %v7816_v43  ;;  %v485_v12 = vld [vmem:[%s12952_s0 + $0xe98] sm:$0xff]  ;;  %v7817_v40 = vcombine.low %v469_v57, %v477_v32  ;;  %v7832_v43 = vcombine.high %v484_v6, %v492_v33 }
 0x21b   :  { %v4752_v21 = vpop.f32.mrf.mxu0  ;;  %5237 = vmatprep.mubr.bf16.mxu1 %v7818_v48  ;;  %v7834_v48 = vcombine.high %v485_v12, %v493_v22  ;;  %v509_v32 = vld [vmem:[%s12952_s0 + $0xf58] sm:$0xff] }
 0x21c   :  { %v9769_v38 = vadd.f32 %v5039_v13, %v4751_v54  ;;  %v5041_v39 = vpop.f32.mrf.mxu1 }
 0x21d   :  { %v4753_v26 = vpop.f32.mrf.mxu0 }
 0x21e   :  { %v4754_v3 = vadd.f32 %v4753_v26, %v9130_v25  ;;  %v5042_v36 = vpop.f32.mrf.mxu1  ;;  %v500_v25 = vld [vmem:[%s12952_s0 + $0xf10] sm:$0xff] }
 0x21f   :  { %v4755_v49 = vpop.f32.mrf.mxu0 }
 0x220   :  { %v9778_v1 = vadd.f32 %v5042_v36, %v4754_v3  ;;  %v5044_v56 = vpop.f32.mrf.mxu1 }
 0x221   :  { %v4758_v54 = vpop.f32.mrf.mxu0  ;;  %4949 = vmatmul.mubr.bf16.gmra.mxu0 %v7815_v0  ;;  %v7831_v0 = vcombine.low %v484_v6, %v492_v33  ;;  %v524_v6 = vld [vmem:[%s12952_s0 + $0xfd0] sm:$0xff] }
 0x222   :  { %v4759_v13 = vadd.f32 %v4758_v54, %v9132_v31  ;;  %v5047_v21 = vpop.f32.mrf.mxu1  ;;  %5238 = vmatmul.mubr.bf16.gmra.mxu1 %v7817_v40  ;;  %4956 = vmatprep.mubr.bf16.mxu0 %v7832_v43  ;;  %v501_v31 = vld [vmem:[%s12952_s0 + $0xf18] sm:$0xff]  ;;  %v7833_v40 = vcombine.low %v485_v12, %v493_v22  ;;  %v7848_v43 = vcombine.high %v500_v25, %v508_v51 }
 0x223   :  { %v4760_v39 = vpop.f32.mrf.mxu0  ;;  %5245 = vmatprep.mubr.bf16.mxu1 %v7834_v48  ;;  %v7850_v48 = vcombine.high %v501_v31, %v509_v32  ;;  %v525_v22 = vld [vmem:[%s12952_s0 + $0xfd8] sm:$0xff] }
 0x224   :  { %v9787_v59 = vadd.f32 %v5047_v21, %v4759_v13  ;;  %v5049_v57 = vpop.f32.mrf.mxu1 }
 0x225   :  { %v4761_v26 = vpop.f32.mrf.mxu0 }
 0x226   :  { %v4762_v3 = vadd.f32 %v4761_v26, %v9146_v45  ;;  %v5050_v36 = vpop.f32.mrf.mxu1  ;;  %v516_v45 = vld [vmem:[%s12952_s0 + $0xf90] sm:$0xff] }
 0x227   :  { %v4763_v49 = vpop.f32.mrf.mxu0 }
 0x228   :  { %v9796_v56 = vadd.f32 %v5050_v36, %v4762_v3  ;;  %v5052_v54 = vpop.f32.mrf.mxu1 }
 0x229   :  { %v4766_v13 = vpop.f32.mrf.mxu0  ;;  %4957 = vmatmul.mubr.bf16.gmra.mxu0 %v7831_v0  ;;  %v7847_v0 = vcombine.low %v500_v25, %v508_v51  ;;  %v30_v25 = vld [vmem:[%s12952_s0 + $0x60] sm:$0xff] }
 0x22a   :  { %v4767_v21 = vadd.f32 %v4766_v13, %v9148_v52  ;;  %v5055_v39 = vpop.f32.mrf.mxu1  ;;  %5246 = vmatmul.mubr.bf16.gmra.mxu1 %v7833_v40  ;;  %4964 = vmatprep.mubr.bf16.mxu0 %v7848_v43  ;;  %v517_v52 = vld [vmem:[%s12952_s0 + $0xf98] sm:$0xff]  ;;  %v7849_v40 = vcombine.low %v501_v31, %v509_v32  ;;  %v7864_v43 = vcombine.high %v516_v45, %v524_v6  ;;  %v31_v32 = vld [vmem:[%s12952_s0 + $0x68] sm:$0xff] }
 0x22b   :  { %v4768_v57 = vpop.f32.mrf.mxu0  ;;  %5253 = vmatprep.mubr.bf16.mxu1 %v7850_v48  ;;  %v7866_v48 = vcombine.high %v517_v52, %v525_v22 }
 0x22c   :  { %v9805_v33 = vadd.f32 %v5055_v39, %v4767_v21  ;;  %v5057_v12 = vpop.f32.mrf.mxu1 }
 0x22d   :  { %v4769_v26 = vpop.f32.mrf.mxu0 }
 0x22e   :  { %v4770_v3 = vadd.f32 %v4769_v26, %v9162_v2  ;;  %v5058_v36 = vpop.f32.mrf.mxu1  ;;  %v22_v2 = vld [vmem:[%s12952_s0 + $0x20] sm:$0xff] }
 0x22f   :  { %v4771_v49 = vpop.f32.mrf.mxu0 }
 0x230   :  { %v9814_v54 = vadd.f32 %v5058_v36, %v4770_v3  ;;  %v5060_v13 = vpop.f32.mrf.mxu1 }
 0x231   :  { %v4774_v21 = vpop.f32.mrf.mxu0  ;;  %4965 = vmatmul.mubr.bf16.gmra.mxu0 %v7847_v0  ;;  %v7863_v0 = vcombine.low %v516_v45, %v524_v6  ;;  %v38_v6 = vld [vmem:[%s12952_s0 + $0xa0] sm:$0xff] }
 0x232   :  { %v4775_v39 = vadd.f32 %v4774_v21, %v9164_v9  ;;  %v5063_v57 = vpop.f32.mrf.mxu1  ;;  %5254 = vmatmul.mubr.bf16.gmra.mxu1 %v7849_v40  ;;  %4972 = vmatprep.mubr.bf16.mxu0 %v7864_v43  ;;  %v23_v9 = vld [vmem:[%s12952_s0 + $0x28] sm:$0xff]  ;;  %v7865_v40 = vcombine.low %v517_v52, %v525_v22  ;;  %v7372_v43 = vcombine.high %v22_v2, %v30_v25  ;;  %v46_v52 = vld [vmem:[%s12952_s0 + $0xe0] sm:$0xff] }
 0x233   :  { %v4776_v12 = vpop.f32.mrf.mxu0  ;;  %5261 = vmatprep.mubr.bf16.mxu1 %v7866_v48  ;;  %v7374_v48 = vcombine.high %v23_v9, %v31_v32 }
 0x234   :  { %v9823_v51 = vadd.f32 %v5063_v57, %v4775_v39  ;;  %v5065_v31 = vpop.f32.mrf.mxu1 }
 0x235   :  { %v4777_v26 = vpop.f32.mrf.mxu0 }
 0x236   :  { %v4778_v3 = vadd.f32 %v4777_v26, %v9178_v23  ;;  %v5066_v36 = vpop.f32.mrf.mxu1  ;;  %v7371_v26 = vcombine.low %v22_v2, %v30_v25  ;;  %v8421_v2 = vld [vmem:[%s12951_s1 + $0x3b8] sm:$0xff]   ;;  %v7388_v25 = vcombine.high %v38_v6, %v46_v52 }
 0x237   :  { %v4779_v49 = vpop.f32.mrf.mxu0 }
 0x238   :  { %v9832_v13 = vadd.f32 %v5066_v36, %v4778_v3  ;;  %v5068_v21 = vpop.f32.mrf.mxu1 }
 0x239   :  { %v4782_v39 = vpop.f32.mrf.mxu0  ;;  %4973 = vmatmul.mubr.bf16.gmra.mxu0 %v7863_v0  ;;  %v47_v0 = vld [vmem:[%s12952_s0 + $0xe8] sm:$0xff] }
 0x23a   :  { %v4783_v57 = vadd.f32 %v4782_v39, %v9180_v30  ;;  %v5071_v12 = vpop.f32.mrf.mxu1  ;;  %5262 = vmatmul.mubr.bf16.gmra.mxu1 %v7865_v40  ;;  %5302 = vmatprep.mubr.bf16.mxu0 %v7372_v43  ;;  %v39_v30 = vld [vmem:[%s12952_s0 + $0xa8] sm:$0xff]  ;;  %v7373_v40 = vcombine.low %v23_v9, %v31_v32  ;;  %v8420_v43 = vld [vmem:[%s12951_s1 + $0x338] sm:$0xff]   ;;  %v8422_v9 = vld [vmem:[%s12951_s1 + $0x330] sm:$0xff]  }
 0x23b   :  { %v4784_v31 = vpop.f32.mrf.mxu0  ;;  %5591 = vmatprep.mubr.bf16.mxu1 %v7374_v48  ;;  %v7390_v39 = vcombine.high %v39_v30, %v47_v0 }
 0x23c   :  { %v9835_v45 = vadd.f32 %v5071_v12, %v4783_v57  ;;  %v5073_v23 = vpop.f32.mrf.mxu1  ;;  %v54_v31 = vld [vmem:[%s12952_s0 + $0x120] sm:$0xff] }
 0x23d   :  { %v4785_v22 = vpop.f32.mrf.mxu0  ;;  %v62_v23 = vld [vmem:[%s12952_s0 + $0x160] sm:$0xff] }
 0x23e   :  { %v4786_v3 = vadd.f32 %v4785_v22, %v9197_v46  ;;  %v5074_v36 = vpop.f32.mrf.mxu1 }
 0x23f   :  { %v4787_v49 = vpop.f32.mrf.mxu0 }
 0x240   :  { %v9856_v48 = vadd.f32 %v5074_v36, %v4786_v3  ;;  %v5076_v21 = vpop.f32.mrf.mxu1  ;;  %v55_v3 = vld [vmem:[%s12952_s0 + $0x128] sm:$0xff] }
 0x241   :  { %v4790_v57 = vpop.f32.mrf.mxu0  ;;  %5303 = vmatmul.mubr.bf16.vlgmr.msra.gmra.mxu0 %v7371_v26  ;;  %v63_v36 = vld [vmem:[%s12952_s0 + $0x168] sm:$0xff]  ;;  %v7404_v21 = vcombine.high %v54_v31, %v62_v23 }
 0x242   :  { %v4791_v46 = vadd.f32 %v4790_v57, %v9205_v58  ;;  %v5079_v12 = vpop.f32.mrf.mxu1  ;;  %5592 = vmatmul.mubr.bf16.vlgmr.msra.gmra.mxu1 %v7373_v40  ;;  %5849 = vmatpush1.bf16.msra.mxu0 %v8420_v43  ;;  %v8423_v58 = vld [vmem:[%s12951_s1 + $0x3b0] sm:$0xff]   ;;  %v7387_v43 = vcombine.low %v38_v6, %v46_v52  ;;  %v7406_v57 = vcombine.high %v55_v3, %v63_v36 }
 0x243   :  { %v4792_v32 = vpop.f32.mrf.mxu0  ;;  %6138 = vmatpush1.bf16.msra.mxu1 %v8421_v2  ;;  %5310 = vmatprep.mubr.bf16.mxu0 %v7388_v25  ;;  %v7389_v25 = vcombine.low %v39_v30, %v47_v0 }
 0x244   :  { %v9871_v22 = vadd.f32 %v5079_v12, %v4791_v46  ;;  %v5081_v26 = vpop.f32.mrf.mxu1  ;;  %5599 = vmatprep.mubr.bf16.mxu1 %v7390_v39  ;;  %5850 = vmatprep.subr.bf16.mxu0 %v13035_v15  ;;  %v8424_v46 = vld [vmem:[%s12951_s1 + $0x328] sm:$0xff]   ;;  %v9896_v32 = vld [vmem:[%s12952_s0 + $0x1a0] sm:$0xff] }
 0x245   :  { %v4793_v40 = vpop.f32.mrf.mxu0  ;;  %6139 = vmatprep.subr.bf16.mxu1 %v13035_v15 }
 0x246   :  { %v4794_v49 = vadd.f32 %v4793_v40, %v9224_v11  ;;  %v5082_v2 = vpop.f32.mrf.mxu1  ;;  %5851 = vmatpush1.bf16.msra.mxu0 %v8422_v9  ;;  %v8425_v11 = vld [vmem:[%s12951_s1 + $0x3a8] sm:$0xff]  }
 0x247   :  { %v4795_v39 = vpop.f32.mrf.mxu0  ;;  %6140 = vmatpush1.bf16.msra.mxu1 %v8423_v58  ;;  %5852 = vmatprep.subr.bf16.mxu0 %v13035_v15  ;;  %v9901_v58 = vld [vmem:[%s12952_s0 + $0x1e0] sm:$0xff] }
 0x248   :  { %v9886_v12 = vadd.f32 %v5082_v2, %v4794_v49  ;;  %v5084_v6 = vpop.f32.mrf.mxu1  ;;  %6141 = vmatprep.subr.bf16.mxu1 %v13035_v15  ;;  %v79_v49 = vld [vmem:[%s12952_s0 + $0x1e8] sm:$0xff]  ;;  %v8427_v2 = vld [vmem:[%s12951_s1 + $0x3a0] sm:$0xff]  }
 0x249   :  { %v4798_v52 = vpop.f32.mrf.mxu0  ;;  %5311 = vmatmul.mubr.bf16.gmra.mxu0 %v7387_v43  ;;  %v71_v43 = vld [vmem:[%s12952_s0 + $0x1a8] sm:$0xff]  ;;  %v7420_v6 = vcombine.high %v9896_v32, %v9901_v58 }
 0x24a   :  { %v4799_v30 = vadd.f32 %v4798_v52, %v9234_v20  ;;  %v5087_v0 = vpop.f32.mrf.mxu1  ;;  %5600 = vmatmul.mubr.bf16.gmra.mxu1 %v7389_v25  ;;  %5318 = vmatprep.mubr.bf16.mxu0 %v7404_v21  ;;  %v8426_v20 = vld [vmem:[%s12951_s1 + $0x320] sm:$0xff]   ;;  %v7403_v21 = vcombine.low %v54_v31, %v62_v23 }
 0x24b   :  { %v4800_v9 = vpop.f32.mrf.mxu0  ;;  %5607 = vmatprep.mubr.bf16.mxu1 %v7406_v57  ;;  %5853 = vmatpush1.bf16.msra.mxu0 %v8424_v46  ;;  %v7405_v46 = vcombine.low %v55_v3, %v63_v36 }
 0x24c   :  { %v9906_v26 = vadd.f32 %v5087_v0, %v4799_v30  ;;  %v5089_v40 = vpop.f32.mrf.mxu1  ;;  %6142 = vmatpush1.bf16.msra.mxu1 %v8425_v11  ;;  %5854 = vmatprep.subr.bf16.mxu0 %v13035_v15  ;;  %v7422_v30 = vcombine.high %v71_v43, %v79_v49  ;;  %v8428_v11 = vld [vmem:[%s12951_s1 + $0x318] sm:$0xff]  }
 0x24d   :  { %v4801_v25 = vpop.f32.mrf.mxu0  ;;  %6143 = vmatprep.subr.bf16.mxu1 %v13035_v15  ;;  %v9941_v40 = vld [vmem:[%s12952_s0 + $0x260] sm:$0xff] }
 0x24e   :  { %v4802_v39 = vadd.f32 %v4801_v25, %v9256_v41  ;;  %v5090_v57 = vpop.f32.mrf.mxu1  ;;  %v8429_v41 = vld [vmem:[%s12951_s1 + $0x398] sm:$0xff]  }
 0x24f   :  { %v4803_v52 = vpop.f32.mrf.mxu0  ;;  %5855 = vmatpush1.bf16.msra.mxu0 %v8426_v20  ;;  %v9936_v20 = vld [vmem:[%s12952_s0 + $0x220] sm:$0xff] }
 0x250   :  { %v9925_v0 = vadd.f32 %v5090_v57, %v4802_v39  ;;  %v5092_v9 = vpop.f32.mrf.mxu1  ;;  %6144 = vmatpush1.bf16.msra.mxu1 %v8427_v2  ;;  %5856 = vmatprep.subr.bf16.mxu0 %v13035_v15  ;;  %v95_v39 = vld [vmem:[%s12952_s0 + $0x268] sm:$0xff]  ;;  %v8431_v57 = vld [vmem:[%s12951_s1 + $0x390] sm:$0xff]  }
 0x251   :  { %v4806_v31 = vpop.f32.mrf.mxu0  ;;  %5319 = vmatmul.mubr.bf16.gmra.mxu0 %v7403_v21  ;;  %6145 = vmatprep.subr.bf16.mxu1 %v13035_v15  ;;  %v87_v21 = vld [vmem:[%s12952_s0 + $0x228] sm:$0xff]  ;;  %v7436_v9 = vcombine.high %v9936_v20, %v9941_v40 }
 0x252   :  { %v4807_v23 = vadd.f32 %v4806_v31, %v9266_v53  ;;  %v5095_v3 = vpop.f32.mrf.mxu1  ;;  %5608 = vmatmul.mubr.bf16.gmra.mxu1 %v7405_v46  ;;  %5326 = vmatprep.mubr.bf16.mxu0 %v7420_v6  ;;  %v8430_v53 = vld [vmem:[%s12951_s1 + $0x310] sm:$0xff]   ;;  %v7419_v6 = vcombine.low %v9896_v32, %v9901_v58  ;;  %v7438_v31 = vcombine.high %v87_v21, %v95_v39 }
 0x253   :  { %v4808_v36 = vpop.f32.mrf.mxu0  ;;  %5615 = vmatprep.mubr.bf16.mxu1 %v7422_v30  ;;  %5857 = vmatpush1.bf16.msra.mxu0 %v8428_v11  ;;  %v7421_v11 = vcombine.low %v71_v43, %v79_v49 }
 0x254   :  { %v9946_v2 = vadd.f32 %v5095_v3, %v4807_v23  ;;  %v5097_v25 = vpop.f32.mrf.mxu1  ;;  %6146 = vmatpush1.bf16.msra.mxu1 %v8429_v41  ;;  %5858 = vmatprep.subr.bf16.mxu0 %v13035_v15  ;;  %v8432_v23 = vld [vmem:[%s12951_s1 + $0x308] sm:$0xff]  }
 0x255   :  { %v4809_v46 = vpop.f32.mrf.mxu0  ;;  %6147 = vmatprep.subr.bf16.mxu1 %v13035_v15  ;;  %v9983_v25 = vld [vmem:[%s12952_s0 + $0x2e0] sm:$0xff] }
 0x256   :  { %v4810_v52 = vadd.f32 %v4809_v46, %v9288_v8  ;;  %v5098_v30 = vpop.f32.mrf.mxu1  ;;  %v8433_v8 = vld [vmem:[%s12951_s1 + $0x388] sm:$0xff]  }
 0x257   :  { %v4811_v41 = vpop.f32.mrf.mxu0  ;;  %5859 = vmatpush1.bf16.msra.mxu0 %v8430_v53  ;;  %v9978_v53 = vld [vmem:[%s12952_s0 + $0x2a0] sm:$0xff] }
 0x258   :  { %v9967_v3 = vadd.f32 %v5098_v30, %v4810_v52  ;;  %v5100_v36 = vpop.f32.mrf.mxu1  ;;  %6148 = vmatpush1.bf16.msra.mxu1 %v8431_v57  ;;  %5860 = vmatprep.subr.bf16.mxu0 %v13035_v15  ;;  %v111_v52 = vld [vmem:[%s12952_s0 + $0x2e8] sm:$0xff]  ;;  %v8435_v30 = vld [vmem:[%s12951_s1 + $0x380] sm:$0xff]  }
 0x259   :  { %v4814_v32 = vpop.f32.mrf.mxu0  ;;  %5327 = vmatmul.mubr.bf16.gmra.mxu0 %v7419_v6  ;;  %6149 = vmatprep.subr.bf16.mxu1 %v13035_v15  ;;  %v103_v6 = vld [vmem:[%s12952_s0 + $0x2a8] sm:$0xff]  ;;  %v7452_v36 = vcombine.high %v9978_v53, %v9983_v25 }
 0x25a   :  { %v4815_v58 = vadd.f32 %v4814_v32, %v9298_v19  ;;  %v5103_v43 = vpop.f32.mrf.mxu1  ;;  %5616 = vmatmul.mubr.bf16.gmra.mxu1 %v7421_v11  ;;  %5334 = vmatprep.mubr.bf16.mxu0 %v7436_v9  ;;  %v8434_v19 = vld [vmem:[%s12951_s1 + $0x300] sm:$0xff]   ;;  %v7435_v9 = vcombine.low %v9936_v20, %v9941_v40  ;;  %v7454_v32 = vcombine.high %v103_v6, %v111_v52 }
 0x25b   :  { %v4816_v49 = vpop.f32.mrf.mxu0  ;;  %5623 = vmatprep.mubr.bf16.mxu1 %v7438_v31  ;;  %5861 = vmatpush1.bf16.msra.mxu0 %v8432_v23  ;;  %v7437_v23 = vcombine.low %v87_v21, %v95_v39 }
 0x25c   :  { %v9988_v57 = vadd.f32 %v5103_v43, %v4815_v58  ;;  %v5105_v46 = vpop.f32.mrf.mxu1  ;;  %6150 = vmatpush1.bf16.msra.mxu1 %v8433_v8  ;;  %5862 = vmatprep.subr.bf16.mxu0 %v13035_v15  ;;  %v8436_v58 = vld [vmem:[%s12951_s1 + $0x378] sm:$0xff]  }
 0x25d   :  { %v4817_v11 = vpop.f32.mrf.mxu0  ;;  %6151 = vmatprep.subr.bf16.mxu1 %v13035_v15  ;;  %v126_v46 = vld [vmem:[%s12952_s0 + $0x360] sm:$0xff] }
 0x25e   :  { %v4818_v41 = vadd.f32 %v4817_v11, %v9320_v42  ;;  %v5106_v31 = vpop.f32.mrf.mxu1  ;;  %v8437_v42 = vld [vmem:[%s12951_s1 + $0x3f8] sm:$0xff]  }
 0x25f   :  { %v4819_v8 = vpop.f32.mrf.mxu0  ;;  %5863 = vmatpush1.bf16.msra.mxu0 %v8434_v19  ;;  %v118_v19 = vld [vmem:[%s12952_s0 + $0x320] sm:$0xff] }
 0x260   :  { %v10009_v43 = vadd.f32 %v5106_v31, %v4818_v41  ;;  %v5108_v49 = vpop.f32.mrf.mxu1  ;;  %6152 = vmatpush1.bf16.msra.mxu1 %v8435_v30  ;;  %5864 = vmatprep.subr.bf16.mxu0 %v13035_v15  ;;  %v8438_v30 = vld [vmem:[%s12951_s1 + $0x370] sm:$0xff]   ;;  %v127_v41 = vld [vmem:[%s12952_s0 + $0x368] sm:$0xff] }
 0x261   :  { %v4822_v20 = vpop.f32.mrf.mxu0  ;;  %5335 = vmatmul.mubr.bf16.gmra.mxu0 %v7435_v9  ;;  %6153 = vmatprep.subr.bf16.mxu1 %v13035_v15  ;;  %v119_v9 = vld [vmem:[%s12952_s0 + $0x328] sm:$0xff]  ;;  %v8439_v31 = vld [vmem:[%s12951_s1 + $0x3f0] sm:$0xff]   ;;  %v7468_v49 = vcombine.high %v118_v19, %v126_v46 }
 0x262   :  { %v4823_v40 = vadd.f32 %v4822_v20, %v9330_v55  ;;  %v5111_v21 = vpop.f32.mrf.mxu1  ;;  %5624 = vmatmul.mubr.bf16.gmra.mxu1 %v7437_v23  ;;  %5342 = vmatprep.mubr.bf16.mxu0 %v7452_v36  ;;  %v7451_v36 = vcombine.low %v9978_v53, %v9983_v25 }
 0x263   :  { %v4824_v39 = vpop.f32.mrf.mxu0  ;;  %5631 = vmatprep.mubr.bf16.mxu1 %v7454_v32  ;;  %5865 = vmatpush2.bf16.msra.mxu0 %v8436_v58  ;;  %v7453_v58 = vcombine.low %v103_v6, %v111_v52 }
 0x264   :  { %v10026_v11 = vadd.f32 %v5111_v21, %v4823_v40  ;;  %v5113_v55 = vpop.f32.mrf.mxu1  ;;  %6154 = vmatpush2.bf16.msra.mxu1 %v8437_v42  ;;  %5866 = vmatprep.subr.bf16.mxu0 %v13035_v15  ;;  %v7470_v40 = vcombine.high %v119_v9, %v127_v41  ;;  %v8440_v42 = vld [vmem:[%s12951_s1 + $0x368] sm:$0xff]  }
 0x265   :  { %v4825_v23 = vpop.f32.mrf.mxu0  ;;  %6155 = vmatprep.subr.bf16.mxu1 %v13035_v15  ;;  %v142_v55 = vld [vmem:[%s12952_s0 + $0x3e0] sm:$0xff] }
 0x266   :  { %v4826_v8 = vadd.f32 %v4825_v23, %v9352_v14  ;;  %v5114_v32 = vpop.f32.mrf.mxu1  ;;  %v8441_v14 = vld [vmem:[%s12951_s1 + $0x3e8] sm:$0xff]  }
 0x267   :  { %v4827_v20 = vpop.f32.mrf.mxu0  ;;  %5867 = vmatpush2.bf16.msra.mxu0 %v8438_v30  ;;  %v134_v30 = vld [vmem:[%s12952_s0 + $0x3a0] sm:$0xff] }
 0x268   :  { %v10045_v21 = vadd.f32 %v5114_v32, %v4826_v8  ;;  %v5116_v39 = vpop.f32.mrf.mxu1  ;;  %6156 = vmatpush2.bf16.msra.mxu1 %v8439_v31  ;;  %5868 = vmatprep.subr.bf16.mxu0 %v13035_v15  ;;  %v7467_v32 = vcombine.low %v118_v19, %v126_v46  ;;  %v7469_v20 = vcombine.low %v119_v9, %v127_v41  ;;  %v158_v46 = vld [vmem:[%s12952_s0 + $0x460] sm:$0xff]  ;;  %v151_v9 = vld [vmem:[%s12952_s0 + $0x428] sm:$0xff] }
 0x269   :  { %v4830_v53 = vpop.f32.mrf.mxu0  ;;  %5343 = vmatmul.mubr.bf16.gmra.mxu0 %v7451_v36  ;;  %6157 = vmatprep.subr.bf16.mxu1 %v13035_v15  ;;  %v143_v36 = vld [vmem:[%s12952_s0 + $0x3e8] sm:$0xff] }
 0x26a   :  { %v4831_v25 = vadd.f32 %v4830_v53, %v9362_v27  ;;  %v5119_v6 = vpop.f32.mrf.mxu1  ;;  %5632 = vmatmul.mubr.bf16.gmra.mxu1 %v7453_v58  ;;  %5350 = vmatprep.mubr.bf16.mxu0 %v7468_v49  ;;  %v135_v27 = vld [vmem:[%s12952_s0 + $0x3a8] sm:$0xff] }
 0x26b   :  { %v4832_v52 = vpop.f32.mrf.mxu0  ;;  %5639 = vmatprep.mubr.bf16.mxu1 %v7470_v40  ;;  %5869 = vmatpush2.bf16.msra.mxu0 %v8440_v42  ;;  %v7484_v40 = vcombine.high %v134_v30, %v142_v55  ;;  %v7486_v39 = vcombine.high %v135_v27, %v143_v36 }
 0x26c   :  { %v10059_v31 = vadd.f32 %v5119_v6, %v4831_v25  ;;  %v5121_v23 = vpop.f32.mrf.mxu1  ;;  %6158 = vmatpush2.bf16.msra.mxu1 %v8441_v14  ;;  %5870 = vmatprep.subr.bf16.mxu0 %v13035_v15 }
 0x26d   :  { %v4833_v8 = vpop.f32.mrf.mxu0  ;;  %6159 = vmatprep.subr.bf16.mxu1 %v13035_v15  ;;  %v159_v23 = vld [vmem:[%s12952_s0 + $0x468] sm:$0xff] }
 0x26e   :  { %v4834_v58 = vadd.f32 %v4833_v8, %v9378_v47  ;;  %v5122_v49 = vpop.f32.mrf.mxu1  ;;  %v150_v47 = vld [vmem:[%s12952_s0 + $0x420] sm:$0xff] }
 0x26f   :  { %v4835_v42 = vpop.f32.mrf.mxu0  ;;  %v8442_v8 = vld [vmem:[%s12951_s1 + $0x360] sm:$0xff]  }
 0x270   :  { %v10070_v53 = vadd.f32 %v5122_v49, %v4834_v58  ;;  %v5124_v25 = vpop.f32.mrf.mxu1  ;;  %v7483_v49 = vcombine.low %v134_v30, %v142_v55  ;;  %v7485_v42 = vcombine.low %v135_v27, %v143_v36  ;;  %5871 = vmatpush2.bf16.msra.mxu0 %v8442_v8  ;;  %v166_v27 = vld [vmem:[%s12952_s0 + $0x4a0] sm:$0xff] }
 0x271   :  { %v4838_v6 = vpop.f32.mrf.mxu0  ;;  %5351 = vmatmul.mubr.bf16.gmra.mxu0 %v7467_v32  ;;  %v8443_v32 = vld [vmem:[%s12951_s1 + $0x3e0] sm:$0xff]   ;;  %5872 = vmatprep.subr.bf16.mxu0 %v13035_v15 }
 0x272   :  { %v4839_v14 = vadd.f32 %v4838_v6, %v9380_v61  ;;  %v5127_v52 = vpop.f32.mrf.mxu1  ;;  %5640 = vmatmul.mubr.bf16.gmra.mxu1 %v7469_v20  ;;  %5358 = vmatprep.mubr.bf16.mxu0 %v7484_v40  ;;  %v7502_v6 = vcombine.high %v151_v9, %v159_v23  ;;  %v174_v36 = vld [vmem:[%s12952_s0 + $0x4e0] sm:$0xff] }
 0x273   :  { %v4840_v19 = vpop.f32.mrf.mxu0  ;;  %5647 = vmatprep.mubr.bf16.mxu1 %v7486_v39  ;;  %v7500_v39 = vcombine.high %v150_v47, %v158_v46  ;;  %6160 = vmatpush2.bf16.msra.mxu1 %v8443_v32  ;;  %v175_v32 = vld [vmem:[%s12952_s0 + $0x4e8] sm:$0xff] }
 0x274   :  { %v10082_v41 = vadd.f32 %v5127_v52, %v4839_v14  ;;  %v5129_v61 = vpop.f32.mrf.mxu1  ;;  %6161 = vmatprep.subr.bf16.mxu1 %v13035_v15 }
 0x275   :  { %v4841_v58 = vpop.f32.mrf.mxu0 }
 0x276   :  { %v4842_v20 = vadd.f32 %v4841_v58, %v9401_v17  ;;  %v5130_v40 = vpop.f32.mrf.mxu1 }
 0x277   :  { %v4843_v25 = vpop.f32.mrf.mxu0 }
 0x278   :  { %v10096_v14 = vadd.f32 %v5130_v40, %v4842_v20  ;;  %v5132_v52 = vpop.f32.mrf.mxu1 }
 0x279   :  { %v4846_v19 = vpop.f32.mrf.mxu0  ;;  %5359 = vmatmul.mubr.bf16.gmra.mxu0 %v7483_v49  ;;  %v7499_v49 = vcombine.low %v150_v47, %v158_v46  ;;  %v190_v47 = vld [vmem:[%s12952_s0 + $0x560] sm:$0xff]  ;;  %v183_v46 = vld [vmem:[%s12952_s0 + $0x528] sm:$0xff] }
 0x27a   :  { %v4847_v30 = vadd.f32 %v4846_v19, %v9404_v29  ;;  %v5135_v55 = vpop.f32.mrf.mxu1  ;;  %5648 = vmatmul.mubr.bf16.gmra.mxu1 %v7485_v42  ;;  %5366 = vmatprep.mubr.bf16.mxu0 %v7500_v39  ;;  %v167_v29 = vld [vmem:[%s12952_s0 + $0x4a8] sm:$0xff]  ;;  %v7501_v42 = vcombine.low %v151_v9, %v159_v23  ;;  %v7516_v39 = vcombine.high %v166_v27, %v174_v36 }
 0x27b   :  { %v4848_v17 = vpop.f32.mrf.mxu0  ;;  %5655 = vmatprep.mubr.bf16.mxu1 %v7502_v6  ;;  %v7518_v6 = vcombine.high %v167_v29, %v175_v32  ;;  %v191_v23 = vld [vmem:[%s12952_s0 + $0x568] sm:$0xff] }
 0x27c   :  { %v10105_v61 = vadd.f32 %v5135_v55, %v4847_v30  ;;  %v5137_v8 = vpop.f32.mrf.mxu1 }
 0x27d   :  { %v4849_v58 = vpop.f32.mrf.mxu0 }
 0x27e   :  { %v4850_v20 = vadd.f32 %v4849_v58, %v9418_v50  ;;  %v5138_v40 = vpop.f32.mrf.mxu1  ;;  %v182_v50 = vld [vmem:[%s12952_s0 + $0x520] sm:$0xff]  ;;  %v8444_v58 = vld [vmem:[%s12951_s1 + $0x358] sm:$0xff]  }
 0x27f   :  { %v4851_v25 = vpop.f32.mrf.mxu0  ;;  %5873 = vmatpush2.bf16.msra.mxu0 %v8444_v58 }
 0x280   :  { %v10114_v52 = vadd.f32 %v5138_v40, %v4850_v20  ;;  %v5140_v19 = vpop.f32.mrf.mxu1  ;;  %v7515_v40 = vcombine.low %v166_v27, %v174_v36  ;;  %v7517_v25 = vcombine.low %v167_v29, %v175_v32  ;;  %5874 = vmatprep.subr.bf16.mxu0 %v13035_v15  ;;  %v198_v29 = vld [vmem:[%s12952_s0 + $0x5a0] sm:$0xff] }
 0x281   :  { %v4854_v30 = vpop.f32.mrf.mxu0  ;;  %5367 = vmatmul.mubr.bf16.gmra.mxu0 %v7499_v49  ;;  %v8445_v49 = vld [vmem:[%s12951_s1 + $0x3d8] sm:$0xff]   ;;  %v206_v32 = vld [vmem:[%s12952_s0 + $0x5e0] sm:$0xff] }
 0x282   :  { %v4855_v55 = vadd.f32 %v4854_v30, %v9420_v5  ;;  %v5143_v17 = vpop.f32.mrf.mxu1  ;;  %5656 = vmatmul.mubr.bf16.gmra.mxu1 %v7501_v42  ;;  %5374 = vmatprep.mubr.bf16.mxu0 %v7516_v39  ;;  %v7534_v30 = vcombine.high %v183_v46, %v191_v23 }
 0x283   :  { %v4856_v8 = vpop.f32.mrf.mxu0  ;;  %5663 = vmatprep.mubr.bf16.mxu1 %v7518_v6  ;;  %v7532_v6 = vcombine.high %v182_v50, %v190_v47  ;;  %6162 = vmatpush2.bf16.msra.mxu1 %v8445_v49  ;;  %v207_v49 = vld [vmem:[%s12952_s0 + $0x5e8] sm:$0xff] }
 0x284   :  { %v10126_v9 = vadd.f32 %v5143_v17, %v4855_v55  ;;  %v5145_v5 = vpop.f32.mrf.mxu1  ;;  %6163 = vmatprep.subr.bf16.mxu1 %v13035_v15 }
 0x285   :  { %v4857_v20 = vpop.f32.mrf.mxu0 }
 0x286   :  { %v4858_v42 = vadd.f32 %v4857_v20, %v9440_v28  ;;  %v5146_v39 = vpop.f32.mrf.mxu1 }
 0x287   :  { %v4859_v19 = vpop.f32.mrf.mxu0 }
 0x288   :  { %v10140_v55 = vadd.f32 %v5146_v39, %v4858_v42  ;;  %v5148_v17 = vpop.f32.mrf.mxu1 }
 0x289   :  { %v4862_v8 = vpop.f32.mrf.mxu0  ;;  %5375 = vmatmul.mubr.bf16.gmra.mxu0 %v7515_v40  ;;  %v7531_v40 = vcombine.low %v182_v50, %v190_v47  ;;  %v222_v50 = vld [vmem:[%s12952_s0 + $0x660] sm:$0xff]  ;;  %v215_v47 = vld [vmem:[%s12952_s0 + $0x628] sm:$0xff] }
 0x28a   :  { %v4863_v27 = vadd.f32 %v4862_v8, %v9444_v34  ;;  %v5151_v36 = vpop.f32.mrf.mxu1  ;;  %5664 = vmatmul.mubr.bf16.gmra.mxu1 %v7517_v25  ;;  %5382 = vmatprep.mubr.bf16.mxu0 %v7532_v6  ;;  %v199_v34 = vld [vmem:[%s12952_s0 + $0x5a8] sm:$0xff]  ;;  %v7533_v25 = vcombine.low %v183_v46, %v191_v23  ;;  %v7548_v6 = vcombine.high %v198_v29, %v206_v32 }
 0x28b   :  { %v4864_v28 = vpop.f32.mrf.mxu0  ;;  %5671 = vmatprep.mubr.bf16.mxu1 %v7534_v30  ;;  %v7550_v30 = vcombine.high %v199_v34, %v207_v49  ;;  %v223_v23 = vld [vmem:[%s12952_s0 + $0x668] sm:$0xff] }
 0x28c   :  { %v10149_v5 = vadd.f32 %v5151_v36, %v4863_v27  ;;  %v5153_v58 = vpop.f32.mrf.mxu1 }
 0x28d   :  { %v4865_v20 = vpop.f32.mrf.mxu0 }
 0x28e   :  { %v4866_v42 = vadd.f32 %v4865_v20, %v9458_v4  ;;  %v5154_v39 = vpop.f32.mrf.mxu1  ;;  %v214_v4 = vld [vmem:[%s12952_s0 + $0x620] sm:$0xff]  ;;  %v8446_v20 = vld [vmem:[%s12951_s1 + $0x350] sm:$0xff]  }
 0x28f   :  { %v4867_v19 = vpop.f32.mrf.mxu0  ;;  %5875 = vmatpush2.bf16.msra.mxu0 %v8446_v20 }
 0x290   :  { %v10158_v17 = vadd.f32 %v5154_v39, %v4866_v42  ;;  %v5156_v8 = vpop.f32.mrf.mxu1  ;;  %v7547_v39 = vcombine.low %v198_v29, %v206_v32  ;;  %v7549_v19 = vcombine.low %v199_v34, %v207_v49  ;;  %5876 = vmatprep.subr.bf16.mxu0 %v13035_v15  ;;  %v230_v34 = vld [vmem:[%s12952_s0 + $0x6a0] sm:$0xff] }
 0x291   :  { %v4870_v27 = vpop.f32.mrf.mxu0  ;;  %5383 = vmatmul.mubr.bf16.gmra.mxu0 %v7531_v40  ;;  %v8447_v40 = vld [vmem:[%s12951_s1 + $0x3d0] sm:$0xff]   ;;  %v238_v49 = vld [vmem:[%s12952_s0 + $0x6e0] sm:$0xff] }
 0x292   :  { %v4871_v36 = vadd.f32 %v4870_v27, %v9460_v24  ;;  %v5159_v28 = vpop.f32.mrf.mxu1  ;;  %5672 = vmatmul.mubr.bf16.gmra.mxu1 %v7533_v25  ;;  %5390 = vmatprep.mubr.bf16.mxu0 %v7548_v6  ;;  %v7566_v27 = vcombine.high %v215_v47, %v223_v23 }
 0x293   :  { %v4872_v58 = vpop.f32.mrf.mxu0  ;;  %5679 = vmatprep.mubr.bf16.mxu1 %v7550_v30  ;;  %v7564_v30 = vcombine.high %v214_v4, %v222_v50  ;;  %6164 = vmatpush2.bf16.msra.mxu1 %v8447_v40  ;;  %v239_v40 = vld [vmem:[%s12952_s0 + $0x6e8] sm:$0xff] }
 0x294   :  { %v10170_v46 = vadd.f32 %v5159_v28, %v4871_v36  ;;  %v5161_v24 = vpop.f32.mrf.mxu1  ;;  %6165 = vmatprep.subr.bf16.mxu1 %v13035_v15 }
 0x295   :  { %v4873_v42 = vpop.f32.mrf.mxu0 }
 0x296   :  { %v4874_v25 = vadd.f32 %v4873_v42, %v9480_v62  ;;  %v5162_v6 = vpop.f32.mrf.mxu1 }
 0x297   :  { %v4875_v8 = vpop.f32.mrf.mxu0 }
 0x298   :  { %v10184_v36 = vadd.f32 %v5162_v6, %v4874_v25  ;;  %v5164_v28 = vpop.f32.mrf.mxu1 }
 0x299   :  { %v4878_v58 = vpop.f32.mrf.mxu0  ;;  %5391 = vmatmul.mubr.bf16.gmra.mxu0 %v7547_v39  ;;  %v7563_v39 = vcombine.low %v214_v4, %v222_v50  ;;  %v254_v4 = vld [vmem:[%s12952_s0 + $0x760] sm:$0xff]  ;;  %v247_v50 = vld [vmem:[%s12952_s0 + $0x728] sm:$0xff] }
 0x29a   :  { %v4879_v29 = vadd.f32 %v4878_v58, %v9484_v37  ;;  %v5167_v32 = vpop.f32.mrf.mxu1  ;;  %5680 = vmatmul.mubr.bf16.gmra.mxu1 %v7549_v19  ;;  %5398 = vmatprep.mubr.bf16.mxu0 %v7564_v30  ;;  %v231_v37 = vld [vmem:[%s12952_s0 + $0x6a8] sm:$0xff]  ;;  %v7565_v19 = vcombine.low %v215_v47, %v223_v23  ;;  %v7580_v30 = vcombine.high %v230_v34, %v238_v49 }
 0x29b   :  { %v4880_v62 = vpop.f32.mrf.mxu0  ;;  %5687 = vmatprep.mubr.bf16.mxu1 %v7566_v27  ;;  %v7582_v27 = vcombine.high %v231_v37, %v239_v40  ;;  %v255_v23 = vld [vmem:[%s12952_s0 + $0x768] sm:$0xff] }
 0x29c   :  { %v10193_v24 = vadd.f32 %v5167_v32, %v4879_v29  ;;  %v5169_v20 = vpop.f32.mrf.mxu1 }
 0x29d   :  { %v4881_v42 = vpop.f32.mrf.mxu0 }
 0x29e   :  { %v4882_v25 = vadd.f32 %v4881_v42, %v9498_v44  ;;  %v5170_v6 = vpop.f32.mrf.mxu1  ;;  %v246_v44 = vld [vmem:[%s12952_s0 + $0x720] sm:$0xff]  ;;  %v8448_v42 = vld [vmem:[%s12951_s1 + $0x348] sm:$0xff]  }
 0x29f   :  { %v4883_v8 = vpop.f32.mrf.mxu0  ;;  %5877 = vmatpush2.bf16.msra.mxu0 %v8448_v42 }
 0x2a0   :  { %v10202_v28 = vadd.f32 %v5170_v6, %v4882_v25  ;;  %v5172_v58 = vpop.f32.mrf.mxu1  ;;  %v7579_v6 = vcombine.low %v230_v34, %v238_v49  ;;  %v7581_v8 = vcombine.low %v231_v37, %v239_v40  ;;  %5878 = vmatprep.subr.bf16.mxu0 %v13035_v15  ;;  %v262_v37 = vld [vmem:[%s12952_s0 + $0x7a0] sm:$0xff] }
 0x2a1   :  { %v4886_v29 = vpop.f32.mrf.mxu0  ;;  %5399 = vmatmul.mubr.bf16.gmra.mxu0 %v7563_v39  ;;  %v8449_v39 = vld [vmem:[%s12951_s1 + $0x3c8] sm:$0xff]  }
 0x2a2   :  { %v4887_v32 = vadd.f32 %v4886_v29, %v9500_v7  ;;  %v5175_v62 = vpop.f32.mrf.mxu1  ;;  %5688 = vmatmul.mubr.bf16.gmra.mxu1 %v7565_v19  ;;  %5406 = vmatprep.mubr.bf16.mxu0 %v7580_v30  ;;  %v7598_v29 = vcombine.high %v247_v50, %v255_v23 }
 0x2a3   :  { %v4888_v20 = vpop.f32.mrf.mxu0  ;;  %5695 = vmatprep.mubr.bf16.mxu1 %v7582_v27  ;;  %v7596_v27 = vcombine.high %v246_v44, %v254_v4  ;;  %6166 = vmatpush2.bf16.msra.mxu1 %v8449_v39  ;;  %v263_v39 = vld [vmem:[%s12952_s0 + $0x7a8] sm:$0xff] }
 0x2a4   :  { %v10214_v47 = vadd.f32 %v5175_v62, %v4887_v32  ;;  %v5177_v7 = vpop.f32.mrf.mxu1  ;;  %6167 = vmatprep.subr.bf16.mxu1 %v13035_v15  ;;  %v270_v15 = vld [vmem:[%s12952_s0 + $0x7e0] sm:$0xff] }
 0x2a5   :  { %v4889_v25 = vpop.f32.mrf.mxu0  ;;  %v13057_v7 = vld [vmem:[#allocation2_spill] sm:$0xff] }
 0x2a6   :  { %13055 = vst [vmem:[#allocation25_spill] sm:$0xff] %v10214_v47  ;;  %v4890_v19 = vadd.f32 %v4889_v25, %v9520_v35  ;;  %v5178_v30 = vpop.f32.mrf.mxu1  ;;  %v271_v25 = vld [vmem:[%s12952_s0 + $0x7e8] sm:$0xff] }
 0x2a7   :  { %v4891_v58 = vpop.f32.mrf.mxu0 }
 0x2a8   :  { %v10228_v32 = vadd.f32 %v5178_v30, %v4890_v19  ;;  %v5180_v62 = vpop.f32.mrf.mxu1  ;;  %v7595_v19 = vcombine.low %v246_v44, %v254_v4  ;;  %v13059_v30 = vld [vmem:[#allocation3_spill] sm:$0xff]  ;;  %v7597_v58 = vcombine.low %v247_v50, %v255_v23  ;;  %v278_v44 = vld [vmem:[%s12952_s0 + $0x820] sm:$0xff] }
 0x2a9   :  { %v4894_v20 = vpop.f32.mrf.mxu0  ;;  %5407 = vmatmul.mubr.bf16.gmra.mxu0 %v7579_v6  ;;  %v286_v4 = vld [vmem:[%s12952_s0 + $0x860] sm:$0xff]  ;;  %v279_v50 = vld [vmem:[%s12952_s0 + $0x828] sm:$0xff] }
 0x2aa   :  { %13056 = vst [vmem:[#allocation26_spill] sm:$0xff] %v10228_v32  ;;  %v4895_v34 = vadd.f32 %v4894_v20, %v13057_v7  ;;  %v5183_v49 = vpop.f32.mrf.mxu1  ;;  %5696 = vmatmul.mubr.bf16.gmra.mxu1 %v7581_v8  ;;  %5414 = vmatprep.mubr.bf16.mxu0 %v7596_v27  ;;  %v7614_v20 = vcombine.high %v263_v39, %v271_v25 }
 0x2ab   :  { %v4896_v35 = vpop.f32.mrf.mxu0  ;;  %5703 = vmatprep.mubr.bf16.mxu1 %v7598_v29  ;;  %v7612_v29 = vcombine.high %v262_v37, %v270_v15 }
 0x2ac   :  { %v10237_v40 = vadd.f32 %v5183_v49, %v4895_v34  ;;  %v5185_v42 = vpop.f32.mrf.mxu1  ;;  %v13061_v35 = vld [vmem:[#allocation4_spill] sm:$0xff] }
 0x2ad   :  { %v4897_v6 = vpop.f32.mrf.mxu0 }
 0x2ae   :  { %13058 = vst [vmem:[#allocation2_spill] sm:$0xff] %v10237_v40  ;;  %v4898_v8 = vadd.f32 %v4897_v6, %v13059_v30  ;;  %v5186_v27 = vpop.f32.mrf.mxu1  ;;  %v8451_v30 = vld [vmem:[%s12951_s1 + $0x3c0] sm:$0xff]  }
 0x2af   :  { %v4899_v62 = vpop.f32.mrf.mxu0  ;;  %6168 = vmatpush2.bf16.msra.mxu1 %v8451_v30  ;;  %v303_v30 = vld [vmem:[%s12952_s0 + $0x8e8] sm:$0xff] }
 0x2b0   :  { %v10246_v7 = vadd.f32 %v5186_v27, %v4898_v8  ;;  %v5188_v34 = vpop.f32.mrf.mxu1  ;;  %v7611_v27 = vcombine.low %v262_v37, %v270_v15  ;;  %v294_v15 = vld [vmem:[%s12952_s0 + $0x8a0] sm:$0xff] }
 0x2b1   :  { %v4902_v49 = vpop.f32.mrf.mxu0  ;;  %5415 = vmatmul.mubr.bf16.gmra.mxu0 %v7595_v19  ;;  %v8450_v19 = vld [vmem:[%s12951_s1 + $0x340] sm:$0xff]  }
 0x2b2   :  { %13060 = vst [vmem:[#allocation3_spill] sm:$0xff] %v10246_v7  ;;  %v4903_v42 = vadd.f32 %v4902_v49, %v13061_v35  ;;  %v5191_v40 = vpop.f32.mrf.mxu1  ;;  %5704 = vmatmul.mubr.bf16.gmra.mxu1 %v7597_v58  ;;  %5422 = vmatprep.mubr.bf16.mxu0 %v7612_v29  ;;  %v13063_v58 = vld [vmem:[#allocation5_spill] sm:$0xff] }
 0x2b3   :  { %v4904_v32 = vpop.f32.mrf.mxu0  ;;  %5711 = vmatprep.mubr.bf16.mxu1 %v7614_v20  ;;  %v7628_v20 = vcombine.high %v278_v44, %v286_v4  ;;  %5879 = vmatpush2.bf16.msra.mxu0 %v8450_v19 }
 0x2b4   :  { %v10258_v23 = vadd.f32 %v5191_v40, %v4903_v42  ;;  %v5193_v6 = vpop.f32.mrf.mxu1  ;;  %v287_v32 = vld [vmem:[%s12952_s0 + $0x868] sm:$0xff]  ;;  %v7613_v40 = vcombine.low %v263_v39, %v271_v25  ;;  %v302_v39 = vld [vmem:[%s12952_s0 + $0x8e0] sm:$0xff] }
 0x2b5   :  { %v4905_v8 = vpop.f32.mrf.mxu0  ;;  %v7630_v49 = vcombine.high %v279_v50, %v287_v32 }
 0x2b6   :  { %13062 = vst [vmem:[#allocation4_spill] sm:$0xff] %v10258_v23  ;;  %v4906_v29 = vadd.f32 %v4905_v8, %v13063_v58  ;;  %v5194_v62 = vpop.f32.mrf.mxu1  ;;  %v13064_v23 = vld [vmem:[#allocation6_spill] sm:$0xff]  ;;  %v13066_v58 = vld [vmem:[#allocation7_spill] sm:$0xff] }
 0x2b7   :  { %v4907_v34 = vpop.f32.mrf.mxu0 }
 0x2b8   :  { %v10270_v35 = vadd.f32 %v5194_v62, %v4906_v29  ;;  %v5196_v42 = vpop.f32.mrf.mxu1 }
 0x2b9   :  { %v4910_v6 = vpop.f32.mrf.mxu0  ;;  %5423 = vmatmul.mubr.bf16.gmra.mxu0 %v7611_v27  ;;  %v7627_v27 = vcombine.low %v278_v44, %v286_v4  ;;  %v310_v44 = vld [vmem:[%s12952_s0 + $0x920] sm:$0xff] }
 0x2ba   :  { %v4911_v7 = vadd.f32 %v4910_v6, %v13064_v23  ;;  %v5199_v47 = vpop.f32.mrf.mxu1  ;;  %5712 = vmatmul.mubr.bf16.gmra.mxu1 %v7613_v40  ;;  %5430 = vmatprep.mubr.bf16.mxu0 %v7628_v20  ;;  %v295_v23 = vld [vmem:[%s12952_s0 + $0x8a8] sm:$0xff]  ;;  %v7629_v40 = vcombine.low %v279_v50, %v287_v32  ;;  %v7644_v20 = vcombine.high %v294_v15, %v302_v39  ;;  %v13068_v6 = vld [vmem:[#allocation8_spill] sm:$0xff]  ;;  %v318_v4 = vld [vmem:[%s12952_s0 + $0x960] sm:$0xff] }
 0x2bb   :  { %v4912_v37 = vpop.f32.mrf.mxu0  ;;  %5719 = vmatprep.mubr.bf16.mxu1 %v7630_v49  ;;  %v7646_v49 = vcombine.high %v295_v23, %v303_v30 }
 0x2bc   :  { %v10279_v25 = vadd.f32 %v5199_v47, %v4911_v7  ;;  %v5201_v19 = vpop.f32.mrf.mxu1 }
 0x2bd   :  { %v4913_v8 = vpop.f32.mrf.mxu0 }
 0x2be   :  { %13065 = vst [vmem:[#allocation5_spill] sm:$0xff] %v10279_v25  ;;  %v4914_v29 = vadd.f32 %v4913_v8, %v13066_v58  ;;  %v5202_v62 = vpop.f32.mrf.mxu1  ;;  %v311_v8 = vld [vmem:[%s12952_s0 + $0x928] sm:$0xff]  ;;  %v7643_v58 = vcombine.low %v294_v15, %v302_v39  ;;  %v326_v15 = vld [vmem:[%s12952_s0 + $0x9a0] sm:$0xff] }
 0x2bf   :  { %v4915_v34 = vpop.f32.mrf.mxu0  ;;  %v334_v39 = vld [vmem:[%s12952_s0 + $0x9e0] sm:$0xff] }
 0x2c0   :  { %v10288_v47 = vadd.f32 %v5202_v62, %v4914_v29  ;;  %v5204_v7 = vpop.f32.mrf.mxu1  ;;  %v13070_v29 = vld [vmem:[#allocation9_spill] sm:$0xff]  ;;  %v7660_v34 = vcombine.high %v310_v44, %v318_v4 }
 0x2c1   :  { %v4918_v42 = vpop.f32.mrf.mxu0  ;;  %5431 = vmatmul.mubr.bf16.gmra.mxu0 %v7627_v27 }
 0x2c2   :  { %13067 = vst [vmem:[#allocation6_spill] sm:$0xff] %v10288_v47  ;;  %v4919_v37 = vadd.f32 %v4918_v42, %v13068_v6  ;;  %v5207_v19 = vpop.f32.mrf.mxu1  ;;  %5720 = vmatmul.mubr.bf16.gmra.mxu1 %v7629_v40  ;;  %5438 = vmatprep.mubr.bf16.mxu0 %v7644_v20  ;;  %v7645_v20 = vcombine.low %v295_v23, %v303_v30 }
 0x2c3   :  { %v4920_v25 = vpop.f32.mrf.mxu0  ;;  %5727 = vmatprep.mubr.bf16.mxu1 %v7646_v49 }
 0x2c4   :  { %v10297_v50 = vadd.f32 %v5207_v19, %v4919_v37  ;;  %v5209_v32 = vpop.f32.mrf.mxu1  ;;  %v319_v25 = vld [vmem:[%s12952_s0 + $0x968] sm:$0xff]  ;;  %v13072_v19 = vld [vmem:[#allocation10_spill] sm:$0xff] }
 0x2c5   :  { %v4921_v27 = vpop.f32.mrf.mxu0  ;;  %v7662_v7 = vcombine.high %v311_v8, %v319_v25 }
 0x2c6   :  { %13069 = vst [vmem:[#allocation7_spill] sm:$0xff] %v10297_v50  ;;  %v4922_v62 = vadd.f32 %v4921_v27, %v13070_v29  ;;  %v5210_v40 = vpop.f32.mrf.mxu1  ;;  %v327_v27 = vld [vmem:[%s12952_s0 + $0x9a8] sm:$0xff]  ;;  %v7659_v29 = vcombine.low %v310_v44, %v318_v4  ;;  %v342_v44 = vld [vmem:[%s12952_s0 + $0xa20] sm:$0xff] }
 0x2c7   :  { %v4923_v49 = vpop.f32.mrf.mxu0  ;;  %v350_v4 = vld [vmem:[%s12952_s0 + $0xa60] sm:$0xff] }
 0x2c8   :  { %v10306_v42 = vadd.f32 %v5210_v40, %v4922_v62  ;;  %v5212_v6 = vpop.f32.mrf.mxu1  ;;  %v13074_v62 = vld [vmem:[#allocation11_spill] sm:$0xff]  ;;  %v7676_v49 = vcombine.high %v326_v15, %v334_v39 }
 0x2c9   :  { %v4926_v37 = vpop.f32.mrf.mxu0  ;;  %5439 = vmatmul.mubr.bf16.gmra.mxu0 %v7643_v58 }
 0x2ca   :  { %13071 = vst [vmem:[#allocation8_spill] sm:$0xff] %v10306_v42  ;;  %v4927_v32 = vadd.f32 %v4926_v37, %v13072_v19  ;;  %v5215_v50 = vpop.f32.mrf.mxu1  ;;  %5728 = vmatmul.mubr.bf16.gmra.mxu1 %v7645_v20  ;;  %5446 = vmatprep.mubr.bf16.mxu0 %v7660_v34  ;;  %v7661_v34 = vcombine.low %v311_v8, %v319_v25 }
 0x2cb   :  { %v4928_v47 = vpop.f32.mrf.mxu0  ;;  %5735 = vmatprep.mubr.bf16.mxu1 %v7662_v7 }
 0x2cc   :  { %v10315_v23 = vadd.f32 %v5215_v50, %v4927_v32  ;;  %v5217_v30 = vpop.f32.mrf.mxu1  ;;  %v335_v47 = vld [vmem:[%s12952_s0 + $0x9e8] sm:$0xff]  ;;  %v13076_v32 = vld [vmem:[#allocation12_spill] sm:$0xff] }
 0x2cd   :  { %v4929_v58 = vpop.f32.mrf.mxu0  ;;  %v7678_v6 = vcombine.high %v327_v27, %v335_v47 }
 0x2ce   :  { %13073 = vst [vmem:[#allocation9_spill] sm:$0xff] %v10315_v23  ;;  %v4930_v40 = vadd.f32 %v4929_v58, %v13074_v62  ;;  %v5218_v20 = vpop.f32.mrf.mxu1  ;;  %v343_v58 = vld [vmem:[%s12952_s0 + $0xa28] sm:$0xff]  ;;  %v7675_v62 = vcombine.low %v326_v15, %v334_v39  ;;  %v358_v15 = vld [vmem:[%s12952_s0 + $0xaa0] sm:$0xff] }
 0x2cf   :  { %v4931_v7 = vpop.f32.mrf.mxu0  ;;  %v366_v39 = vld [vmem:[%s12952_s0 + $0xae0] sm:$0xff] }
 0x2d0   :  { %v10324_v50 = vadd.f32 %v5218_v20, %v4930_v40  ;;  %v5220_v37 = vpop.f32.mrf.mxu1  ;;  %v13078_v40 = vld [vmem:[#allocation13_spill] sm:$0xff]  ;;  %v7692_v7 = vcombine.high %v342_v44, %v350_v4 }
 0x2d1   :  { %v4934_v19 = vpop.f32.mrf.mxu0  ;;  %5447 = vmatmul.mubr.bf16.gmra.mxu0 %v7659_v29 }
 0x2d2   :  { %13075 = vst [vmem:[#allocation10_spill] sm:$0xff] %v10324_v50  ;;  %v4935_v30 = vadd.f32 %v4934_v19, %v13076_v32  ;;  %v5223_v23 = vpop.f32.mrf.mxu1  ;;  %5736 = vmatmul.mubr.bf16.gmra.mxu1 %v7661_v34  ;;  %5454 = vmatprep.mubr.bf16.mxu0 %v7676_v49  ;;  %v7677_v49 = vcombine.low %v327_v27, %v335_v47 }
 0x2d3   :  { %v4936_v42 = vpop.f32.mrf.mxu0  ;;  %5743 = vmatprep.mubr.bf16.mxu1 %v7678_v6 }
 0x2d4   :  { %v10333_v8 = vadd.f32 %v5223_v23, %v4935_v30  ;;  %v5225_v25 = vpop.f32.mrf.mxu1  ;;  %v351_v42 = vld [vmem:[%s12952_s0 + $0xa68] sm:$0xff]  ;;  %v13080_v30 = vld [vmem:[#allocation14_spill] sm:$0xff] }
 0x2d5   :  { %v4937_v29 = vpop.f32.mrf.mxu0  ;;  %v7694_v37 = vcombine.high %v343_v58, %v351_v42 }
 0x2d6   :  { %13077 = vst [vmem:[#allocation11_spill] sm:$0xff] %v10333_v8  ;;  %v4938_v20 = vadd.f32 %v4937_v29, %v13078_v40  ;;  %v5226_v34 = vpop.f32.mrf.mxu1  ;;  %v359_v29 = vld [vmem:[%s12952_s0 + $0xaa8] sm:$0xff]  ;;  %v7691_v40 = vcombine.low %v342_v44, %v350_v4  ;;  %v374_v44 = vld [vmem:[%s12952_s0 + $0xb20] sm:$0xff] }
 0x2d7   :  { %v4939_v6 = vpop.f32.mrf.mxu0  ;;  %v382_v4 = vld [vmem:[%s12952_s0 + $0xb60] sm:$0xff] }
 0x2d8   :  { %v10342_v23 = vadd.f32 %v5226_v34, %v4938_v20  ;;  %v5228_v19 = vpop.f32.mrf.mxu1  ;;  %v13082_v20 = vld [vmem:[#allocation15_spill] sm:$0xff]  ;;  %v7708_v6 = vcombine.high %v358_v15, %v366_v39 }
 0x2d9   :  { %v4942_v32 = vpop.f32.mrf.mxu0  ;;  %5455 = vmatmul.mubr.bf16.gmra.mxu0 %v7675_v62 }
 0x2da   :  { %13079 = vst [vmem:[#allocation12_spill] sm:$0xff] %v10342_v23  ;;  %v4943_v25 = vadd.f32 %v4942_v32, %v13080_v30  ;;  %v5231_v8 = vpop.f32.mrf.mxu1  ;;  %5744 = vmatmul.mubr.bf16.gmra.mxu1 %v7677_v49  ;;  %5462 = vmatprep.mubr.bf16.mxu0 %v7692_v7  ;;  %v7693_v7 = vcombine.low %v343_v58, %v351_v42 }
 0x2db   :  { %v4944_v50 = vpop.f32.mrf.mxu0  ;;  %5751 = vmatprep.mubr.bf16.mxu1 %v7694_v37 }
 0x2dc   :  { %v10351_v27 = vadd.f32 %v5231_v8, %v4943_v25  ;;  %v5233_v47 = vpop.f32.mrf.mxu1  ;;  %v367_v50 = vld [vmem:[%s12952_s0 + $0xae8] sm:$0xff]  ;;  %v13084_v25 = vld [vmem:[#allocation16_spill] sm:$0xff] }
 0x2dd   :  { %v4945_v62 = vpop.f32.mrf.mxu0  ;;  %v7710_v19 = vcombine.high %v359_v29, %v367_v50 }
 0x2de   :  { %13081 = vst [vmem:[#allocation13_spill] sm:$0xff] %v10351_v27  ;;  %v4946_v34 = vadd.f32 %v4945_v62, %v13082_v20  ;;  %v5234_v49 = vpop.f32.mrf.mxu1  ;;  %v375_v62 = vld [vmem:[%s12952_s0 + $0xb28] sm:$0xff]  ;;  %v7707_v20 = vcombine.low %v358_v15, %v366_v39  ;;  %v390_v15 = vld [vmem:[%s12952_s0 + $0xba0] sm:$0xff] }
 0x2df   :  { %v4947_v37 = vpop.f32.mrf.mxu0  ;;  %v398_v39 = vld [vmem:[%s12952_s0 + $0xbe0] sm:$0xff] }
 0x2e0   :  { %v10360_v8 = vadd.f32 %v5234_v49, %v4946_v34  ;;  %v5236_v32 = vpop.f32.mrf.mxu1  ;;  %v13086_v34 = vld [vmem:[#allocation17_spill] sm:$0xff]  ;;  %v7724_v37 = vcombine.high %v374_v44, %v382_v4 }
 0x2e1   :  { %v4950_v30 = vpop.f32.mrf.mxu0  ;;  %5463 = vmatmul.mubr.bf16.gmra.mxu0 %v7691_v40 }
 0x2e2   :  { %13083 = vst [vmem:[#allocation14_spill] sm:$0xff] %v10360_v8  ;;  %v4951_v47 = vadd.f32 %v4950_v30, %v13084_v25  ;;  %v5239_v27 = vpop.f32.mrf.mxu1  ;;  %5752 = vmatmul.mubr.bf16.gmra.mxu1 %v7693_v7  ;;  %5470 = vmatprep.mubr.bf16.mxu0 %v7708_v6  ;;  %v7709_v6 = vcombine.low %v359_v29, %v367_v50 }
 0x2e3   :  { %v4952_v23 = vpop.f32.mrf.mxu0  ;;  %5759 = vmatprep.mubr.bf16.mxu1 %v7710_v19 }
 0x2e4   :  { %v10369_v58 = vadd.f32 %v5239_v27, %v4951_v47  ;;  %v5241_v42 = vpop.f32.mrf.mxu1  ;;  %v383_v23 = vld [vmem:[%s12952_s0 + $0xb68] sm:$0xff]  ;;  %v13088_v47 = vld [vmem:[#allocation18_spill] sm:$0xff] }
 0x2e5   :  { %v4953_v40 = vpop.f32.mrf.mxu0  ;;  %v7726_v32 = vcombine.high %v375_v62, %v383_v23 }
 0x2e6   :  { %13085 = vst [vmem:[#allocation15_spill] sm:$0xff] %v10369_v58  ;;  %v4954_v49 = vadd.f32 %v4953_v40, %v13086_v34  ;;  %v5242_v7 = vpop.f32.mrf.mxu1  ;;  %v391_v40 = vld [vmem:[%s12952_s0 + $0xba8] sm:$0xff]  ;;  %v7723_v34 = vcombine.low %v374_v44, %v382_v4  ;;  %v406_v44 = vld [vmem:[%s12952_s0 + $0xc20] sm:$0xff] }
 0x2e7   :  { %v4955_v19 = vpop.f32.mrf.mxu0  ;;  %v414_v4 = vld [vmem:[%s12952_s0 + $0xc60] sm:$0xff] }
 0x2e8   :  { %v10378_v27 = vadd.f32 %v5242_v7, %v4954_v49  ;;  %v5244_v30 = vpop.f32.mrf.mxu1  ;;  %v13090_v49 = vld [vmem:[#allocation19_spill] sm:$0xff]  ;;  %v7740_v19 = vcombine.high %v390_v15, %v398_v39 }
 0x2e9   :  { %v4958_v25 = vpop.f32.mrf.mxu0  ;;  %5471 = vmatmul.mubr.bf16.gmra.mxu0 %v7707_v20 }
 0x2ea   :  { %13087 = vst [vmem:[#allocation16_spill] sm:$0xff] %v10378_v27  ;;  %v4959_v42 = vadd.f32 %v4958_v25, %v13088_v47  ;;  %v5247_v58 = vpop.f32.mrf.mxu1  ;;  %5760 = vmatmul.mubr.bf16.gmra.mxu1 %v7709_v6  ;;  %5478 = vmatprep.mubr.bf16.mxu0 %v7724_v37  ;;  %v7725_v37 = vcombine.low %v375_v62, %v383_v23 }
 0x2eb   :  { %v4960_v8 = vpop.f32.mrf.mxu0  ;;  %5767 = vmatprep.mubr.bf16.mxu1 %v7726_v32 }
 0x2ec   :  { %v10387_v29 = vadd.f32 %v5247_v58, %v4959_v42  ;;  %v5249_v50 = vpop.f32.mrf.mxu1  ;;  %v399_v8 = vld [vmem:[%s12952_s0 + $0xbe8] sm:$0xff]  ;;  %v13092_v42 = vld [vmem:[#allocation20_spill] sm:$0xff] }
 0x2ed   :  { %v4961_v20 = vpop.f32.mrf.mxu0  ;;  %v7742_v30 = vcombine.high %v391_v40, %v399_v8 }
 0x2ee   :  { %13089 = vst [vmem:[#allocation17_spill] sm:$0xff] %v10387_v29  ;;  %v4962_v7 = vadd.f32 %v4961_v20, %v13090_v49  ;;  %v5250_v6 = vpop.f32.mrf.mxu1  ;;  %v407_v20 = vld [vmem:[%s12952_s0 + $0xc28] sm:$0xff]  ;;  %v7739_v49 = vcombine.low %v390_v15, %v398_v39  ;;  %v422_v15 = vld [vmem:[%s12952_s0 + $0xca0] sm:$0xff] }
 0x2ef   :  { %v4963_v32 = vpop.f32.mrf.mxu0  ;;  %v430_v39 = vld [vmem:[%s12952_s0 + $0xce0] sm:$0xff] }
 0x2f0   :  { %v10396_v58 = vadd.f32 %v5250_v6, %v4962_v7  ;;  %v5252_v25 = vpop.f32.mrf.mxu1  ;;  %v13094_v7 = vld [vmem:[#allocation21_spill] sm:$0xff]  ;;  %v7756_v32 = vcombine.high %v406_v44, %v414_v4 }
 0x2f1   :  { %v4966_v47 = vpop.f32.mrf.mxu0  ;;  %5479 = vmatmul.mubr.bf16.gmra.mxu0 %v7723_v34 }
 0x2f2   :  { %13091 = vst [vmem:[#allocation18_spill] sm:$0xff] %v10396_v58  ;;  %v4967_v50 = vadd.f32 %v4966_v47, %v13092_v42  ;;  %v5255_v29 = vpop.f32.mrf.mxu1  ;;  %5768 = vmatmul.mubr.bf16.gmra.mxu1 %v7725_v37  ;;  %5486 = vmatprep.mubr.bf16.mxu0 %v7740_v19  ;;  %v7741_v19 = vcombine.low %v391_v40, %v399_v8 }
 0x2f3   :  { %v4968_v27 = vpop.f32.mrf.mxu0  ;;  %5775 = vmatprep.mubr.bf16.mxu1 %v7742_v30 }
 0x2f4   :  { %v10405_v62 = vadd.f32 %v5255_v29, %v4967_v50  ;;  %v5257_v23 = vpop.f32.mrf.mxu1  ;;  %v415_v27 = vld [vmem:[%s12952_s0 + $0xc68] sm:$0xff]  ;;  %v13096_v50 = vld [vmem:[#allocation22_spill] sm:$0xff] }
 0x2f5   :  { %v4969_v34 = vpop.f32.mrf.mxu0  ;;  %v7758_v25 = vcombine.high %v407_v20, %v415_v27 }
 0x2f6   :  { %13093 = vst [vmem:[#allocation19_spill] sm:$0xff] %v10405_v62  ;;  %v4970_v6 = vadd.f32 %v4969_v34, %v13094_v7  ;;  %v5258_v37 = vpop.f32.mrf.mxu1  ;;  %v423_v34 = vld [vmem:[%s12952_s0 + $0xca8] sm:$0xff]  ;;  %v7755_v7 = vcombine.low %v406_v44, %v414_v4  ;;  %v438_v44 = vld [vmem:[%s12952_s0 + $0xd20] sm:$0xff] }
 0x2f7   :  { %v4971_v30 = vpop.f32.mrf.mxu0  ;;  %v446_v4 = vld [vmem:[%s12952_s0 + $0xd60] sm:$0xff] }
 0x2f8   :  { %v10414_v29 = vadd.f32 %v5258_v37, %v4970_v6  ;;  %v5260_v47 = vpop.f32.mrf.mxu1  ;;  %v13098_v6 = vld [vmem:[#allocation23_spill] sm:$0xff]  ;;  %v7772_v30 = vcombine.high %v422_v15, %v430_v39 }
 0x2f9   :  { %v4974_v42 = vpop.f32.mrf.mxu0  ;;  %5487 = vmatmul.mubr.bf16.gmra.mxu0 %v7739_v49 }
 0x2fa   :  { %13095 = vst [vmem:[#allocation20_spill] sm:$0xff] %v10414_v29  ;;  %v4975_v23 = vadd.f32 %v4974_v42, %v13096_v50  ;;  %v5263_v62 = vpop.f32.mrf.mxu1  ;;  %5776 = vmatmul.mubr.bf16.gmra.mxu1 %v7741_v19  ;;  %5494 = vmatprep.mubr.bf16.mxu0 %v7756_v32  ;;  %v7757_v32 = vcombine.low %v407_v20, %v415_v27 }
 0x2fb   :  { %v4976_v58 = vpop.f32.mrf.mxu0  ;;  %5783 = vmatprep.mubr.bf16.mxu1 %v7758_v25 }
 0x2fc   :  { %v10423_v40 = vadd.f32 %v5263_v62, %v4975_v23  ;;  %v5265_v8 = vpop.f32.mrf.mxu1  ;;  %v431_v58 = vld [vmem:[%s12952_s0 + $0xce8] sm:$0xff]  ;;  %v13099_v23 = vld [vmem:[#allocation24_spill] sm:$0xff] }
 0x2fd   :  { %v4977_v49 = vpop.f32.mrf.mxu0  ;;  %v7774_v47 = vcombine.high %v423_v34, %v431_v58 }
 0x2fe   :  { %13097 = vst [vmem:[#allocation21_spill] sm:$0xff] %v10423_v40  ;;  %v4978_v37 = vadd.f32 %v4977_v49, %v13098_v6  ;;  %v5266_v19 = vpop.f32.mrf.mxu1  ;;  %v439_v49 = vld [vmem:[%s12952_s0 + $0xd28] sm:$0xff]  ;;  %v7771_v6 = vcombine.low %v422_v15, %v430_v39  ;;  %v462_v15 = vld [vmem:[%s12952_s0 + $0xde0] sm:$0xff] }
 0x2ff   :  { %v4979_v25 = vpop.f32.mrf.mxu0 }
 0x300   :  { %v10432_v62 = vadd.f32 %v5266_v19, %v4978_v37  ;;  %v5268_v42 = vpop.f32.mrf.mxu1 }
 0x301   :  { %v5304_v50 = vpop.f32.mrf.mxu0  ;;  %5495 = vmatmul.mubr.bf16.gmra.mxu0 %v7755_v7 }
 0x302   :  { %v5305_v8 = vadd.f32 %v5304_v50, %v13099_v23  ;;  %v5593_v40 = vpop.f32.mrf.mxu1  ;;  %5784 = vmatmul.mubr.bf16.gmra.mxu1 %v7757_v32  ;;  %5502 = vmatprep.mubr.bf16.mxu0 %v7772_v30  ;;  %v7773_v32 = vcombine.low %v423_v34, %v431_v58  ;;  %v7788_v30 = vcombine.high %v438_v44, %v446_v4  ;;  %v463_v58 = vld [vmem:[%s12952_s0 + $0xde8] sm:$0xff] }
 0x303   :  { %v5306_v29 = vpop.f32.mrf.mxu0  ;;  %5791 = vmatprep.mubr.bf16.mxu1 %v7774_v47 }
 0x304   :  { %v10441_v20 = vadd.f32 %v5593_v40, %v5305_v8  ;;  %v5595_v27 = vpop.f32.mrf.mxu1  ;;  %v447_v29 = vld [vmem:[%s12952_s0 + $0xd68] sm:$0xff] }
 0x305   :  { %v5307_v7 = vpop.f32.mrf.mxu0  ;;  %v7790_v47 = vcombine.high %v439_v49, %v447_v29 }
 0x306   :  { %v5308_v37 = vadd.f32 %v5307_v7, %v9724_v18  ;;  %v5596_v19 = vpop.f32.mrf.mxu1  ;;  %v454_v18 = vld [vmem:[%s12952_s0 + $0xda0] sm:$0xff] }
 0x307   :  { %v5309_v25 = vpop.f32.mrf.mxu0 }
 0x308   :  { %v10450_v40 = vadd.f32 %v5596_v19, %v5308_v37  ;;  %v5598_v42 = vpop.f32.mrf.mxu1 }
 0x309   :  { %v5312_v50 = vpop.f32.mrf.mxu0  ;;  %5503 = vmatmul.mubr.bf16.gmra.mxu0 %v7771_v6  ;;  %v7787_v6 = vcombine.low %v438_v44, %v446_v4  ;;  %v478_v44 = vld [vmem:[%s12952_s0 + $0xe60] sm:$0xff] }
 0x30a   :  { %v5313_v23 = vadd.f32 %v5312_v50, %v9733_v16  ;;  %v5601_v8 = vpop.f32.mrf.mxu1  ;;  %5792 = vmatmul.mubr.bf16.gmra.mxu1 %v7773_v32  ;;  %5510 = vmatprep.mubr.bf16.mxu0 %v7788_v30  ;;  %v455_v16 = vld [vmem:[%s12952_s0 + $0xda8] sm:$0xff]  ;;  %v7789_v32 = vcombine.low %v439_v49, %v447_v29  ;;  %v7804_v30 = vcombine.high %v454_v18, %v462_v15 }
 0x30b   :  { %v5314_v27 = vpop.f32.mrf.mxu0  ;;  %5799 = vmatprep.mubr.bf16.mxu1 %v7790_v47  ;;  %v7806_v47 = vcombine.high %v455_v16, %v463_v58  ;;  %v479_v29 = vld [vmem:[%s12952_s0 + $0xe68] sm:$0xff] }
 0x30c   :  { %v10459_v39 = vadd.f32 %v5601_v8, %v5313_v23  ;;  %v5603_v34 = vpop.f32.mrf.mxu1 }
 0x30d   :  { %v5315_v7 = vpop.f32.mrf.mxu0 }
 0x30e   :  { %v5316_v37 = vadd.f32 %v5315_v7, %v9742_v63  ;;  %v5604_v19 = vpop.f32.mrf.mxu1  ;;  %v470_v63 = vld [vmem:[%s12952_s0 + $0xe20] sm:$0xff] }
 0x30f   :  { %v5317_v25 = vpop.f32.mrf.mxu0 }
 0x310   :  { %v10468_v42 = vadd.f32 %v5604_v19, %v5316_v37  ;;  %v5606_v50 = vpop.f32.mrf.mxu1 }
 0x311   :  { %v5320_v23 = vpop.f32.mrf.mxu0  ;;  %5511 = vmatmul.mubr.bf16.gmra.mxu0 %v7787_v6  ;;  %v7803_v6 = vcombine.low %v454_v18, %v462_v15  ;;  %v494_v18 = vld [vmem:[%s12952_s0 + $0xee0] sm:$0xff] }
 0x312   :  { %v5321_v8 = vadd.f32 %v5320_v23, %v9751_v60  ;;  %v5609_v27 = vpop.f32.mrf.mxu1  ;;  %5800 = vmatmul.mubr.bf16.gmra.mxu1 %v7789_v32  ;;  %5518 = vmatprep.mubr.bf16.mxu0 %v7804_v30  ;;  %v471_v60 = vld [vmem:[%s12952_s0 + $0xe28] sm:$0xff]  ;;  %v7805_v32 = vcombine.low %v455_v16, %v463_v58  ;;  %v7820_v30 = vcombine.high %v470_v63, %v478_v44 }
 0x313   :  { %v5322_v34 = vpop.f32.mrf.mxu0  ;;  %5807 = vmatprep.mubr.bf16.mxu1 %v7806_v47  ;;  %v7822_v47 = vcombine.high %v471_v60, %v479_v29  ;;  %v495_v58 = vld [vmem:[%s12952_s0 + $0xee8] sm:$0xff] }
 0x314   :  { %v10477_v4 = vadd.f32 %v5609_v27, %v5321_v8  ;;  %v5611_v49 = vpop.f32.mrf.mxu1 }
 0x315   :  { %v5323_v7 = vpop.f32.mrf.mxu0 }
 0x316   :  { %v5324_v37 = vadd.f32 %v5323_v7, %v9760_v10  ;;  %v5612_v19 = vpop.f32.mrf.mxu1  ;;  %v486_v10 = vld [vmem:[%s12952_s0 + $0xea0] sm:$0xff] }
 0x317   :  { %v5325_v25 = vpop.f32.mrf.mxu0 }
 0x318   :  { %v10486_v50 = vadd.f32 %v5612_v19, %v5324_v37  ;;  %v5614_v23 = vpop.f32.mrf.mxu1 }
 0x319   :  { %v5328_v8 = vpop.f32.mrf.mxu0  ;;  %5519 = vmatmul.mubr.bf16.gmra.mxu0 %v7803_v6  ;;  %v7819_v6 = vcombine.low %v470_v63, %v478_v44  ;;  %v510_v63 = vld [vmem:[%s12952_s0 + $0xf60] sm:$0xff] }
 0x31a   :  { %v5329_v27 = vadd.f32 %v5328_v8, %v9769_v38  ;;  %v5617_v34 = vpop.f32.mrf.mxu1  ;;  %5808 = vmatmul.mubr.bf16.gmra.mxu1 %v7805_v32  ;;  %5526 = vmatprep.mubr.bf16.mxu0 %v7820_v30  ;;  %v487_v38 = vld [vmem:[%s12952_s0 + $0xea8] sm:$0xff]  ;;  %v7821_v32 = vcombine.low %v471_v60, %v479_v29  ;;  %v7836_v30 = vcombine.high %v486_v10, %v494_v18 }
 0x31b   :  { %v5330_v49 = vpop.f32.mrf.mxu0  ;;  %5815 = vmatprep.mubr.bf16.mxu1 %v7822_v47  ;;  %v7838_v47 = vcombine.high %v487_v38, %v495_v58  ;;  %v511_v29 = vld [vmem:[%s12952_s0 + $0xf68] sm:$0xff] }
 0x31c   :  { %v10495_v15 = vadd.f32 %v5617_v34, %v5329_v27  ;;  %v5619_v16 = vpop.f32.mrf.mxu1 }
 0x31d   :  { %v5331_v7 = vpop.f32.mrf.mxu0 }
 0x31e   :  { %v5332_v37 = vadd.f32 %v5331_v7, %v9778_v1  ;;  %v5620_v19 = vpop.f32.mrf.mxu1  ;;  %v502_v1 = vld [vmem:[%s12952_s0 + $0xf20] sm:$0xff] }
 0x31f   :  { %v5333_v25 = vpop.f32.mrf.mxu0 }
 0x320   :  { %v10504_v23 = vadd.f32 %v5620_v19, %v5332_v37  ;;  %v5622_v8 = vpop.f32.mrf.mxu1 }
 0x321   :  { %v5336_v27 = vpop.f32.mrf.mxu0  ;;  %5527 = vmatmul.mubr.bf16.gmra.mxu0 %v7819_v6  ;;  %v7835_v6 = vcombine.low %v486_v10, %v494_v18  ;;  %v526_v10 = vld [vmem:[%s12952_s0 + $0xfe0] sm:$0xff] }
 0x322   :  { %v5337_v34 = vadd.f32 %v5336_v27, %v9787_v59  ;;  %v5625_v49 = vpop.f32.mrf.mxu1  ;;  %5816 = vmatmul.mubr.bf16.gmra.mxu1 %v7821_v32  ;;  %5534 = vmatprep.mubr.bf16.mxu0 %v7836_v30  ;;  %v503_v59 = vld [vmem:[%s12952_s0 + $0xf28] sm:$0xff]  ;;  %v7837_v32 = vcombine.low %v487_v38, %v495_v58  ;;  %v7852_v30 = vcombine.high %v502_v1, %v510_v63 }
 0x323   :  { %v5338_v16 = vpop.f32.mrf.mxu0  ;;  %5823 = vmatprep.mubr.bf16.mxu1 %v7838_v47  ;;  %v7854_v47 = vcombine.high %v503_v59, %v511_v29  ;;  %v527_v58 = vld [vmem:[%s12952_s0 + $0xfe8] sm:$0xff] }
 0x324   :  { %v10513_v44 = vadd.f32 %v5625_v49, %v5337_v34  ;;  %v5627_v60 = vpop.f32.mrf.mxu1 }
 0x325   :  { %v5339_v7 = vpop.f32.mrf.mxu0 }
 0x326   :  { %v5340_v37 = vadd.f32 %v5339_v7, %v9796_v56  ;;  %v5628_v19 = vpop.f32.mrf.mxu1  ;;  %v518_v56 = vld [vmem:[%s12952_s0 + $0xfa0] sm:$0xff] }
 0x327   :  { %v5341_v25 = vpop.f32.mrf.mxu0 }
 0x328   :  { %v10522_v8 = vadd.f32 %v5628_v19, %v5340_v37  ;;  %v5630_v27 = vpop.f32.mrf.mxu1 }
 0x329   :  { %v5344_v34 = vpop.f32.mrf.mxu0  ;;  %5535 = vmatmul.mubr.bf16.gmra.mxu0 %v7835_v6  ;;  %v7851_v6 = vcombine.low %v502_v1, %v510_v63  ;;  %v32_v1 = vld [vmem:[%s12952_s0 + $0x70] sm:$0xff] }
 0x32a   :  { %v5345_v49 = vadd.f32 %v5344_v34, %v9805_v33  ;;  %v5633_v16 = vpop.f32.mrf.mxu1  ;;  %5824 = vmatmul.mubr.bf16.gmra.mxu1 %v7837_v32  ;;  %5542 = vmatprep.mubr.bf16.mxu0 %v7852_v30  ;;  %v519_v33 = vld [vmem:[%s12952_s0 + $0xfa8] sm:$0xff]  ;;  %v7853_v32 = vcombine.low %v503_v59, %v511_v29  ;;  %v7868_v30 = vcombine.high %v518_v56, %v526_v10  ;;  %v33_v29 = vld [vmem:[%s12952_s0 + $0x78] sm:$0xff] }
 0x32b   :  { %v5346_v60 = vpop.f32.mrf.mxu0  ;;  %5831 = vmatprep.mubr.bf16.mxu1 %v7854_v47  ;;  %v7870_v47 = vcombine.high %v519_v33, %v527_v58 }
 0x32c   :  { %v10531_v18 = vadd.f32 %v5633_v16, %v5345_v49  ;;  %v5635_v38 = vpop.f32.mrf.mxu1 }
 0x32d   :  { %v5347_v7 = vpop.f32.mrf.mxu0 }
 0x32e   :  { %v5348_v37 = vadd.f32 %v5347_v7, %v9814_v54  ;;  %v5636_v19 = vpop.f32.mrf.mxu1  ;;  %v24_v54 = vld [vmem:[%s12952_s0 + $0x30] sm:$0xff] }
 0x32f   :  { %v5349_v25 = vpop.f32.mrf.mxu0 }
 0x330   :  { %v10540_v27 = vadd.f32 %v5636_v19, %v5348_v37  ;;  %v5638_v34 = vpop.f32.mrf.mxu1 }
 0x331   :  { %v5352_v49 = vpop.f32.mrf.mxu0  ;;  %5543 = vmatmul.mubr.bf16.gmra.mxu0 %v7851_v6  ;;  %v7867_v6 = vcombine.low %v518_v56, %v526_v10  ;;  %v48_v56 = vld [vmem:[%s12952_s0 + $0xf0] sm:$0xff] }
 0x332   :  { %v5353_v16 = vadd.f32 %v5352_v49, %v9823_v51  ;;  %v5641_v60 = vpop.f32.mrf.mxu1  ;;  %5832 = vmatmul.mubr.bf16.gmra.mxu1 %v7853_v32  ;;  %5550 = vmatprep.mubr.bf16.mxu0 %v7868_v30  ;;  %v25_v51 = vld [vmem:[%s12952_s0 + $0x38] sm:$0xff]  ;;  %v7869_v32 = vcombine.low %v519_v33, %v527_v58  ;;  %v7376_v30 = vcombine.high %v24_v54, %v32_v1 }
 0x333   :  { %v5354_v38 = vpop.f32.mrf.mxu0  ;;  %5839 = vmatprep.mubr.bf16.mxu1 %v7870_v47  ;;  %v7378_v47 = vcombine.high %v25_v51, %v33_v29  ;;  %v49_v58 = vld [vmem:[%s12952_s0 + $0xf8] sm:$0xff] }
 0x334   :  { %v10549_v63 = vadd.f32 %v5641_v60, %v5353_v16  ;;  %v5643_v59 = vpop.f32.mrf.mxu1 }
 0x335   :  { %v5355_v7 = vpop.f32.mrf.mxu0 }
 0x336   :  { %v5356_v37 = vadd.f32 %v5355_v7, %v9832_v13  ;;  %v5644_v19 = vpop.f32.mrf.mxu1  ;;  %v40_v13 = vld [vmem:[%s12952_s0 + $0xb0] sm:$0xff] }
 0x337   :  { %v5357_v25 = vpop.f32.mrf.mxu0 }
 0x338   :  { %v10558_v34 = vadd.f32 %v5644_v19, %v5356_v37  ;;  %v5646_v49 = vpop.f32.mrf.mxu1 }
 0x339   :  { %v5360_v16 = vpop.f32.mrf.mxu0  ;;  %5551 = vmatmul.mubr.bf16.gmra.mxu0 %v7867_v6  ;;  %v7375_v6 = vcombine.low %v24_v54, %v32_v1  ;;  %v64_v54 = vld [vmem:[%s12952_s0 + $0x170] sm:$0xff] }
 0x33a   :  { %v5361_v60 = vadd.f32 %v5360_v16, %v9835_v45  ;;  %v5649_v38 = vpop.f32.mrf.mxu1  ;;  %5840 = vmatmul.mubr.bf16.gmra.mxu1 %v7869_v32  ;;  %5880 = vmatprep.mubr.bf16.mxu0 %v7376_v30  ;;  %v41_v45 = vld [vmem:[%s12952_s0 + $0xb8] sm:$0xff]  ;;  %v7377_v32 = vcombine.low %v25_v51, %v33_v29  ;;  %v7392_v30 = vcombine.high %v40_v13, %v48_v56 }
 0x33b   :  { %v5362_v59 = vpop.f32.mrf.mxu0  ;;  %6169 = vmatprep.mubr.bf16.mxu1 %v7378_v47  ;;  %v7394_v47 = vcombine.high %v41_v45, %v49_v58  ;;  %v65_v29 = vld [vmem:[%s12952_s0 + $0x178] sm:$0xff] }
 0x33c   :  { %v10567_v10 = vadd.f32 %v5649_v38, %v5361_v60  ;;  %v5651_v33 = vpop.f32.mrf.mxu1 }
 0x33d   :  { %v5363_v7 = vpop.f32.mrf.mxu0 }
 0x33e   :  { %v5364_v37 = vadd.f32 %v5363_v7, %v9856_v48  ;;  %v5652_v19 = vpop.f32.mrf.mxu1  ;;  %v56_v48 = vld [vmem:[%s12952_s0 + $0x130] sm:$0xff] }
 0x33f   :  { %v5365_v25 = vpop.f32.mrf.mxu0 }
 0x340   :  { %v10576_v49 = vadd.f32 %v5652_v19, %v5364_v37  ;;  %v5654_v16 = vpop.f32.mrf.mxu1 }
 0x341   :  { %v5368_v60 = vpop.f32.mrf.mxu0  ;;  %5881 = vmatmul.mubr.bf16.vlgmr.msra.gmra.mxu0 %v7375_v6  ;;  %v7391_v6 = vcombine.low %v40_v13, %v48_v56  ;;  %v80_v13 = vld [vmem:[%s12952_s0 + $0x1f0] sm:$0xff] }
 0x342   :  { %v5369_v38 = vadd.f32 %v5368_v60, %v9871_v22  ;;  %v5657_v59 = vpop.f32.mrf.mxu1  ;;  %6170 = vmatmul.mubr.bf16.vlgmr.msra.gmra.mxu1 %v7377_v32  ;;  %5888 = vmatprep.mubr.bf16.mxu0 %v7392_v30  ;;  %v57_v22 = vld [vmem:[%s12952_s0 + $0x138] sm:$0xff]  ;;  %v7393_v32 = vcombine.low %v41_v45, %v49_v58  ;;  %v7408_v30 = vcombine.high %v56_v48, %v64_v54 }
 0x343   :  { %v5370_v33 = vpop.f32.mrf.mxu0  ;;  %6177 = vmatprep.mubr.bf16.mxu1 %v7394_v47  ;;  %v7410_v47 = vcombine.high %v57_v22, %v65_v29  ;;  %v81_v58 = vld [vmem:[%s12952_s0 + $0x1f8] sm:$0xff] }
 0x344   :  { %v10585_v1 = vadd.f32 %v5657_v59, %v5369_v38  ;;  %v5659_v51 = vpop.f32.mrf.mxu1 }
 0x345   :  { %v5371_v7 = vpop.f32.mrf.mxu0 }
 0x346   :  { %v5372_v37 = vadd.f32 %v5371_v7, %v9886_v12  ;;  %v5660_v19 = vpop.f32.mrf.mxu1  ;;  %v72_v12 = vld [vmem:[%s12952_s0 + $0x1b0] sm:$0xff] }
 0x347   :  { %v5373_v25 = vpop.f32.mrf.mxu0 }
 0x348   :  { %v10594_v16 = vadd.f32 %v5660_v19, %v5372_v37  ;;  %v5662_v60 = vpop.f32.mrf.mxu1 }
 0x349   :  { %v5376_v38 = vpop.f32.mrf.mxu0  ;;  %5889 = vmatmul.mubr.bf16.gmra.mxu0 %v7391_v6  ;;  %v7407_v6 = vcombine.low %v56_v48, %v64_v54  ;;  %v96_v48 = vld [vmem:[%s12952_s0 + $0x270] sm:$0xff] }
 0x34a   :  { %v5377_v59 = vadd.f32 %v5376_v38, %v9906_v26  ;;  %v5665_v33 = vpop.f32.mrf.mxu1  ;;  %6178 = vmatmul.mubr.bf16.gmra.mxu1 %v7393_v32  ;;  %5896 = vmatprep.mubr.bf16.mxu0 %v7408_v30  ;;  %v73_v26 = vld [vmem:[%s12952_s0 + $0x1b8] sm:$0xff]  ;;  %v7409_v32 = vcombine.low %v57_v22, %v65_v29  ;;  %v7424_v30 = vcombine.high %v72_v12, %v80_v13 }
 0x34b   :  { %v5378_v51 = vpop.f32.mrf.mxu0  ;;  %6185 = vmatprep.mubr.bf16.mxu1 %v7410_v47  ;;  %v7426_v47 = vcombine.high %v73_v26, %v81_v58  ;;  %v97_v29 = vld [vmem:[%s12952_s0 + $0x278] sm:$0xff] }
 0x34c   :  { %v10603_v56 = vadd.f32 %v5665_v33, %v5377_v59  ;;  %v5667_v45 = vpop.f32.mrf.mxu1 }
 0x34d   :  { %v5379_v7 = vpop.f32.mrf.mxu0 }
 0x34e   :  { %v5380_v37 = vadd.f32 %v5379_v7, %v9925_v0  ;;  %v5668_v19 = vpop.f32.mrf.mxu1  ;;  %v88_v0 = vld [vmem:[%s12952_s0 + $0x230] sm:$0xff] }
 0x34f   :  { %v5381_v25 = vpop.f32.mrf.mxu0 }
 0x350   :  { %v10612_v60 = vadd.f32 %v5668_v19, %v5380_v37  ;;  %v5670_v38 = vpop.f32.mrf.mxu1 }
 0x351   :  { %v5384_v59 = vpop.f32.mrf.mxu0  ;;  %5897 = vmatmul.mubr.bf16.gmra.mxu0 %v7407_v6  ;;  %v7423_v6 = vcombine.low %v72_v12, %v80_v13  ;;  %v112_v12 = vld [vmem:[%s12952_s0 + $0x2f0] sm:$0xff] }
 0x352   :  { %v5385_v33 = vadd.f32 %v5384_v59, %v9946_v2  ;;  %v5673_v51 = vpop.f32.mrf.mxu1  ;;  %6186 = vmatmul.mubr.bf16.gmra.mxu1 %v7409_v32  ;;  %5904 = vmatprep.mubr.bf16.mxu0 %v7424_v30  ;;  %v89_v2 = vld [vmem:[%s12952_s0 + $0x238] sm:$0xff]  ;;  %v7425_v32 = vcombine.low %v73_v26, %v81_v58  ;;  %v7440_v30 = vcombine.high %v88_v0, %v96_v48 }
 0x353   :  { %v5386_v45 = vpop.f32.mrf.mxu0  ;;  %6193 = vmatprep.mubr.bf16.mxu1 %v7426_v47  ;;  %v7442_v47 = vcombine.high %v89_v2, %v97_v29  ;;  %v113_v58 = vld [vmem:[%s12952_s0 + $0x2f8] sm:$0xff] }
 0x354   :  { %v10621_v54 = vadd.f32 %v5673_v51, %v5385_v33  ;;  %v5675_v22 = vpop.f32.mrf.mxu1 }
 0x355   :  { %v5387_v7 = vpop.f32.mrf.mxu0 }
 0x356   :  { %v5388_v37 = vadd.f32 %v5387_v7, %v9967_v3  ;;  %v5676_v19 = vpop.f32.mrf.mxu1  ;;  %v104_v3 = vld [vmem:[%s12952_s0 + $0x2b0] sm:$0xff] }
 0x357   :  { %v5389_v25 = vpop.f32.mrf.mxu0 }
 0x358   :  { %v10630_v38 = vadd.f32 %v5676_v19, %v5388_v37  ;;  %v5678_v59 = vpop.f32.mrf.mxu1 }
 0x359   :  { %v5392_v33 = vpop.f32.mrf.mxu0  ;;  %5905 = vmatmul.mubr.bf16.gmra.mxu0 %v7423_v6  ;;  %v7439_v6 = vcombine.low %v88_v0, %v96_v48  ;;  %v128_v0 = vld [vmem:[%s12952_s0 + $0x370] sm:$0xff] }
 0x35a   :  { %v5393_v51 = vadd.f32 %v5392_v33, %v9988_v57  ;;  %v5681_v45 = vpop.f32.mrf.mxu1  ;;  %6194 = vmatmul.mubr.bf16.gmra.mxu1 %v7425_v32  ;;  %5912 = vmatprep.mubr.bf16.mxu0 %v7440_v30  ;;  %v105_v57 = vld [vmem:[%s12952_s0 + $0x2b8] sm:$0xff]  ;;  %v7441_v32 = vcombine.low %v89_v2, %v97_v29  ;;  %v7456_v30 = vcombine.high %v104_v3, %v112_v12 }
 0x35b   :  { %v5394_v22 = vpop.f32.mrf.mxu0  ;;  %6201 = vmatprep.mubr.bf16.mxu1 %v7442_v47  ;;  %v7458_v47 = vcombine.high %v105_v57, %v113_v58  ;;  %v129_v29 = vld [vmem:[%s12952_s0 + $0x378] sm:$0xff] }
 0x35c   :  { %v10639_v13 = vadd.f32 %v5681_v45, %v5393_v51  ;;  %v5683_v26 = vpop.f32.mrf.mxu1 }
 0x35d   :  { %v5395_v7 = vpop.f32.mrf.mxu0 }
 0x35e   :  { %v5396_v37 = vadd.f32 %v5395_v7, %v10009_v43  ;;  %v5684_v19 = vpop.f32.mrf.mxu1  ;;  %v120_v43 = vld [vmem:[%s12952_s0 + $0x330] sm:$0xff] }
 0x35f   :  { %v5397_v25 = vpop.f32.mrf.mxu0 }
 0x360   :  { %v10648_v59 = vadd.f32 %v5684_v19, %v5396_v37  ;;  %v5686_v33 = vpop.f32.mrf.mxu1 }
 0x361   :  { %v5400_v51 = vpop.f32.mrf.mxu0  ;;  %5913 = vmatmul.mubr.bf16.gmra.mxu0 %v7439_v6  ;;  %v7455_v6 = vcombine.low %v104_v3, %v112_v12  ;;  %v144_v3 = vld [vmem:[%s12952_s0 + $0x3f0] sm:$0xff] }
 0x362   :  { %v5401_v45 = vadd.f32 %v5400_v51, %v10026_v11  ;;  %v5689_v22 = vpop.f32.mrf.mxu1  ;;  %6202 = vmatmul.mubr.bf16.gmra.mxu1 %v7441_v32  ;;  %5920 = vmatprep.mubr.bf16.mxu0 %v7456_v30  ;;  %v121_v11 = vld [vmem:[%s12952_s0 + $0x338] sm:$0xff]  ;;  %v7457_v32 = vcombine.low %v105_v57, %v113_v58  ;;  %v7472_v30 = vcombine.high %v120_v43, %v128_v0 }
 0x363   :  { %v5402_v26 = vpop.f32.mrf.mxu0  ;;  %6209 = vmatprep.mubr.bf16.mxu1 %v7458_v47  ;;  %v7474_v47 = vcombine.high %v121_v11, %v129_v29  ;;  %v145_v58 = vld [vmem:[%s12952_s0 + $0x3f8] sm:$0xff] }
 0x364   :  { %v10657_v48 = vadd.f32 %v5689_v22, %v5401_v45  ;;  %v5691_v2 = vpop.f32.mrf.mxu1 }
 0x365   :  { %v5403_v7 = vpop.f32.mrf.mxu0 }
 0x366   :  { %v5404_v37 = vadd.f32 %v5403_v7, %v10045_v21  ;;  %v5692_v19 = vpop.f32.mrf.mxu1  ;;  %v136_v21 = vld [vmem:[%s12952_s0 + $0x3b0] sm:$0xff] }
 0x367   :  { %v5405_v25 = vpop.f32.mrf.mxu0 }
 0x368   :  { %v10666_v33 = vadd.f32 %v5692_v19, %v5404_v37  ;;  %v5694_v51 = vpop.f32.mrf.mxu1 }
 0x369   :  { %v5408_v45 = vpop.f32.mrf.mxu0  ;;  %5921 = vmatmul.mubr.bf16.gmra.mxu0 %v7455_v6  ;;  %v7471_v6 = vcombine.low %v120_v43, %v128_v0  ;;  %v160_v43 = vld [vmem:[%s12952_s0 + $0x470] sm:$0xff] }
 0x36a   :  { %v5409_v22 = vadd.f32 %v5408_v45, %v10059_v31  ;;  %v5697_v26 = vpop.f32.mrf.mxu1  ;;  %6210 = vmatmul.mubr.bf16.gmra.mxu1 %v7457_v32  ;;  %5928 = vmatprep.mubr.bf16.mxu0 %v7472_v30  ;;  %v137_v31 = vld [vmem:[%s12952_s0 + $0x3b8] sm:$0xff]  ;;  %v7473_v32 = vcombine.low %v121_v11, %v129_v29  ;;  %v7488_v30 = vcombine.high %v136_v21, %v144_v3 }
 0x36b   :  { %v5410_v2 = vpop.f32.mrf.mxu0  ;;  %6217 = vmatprep.mubr.bf16.mxu1 %v7474_v47  ;;  %v7490_v47 = vcombine.high %v137_v31, %v145_v58  ;;  %v161_v29 = vld [vmem:[%s12952_s0 + $0x478] sm:$0xff] }
 0x36c   :  { %v10675_v12 = vadd.f32 %v5697_v26, %v5409_v22  ;;  %v5699_v57 = vpop.f32.mrf.mxu1 }
 0x36d   :  { %v5411_v7 = vpop.f32.mrf.mxu0 }
 0x36e   :  { %v5412_v37 = vadd.f32 %v5411_v7, %v10070_v53  ;;  %v5700_v19 = vpop.f32.mrf.mxu1  ;;  %v152_v53 = vld [vmem:[%s12952_s0 + $0x430] sm:$0xff] }
 0x36f   :  { %v5413_v25 = vpop.f32.mrf.mxu0 }
 0x370   :  { %v10684_v51 = vadd.f32 %v5700_v19, %v5412_v37  ;;  %v5702_v45 = vpop.f32.mrf.mxu1 }
 0x371   :  { %v5416_v22 = vpop.f32.mrf.mxu0  ;;  %5929 = vmatmul.mubr.bf16.gmra.mxu0 %v7471_v6  ;;  %v7487_v6 = vcombine.low %v136_v21, %v144_v3  ;;  %v176_v21 = vld [vmem:[%s12952_s0 + $0x4f0] sm:$0xff] }
 0x372   :  { %v5417_v26 = vadd.f32 %v5416_v22, %v10082_v41  ;;  %v5705_v2 = vpop.f32.mrf.mxu1  ;;  %6218 = vmatmul.mubr.bf16.gmra.mxu1 %v7473_v32  ;;  %5936 = vmatprep.mubr.bf16.mxu0 %v7488_v30  ;;  %v153_v41 = vld [vmem:[%s12952_s0 + $0x438] sm:$0xff]  ;;  %v7489_v32 = vcombine.low %v137_v31, %v145_v58  ;;  %v7504_v30 = vcombine.high %v152_v53, %v160_v43 }
 0x373   :  { %v5418_v57 = vpop.f32.mrf.mxu0  ;;  %6225 = vmatprep.mubr.bf16.mxu1 %v7490_v47  ;;  %v7506_v47 = vcombine.high %v153_v41, %v161_v29  ;;  %v177_v58 = vld [vmem:[%s12952_s0 + $0x4f8] sm:$0xff] }
 0x374   :  { %v10693_v0 = vadd.f32 %v5705_v2, %v5417_v26  ;;  %v5707_v11 = vpop.f32.mrf.mxu1 }
 0x375   :  { %v5419_v7 = vpop.f32.mrf.mxu0 }
 0x376   :  { %v5420_v37 = vadd.f32 %v5419_v7, %v10096_v14  ;;  %v5708_v19 = vpop.f32.mrf.mxu1  ;;  %v168_v14 = vld [vmem:[%s12952_s0 + $0x4b0] sm:$0xff] }
 0x377   :  { %v5421_v25 = vpop.f32.mrf.mxu0 }
 0x378   :  { %v10702_v45 = vadd.f32 %v5708_v19, %v5420_v37  ;;  %v5710_v22 = vpop.f32.mrf.mxu1 }
 0x379   :  { %v5424_v26 = vpop.f32.mrf.mxu0  ;;  %5937 = vmatmul.mubr.bf16.gmra.mxu0 %v7487_v6  ;;  %v7503_v6 = vcombine.low %v152_v53, %v160_v43  ;;  %v192_v53 = vld [vmem:[%s12952_s0 + $0x570] sm:$0xff] }
 0x37a   :  { %v5425_v2 = vadd.f32 %v5424_v26, %v10105_v61  ;;  %v5713_v57 = vpop.f32.mrf.mxu1  ;;  %6226 = vmatmul.mubr.bf16.gmra.mxu1 %v7489_v32  ;;  %5944 = vmatprep.mubr.bf16.mxu0 %v7504_v30  ;;  %v169_v61 = vld [vmem:[%s12952_s0 + $0x4b8] sm:$0xff]  ;;  %v7505_v32 = vcombine.low %v153_v41, %v161_v29  ;;  %v7520_v30 = vcombine.high %v168_v14, %v176_v21 }
 0x37b   :  { %v5426_v11 = vpop.f32.mrf.mxu0  ;;  %6233 = vmatprep.mubr.bf16.mxu1 %v7506_v47  ;;  %v7522_v47 = vcombine.high %v169_v61, %v177_v58  ;;  %v193_v29 = vld [vmem:[%s12952_s0 + $0x578] sm:$0xff] }
 0x37c   :  { %v10711_v3 = vadd.f32 %v5713_v57, %v5425_v2  ;;  %v5715_v31 = vpop.f32.mrf.mxu1 }
 0x37d   :  { %v5427_v7 = vpop.f32.mrf.mxu0 }
 0x37e   :  { %v5428_v37 = vadd.f32 %v5427_v7, %v10114_v52  ;;  %v5716_v19 = vpop.f32.mrf.mxu1  ;;  %v184_v52 = vld [vmem:[%s12952_s0 + $0x530] sm:$0xff] }
 0x37f   :  { %v5429_v25 = vpop.f32.mrf.mxu0 }
 0x380   :  { %v10720_v22 = vadd.f32 %v5716_v19, %v5428_v37  ;;  %v5718_v26 = vpop.f32.mrf.mxu1 }
 0x381   :  { %v5432_v2 = vpop.f32.mrf.mxu0  ;;  %5945 = vmatmul.mubr.bf16.gmra.mxu0 %v7503_v6  ;;  %v7519_v6 = vcombine.low %v168_v14, %v176_v21  ;;  %v208_v14 = vld [vmem:[%s12952_s0 + $0x5f0] sm:$0xff] }
 0x382   :  { %v5433_v57 = vadd.f32 %v5432_v2, %v10126_v9  ;;  %v5721_v11 = vpop.f32.mrf.mxu1  ;;  %6234 = vmatmul.mubr.bf16.gmra.mxu1 %v7505_v32  ;;  %5952 = vmatprep.mubr.bf16.mxu0 %v7520_v30  ;;  %v185_v9 = vld [vmem:[%s12952_s0 + $0x538] sm:$0xff]  ;;  %v7521_v32 = vcombine.low %v169_v61, %v177_v58  ;;  %v7536_v30 = vcombine.high %v184_v52, %v192_v53 }
 0x383   :  { %v5434_v31 = vpop.f32.mrf.mxu0  ;;  %6241 = vmatprep.mubr.bf16.mxu1 %v7522_v47  ;;  %v7538_v47 = vcombine.high %v185_v9, %v193_v29  ;;  %v209_v58 = vld [vmem:[%s12952_s0 + $0x5f8] sm:$0xff] }
 0x384   :  { %v10729_v43 = vadd.f32 %v5721_v11, %v5433_v57  ;;  %v5723_v41 = vpop.f32.mrf.mxu1 }
 0x385   :  { %v5435_v7 = vpop.f32.mrf.mxu0 }
 0x386   :  { %v5436_v37 = vadd.f32 %v5435_v7, %v10140_v55  ;;  %v5724_v19 = vpop.f32.mrf.mxu1  ;;  %v200_v55 = vld [vmem:[%s12952_s0 + $0x5b0] sm:$0xff] }
 0x387   :  { %v5437_v25 = vpop.f32.mrf.mxu0 }
 0x388   :  { %v10738_v26 = vadd.f32 %v5724_v19, %v5436_v37  ;;  %v5726_v2 = vpop.f32.mrf.mxu1 }
 0x389   :  { %v5440_v57 = vpop.f32.mrf.mxu0  ;;  %5953 = vmatmul.mubr.bf16.gmra.mxu0 %v7519_v6  ;;  %v7535_v6 = vcombine.low %v184_v52, %v192_v53  ;;  %v224_v52 = vld [vmem:[%s12952_s0 + $0x670] sm:$0xff] }
 0x38a   :  { %v5441_v11 = vadd.f32 %v5440_v57, %v10149_v5  ;;  %v5729_v31 = vpop.f32.mrf.mxu1  ;;  %6242 = vmatmul.mubr.bf16.gmra.mxu1 %v7521_v32  ;;  %5960 = vmatprep.mubr.bf16.mxu0 %v7536_v30  ;;  %v201_v5 = vld [vmem:[%s12952_s0 + $0x5b8] sm:$0xff]  ;;  %v7537_v32 = vcombine.low %v185_v9, %v193_v29  ;;  %v7552_v30 = vcombine.high %v200_v55, %v208_v14 }
 0x38b   :  { %v5442_v41 = vpop.f32.mrf.mxu0  ;;  %6249 = vmatprep.mubr.bf16.mxu1 %v7538_v47  ;;  %v7554_v47 = vcombine.high %v201_v5, %v209_v58  ;;  %v225_v29 = vld [vmem:[%s12952_s0 + $0x678] sm:$0xff] }
 0x38c   :  { %v10747_v21 = vadd.f32 %v5729_v31, %v5441_v11  ;;  %v5731_v61 = vpop.f32.mrf.mxu1 }
 0x38d   :  { %v5443_v7 = vpop.f32.mrf.mxu0 }
 0x38e   :  { %v5444_v37 = vadd.f32 %v5443_v7, %v10158_v17  ;;  %v5732_v19 = vpop.f32.mrf.mxu1  ;;  %v216_v17 = vld [vmem:[%s12952_s0 + $0x630] sm:$0xff] }
 0x38f   :  { %v5445_v25 = vpop.f32.mrf.mxu0 }
 0x390   :  { %v10756_v2 = vadd.f32 %v5732_v19, %v5444_v37  ;;  %v5734_v57 = vpop.f32.mrf.mxu1 }
 0x391   :  { %v5448_v11 = vpop.f32.mrf.mxu0  ;;  %5961 = vmatmul.mubr.bf16.gmra.mxu0 %v7535_v6  ;;  %v7551_v6 = vcombine.low %v200_v55, %v208_v14  ;;  %v240_v55 = vld [vmem:[%s12952_s0 + $0x6f0] sm:$0xff] }
 0x392   :  { %v5449_v31 = vadd.f32 %v5448_v11, %v10170_v46  ;;  %v5737_v41 = vpop.f32.mrf.mxu1  ;;  %6250 = vmatmul.mubr.bf16.gmra.mxu1 %v7537_v32  ;;  %5968 = vmatprep.mubr.bf16.mxu0 %v7552_v30  ;;  %v217_v46 = vld [vmem:[%s12952_s0 + $0x638] sm:$0xff]  ;;  %v7553_v32 = vcombine.low %v201_v5, %v209_v58  ;;  %v7568_v30 = vcombine.high %v216_v17, %v224_v52 }
 0x393   :  { %v5450_v61 = vpop.f32.mrf.mxu0  ;;  %6257 = vmatprep.mubr.bf16.mxu1 %v7554_v47  ;;  %v7570_v47 = vcombine.high %v217_v46, %v225_v29  ;;  %v241_v58 = vld [vmem:[%s12952_s0 + $0x6f8] sm:$0xff] }
 0x394   :  { %v10765_v53 = vadd.f32 %v5737_v41, %v5449_v31  ;;  %v5739_v9 = vpop.f32.mrf.mxu1 }
 0x395   :  { %v5451_v7 = vpop.f32.mrf.mxu0 }
 0x396   :  { %v5452_v37 = vadd.f32 %v5451_v7, %v10184_v36  ;;  %v5740_v19 = vpop.f32.mrf.mxu1  ;;  %v232_v36 = vld [vmem:[%s12952_s0 + $0x6b0] sm:$0xff] }
 0x397   :  { %v5453_v25 = vpop.f32.mrf.mxu0 }
 0x398   :  { %v10774_v57 = vadd.f32 %v5740_v19, %v5452_v37  ;;  %v5742_v11 = vpop.f32.mrf.mxu1 }
 0x399   :  { %v5456_v31 = vpop.f32.mrf.mxu0  ;;  %5969 = vmatmul.mubr.bf16.gmra.mxu0 %v7551_v6  ;;  %v7567_v6 = vcombine.low %v216_v17, %v224_v52  ;;  %v256_v17 = vld [vmem:[%s12952_s0 + $0x770] sm:$0xff] }
 0x39a   :  { %v5457_v41 = vadd.f32 %v5456_v31, %v10193_v24  ;;  %v5745_v61 = vpop.f32.mrf.mxu1  ;;  %6258 = vmatmul.mubr.bf16.gmra.mxu1 %v7553_v32  ;;  %5976 = vmatprep.mubr.bf16.mxu0 %v7568_v30  ;;  %v233_v24 = vld [vmem:[%s12952_s0 + $0x6b8] sm:$0xff]  ;;  %v7569_v32 = vcombine.low %v217_v46, %v225_v29  ;;  %v7584_v30 = vcombine.high %v232_v36, %v240_v55 }
 0x39b   :  { %v5458_v9 = vpop.f32.mrf.mxu0  ;;  %6265 = vmatprep.mubr.bf16.mxu1 %v7570_v47  ;;  %v7586_v47 = vcombine.high %v233_v24, %v241_v58  ;;  %v249_v29 = vld [vmem:[%s12952_s0 + $0x738] sm:$0xff] }
 0x39c   :  { %v10783_v14 = vadd.f32 %v5745_v61, %v5457_v41  ;;  %v5747_v5 = vpop.f32.mrf.mxu1  ;;  %v13102_v61 = vld [vmem:[#allocation25_spill] sm:$0xff] }
 0x39d   :  { %v5459_v7 = vpop.f32.mrf.mxu0 }
 0x39e   :  { %13100 = vst [vmem:[#allocation22_spill] sm:$0xff] %v10783_v14  ;;  %v5460_v37 = vadd.f32 %v5459_v7, %v10202_v28  ;;  %v5748_v19 = vpop.f32.mrf.mxu1  ;;  %v248_v28 = vld [vmem:[%s12952_s0 + $0x730] sm:$0xff] }
 0x39f   :  { %v5461_v25 = vpop.f32.mrf.mxu0 }
 0x3a0   :  { %v10792_v11 = vadd.f32 %v5748_v19, %v5460_v37  ;;  %v5750_v31 = vpop.f32.mrf.mxu1  ;;  %v13104_v37 = vld [vmem:[#allocation26_spill] sm:$0xff]  ;;  %v7600_v25 = vcombine.high %v248_v28, %v256_v17 }
 0x3a1   :  { %v5464_v41 = vpop.f32.mrf.mxu0  ;;  %5977 = vmatmul.mubr.bf16.gmra.mxu0 %v7567_v6  ;;  %v7583_v6 = vcombine.low %v232_v36, %v240_v55  ;;  %v264_v36 = vld [vmem:[%s12952_s0 + $0x7b0] sm:$0xff] }
 0x3a2   :  { %13101 = vst [vmem:[#allocation23_spill] sm:$0xff] %v10792_v11  ;;  %v5465_v9 = vadd.f32 %v5464_v41, %v13102_v61  ;;  %v5753_v5 = vpop.f32.mrf.mxu1  ;;  %6266 = vmatmul.mubr.bf16.gmra.mxu1 %v7569_v32  ;;  %5984 = vmatprep.mubr.bf16.mxu0 %v7584_v30  ;;  %v7585_v30 = vcombine.low %v233_v24, %v241_v58  ;;  %v272_v55 = vld [vmem:[%s12952_s0 + $0x7f0] sm:$0xff] }
 0x3a3   :  { %v5466_v14 = vpop.f32.mrf.mxu0  ;;  %6273 = vmatprep.mubr.bf16.mxu1 %v7586_v47 }
 0x3a4   :  { %v10801_v52 = vadd.f32 %v5753_v5, %v5465_v9  ;;  %v5755_v46 = vpop.f32.mrf.mxu1  ;;  %v257_v14 = vld [vmem:[%s12952_s0 + $0x778] sm:$0xff]  ;;  %v13106_v5 = vld [vmem:[#allocation2_spill] sm:$0xff] }
 0x3a5   :  { %v5467_v7 = vpop.f32.mrf.mxu0  ;;  %v7602_v31 = vcombine.high %v249_v29, %v257_v14 }
 0x3a6   :  { %13103 = vst [vmem:[#allocation24_spill] sm:$0xff] %v10801_v52  ;;  %v5468_v19 = vadd.f32 %v5467_v7, %v13104_v37  ;;  %v5756_v32 = vpop.f32.mrf.mxu1  ;;  %v265_v7 = vld [vmem:[%s12952_s0 + $0x7b8] sm:$0xff]  ;;  %v7599_v37 = vcombine.low %v248_v28, %v256_v17  ;;  %v280_v28 = vld [vmem:[%s12952_s0 + $0x830] sm:$0xff] }
 0x3a7   :  { %v5469_v47 = vpop.f32.mrf.mxu0  ;;  %v288_v17 = vld [vmem:[%s12952_s0 + $0x870] sm:$0xff] }
 0x3a8   :  { %v10810_v41 = vadd.f32 %v5756_v32, %v5468_v19  ;;  %v5758_v61 = vpop.f32.mrf.mxu1  ;;  %v13108_v19 = vld [vmem:[#allocation3_spill] sm:$0xff]  ;;  %v7616_v47 = vcombine.high %v264_v36, %v272_v55 }
 0x3a9   :  { %v5472_v9 = vpop.f32.mrf.mxu0  ;;  %5985 = vmatmul.mubr.bf16.gmra.mxu0 %v7583_v6 }
 0x3aa   :  { %13105 = vst [vmem:[#allocation25_spill] sm:$0xff] %v10810_v41  ;;  %v5473_v46 = vadd.f32 %v5472_v9, %v13106_v5  ;;  %v5761_v52 = vpop.f32.mrf.mxu1  ;;  %6274 = vmatmul.mubr.bf16.gmra.mxu1 %v7585_v30  ;;  %5992 = vmatprep.mubr.bf16.mxu0 %v7600_v25  ;;  %v7601_v25 = vcombine.low %v249_v29, %v257_v14 }
 0x3ab   :  { %v5474_v11 = vpop.f32.mrf.mxu0  ;;  %6281 = vmatprep.mubr.bf16.mxu1 %v7602_v31 }
 0x3ac   :  { %v10819_v24 = vadd.f32 %v5761_v52, %v5473_v46  ;;  %v5763_v58 = vpop.f32.mrf.mxu1  ;;  %v273_v11 = vld [vmem:[%s12952_s0 + $0x7f8] sm:$0xff]  ;;  %v13109_v46 = vld [vmem:[#allocation4_spill] sm:$0xff] }
 0x3ad   :  { %v5475_v6 = vpop.f32.mrf.mxu0  ;;  %v7618_v61 = vcombine.high %v265_v7, %v273_v11 }
 0x3ae   :  { %13107 = vst [vmem:[#allocation26_spill] sm:$0xff] %v10819_v24  ;;  %v5476_v32 = vadd.f32 %v5475_v6, %v13108_v19  ;;  %v5764_v30 = vpop.f32.mrf.mxu1  ;;  %v281_v6 = vld [vmem:[%s12952_s0 + $0x838] sm:$0xff]  ;;  %v7615_v19 = vcombine.low %v264_v36, %v272_v55  ;;  %v304_v36 = vld [vmem:[%s12952_s0 + $0x8f0] sm:$0xff] }
 0x3af   :  { %v5477_v31 = vpop.f32.mrf.mxu0 }
 0x3b0   :  { %v10828_v52 = vadd.f32 %v5764_v30, %v5476_v32  ;;  %v5766_v9 = vpop.f32.mrf.mxu1 }
 0x3b1   :  { %v5480_v5 = vpop.f32.mrf.mxu0  ;;  %5993 = vmatmul.mubr.bf16.gmra.mxu0 %v7599_v37 }
 0x3b2   :  { %v5481_v58 = vadd.f32 %v5480_v5, %v13109_v46  ;;  %v5769_v24 = vpop.f32.mrf.mxu1  ;;  %6282 = vmatmul.mubr.bf16.gmra.mxu1 %v7601_v25  ;;  %6000 = vmatprep.mubr.bf16.mxu0 %v7616_v47  ;;  %v7617_v25 = vcombine.low %v265_v7, %v273_v11  ;;  %v7632_v47 = vcombine.high %v280_v28, %v288_v17  ;;  %v13112_v46 = vld [vmem:[#allocation5_spill] sm:$0xff] }
 0x3b3   :  { %v5482_v41 = vpop.f32.mrf.mxu0  ;;  %6289 = vmatprep.mubr.bf16.mxu1 %v7618_v61  ;;  %v297_v11 = vld [vmem:[%s12952_s0 + $0x8b8] sm:$0xff] }
 0x3b4   :  { %v10837_v29 = vadd.f32 %v5769_v24, %v5481_v58  ;;  %v5771_v14 = vpop.f32.mrf.mxu1  ;;  %v289_v41 = vld [vmem:[%s12952_s0 + $0x878] sm:$0xff] }
 0x3b5   :  { %v5483_v37 = vpop.f32.mrf.mxu0  ;;  %v7634_v61 = vcombine.high %v281_v6, %v289_v41 }
 0x3b6   :  { %13110 = vst [vmem:[#allocation2_spill] sm:$0xff] %v10837_v29  ;;  %v5484_v32 = vadd.f32 %v5483_v37, %v10270_v35  ;;  %v5772_v30 = vpop.f32.mrf.mxu1  ;;  %v296_v35 = vld [vmem:[%s12952_s0 + $0x8b0] sm:$0xff] }
 0x3b7   :  { %v5485_v31 = vpop.f32.mrf.mxu0 }
 0x3b8   :  { %v10846_v24 = vadd.f32 %v5772_v30, %v5484_v32  ;;  %v5774_v9 = vpop.f32.mrf.mxu1  ;;  %v13114_v32 = vld [vmem:[#allocation6_spill] sm:$0xff]  ;;  %v7648_v31 = vcombine.high %v296_v35, %v304_v36 }
 0x3b9   :  { %v5488_v5 = vpop.f32.mrf.mxu0  ;;  %6001 = vmatmul.mubr.bf16.gmra.mxu0 %v7615_v19  ;;  %v7631_v19 = vcombine.low %v280_v28, %v288_v17  ;;  %v312_v28 = vld [vmem:[%s12952_s0 + $0x930] sm:$0xff] }
 0x3ba   :  { %13111 = vst [vmem:[#allocation3_spill] sm:$0xff] %v10846_v24  ;;  %v5489_v58 = vadd.f32 %v5488_v5, %v13112_v46  ;;  %v5777_v14 = vpop.f32.mrf.mxu1  ;;  %6290 = vmatmul.mubr.bf16.gmra.mxu1 %v7617_v25  ;;  %6008 = vmatprep.mubr.bf16.mxu0 %v7632_v47  ;;  %v7633_v47 = vcombine.low %v281_v6, %v289_v41  ;;  %v320_v17 = vld [vmem:[%s12952_s0 + $0x970] sm:$0xff] }
 0x3bb   :  { %v5490_v29 = vpop.f32.mrf.mxu0  ;;  %6297 = vmatprep.mubr.bf16.mxu1 %v7634_v61 }
 0x3bc   :  { %v10855_v55 = vadd.f32 %v5777_v14, %v5489_v58  ;;  %v5779_v7 = vpop.f32.mrf.mxu1  ;;  %v305_v29 = vld [vmem:[%s12952_s0 + $0x8f8] sm:$0xff]  ;;  %v13116_v14 = vld [vmem:[#allocation7_spill] sm:$0xff] }
 0x3bd   :  { %v5491_v37 = vpop.f32.mrf.mxu0  ;;  %v7650_v9 = vcombine.high %v297_v11, %v305_v29 }
 0x3be   :  { %13113 = vst [vmem:[#allocation4_spill] sm:$0xff] %v10855_v55  ;;  %v5492_v30 = vadd.f32 %v5491_v37, %v13114_v32  ;;  %v5780_v25 = vpop.f32.mrf.mxu1  ;;  %v313_v37 = vld [vmem:[%s12952_s0 + $0x938] sm:$0xff]  ;;  %v7647_v32 = vcombine.low %v296_v35, %v304_v36  ;;  %v328_v35 = vld [vmem:[%s12952_s0 + $0x9b0] sm:$0xff] }
 0x3bf   :  { %v5493_v61 = vpop.f32.mrf.mxu0  ;;  %v336_v36 = vld [vmem:[%s12952_s0 + $0x9f0] sm:$0xff] }
 0x3c0   :  { %v10864_v5 = vadd.f32 %v5780_v25, %v5492_v30  ;;  %v5782_v46 = vpop.f32.mrf.mxu1  ;;  %v13118_v30 = vld [vmem:[#allocation8_spill] sm:$0xff]  ;;  %v7664_v61 = vcombine.high %v312_v28, %v320_v17 }
 0x3c1   :  { %v5496_v58 = vpop.f32.mrf.mxu0  ;;  %6009 = vmatmul.mubr.bf16.gmra.mxu0 %v7631_v19 }
 0x3c2   :  { %13115 = vst [vmem:[#allocation5_spill] sm:$0xff] %v10864_v5  ;;  %v5497_v7 = vadd.f32 %v5496_v58, %v13116_v14  ;;  %v5785_v55 = vpop.f32.mrf.mxu1  ;;  %6298 = vmatmul.mubr.bf16.gmra.mxu1 %v7633_v47  ;;  %6016 = vmatprep.mubr.bf16.mxu0 %v7648_v31  ;;  %v7649_v31 = vcombine.low %v297_v11, %v305_v29 }
 0x3c3   :  { %v5498_v24 = vpop.f32.mrf.mxu0  ;;  %6305 = vmatprep.mubr.bf16.mxu1 %v7650_v9 }
 0x3c4   :  { %v10873_v6 = vadd.f32 %v5785_v55, %v5497_v7  ;;  %v5787_v41 = vpop.f32.mrf.mxu1  ;;  %v321_v24 = vld [vmem:[%s12952_s0 + $0x978] sm:$0xff] }
 0x3c5   :  { %v5499_v19 = vpop.f32.mrf.mxu0  ;;  %v7666_v46 = vcombine.high %v313_v37, %v321_v24  ;;  %v13120_v7 = vld [vmem:[#allocation9_spill] sm:$0xff] }
 0x3c6   :  { %13117 = vst [vmem:[#allocation6_spill] sm:$0xff] %v10873_v6  ;;  %v5500_v25 = vadd.f32 %v5499_v19, %v13118_v30  ;;  %v5788_v47 = vpop.f32.mrf.mxu1  ;;  %v329_v19 = vld [vmem:[%s12952_s0 + $0x9b8] sm:$0xff]  ;;  %v7663_v30 = vcombine.low %v312_v28, %v320_v17  ;;  %v344_v28 = vld [vmem:[%s12952_s0 + $0xa30] sm:$0xff] }
 0x3c7   :  { %v5501_v9 = vpop.f32.mrf.mxu0  ;;  %v352_v17 = vld [vmem:[%s12952_s0 + $0xa70] sm:$0xff] }
 0x3c8   :  { %v10882_v55 = vadd.f32 %v5788_v47, %v5500_v25  ;;  %v5790_v58 = vpop.f32.mrf.mxu1  ;;  %v13122_v25 = vld [vmem:[#allocation10_spill] sm:$0xff]  ;;  %v7680_v9 = vcombine.high %v328_v35, %v336_v36 }
 0x3c9   :  { %v5504_v14 = vpop.f32.mrf.mxu0  ;;  %6017 = vmatmul.mubr.bf16.gmra.mxu0 %v7647_v32 }
 0x3ca   :  { %13119 = vst [vmem:[#allocation7_spill] sm:$0xff] %v10882_v55  ;;  %v5505_v41 = vadd.f32 %v5504_v14, %v13120_v7  ;;  %v5793_v6 = vpop.f32.mrf.mxu1  ;;  %6306 = vmatmul.mubr.bf16.gmra.mxu1 %v7649_v31  ;;  %6024 = vmatprep.mubr.bf16.mxu0 %v7664_v61  ;;  %v7665_v61 = vcombine.low %v313_v37, %v321_v24 }
 0x3cb   :  { %v5506_v5 = vpop.f32.mrf.mxu0  ;;  %6313 = vmatprep.mubr.bf16.mxu1 %v7666_v46 }
 0x3cc   :  { %v10891_v11 = vadd.f32 %v5793_v6, %v5505_v41  ;;  %v5795_v29 = vpop.f32.mrf.mxu1  ;;  %v337_v5 = vld [vmem:[%s12952_s0 + $0x9f8] sm:$0xff]  ;;  %v13124_v41 = vld [vmem:[#allocation11_spill] sm:$0xff] }
 0x3cd   :  { %v5507_v32 = vpop.f32.mrf.mxu0  ;;  %v7682_v58 = vcombine.high %v329_v19, %v337_v5 }
 0x3ce   :  { %13121 = vst [vmem:[#allocation8_spill] sm:$0xff] %v10891_v11  ;;  %v5508_v47 = vadd.f32 %v5507_v32, %v13122_v25  ;;  %v5796_v31 = vpop.f32.mrf.mxu1  ;;  %v345_v32 = vld [vmem:[%s12952_s0 + $0xa38] sm:$0xff]  ;;  %v7679_v25 = vcombine.low %v328_v35, %v336_v36  ;;  %v360_v35 = vld [vmem:[%s12952_s0 + $0xab0] sm:$0xff] }
 0x3cf   :  { %v5509_v46 = vpop.f32.mrf.mxu0  ;;  %v368_v36 = vld [vmem:[%s12952_s0 + $0xaf0] sm:$0xff] }
 0x3d0   :  { %v10900_v6 = vadd.f32 %v5796_v31, %v5508_v47  ;;  %v5798_v14 = vpop.f32.mrf.mxu1  ;;  %v13126_v47 = vld [vmem:[#allocation12_spill] sm:$0xff]  ;;  %v7696_v46 = vcombine.high %v344_v28, %v352_v17 }
 0x3d1   :  { %v5512_v7 = vpop.f32.mrf.mxu0  ;;  %6025 = vmatmul.mubr.bf16.gmra.mxu0 %v7663_v30 }
 0x3d2   :  { %13123 = vst [vmem:[#allocation9_spill] sm:$0xff] %v10900_v6  ;;  %v5513_v29 = vadd.f32 %v5512_v7, %v13124_v41  ;;  %v5801_v11 = vpop.f32.mrf.mxu1  ;;  %6314 = vmatmul.mubr.bf16.gmra.mxu1 %v7665_v61  ;;  %6032 = vmatprep.mubr.bf16.mxu0 %v7680_v9  ;;  %v7681_v9 = vcombine.low %v329_v19, %v337_v5 }
 0x3d3   :  { %v5514_v55 = vpop.f32.mrf.mxu0  ;;  %6321 = vmatprep.mubr.bf16.mxu1 %v7682_v58 }
 0x3d4   :  { %v10909_v37 = vadd.f32 %v5801_v11, %v5513_v29  ;;  %v5803_v24 = vpop.f32.mrf.mxu1  ;;  %v353_v55 = vld [vmem:[%s12952_s0 + $0xa78] sm:$0xff] }
 0x3d5   :  { %v5515_v30 = vpop.f32.mrf.mxu0  ;;  %v7698_v14 = vcombine.high %v345_v32, %v353_v55  ;;  %v13128_v29 = vld [vmem:[#allocation13_spill] sm:$0xff] }
 0x3d6   :  { %13125 = vst [vmem:[#allocation10_spill] sm:$0xff] %v10909_v37  ;;  %v5516_v31 = vadd.f32 %v5515_v30, %v13126_v47  ;;  %v5804_v61 = vpop.f32.mrf.mxu1  ;;  %v361_v30 = vld [vmem:[%s12952_s0 + $0xab8] sm:$0xff]  ;;  %v7695_v47 = vcombine.low %v344_v28, %v352_v17  ;;  %v376_v28 = vld [vmem:[%s12952_s0 + $0xb30] sm:$0xff] }
 0x3d7   :  { %v5517_v58 = vpop.f32.mrf.mxu0  ;;  %v384_v17 = vld [vmem:[%s12952_s0 + $0xb70] sm:$0xff] }
 0x3d8   :  { %v10918_v11 = vadd.f32 %v5804_v61, %v5516_v31  ;;  %v5806_v7 = vpop.f32.mrf.mxu1  ;;  %v13130_v31 = vld [vmem:[#allocation14_spill] sm:$0xff]  ;;  %v7712_v58 = vcombine.high %v360_v35, %v368_v36 }
 0x3d9   :  { %v5520_v41 = vpop.f32.mrf.mxu0  ;;  %6033 = vmatmul.mubr.bf16.gmra.mxu0 %v7679_v25 }
 0x3da   :  { %13127 = vst [vmem:[#allocation11_spill] sm:$0xff] %v10918_v11  ;;  %v5521_v24 = vadd.f32 %v5520_v41, %v13128_v29  ;;  %v5809_v37 = vpop.f32.mrf.mxu1  ;;  %6322 = vmatmul.mubr.bf16.gmra.mxu1 %v7681_v9  ;;  %6040 = vmatprep.mubr.bf16.mxu0 %v7696_v46  ;;  %v7697_v46 = vcombine.low %v345_v32, %v353_v55 }
 0x3db   :  { %v5522_v6 = vpop.f32.mrf.mxu0  ;;  %6329 = vmatprep.mubr.bf16.mxu1 %v7698_v14 }
 0x3dc   :  { %v10927_v19 = vadd.f32 %v5809_v37, %v5521_v24  ;;  %v5811_v5 = vpop.f32.mrf.mxu1  ;;  %v369_v6 = vld [vmem:[%s12952_s0 + $0xaf8] sm:$0xff]  ;;  %v13132_v24 = vld [vmem:[#allocation15_spill] sm:$0xff] }
 0x3dd   :  { %v5523_v25 = vpop.f32.mrf.mxu0  ;;  %v7714_v7 = vcombine.high %v361_v30, %v369_v6 }
 0x3de   :  { %13129 = vst [vmem:[#allocation12_spill] sm:$0xff] %v10927_v19  ;;  %v5524_v61 = vadd.f32 %v5523_v25, %v13130_v31  ;;  %v5812_v9 = vpop.f32.mrf.mxu1  ;;  %v377_v25 = vld [vmem:[%s12952_s0 + $0xb38] sm:$0xff]  ;;  %v7711_v31 = vcombine.low %v360_v35, %v368_v36  ;;  %v392_v35 = vld [vmem:[%s12952_s0 + $0xbb0] sm:$0xff] }
 0x3df   :  { %v5525_v14 = vpop.f32.mrf.mxu0  ;;  %v400_v36 = vld [vmem:[%s12952_s0 + $0xbf0] sm:$0xff] }
 0x3e0   :  { %v10936_v37 = vadd.f32 %v5812_v9, %v5524_v61  ;;  %v5814_v41 = vpop.f32.mrf.mxu1  ;;  %v13134_v61 = vld [vmem:[#allocation16_spill] sm:$0xff]  ;;  %v7728_v14 = vcombine.high %v376_v28, %v384_v17 }
 0x3e1   :  { %v5528_v29 = vpop.f32.mrf.mxu0  ;;  %6041 = vmatmul.mubr.bf16.gmra.mxu0 %v7695_v47 }
 0x3e2   :  { %13131 = vst [vmem:[#allocation13_spill] sm:$0xff] %v10936_v37  ;;  %v5529_v5 = vadd.f32 %v5528_v29, %v13132_v24  ;;  %v5817_v19 = vpop.f32.mrf.mxu1  ;;  %6330 = vmatmul.mubr.bf16.gmra.mxu1 %v7697_v46  ;;  %6048 = vmatprep.mubr.bf16.mxu0 %v7712_v58  ;;  %v7713_v58 = vcombine.low %v361_v30, %v369_v6 }
 0x3e3   :  { %v5530_v11 = vpop.f32.mrf.mxu0  ;;  %6337 = vmatprep.mubr.bf16.mxu1 %v7714_v7 }
 0x3e4   :  { %v10945_v32 = vadd.f32 %v5817_v19, %v5529_v5  ;;  %v5819_v55 = vpop.f32.mrf.mxu1  ;;  %v385_v11 = vld [vmem:[%s12952_s0 + $0xb78] sm:$0xff] }
 0x3e5   :  { %v5531_v47 = vpop.f32.mrf.mxu0  ;;  %v7730_v41 = vcombine.high %v377_v25, %v385_v11  ;;  %v13136_v5 = vld [vmem:[#allocation17_spill] sm:$0xff] }
 0x3e6   :  { %13133 = vst [vmem:[#allocation14_spill] sm:$0xff] %v10945_v32  ;;  %v5532_v9 = vadd.f32 %v5531_v47, %v13134_v61  ;;  %v5820_v46 = vpop.f32.mrf.mxu1  ;;  %v393_v47 = vld [vmem:[%s12952_s0 + $0xbb8] sm:$0xff]  ;;  %v7727_v61 = vcombine.low %v376_v28, %v384_v17  ;;  %v408_v28 = vld [vmem:[%s12952_s0 + $0xc30] sm:$0xff] }
 0x3e7   :  { %v5533_v7 = vpop.f32.mrf.mxu0  ;;  %v416_v17 = vld [vmem:[%s12952_s0 + $0xc70] sm:$0xff] }
 0x3e8   :  { %v10954_v19 = vadd.f32 %v5820_v46, %v5532_v9  ;;  %v5822_v29 = vpop.f32.mrf.mxu1  ;;  %v13138_v9 = vld [vmem:[#allocation18_spill] sm:$0xff]  ;;  %v7744_v7 = vcombine.high %v392_v35, %v400_v36 }
 0x3e9   :  { %v5536_v24 = vpop.f32.mrf.mxu0  ;;  %6049 = vmatmul.mubr.bf16.gmra.mxu0 %v7711_v31 }
 0x3ea   :  { %13135 = vst [vmem:[#allocation15_spill] sm:$0xff] %v10954_v19  ;;  %v5537_v55 = vadd.f32 %v5536_v24, %v13136_v5  ;;  %v5825_v32 = vpop.f32.mrf.mxu1  ;;  %6338 = vmatmul.mubr.bf16.gmra.mxu1 %v7713_v58  ;;  %6056 = vmatprep.mubr.bf16.mxu0 %v7728_v14  ;;  %v7729_v14 = vcombine.low %v377_v25, %v385_v11 }
 0x3eb   :  { %v5538_v37 = vpop.f32.mrf.mxu0  ;;  %6345 = vmatprep.mubr.bf16.mxu1 %v7730_v41 }
 0x3ec   :  { %v10963_v30 = vadd.f32 %v5825_v32, %v5537_v55  ;;  %v5827_v6 = vpop.f32.mrf.mxu1  ;;  %v401_v37 = vld [vmem:[%s12952_s0 + $0xbf8] sm:$0xff]  ;;  %v13140_v55 = vld [vmem:[#allocation19_spill] sm:$0xff] }
 0x3ed   :  { %v5539_v31 = vpop.f32.mrf.mxu0  ;;  %v7746_v29 = vcombine.high %v393_v47, %v401_v37 }
 0x3ee   :  { %13137 = vst [vmem:[#allocation16_spill] sm:$0xff] %v10963_v30  ;;  %v5540_v46 = vadd.f32 %v5539_v31, %v13138_v9  ;;  %v5828_v58 = vpop.f32.mrf.mxu1  ;;  %v409_v31 = vld [vmem:[%s12952_s0 + $0xc38] sm:$0xff]  ;;  %v7743_v9 = vcombine.low %v392_v35, %v400_v36  ;;  %v424_v35 = vld [vmem:[%s12952_s0 + $0xcb0] sm:$0xff] }
 0x3ef   :  { %v5541_v41 = vpop.f32.mrf.mxu0  ;;  %v432_v36 = vld [vmem:[%s12952_s0 + $0xcf0] sm:$0xff] }
 0x3f0   :  { %v10972_v32 = vadd.f32 %v5828_v58, %v5540_v46  ;;  %v5830_v24 = vpop.f32.mrf.mxu1  ;;  %v13142_v46 = vld [vmem:[#allocation20_spill] sm:$0xff]  ;;  %v7760_v41 = vcombine.high %v408_v28, %v416_v17 }
 0x3f1   :  { %v5544_v5 = vpop.f32.mrf.mxu0  ;;  %6057 = vmatmul.mubr.bf16.gmra.mxu0 %v7727_v61 }
 0x3f2   :  { %13139 = vst [vmem:[#allocation17_spill] sm:$0xff] %v10972_v32  ;;  %v5545_v6 = vadd.f32 %v5544_v5, %v13140_v55  ;;  %v5833_v30 = vpop.f32.mrf.mxu1  ;;  %6346 = vmatmul.mubr.bf16.gmra.mxu1 %v7729_v14  ;;  %6064 = vmatprep.mubr.bf16.mxu0 %v7744_v7  ;;  %v7745_v7 = vcombine.low %v393_v47, %v401_v37 }
 0x3f3   :  { %v5546_v19 = vpop.f32.mrf.mxu0  ;;  %6353 = vmatprep.mubr.bf16.mxu1 %v7746_v29 }
 0x3f4   :  { %v10981_v25 = vadd.f32 %v5833_v30, %v5545_v6  ;;  %v5835_v11 = vpop.f32.mrf.mxu1  ;;  %v417_v19 = vld [vmem:[%s12952_s0 + $0xc78] sm:$0xff] }
 0x3f5   :  { %v5547_v61 = vpop.f32.mrf.mxu0  ;;  %v7762_v24 = vcombine.high %v409_v31, %v417_v19  ;;  %v13143_v6 = vld [vmem:[#allocation21_spill] sm:$0xff] }
 0x3f6   :  { %13141 = vst [vmem:[#allocation18_spill] sm:$0xff] %v10981_v25  ;;  %v5548_v58 = vadd.f32 %v5547_v61, %v13142_v46  ;;  %v5836_v14 = vpop.f32.mrf.mxu1  ;;  %v425_v61 = vld [vmem:[%s12952_s0 + $0xcb8] sm:$0xff]  ;;  %v7759_v46 = vcombine.low %v408_v28, %v416_v17  ;;  %v448_v28 = vld [vmem:[%s12952_s0 + $0xd70] sm:$0xff] }
 0x3f7   :  { %v5549_v29 = vpop.f32.mrf.mxu0 }
 0x3f8   :  { %v10990_v30 = vadd.f32 %v5836_v14, %v5548_v58  ;;  %v5838_v5 = vpop.f32.mrf.mxu1 }
 0x3f9   :  { %v5552_v55 = vpop.f32.mrf.mxu0  ;;  %6065 = vmatmul.mubr.bf16.gmra.mxu0 %v7743_v9 }
 0x3fa   :  { %v5553_v11 = vadd.f32 %v5552_v55, %v13143_v6  ;;  %v5841_v25 = vpop.f32.mrf.mxu1  ;;  %6354 = vmatmul.mubr.bf16.gmra.mxu1 %v7745_v7  ;;  %6072 = vmatprep.mubr.bf16.mxu0 %v7760_v41  ;;  %v7761_v7 = vcombine.low %v409_v31, %v417_v19  ;;  %v7776_v41 = vcombine.high %v424_v35, %v432_v36  ;;  %v449_v19 = vld [vmem:[%s12952_s0 + $0xd78] sm:$0xff] }
 0x3fb   :  { %v5554_v32 = vpop.f32.mrf.mxu0  ;;  %6361 = vmatprep.mubr.bf16.mxu1 %v7762_v24 }
 0x3fc   :  { %v10999_v47 = vadd.f32 %v5841_v25, %v5553_v11  ;;  %v5843_v37 = vpop.f32.mrf.mxu1  ;;  %v433_v32 = vld [vmem:[%s12952_s0 + $0xcf8] sm:$0xff] }
 0x3fd   :  { %v5555_v9 = vpop.f32.mrf.mxu0  ;;  %v7778_v24 = vcombine.high %v425_v61, %v433_v32 }
 0x3fe   :  { %v5556_v58 = vadd.f32 %v5555_v9, %v10432_v62  ;;  %v5844_v14 = vpop.f32.mrf.mxu1  ;;  %v440_v62 = vld [vmem:[%s12952_s0 + $0xd30] sm:$0xff] }
 0x3ff   :  { %v5557_v29 = vpop.f32.mrf.mxu0 }
 0x400   :  { %v11008_v25 = vadd.f32 %v5844_v14, %v5556_v58  ;;  %v5846_v5 = vpop.f32.mrf.mxu1 }
 0x401   :  { %v5882_v55 = vpop.f32.mrf.mxu0  ;;  %6073 = vmatmul.mubr.bf16.gmra.mxu0 %v7759_v46  ;;  %v7775_v46 = vcombine.low %v424_v35, %v432_v36  ;;  %v464_v35 = vld [vmem:[%s12952_s0 + $0xdf0] sm:$0xff] }
 0x402   :  { %v5883_v6 = vadd.f32 %v5882_v55, %v10441_v20  ;;  %v6171_v11 = vpop.f32.mrf.mxu1  ;;  %6362 = vmatmul.mubr.bf16.gmra.mxu1 %v7761_v7  ;;  %6080 = vmatprep.mubr.bf16.mxu0 %v7776_v41  ;;  %v441_v20 = vld [vmem:[%s12952_s0 + $0xd38] sm:$0xff]  ;;  %v7777_v7 = vcombine.low %v425_v61, %v433_v32  ;;  %v7792_v41 = vcombine.high %v440_v62, %v448_v28 }
 0x403   :  { %v5884_v37 = vpop.f32.mrf.mxu0  ;;  %6369 = vmatprep.mubr.bf16.mxu1 %v7778_v24  ;;  %v7794_v24 = vcombine.high %v441_v20, %v449_v19  ;;  %v465_v32 = vld [vmem:[%s12952_s0 + $0xdf8] sm:$0xff] }
 0x404   :  { %v11017_v17 = vadd.f32 %v6171_v11, %v5883_v6  ;;  %v6173_v31 = vpop.f32.mrf.mxu1 }
 0x405   :  { %v5885_v9 = vpop.f32.mrf.mxu0 }
 0x406   :  { %v5886_v58 = vadd.f32 %v5885_v9, %v10450_v40  ;;  %v6174_v14 = vpop.f32.mrf.mxu1  ;;  %v456_v40 = vld [vmem:[%s12952_s0 + $0xdb0] sm:$0xff] }
 0x407   :  { %v5887_v29 = vpop.f32.mrf.mxu0 }
 0x408   :  { %v11026_v5 = vadd.f32 %v6174_v14, %v5886_v58  ;;  %v6176_v55 = vpop.f32.mrf.mxu1 }
 0x409   :  { %v5890_v6 = vpop.f32.mrf.mxu0  ;;  %6081 = vmatmul.mubr.bf16.gmra.mxu0 %v7775_v46  ;;  %v7791_v46 = vcombine.low %v440_v62, %v448_v28  ;;  %v480_v62 = vld [vmem:[%s12952_s0 + $0xe70] sm:$0xff] }
 0x40a   :  { %v5891_v11 = vadd.f32 %v5890_v6, %v10459_v39  ;;  %v6179_v37 = vpop.f32.mrf.mxu1  ;;  %6370 = vmatmul.mubr.bf16.gmra.mxu1 %v7777_v7  ;;  %6088 = vmatprep.mubr.bf16.mxu0 %v7792_v41  ;;  %v457_v39 = vld [vmem:[%s12952_s0 + $0xdb8] sm:$0xff]  ;;  %v7793_v7 = vcombine.low %v441_v20, %v449_v19  ;;  %v7808_v41 = vcombine.high %v456_v40, %v464_v35 }
 0x40b   :  { %v5892_v31 = vpop.f32.mrf.mxu0  ;;  %6377 = vmatprep.mubr.bf16.mxu1 %v7794_v24  ;;  %v7810_v24 = vcombine.high %v457_v39, %v465_v32  ;;  %v481_v19 = vld [vmem:[%s12952_s0 + $0xe78] sm:$0xff] }
 0x40c   :  { %v11035_v36 = vadd.f32 %v6179_v37, %v5891_v11  ;;  %v6181_v61 = vpop.f32.mrf.mxu1 }
 0x40d   :  { %v5893_v9 = vpop.f32.mrf.mxu0 }
 0x40e   :  { %v5894_v58 = vadd.f32 %v5893_v9, %v10468_v42  ;;  %v6182_v14 = vpop.f32.mrf.mxu1  ;;  %v472_v42 = vld [vmem:[%s12952_s0 + $0xe30] sm:$0xff] }
 0x40f   :  { %v5895_v29 = vpop.f32.mrf.mxu0 }
 0x410   :  { %v11044_v55 = vadd.f32 %v6182_v14, %v5894_v58  ;;  %v6184_v6 = vpop.f32.mrf.mxu1 }
 0x411   :  { %v5898_v11 = vpop.f32.mrf.mxu0  ;;  %6089 = vmatmul.mubr.bf16.gmra.mxu0 %v7791_v46  ;;  %v7807_v46 = vcombine.low %v456_v40, %v464_v35  ;;  %v496_v40 = vld [vmem:[%s12952_s0 + $0xef0] sm:$0xff] }
 0x412   :  { %v5899_v37 = vadd.f32 %v5898_v11, %v10477_v4  ;;  %v6187_v31 = vpop.f32.mrf.mxu1  ;;  %6378 = vmatmul.mubr.bf16.gmra.mxu1 %v7793_v7  ;;  %6096 = vmatprep.mubr.bf16.mxu0 %v7808_v41  ;;  %v473_v4 = vld [vmem:[%s12952_s0 + $0xe38] sm:$0xff]  ;;  %v7809_v7 = vcombine.low %v457_v39, %v465_v32  ;;  %v7824_v41 = vcombine.high %v472_v42, %v480_v62 }
 0x413   :  { %v5900_v61 = vpop.f32.mrf.mxu0  ;;  %6385 = vmatprep.mubr.bf16.mxu1 %v7810_v24  ;;  %v7826_v24 = vcombine.high %v473_v4, %v481_v19  ;;  %v497_v32 = vld [vmem:[%s12952_s0 + $0xef8] sm:$0xff] }
 0x414   :  { %v11053_v28 = vadd.f32 %v6187_v31, %v5899_v37  ;;  %v6189_v20 = vpop.f32.mrf.mxu1 }
 0x415   :  { %v5901_v9 = vpop.f32.mrf.mxu0 }
 0x416   :  { %v5902_v58 = vadd.f32 %v5901_v9, %v10486_v50  ;;  %v6190_v14 = vpop.f32.mrf.mxu1  ;;  %v488_v50 = vld [vmem:[%s12952_s0 + $0xeb0] sm:$0xff] }
 0x417   :  { %v5903_v29 = vpop.f32.mrf.mxu0 }
 0x418   :  { %v11062_v6 = vadd.f32 %v6190_v14, %v5902_v58  ;;  %v6192_v11 = vpop.f32.mrf.mxu1 }
 0x419   :  { %v5906_v37 = vpop.f32.mrf.mxu0  ;;  %6097 = vmatmul.mubr.bf16.gmra.mxu0 %v7807_v46  ;;  %v7823_v46 = vcombine.low %v472_v42, %v480_v62  ;;  %v512_v42 = vld [vmem:[%s12952_s0 + $0xf70] sm:$0xff] }
 0x41a   :  { %v5907_v31 = vadd.f32 %v5906_v37, %v10495_v15  ;;  %v6195_v61 = vpop.f32.mrf.mxu1  ;;  %6386 = vmatmul.mubr.bf16.gmra.mxu1 %v7809_v7  ;;  %6104 = vmatprep.mubr.bf16.mxu0 %v7824_v41  ;;  %v489_v15 = vld [vmem:[%s12952_s0 + $0xeb8] sm:$0xff]  ;;  %v7825_v7 = vcombine.low %v473_v4, %v481_v19  ;;  %v7840_v41 = vcombine.high %v488_v50, %v496_v40 }
 0x41b   :  { %v5908_v20 = vpop.f32.mrf.mxu0  ;;  %6393 = vmatprep.mubr.bf16.mxu1 %v7826_v24  ;;  %v7842_v24 = vcombine.high %v489_v15, %v497_v32  ;;  %v513_v19 = vld [vmem:[%s12952_s0 + $0xf78] sm:$0xff] }
 0x41c   :  { %v11071_v35 = vadd.f32 %v6195_v61, %v5907_v31  ;;  %v6197_v39 = vpop.f32.mrf.mxu1 }
 0x41d   :  { %v5909_v9 = vpop.f32.mrf.mxu0 }
 0x41e   :  { %v5910_v58 = vadd.f32 %v5909_v9, %v10504_v23  ;;  %v6198_v14 = vpop.f32.mrf.mxu1  ;;  %v504_v23 = vld [vmem:[%s12952_s0 + $0xf30] sm:$0xff] }
 0x41f   :  { %v5911_v29 = vpop.f32.mrf.mxu0 }
 0x420   :  { %v11080_v11 = vadd.f32 %v6198_v14, %v5910_v58  ;;  %v6200_v37 = vpop.f32.mrf.mxu1 }
 0x421   :  { %v5914_v31 = vpop.f32.mrf.mxu0  ;;  %6105 = vmatmul.mubr.bf16.gmra.mxu0 %v7823_v46  ;;  %v7839_v46 = vcombine.low %v488_v50, %v496_v40  ;;  %v528_v50 = vld [vmem:[%s12952_s0 + $0xff0] sm:$0xff] }
 0x422   :  { %v5915_v61 = vadd.f32 %v5914_v31, %v10513_v44  ;;  %v6203_v20 = vpop.f32.mrf.mxu1  ;;  %6394 = vmatmul.mubr.bf16.gmra.mxu1 %v7825_v7  ;;  %6112 = vmatprep.mubr.bf16.mxu0 %v7840_v41  ;;  %v505_v44 = vld [vmem:[%s12952_s0 + $0xf38] sm:$0xff]  ;;  %v7841_v7 = vcombine.low %v489_v15, %v497_v32  ;;  %v7856_v41 = vcombine.high %v504_v23, %v512_v42 }
 0x423   :  { %v5916_v39 = vpop.f32.mrf.mxu0  ;;  %6401 = vmatprep.mubr.bf16.mxu1 %v7842_v24  ;;  %v7858_v24 = vcombine.high %v505_v44, %v513_v19  ;;  %v529_v32 = vld [vmem:[%s12952_s0 + $0xff8] sm:$0xff] }
 0x424   :  { %v11089_v62 = vadd.f32 %v6203_v20, %v5915_v61  ;;  %v6205_v4 = vpop.f32.mrf.mxu1 }
 0x425   :  { %v5917_v9 = vpop.f32.mrf.mxu0 }
 0x426   :  { %v5918_v58 = vadd.f32 %v5917_v9, %v10522_v8  ;;  %v6206_v14 = vpop.f32.mrf.mxu1  ;;  %v520_v8 = vld [vmem:[%s12952_s0 + $0xfb0] sm:$0xff] }
 0x427   :  { %v5919_v29 = vpop.f32.mrf.mxu0 }
 0x428   :  { %v11098_v37 = vadd.f32 %v6206_v14, %v5918_v58  ;;  %v6208_v31 = vpop.f32.mrf.mxu1 }
 0x429   :  { %v5922_v61 = vpop.f32.mrf.mxu0  ;;  %6113 = vmatmul.mubr.bf16.gmra.mxu0 %v7839_v46  ;;  %v7855_v46 = vcombine.low %v504_v23, %v512_v42 }
 0x42a   :  { %v5923_v20 = vadd.f32 %v5922_v61, %v10531_v18  ;;  %v6211_v39 = vpop.f32.mrf.mxu1  ;;  %6402 = vmatmul.mubr.bf16.gmra.mxu1 %v7841_v7  ;;  %6120 = vmatprep.mubr.bf16.mxu0 %v7856_v41  ;;  %v521_v18 = vld [vmem:[%s12952_s0 + $0xfb8] sm:$0xff]  ;;  %v7857_v7 = vcombine.low %v505_v44, %v513_v19  ;;  %v7872_v41 = vcombine.high %v520_v8, %v528_v50 }
 0x42b   :  { %v5924_v4 = vpop.f32.mrf.mxu0  ;;  %6409 = vmatprep.mubr.bf16.mxu1 %v7858_v24  ;;  %v7874_v24 = vcombine.high %v521_v18, %v529_v32  ;;  %v7871_v44 = vcombine.low %v520_v8, %v528_v50 }
 0x42c   :  { %v11107_v40 = vadd.f32 %v6211_v39, %v5923_v20  ;;  %v6213_v15 = vpop.f32.mrf.mxu1 }
 0x42d   :  { %v5925_v9 = vpop.f32.mrf.mxu0 }
 0x42e   :  { %v5926_v58 = vadd.f32 %v5925_v9, %v10540_v27  ;;  %v6214_v14 = vpop.f32.mrf.mxu1 }
 0x42f   :  { %v5927_v29 = vpop.f32.mrf.mxu0 }
 0x430   :  { %v11116_v31 = vadd.f32 %v6214_v14, %v5926_v58  ;;  %v6216_v61 = vpop.f32.mrf.mxu1  ;;  %v7873_v58 = vcombine.low %v521_v18, %v529_v32 }
 0x431   :  { %v5930_v20 = vpop.f32.mrf.mxu0  ;;  %6121 = vmatmul.mubr.bf16.gmra.mxu0 %v7855_v46 }
 0x432   :  { %v5931_v39 = vadd.f32 %v5930_v20, %v10549_v63  ;;  %v6219_v4 = vpop.f32.mrf.mxu1  ;;  %6410 = vmatmul.mubr.bf16.gmra.mxu1 %v7857_v7  ;;  %6128 = vmatprep.mubr.bf16.mxu0 %v7872_v41 }
 0x433   :  { %v5932_v15 = vpop.f32.mrf.mxu0  ;;  %6417 = vmatprep.mubr.bf16.mxu1 %v7874_v24 }
 0x434   :  { %v11119_v23 = vadd.f32 %v6219_v4, %v5931_v39  ;;  %v6221_v27 = vpop.f32.mrf.mxu1 }
 0x435   :  { %v5933_v42 = vpop.f32.mrf.mxu0 }
 0x436   :  { %v5934_v19 = vadd.f32 %v5933_v42, %v10558_v34  ;;  %v6222_v9 = vpop.f32.mrf.mxu1 }
 0x437   :  { %v5935_v14 = vpop.f32.mrf.mxu0 }
 0x438   :  { %v11122_v29 = vadd.f32 %v6222_v9, %v5934_v19  ;;  %v6224_v46 = vpop.f32.mrf.mxu1 }
 0x439   :  { %v5938_v61 = vpop.f32.mrf.mxu0  ;;  %6129 = vmatmul.mubr.bf16.gmra.mxu0 %v7871_v44 }
 0x43a   :  { %v5939_v63 = vadd.f32 %v5938_v61, %v10567_v10  ;;  %v6227_v7 = vpop.f32.mrf.mxu1  ;;  %6418 = vmatmul.mubr.bf16.gmra.mxu1 %v7873_v58 }
 0x43b   :  { %v5940_v41 = vpop.f32.mrf.mxu0 }
 0x43c   :  { %v11125_v24 = vadd.f32 %v6227_v7, %v5939_v63  ;;  %v6229_v20 = vpop.f32.mrf.mxu1 }
 0x43d   :  { %v5941_v39 = vpop.f32.mrf.mxu0 }
 0x43e   :  { %v5942_v8 = vadd.f32 %v5941_v39, %v10576_v49  ;;  %v6230_v34 = vpop.f32.mrf.mxu1 }
 0x43f   :  { %v5943_v50 = vpop.f32.mrf.mxu0 }
 0x440   :  { %v11128_v18 = vadd.f32 %v6230_v34, %v5942_v8  ;;  %v6232_v32 = vpop.f32.mrf.mxu1 }
 0x441   :  { %v5946_v4 = vpop.f32.mrf.mxu0 }
 0x442   :  { %v5947_v15 = vadd.f32 %v5946_v4, %v10585_v1  ;;  %v6235_v27 = vpop.f32.mrf.mxu1 }
 0x443   :  { %v5948_v42 = vpop.f32.mrf.mxu0 }
 0x444   :  { %v11131_v10 = vadd.f32 %v6235_v27, %v5947_v15  ;;  %v6237_v44 = vpop.f32.mrf.mxu1 }
 0x445   :  { %v5949_v19 = vpop.f32.mrf.mxu0 }
 0x446   :  { %v5950_v9 = vadd.f32 %v5949_v19, %v10594_v16  ;;  %v6238_v58 = vpop.f32.mrf.mxu1 }
 0x447   :  { %v5951_v14 = vpop.f32.mrf.mxu0 }
 0x448   :  { %v11134_v46 = vadd.f32 %v6238_v58, %v5950_v9  ;;  %v6240_v49 = vpop.f32.mrf.mxu1 }
 0x449   :  { %v5954_v61 = vpop.f32.mrf.mxu0 }
 0x44a   :  { %v5955_v63 = vadd.f32 %v5954_v61, %v10603_v56  ;;  %v6243_v7 = vpop.f32.mrf.mxu1 }
 0x44b   :  { %v5956_v41 = vpop.f32.mrf.mxu0 }
 0x44c   :  { %v11137_v20 = vadd.f32 %v6243_v7, %v5955_v63  ;;  %v6245_v1 = vpop.f32.mrf.mxu1 }
 0x44d   :  { %v5957_v39 = vpop.f32.mrf.mxu0 }
 0x44e   :  { %v5958_v8 = vadd.f32 %v5957_v39, %v10612_v60  ;;  %v6246_v34 = vpop.f32.mrf.mxu1 }
 0x44f   :  { %v5959_v50 = vpop.f32.mrf.mxu0 }
 0x450   :  { %v11140_v32 = vadd.f32 %v6246_v34, %v5958_v8  ;;  %v6248_v16 = vpop.f32.mrf.mxu1 }
 0x451   :  { %v5962_v4 = vpop.f32.mrf.mxu0 }
 0x452   :  { %v5963_v15 = vadd.f32 %v5962_v4, %v10621_v54  ;;  %v6251_v27 = vpop.f32.mrf.mxu1 }
 0x453   :  { %v5964_v42 = vpop.f32.mrf.mxu0 }
 0x454   :  { %v11143_v44 = vadd.f32 %v6251_v27, %v5963_v15  ;;  %v6253_v56 = vpop.f32.mrf.mxu1 }
 0x455   :  { %v5965_v19 = vpop.f32.mrf.mxu0 }
 0x456   :  { %v5966_v9 = vadd.f32 %v5965_v19, %v10630_v38  ;;  %v6254_v58 = vpop.f32.mrf.mxu1 }
 0x457   :  { %v5967_v14 = vpop.f32.mrf.mxu0 }
 0x458   :  { %v11146_v49 = vadd.f32 %v6254_v58, %v5966_v9  ;;  %v6256_v60 = vpop.f32.mrf.mxu1 }
 0x459   :  { %v5970_v61 = vpop.f32.mrf.mxu0 }
 0x45a   :  { %v5971_v63 = vadd.f32 %v5970_v61, %v10639_v13  ;;  %v6259_v7 = vpop.f32.mrf.mxu1 }
 0x45b   :  { %v5972_v41 = vpop.f32.mrf.mxu0 }
 0x45c   :  { %v11149_v1 = vadd.f32 %v6259_v7, %v5971_v63  ;;  %v6261_v54 = vpop.f32.mrf.mxu1 }
 0x45d   :  { %v5973_v39 = vpop.f32.mrf.mxu0 }
 0x45e   :  { %v5974_v8 = vadd.f32 %v5973_v39, %v10648_v59  ;;  %v6262_v34 = vpop.f32.mrf.mxu1 }
 0x45f   :  { %v5975_v50 = vpop.f32.mrf.mxu0 }
 0x460   :  { %v11152_v16 = vadd.f32 %v6262_v34, %v5974_v8  ;;  %v6264_v38 = vpop.f32.mrf.mxu1 }
 0x461   :  { %v5978_v4 = vpop.f32.mrf.mxu0 }
 0x462   :  { %v5979_v15 = vadd.f32 %v5978_v4, %v10657_v48  ;;  %v6267_v27 = vpop.f32.mrf.mxu1 }
 0x463   :  { %v5980_v42 = vpop.f32.mrf.mxu0 }
 0x464   :  { %v11155_v56 = vadd.f32 %v6267_v27, %v5979_v15  ;;  %v6269_v13 = vpop.f32.mrf.mxu1 }
 0x465   :  { %v5981_v19 = vpop.f32.mrf.mxu0 }
 0x466   :  { %v5982_v9 = vadd.f32 %v5981_v19, %v10666_v33  ;;  %v6270_v58 = vpop.f32.mrf.mxu1 }
 0x467   :  { %v5983_v14 = vpop.f32.mrf.mxu0 }
 0x468   :  { %v11158_v60 = vadd.f32 %v6270_v58, %v5982_v9  ;;  %v6272_v59 = vpop.f32.mrf.mxu1 }
 0x469   :  { %v5986_v61 = vpop.f32.mrf.mxu0 }
 0x46a   :  { %v5987_v63 = vadd.f32 %v5986_v61, %v10675_v12  ;;  %v6275_v7 = vpop.f32.mrf.mxu1 }
 0x46b   :  { %v5988_v41 = vpop.f32.mrf.mxu0 }
 0x46c   :  { %v11161_v54 = vadd.f32 %v6275_v7, %v5987_v63  ;;  %v6277_v48 = vpop.f32.mrf.mxu1 }
 0x46d   :  { %v5989_v39 = vpop.f32.mrf.mxu0 }
 0x46e   :  { %v5990_v8 = vadd.f32 %v5989_v39, %v10684_v51  ;;  %v6278_v34 = vpop.f32.mrf.mxu1  ;;  %v6426_v51 = vadd.f32 %v11026_v5, %v11017_v17 }
 0x46f   :  { %v5991_v50 = vpop.f32.mrf.mxu0 }
 0x470   :  { %v11164_v38 = vadd.f32 %v6278_v34, %v5990_v8  ;;  %v6280_v33 = vpop.f32.mrf.mxu1  ;;  %v6427_v7 = vadd.f32 %v6426_v51, %v11035_v36 }
 0x471   :  { %v5994_v4 = vpop.f32.mrf.mxu0 }
 0x472   :  { %v5995_v15 = vadd.f32 %v5994_v4, %v10693_v0  ;;  %v6283_v27 = vpop.f32.mrf.mxu1  ;;  %v6428_v39 = vadd.f32 %v6427_v7, %v11044_v55 }
 0x473   :  { %v5996_v42 = vpop.f32.mrf.mxu0 }
 0x474   :  { %v11167_v13 = vadd.f32 %v6283_v27, %v5995_v15  ;;  %v6285_v12 = vpop.f32.mrf.mxu1  ;;  %v6429_v50 = vadd.f32 %v6428_v39, %v11053_v28 }
 0x475   :  { %v5997_v19 = vpop.f32.mrf.mxu0 }
 0x476   :  { %v5998_v9 = vadd.f32 %v5997_v19, %v10702_v45  ;;  %v6286_v58 = vpop.f32.mrf.mxu1  ;;  %v6430_v27 = vadd.f32 %v6429_v50, %v11062_v6 }
 0x477   :  { %v5999_v14 = vpop.f32.mrf.mxu0 }
 0x478   :  { %v11172_v59 = vadd.f32 %v6286_v58, %v5998_v9  ;;  %v6288_v61 = vpop.f32.mrf.mxu1  ;;  %v6431_v19 = vadd.f32 %v6430_v27, %v11071_v35 }
 0x479   :  { %v6002_v63 = vpop.f32.mrf.mxu0 }
 0x47a   :  { %13144 = vst [vmem:[#allocation19_spill] sm:$0xff] %v11172_v59  ;;  %v6003_v0 = vadd.f32 %v6002_v63, %v10711_v3  ;;  %v6291_v41 = vpop.f32.mrf.mxu1  ;;  %v6432_v51 = vadd.f32 %v6431_v19, %v11080_v11 }
 0x47b   :  { %v6004_v48 = vpop.f32.mrf.mxu0 }
 0x47c   :  { %v11177_v8 = vadd.f32 %v6291_v41, %v6003_v0  ;;  %v6293_v45 = vpop.f32.mrf.mxu1  ;;  %v6433_v7 = vadd.f32 %v6432_v51, %v11089_v62 }
 0x47d   :  { %v6005_v34 = vpop.f32.mrf.mxu0 }
 0x47e   :  { %v6006_v33 = vadd.f32 %v6005_v34, %v10720_v22  ;;  %v6294_v4 = vpop.f32.mrf.mxu1  ;;  %v6434_v39 = vadd.f32 %v6433_v7, %v11098_v37 }
 0x47f   :  { %v6007_v15 = vpop.f32.mrf.mxu0 }
 0x480   :  { %v11182_v42 = vadd.f32 %v6294_v4, %v6006_v33  ;;  %v6296_v12 = vpop.f32.mrf.mxu1  ;;  %v6435_v50 = vadd.f32 %v6434_v39, %v11107_v40 }
 0x481   :  { %v6010_v3 = vpop.f32.mrf.mxu0 }
 0x482   :  { %13145 = vst [vmem:[#allocation20_spill] sm:$0xff] %v11182_v42  ;;  %v6011_v9 = vadd.f32 %v6010_v3, %v10729_v43  ;;  %v6299_v58 = vpop.f32.mrf.mxu1  ;;  %v6436_v27 = vadd.f32 %v6435_v50, %v11116_v31 }
 0x483   :  { %v6012_v14 = vpop.f32.mrf.mxu0 }
 0x484   :  { %v11187_v61 = vadd.f32 %v6299_v58, %v6011_v9  ;;  %v6301_v63 = vpop.f32.mrf.mxu1  ;;  %v6437_v19 = vadd.f32 %v6436_v27, %v11119_v23 }
 0x485   :  { %v6013_v22 = vpop.f32.mrf.mxu0 }
 0x486   :  { %v6014_v0 = vadd.f32 %v6013_v22, %v10738_v26  ;;  %v6302_v41 = vpop.f32.mrf.mxu1  ;;  %v6438_v51 = vadd.f32 %v6437_v19, %v11122_v29 }
 0x487   :  { %v6015_v48 = vpop.f32.mrf.mxu0 }
 0x488   :  { %v11192_v45 = vadd.f32 %v6302_v41, %v6014_v0  ;;  %v6304_v34 = vpop.f32.mrf.mxu1  ;;  %v6439_v7 = vadd.f32 %v6438_v51, %v11125_v24 }
 0x489   :  { %v6018_v43 = vpop.f32.mrf.mxu0 }
 0x48a   :  { %13146 = vst [vmem:[#allocation21_spill] sm:$0xff] %v11192_v45  ;;  %v6019_v33 = vadd.f32 %v6018_v43, %v10747_v21  ;;  %v6307_v4 = vpop.f32.mrf.mxu1  ;;  %v6440_v39 = vadd.f32 %v6439_v7, %v11128_v18 }
 0x48b   :  { %v6020_v15 = vpop.f32.mrf.mxu0 }
 0x48c   :  { %v11197_v12 = vadd.f32 %v6307_v4, %v6019_v33  ;;  %v6309_v3 = vpop.f32.mrf.mxu1  ;;  %v6441_v50 = vadd.f32 %v6440_v39, %v11131_v10 }
 0x48d   :  { %v6021_v26 = vpop.f32.mrf.mxu0 }
 0x48e   :  { %v6022_v9 = vadd.f32 %v6021_v26, %v10756_v2  ;;  %v6310_v58 = vpop.f32.mrf.mxu1  ;;  %v6442_v27 = vadd.f32 %v6441_v50, %v11134_v46 }
 0x48f   :  { %v6023_v14 = vpop.f32.mrf.mxu0 }
 0x490   :  { %v11202_v63 = vadd.f32 %v6310_v58, %v6022_v9  ;;  %v6312_v22 = vpop.f32.mrf.mxu1  ;;  %v6443_v19 = vadd.f32 %v6442_v27, %v11137_v20  ;;  %v13149_v9 = vld [vmem:[#allocation22_spill] sm:$0xff]  ;;  %v13152_v27 = vld [vmem:[#allocation24_spill] sm:$0xff] }
 0x491   :  { %v6026_v21 = vpop.f32.mrf.mxu0 }
 0x492   :  { %13147 = vst [vmem:[#allocation27_spill] sm:$0xff] %v11202_v63  ;;  %v6027_v0 = vadd.f32 %v6026_v21, %v10765_v53  ;;  %v6315_v41 = vpop.f32.mrf.mxu1  ;;  %v6444_v22 = vadd.f32 %v6443_v19, %v11140_v32 }
 0x493   :  { %v6028_v48 = vpop.f32.mrf.mxu0 }
 0x494   :  { %v11207_v34 = vadd.f32 %v6315_v41, %v6027_v0  ;;  %v6317_v43 = vpop.f32.mrf.mxu1  ;;  %v6445_v0 = vadd.f32 %v6444_v22, %v11143_v44  ;;  %v13150_v41 = vld [vmem:[#allocation23_spill] sm:$0xff] }
 0x495   :  { %v6029_v2 = vpop.f32.mrf.mxu0 }
 0x496   :  { %v6030_v33 = vadd.f32 %v6029_v2, %v10774_v57  ;;  %v6318_v4 = vpop.f32.mrf.mxu1  ;;  %v6446_v2 = vadd.f32 %v6445_v0, %v11146_v49 }
 0x497   :  { %v6031_v15 = vpop.f32.mrf.mxu0 }
 0x498   :  { %v11212_v3 = vadd.f32 %v6318_v4, %v6030_v33  ;;  %v6320_v26 = vpop.f32.mrf.mxu1  ;;  %v6447_v15 = vadd.f32 %v6446_v2, %v11149_v1 }
 0x499   :  { %v6034_v53 = vpop.f32.mrf.mxu0 }
 0x49a   :  { %13148 = vst [vmem:[#allocation28_spill] sm:$0xff] %v11212_v3  ;;  %v6035_v58 = vadd.f32 %v6034_v53, %v13149_v9  ;;  %v6323_v14 = vpop.f32.mrf.mxu1  ;;  %v6448_v9 = vadd.f32 %v6447_v15, %v11152_v16 }
 0x49b   :  { %v6036_v51 = vpop.f32.mrf.mxu0 }
 0x49c   :  { %v11217_v21 = vadd.f32 %v6323_v14, %v6035_v58  ;;  %v6325_v7 = vpop.f32.mrf.mxu1  ;;  %v6449_v22 = vadd.f32 %v6448_v9, %v11155_v56 }
 0x49d   :  { %v6037_v57 = vpop.f32.mrf.mxu0  ;;  %v13154_v7 = vld [vmem:[#allocation25_spill] sm:$0xff] }
 0x49e   :  { %v6038_v48 = vadd.f32 %v6037_v57, %v13150_v41  ;;  %v6326_v39 = vpop.f32.mrf.mxu1 }
 0x49f   :  { %v6039_v43 = vpop.f32.mrf.mxu0 }
 0x4a0   :  { %v11222_v50 = vadd.f32 %v6326_v39, %v6038_v48  ;;  %v6328_v33 = vpop.f32.mrf.mxu1  ;;  %v6450_v48 = vadd.f32 %v6449_v22, %v11158_v60 }
 0x4a1   :  { %v6042_v4 = vpop.f32.mrf.mxu0 }
 0x4a2   :  { %13151 = vst [vmem:[#allocation22_spill] sm:$0xff] %v11222_v50  ;;  %v6043_v26 = vadd.f32 %v6042_v4, %v13152_v27  ;;  %v6331_v53 = vpop.f32.mrf.mxu1  ;;  %v6451_v33 = vadd.f32 %v6450_v48, %v11161_v54  ;;  %v13156_v4 = vld [vmem:[#allocation26_spill] sm:$0xff] }
 0x4a3   :  { %v6044_v19 = vpop.f32.mrf.mxu0 }
 0x4a4   :  { %v11227_v58 = vadd.f32 %v6331_v53, %v6043_v26  ;;  %v6333_v14 = vpop.f32.mrf.mxu1  ;;  %v6452_v53 = vadd.f32 %v6451_v33, %v11164_v38 }
 0x4a5   :  { %v6045_v51 = vpop.f32.mrf.mxu0 }
 0x4a6   :  { %13153 = vst [vmem:[#allocation23_spill] sm:$0xff] %v11227_v58  ;;  %v6046_v57 = vadd.f32 %v6045_v51, %v13154_v7  ;;  %v6334_v0 = vpop.f32.mrf.mxu1  ;;  %v6453_v51 = vadd.f32 %v6452_v53, %v11167_v13 }
 0x4a7   :  { %v6047_v41 = vpop.f32.mrf.mxu0 }
 0x4a8   :  { %v11232_v39 = vadd.f32 %v6334_v0, %v6046_v57  ;;  %v6336_v43 = vpop.f32.mrf.mxu1  ;;  %v6454_v0 = vadd.f32 %v6453_v51, %v11172_v59 }
 0x4a9   :  { %v6050_v2 = vpop.f32.mrf.mxu0 }
 0x4aa   :  { %13155 = vst [vmem:[#allocation24_spill] sm:$0xff] %v11232_v39  ;;  %v6051_v15 = vadd.f32 %v6050_v2, %v13156_v4  ;;  %v6339_v27 = vpop.f32.mrf.mxu1  ;;  %v6455_v2 = vadd.f32 %v6454_v0, %v11177_v8  ;;  %v13159_v4 = vld [vmem:[#allocation2_spill] sm:$0xff] }
 0x4ab   :  { %v6052_v26 = vpop.f32.mrf.mxu0 }
 0x4ac   :  { %v11237_v19 = vadd.f32 %v6339_v27, %v6051_v15  ;;  %v6341_v9 = vpop.f32.mrf.mxu1  ;;  %v6456_v26 = vadd.f32 %v6455_v2, %v11182_v42 }
 0x4ad   :  { %v6053_v14 = vpop.f32.mrf.mxu0 }
 0x4ae   :  { %13157 = vst [vmem:[#allocation25_spill] sm:$0xff] %v11237_v19  ;;  %v6054_v22 = vadd.f32 %v6053_v14, %v10828_v52  ;;  %v6342_v7 = vpop.f32.mrf.mxu1  ;;  %v6457_v14 = vadd.f32 %v6456_v26, %v11187_v61 }
 0x4af   :  { %v6055_v57 = vpop.f32.mrf.mxu0 }
 0x4b0   :  { %v11242_v41 = vadd.f32 %v6342_v7, %v6054_v22  ;;  %v6344_v48 = vpop.f32.mrf.mxu1  ;;  %v13161_v57 = vld [vmem:[#allocation3_spill] sm:$0xff] }
 0x4b1   :  { %v6058_v43 = vpop.f32.mrf.mxu0  ;;  %v6458_v48 = vadd.f32 %v6457_v14, %v11192_v45 }
 0x4b2   :  { %13158 = vst [vmem:[#allocation26_spill] sm:$0xff] %v11242_v41  ;;  %v6059_v33 = vadd.f32 %v6058_v43, %v13159_v4  ;;  %v6347_v15 = vpop.f32.mrf.mxu1 }
 0x4b3   :  { %v6060_v27 = vpop.f32.mrf.mxu0  ;;  %v6459_v4 = vadd.f32 %v6458_v48, %v11197_v12 }
 0x4b4   :  { %v11247_v9 = vadd.f32 %v6347_v15, %v6059_v33  ;;  %v6349_v53 = vpop.f32.mrf.mxu1  ;;  %v13163_v27 = vld [vmem:[#allocation4_spill] sm:$0xff] }
 0x4b5   :  { %v6061_v52 = vpop.f32.mrf.mxu0  ;;  %v6460_v53 = vadd.f32 %v6459_v4, %v11202_v63 }
 0x4b6   :  { %13160 = vst [vmem:[#allocation2_spill] sm:$0xff] %v11247_v9  ;;  %v6062_v51 = vadd.f32 %v6061_v52, %v13161_v57  ;;  %v6350_v22 = vpop.f32.mrf.mxu1 }
 0x4b7   :  { %v6063_v7 = vpop.f32.mrf.mxu0  ;;  %v6461_v57 = vadd.f32 %v6460_v53, %v11207_v34 }
 0x4b8   :  { %v11252_v59 = vadd.f32 %v6350_v22, %v6062_v51  ;;  %v6352_v0 = vpop.f32.mrf.mxu1  ;;  %v13165_v7 = vld [vmem:[#allocation5_spill] sm:$0xff] }
 0x4b9   :  { %v6066_v43 = vpop.f32.mrf.mxu0  ;;  %v6462_v0 = vadd.f32 %v6461_v57, %v11212_v3 }
 0x4ba   :  { %13162 = vst [vmem:[#allocation3_spill] sm:$0xff] %v11252_v59  ;;  %v6067_v2 = vadd.f32 %v6066_v43, %v13163_v27  ;;  %v6355_v33 = vpop.f32.mrf.mxu1 }
 0x4bb   :  { %v6068_v15 = vpop.f32.mrf.mxu0  ;;  %v6463_v27 = vadd.f32 %v6462_v0, %v11217_v21 }
 0x4bc   :  { %v11257_v42 = vadd.f32 %v6355_v33, %v6067_v2  ;;  %v6357_v26 = vpop.f32.mrf.mxu1  ;;  %v13167_v15 = vld [vmem:[#allocation6_spill] sm:$0xff] }
 0x4bd   :  { %v6069_v52 = vpop.f32.mrf.mxu0  ;;  %v6464_v26 = vadd.f32 %v6463_v27, %v11222_v50 }
 0x4be   :  { %13164 = vst [vmem:[#allocation4_spill] sm:$0xff] %v11257_v42  ;;  %v6070_v14 = vadd.f32 %v6069_v52, %v13165_v7  ;;  %v6358_v51 = vpop.f32.mrf.mxu1 }
 0x4bf   :  { %v6071_v22 = vpop.f32.mrf.mxu0  ;;  %v6465_v7 = vadd.f32 %v6464_v26, %v11227_v58 }
 0x4c0   :  { %v11262_v45 = vadd.f32 %v6358_v51, %v6070_v14  ;;  %v6360_v48 = vpop.f32.mrf.mxu1  ;;  %v13169_v22 = vld [vmem:[#allocation7_spill] sm:$0xff] }
 0x4c1   :  { %v6074_v43 = vpop.f32.mrf.mxu0  ;;  %v6466_v48 = vadd.f32 %v6465_v7, %v11232_v39 }
 0x4c2   :  { %13166 = vst [vmem:[#allocation5_spill] sm:$0xff] %v11262_v45  ;;  %v6075_v4 = vadd.f32 %v6074_v43, %v13167_v15  ;;  %v6363_v2 = vpop.f32.mrf.mxu1 }
 0x4c3   :  { %v6076_v33 = vpop.f32.mrf.mxu0  ;;  %v6467_v15 = vadd.f32 %v6466_v48, %v11237_v19 }
 0x4c4   :  { %v11267_v63 = vadd.f32 %v6363_v2, %v6075_v4  ;;  %v6365_v53 = vpop.f32.mrf.mxu1  ;;  %v13171_v33 = vld [vmem:[#allocation8_spill] sm:$0xff] }
 0x4c5   :  { %v6077_v52 = vpop.f32.mrf.mxu0  ;;  %v6468_v53 = vadd.f32 %v6467_v15, %v11242_v41 }
 0x4c6   :  { %13168 = vst [vmem:[#allocation6_spill] sm:$0xff] %v11267_v63  ;;  %v6078_v57 = vadd.f32 %v6077_v52, %v13169_v22  ;;  %v6366_v14 = vpop.f32.mrf.mxu1 }
 0x4c7   :  { %v6079_v51 = vpop.f32.mrf.mxu0  ;;  %v6469_v22 = vadd.f32 %v6468_v53, %v11247_v9 }
 0x4c8   :  { %v11272_v3 = vadd.f32 %v6366_v14, %v6078_v57  ;;  %v6368_v0 = vpop.f32.mrf.mxu1  ;;  %v13173_v51 = vld [vmem:[#allocation9_spill] sm:$0xff] }
 0x4c9   :  { %v6082_v43 = vpop.f32.mrf.mxu0  ;;  %v6470_v0 = vadd.f32 %v6469_v22, %v11252_v59 }
 0x4ca   :  { %13170 = vst [vmem:[#allocation7_spill] sm:$0xff] %v11272_v3  ;;  %v6083_v27 = vadd.f32 %v6082_v43, %v13171_v33  ;;  %v6371_v4 = vpop.f32.mrf.mxu1 }
 0x4cb   :  { %v6084_v2 = vpop.f32.mrf.mxu0  ;;  %v6471_v33 = vadd.f32 %v6470_v0, %v11257_v42 }
 0x4cc   :  { %v11277_v50 = vadd.f32 %v6371_v4, %v6083_v27  ;;  %v6373_v26 = vpop.f32.mrf.mxu1  ;;  %v13175_v2 = vld [vmem:[#allocation10_spill] sm:$0xff] }
 0x4cd   :  { %v6085_v52 = vpop.f32.mrf.mxu0  ;;  %v6472_v26 = vadd.f32 %v6471_v33, %v11262_v45 }
 0x4ce   :  { %13172 = vst [vmem:[#allocation8_spill] sm:$0xff] %v11277_v50  ;;  %v6086_v7 = vadd.f32 %v6085_v52, %v13173_v51  ;;  %v6374_v57 = vpop.f32.mrf.mxu1 }
 0x4cf   :  { %v6087_v14 = vpop.f32.mrf.mxu0  ;;  %v6473_v51 = vadd.f32 %v6472_v26, %v11267_v63  ;;  %v13184_v63 = vld [vmem:[#allocation16_spill] sm:$0xff] }
 0x4d0   :  { %v11282_v39 = vadd.f32 %v6374_v57, %v6086_v7  ;;  %v6376_v48 = vpop.f32.mrf.mxu1  ;;  %v13177_v14 = vld [vmem:[#allocation11_spill] sm:$0xff] }
 0x4d1   :  { %v6090_v43 = vpop.f32.mrf.mxu0  ;;  %v6474_v48 = vadd.f32 %v6473_v51, %v11272_v3 }
 0x4d2   :  { %13174 = vst [vmem:[#allocation9_spill] sm:$0xff] %v11282_v39  ;;  %v6091_v15 = vadd.f32 %v6090_v43, %v13175_v2  ;;  %v6379_v27 = vpop.f32.mrf.mxu1 }
 0x4d3   :  { %v6092_v4 = vpop.f32.mrf.mxu0  ;;  %v6475_v2 = vadd.f32 %v6474_v48, %v11277_v50 }
 0x4d4   :  { %v11287_v41 = vadd.f32 %v6379_v27, %v6091_v15  ;;  %v6381_v53 = vpop.f32.mrf.mxu1  ;;  %v13179_v4 = vld [vmem:[#allocation12_spill] sm:$0xff] }
 0x4d5   :  { %v6093_v52 = vpop.f32.mrf.mxu0  ;;  %v6476_v53 = vadd.f32 %v6475_v2, %v11282_v39 }
 0x4d6   :  { %13176 = vst [vmem:[#allocation10_spill] sm:$0xff] %v11287_v41  ;;  %v6094_v22 = vadd.f32 %v6093_v52, %v13177_v14  ;;  %v6382_v7 = vpop.f32.mrf.mxu1 }
 0x4d7   :  { %v6095_v57 = vpop.f32.mrf.mxu0  ;;  %v6477_v14 = vadd.f32 %v6476_v53, %v11287_v41 }
 0x4d8   :  { %v11292_v59 = vadd.f32 %v6382_v7, %v6094_v22  ;;  %v6384_v0 = vpop.f32.mrf.mxu1  ;;  %v13181_v57 = vld [vmem:[#allocation13_spill] sm:$0xff] }
 0x4d9   :  { %v6098_v43 = vpop.f32.mrf.mxu0 }
 0x4da   :  { %13178 = vst [vmem:[#allocation11_spill] sm:$0xff] %v11292_v59  ;;  %v6099_v33 = vadd.f32 %v6098_v43, %v13179_v4  ;;  %v6387_v15 = vpop.f32.mrf.mxu1  ;;  %v6478_v0 = vadd.f32 %v6477_v14, %v11292_v59 }
 0x4db   :  { %v6100_v27 = vpop.f32.mrf.mxu0 }
 0x4dc   :  { %v11297_v45 = vadd.f32 %v6387_v15, %v6099_v33  ;;  %v6389_v26 = vpop.f32.mrf.mxu1  ;;  %v13182_v27 = vld [vmem:[#allocation14_spill] sm:$0xff] }
 0x4dd   :  { %v6101_v52 = vpop.f32.mrf.mxu0 }
 0x4de   :  { %13180 = vst [vmem:[#allocation12_spill] sm:$0xff] %v11297_v45  ;;  %v6102_v51 = vadd.f32 %v6101_v52, %v13181_v57  ;;  %v6390_v22 = vpop.f32.mrf.mxu1  ;;  %v6479_v4 = vadd.f32 %v6478_v0, %v11297_v45  ;;  %v13183_v57 = vld [vmem:[#allocation15_spill] sm:$0xff] }
 0x4df   :  { %v6103_v7 = vpop.f32.mrf.mxu0 }
 0x4e0   :  { %v11302_v3 = vadd.f32 %v6390_v22, %v6102_v51  ;;  %v6392_v48 = vpop.f32.mrf.mxu1 }
 0x4e1   :  { %v6106_v43 = vpop.f32.mrf.mxu0 }
 0x4e2   :  { %v6107_v2 = vadd.f32 %v6106_v43, %v13182_v27  ;;  %v6395_v33 = vpop.f32.mrf.mxu1  ;;  %v6480_v26 = vadd.f32 %v6479_v4, %v11302_v3 }
 0x4e3   :  { %v6108_v15 = vpop.f32.mrf.mxu0 }
 0x4e4   :  { %v6396_v39 = vadd.f32 %v6395_v33, %v6107_v2  ;;  %v6397_v53 = vpop.f32.mrf.mxu1  ;;  %v13185_v2 = vld [vmem:[#allocation17_spill] sm:$0xff] }
 0x4e5   :  { %v6109_v41 = vpop.f32.mrf.mxu0 }
 0x4e6   :  { %v6481_v52 = vadd.f32 %v6480_v26, %v6396_v39  ;;  %v6110_v7 = vadd.f32 %v6109_v41, %v13183_v57  ;;  %v6398_v50 = vpop.f32.mrf.mxu1 }
 0x4e7   :  { %v6111_v14 = vpop.f32.mrf.mxu0 }
 0x4e8   :  { %v6399_v51 = vadd.f32 %v6398_v50, %v6110_v7  ;;  %v6400_v22 = vpop.f32.mrf.mxu1  ;;  %v13186_v50 = vld [vmem:[#allocation18_spill] sm:$0xff] }
 0x4e9   :  { %v6114_v48 = vpop.f32.mrf.mxu0 }
 0x4ea   :  { %v6482_v59 = vadd.f32 %v6481_v52, %v6399_v51  ;;  %v6115_v0 = vadd.f32 %v6114_v48, %v13184_v63  ;;  %v6403_v45 = vpop.f32.mrf.mxu1 }
 0x4eb   :  { %v6116_v43 = vpop.f32.mrf.mxu0 }
 0x4ec   :  { %v6404_v27 = vadd.f32 %v6403_v45, %v6115_v0  ;;  %v6405_v15 = vpop.f32.mrf.mxu1 }
 0x4ed   :  { %v6117_v42 = vpop.f32.mrf.mxu0 }
 0x4ee   :  { %v6483_v4 = vadd.f32 %v6482_v59, %v6404_v27  ;;  %v6118_v33 = vadd.f32 %v6117_v42, %v13185_v2  ;;  %v6406_v53 = vpop.f32.mrf.mxu1 }
 0x4ef   :  { %v6119_v26 = vpop.f32.mrf.mxu0 }
 0x4f0   :  { %v6407_v9 = vadd.f32 %v6406_v53, %v6118_v33  ;;  %v6408_v41 = vpop.f32.mrf.mxu1 }
 0x4f1   :  { %v6122_v57 = vpop.f32.mrf.mxu0 }
 0x4f2   :  { %v6484_v14 = vadd.f32 %v6483_v4, %v6407_v9  ;;  %v6123_v7 = vadd.f32 %v6122_v57, %v13186_v50  ;;  %v6411_v22 = vpop.f32.mrf.mxu1 }
 0x4f3   :  { %v6124_v52 = vpop.f32.mrf.mxu0 }
 0x4f4   :  { %v6412_v19 = vadd.f32 %v6411_v22, %v6123_v7  ;;  %v6413_v63 = vpop.f32.mrf.mxu1 }
 0x4f5   :  { %v6125_v48 = vpop.f32.mrf.mxu0 }
 0x4f6   :  { %v6485_v43 = vadd.f32 %v6484_v14, %v6412_v19  ;;  %v6126_v45 = vadd.f32 %v6125_v48, %v10990_v30  ;;  %v6414_v0 = vpop.f32.mrf.mxu1 }
 0x4f7   :  { %v6127_v59 = vpop.f32.mrf.mxu0 }
 0x4f8   :  { %v6415_v15 = vadd.f32 %v6414_v0, %v6126_v45  ;;  %v6416_v42 = vpop.f32.mrf.mxu1 }
 0x4f9   :  { %v6130_v2 = vpop.f32.mrf.mxu0 }
 0x4fa   :  { %v6486_v26 = vadd.f32 %v6485_v43, %v6415_v15  ;;  %v6131_v33 = vadd.f32 %v6130_v2, %v10999_v47  ;;  %v6419_v53 = vpop.f32.mrf.mxu1 }
 0x4fb   :  { %v6132_v4 = vpop.f32.mrf.mxu0 }
 0x4fc   :  { %v6420_v41 = vadd.f32 %v6419_v53, %v6131_v33  ;;  %v6421_v57 = vpop.f32.mrf.mxu1 }
 0x4fd   :  { %v6133_v50 = vpop.f32.mrf.mxu0 }
 0x4fe   :  { %v6487_v52 = vadd.f32 %v6486_v26, %v6420_v41  ;;  %v6134_v7 = vadd.f32 %v6133_v50, %v11008_v25  ;;  %v6422_v22 = vpop.f32.mrf.mxu1 }
 0x4ff   :  { %v6135_v14 = vpop.f32.mrf.mxu0 }
 0x500   :  { %v6423_v63 = vadd.f32 %v6422_v22, %v6134_v7  ;;  %v6424_v30 = vpop.f32.mrf.mxu1 }
 0x502   :  { %v6488_v48 = vadd.f32 %v6487_v52, %v6423_v63 }
 0x504   :  { %v6489_v59 = vrot.slane %v6488_v48, 4 }
 0x506   :  { %v6490_v45 = vadd.f32 %v6489_v59, %v6488_v48 }
 0x508   :  { %v6491_v0 = vrot.slane %v6490_v45, 2 }
 0x50a   :  { %v6492_v42 = vadd.f32 %v6491_v0, %v6490_v45 }
 0x50c   :  { %v6493_v43 = vrot.slane %v6492_v42, 1 }
 0x50e   :  { %v6494_v58 = vadd.f32 %v6493_v43, %v6492_v42 }
 0x510   :  { %v11314_v47 = vmul.f32 0.001953125, %v6494_v58 }
 0x512   :  { %v11318_v2 = vsub.f32 %v11302_v3, %v11314_v47  ;;  %v11321_v26 = vsub.f32 %v6396_v39, %v11314_v47  ;;  %v11324_v25 = vsub.f32 %v6399_v51, %v11314_v47  ;;  %v11327_v33 = vsub.f32 %v6404_v27, %v11314_v47 }
 0x513   :  { %v11330_v53 = vsub.f32 %v6407_v9, %v11314_v47  ;;  %v11333_v4 = vsub.f32 %v6412_v19, %v11314_v47  ;;  %v11336_v58 = vsub.f32 %v6415_v15, %v11314_v47  ;;  %v11339_v3 = vsub.f32 %v6420_v41, %v11314_v47 }
 0x514   :  { %13187 = vst [vmem:[#allocation13_spill] sm:$0xff] %v11324_v25  ;;  %13188 = vst [vmem:[#allocation14_spill] sm:$0xff] %v11327_v33  ;;  %v11342_v39 = vsub.f32 %v6423_v63, %v11314_v47  ;;  %v11346_v51 = vsub.f32 %v11017_v17, %v11314_v47  ;;  %v11350_v9 = vsub.f32 %v11026_v5, %v11314_v47 }
 0x515   :  { %13189 = vst [vmem:[#allocation15_spill] sm:$0xff] %v11330_v53  ;;  %13190 = vst [vmem:[#allocation16_spill] sm:$0xff] %v11333_v4  ;;  %v11354_v19 = vsub.f32 %v11035_v36, %v11314_v47  ;;  %v11362_v41 = vsub.f32 %v11044_v55, %v11314_v47  ;;  %v11366_v17 = vsub.f32 %v11053_v28, %v11314_v47 }
 0x516   :  { %13191 = vst [vmem:[#allocation17_spill] sm:$0xff] %v11336_v58  ;;  %13192 = vst [vmem:[#allocation18_spill] sm:$0xff] %v11339_v3  ;;  %v6561_v27 = vmul.f32 %v11346_v51, %v11346_v51  ;;  %v6562_v15 = vmul.f32 %v11350_v9, %v11350_v9  ;;  %v11372_v36 = vsub.f32 %v11062_v6, %v11314_v47 }
 0x517   :  { %v6563_v5 = vmul.f32 %v11354_v19, %v11354_v19  ;;  %v6564_v50 = vmul.f32 %v11362_v41, %v11362_v41  ;;  %v11378_v55 = vsub.f32 %v11071_v35, %v11314_v47  ;;  %v6565_v28 = vmul.f32 %v11366_v17, %v11366_v17 }
 0x518   :  { %v6625_v57 = vadd.f32 %v6562_v15, %v6561_v27  ;;  %v11384_v22 = vsub.f32 %v11080_v11, %v11314_v47  ;;  %v6566_v6 = vmul.f32 %v11372_v36, %v11372_v36  ;;  %v11390_v63 = vsub.f32 %v11089_v62, %v11314_v47 }
 0x519   :  { %v6567_v35 = vmul.f32 %v11378_v55, %v11378_v55  ;;  %v11396_v48 = vsub.f32 %v11098_v37, %v11314_v47  ;;  %v11402_v45 = vsub.f32 %v11107_v40, %v11314_v47  ;;  %v11408_v42 = vsub.f32 %v11116_v31, %v11314_v47 }
 0x51a   :  { %v6626_v52 = vadd.f32 %v6625_v57, %v6563_v5  ;;  %v6568_v11 = vmul.f32 %v11384_v22, %v11384_v22  ;;  %v6569_v62 = vmul.f32 %v11390_v63, %v11390_v63  ;;  %v11414_v27 = vsub.f32 %v11119_v23, %v11314_v47 }
 0x51b   :  { %v6570_v37 = vmul.f32 %v11396_v48, %v11396_v48  ;;  %v6571_v40 = vmul.f32 %v11402_v45, %v11402_v45  ;;  %v11420_v5 = vsub.f32 %v11122_v29, %v11314_v47  ;;  %v6572_v31 = vmul.f32 %v11408_v42, %v11408_v42 }
 0x51c   :  { %v6627_v7 = vadd.f32 %v6626_v52, %v6564_v50  ;;  %v11426_v50 = vsub.f32 %v11125_v24, %v11314_v47  ;;  %v6573_v23 = vmul.f32 %v11414_v27, %v11414_v27 }
 0x51d   :  { %v6574_v29 = vmul.f32 %v11420_v5, %v11420_v5 }
 0x51e   :  { %v6628_v14 = vadd.f32 %v6627_v7, %v6565_v28  ;;  %v11432_v28 = vsub.f32 %v11128_v18, %v11314_v47  ;;  %v6575_v24 = vmul.f32 %v11426_v50, %v11426_v50 }
 0x520   :  { %v6629_v30 = vadd.f32 %v6628_v14, %v6566_v6  ;;  %v11438_v6 = vsub.f32 %v11131_v10, %v11314_v47  ;;  %v6576_v18 = vmul.f32 %v11432_v28, %v11432_v28 }
 0x522   :  { %v6630_v59 = vadd.f32 %v6629_v30, %v6567_v35  ;;  %v11444_v35 = vsub.f32 %v11134_v46, %v11314_v47  ;;  %v6577_v10 = vmul.f32 %v11438_v6, %v11438_v6 }
 0x524   :  { %v6631_v0 = vadd.f32 %v6630_v59, %v6568_v11  ;;  %v11450_v11 = vsub.f32 %v11137_v20, %v11314_v47  ;;  %v6578_v46 = vmul.f32 %v11444_v35, %v11444_v35 }
 0x526   :  { %v6632_v43 = vadd.f32 %v6631_v0, %v6569_v62  ;;  %v11456_v62 = vsub.f32 %v11140_v32, %v11314_v47  ;;  %v6579_v20 = vmul.f32 %v11450_v11, %v11450_v11 }
 0x528   :  { %v6633_v15 = vadd.f32 %v6632_v43, %v6570_v37  ;;  %v11462_v37 = vsub.f32 %v11143_v44, %v11314_v47  ;;  %v6580_v32 = vmul.f32 %v11456_v62, %v11456_v62 }
 0x52a   :  { %v6634_v57 = vadd.f32 %v6633_v15, %v6571_v40  ;;  %v11468_v40 = vsub.f32 %v11146_v49, %v11314_v47  ;;  %v6581_v44 = vmul.f32 %v11462_v37, %v11462_v37 }
 0x52c   :  { %v6635_v52 = vadd.f32 %v6634_v57, %v6572_v31  ;;  %v11474_v31 = vsub.f32 %v11149_v1, %v11314_v47  ;;  %v6582_v49 = vmul.f32 %v11468_v40, %v11468_v40 }
 0x52e   :  { %v6636_v7 = vadd.f32 %v6635_v52, %v6573_v23  ;;  %v11480_v23 = vsub.f32 %v11152_v16, %v11314_v47  ;;  %v6583_v1 = vmul.f32 %v11474_v31, %v11474_v31 }
 0x530   :  { %v6637_v14 = vadd.f32 %v6636_v7, %v6574_v29  ;;  %v11486_v29 = vsub.f32 %v11155_v56, %v11314_v47  ;;  %v6584_v16 = vmul.f32 %v11480_v23, %v11480_v23 }
 0x532   :  { %v6638_v30 = vadd.f32 %v6637_v14, %v6575_v24  ;;  %v11492_v24 = vsub.f32 %v11158_v60, %v11314_v47  ;;  %v6585_v56 = vmul.f32 %v11486_v29, %v11486_v29 }
 0x534   :  { %v6639_v59 = vadd.f32 %v6638_v30, %v6576_v18  ;;  %v11498_v18 = vsub.f32 %v11161_v54, %v11314_v47  ;;  %v6586_v60 = vmul.f32 %v11492_v24, %v11492_v24 }
 0x536   :  { %v6640_v0 = vadd.f32 %v6639_v59, %v6577_v10  ;;  %v11504_v10 = vsub.f32 %v11164_v38, %v11314_v47  ;;  %v6587_v54 = vmul.f32 %v11498_v18, %v11498_v18 }
 0x538   :  { %v6641_v43 = vadd.f32 %v6640_v0, %v6578_v46  ;;  %v11510_v46 = vsub.f32 %v11167_v13, %v11314_v47  ;;  %v6588_v38 = vmul.f32 %v11504_v10, %v11504_v10 }
 0x53a   :  { %v6642_v15 = vadd.f32 %v6641_v43, %v6579_v20  ;;  %v13193_v20 = vld [vmem:[#allocation19_spill] sm:$0xff]  ;;  %v6589_v13 = vmul.f32 %v11510_v46, %v11510_v46 }
 0x53b   :  { %v11516_v43 = vsub.f32 %v13193_v20, %v11314_v47 }
 0x53c   :  { %v6643_v57 = vadd.f32 %v6642_v15, %v6580_v32  ;;  %v11522_v15 = vsub.f32 %v11177_v8, %v11314_v47 }
 0x53e   :  { %v6644_v52 = vadd.f32 %v6643_v57, %v6581_v44  ;;  %v13194_v57 = vld [vmem:[#allocation20_spill] sm:$0xff]  ;;  %v6591_v8 = vmul.f32 %v11522_v15, %v11522_v15 }
 0x540   :  { %v6645_v7 = vadd.f32 %v6644_v52, %v6582_v49  ;;  %v11528_v49 = vsub.f32 %v13194_v57, %v11314_v47  ;;  %v6590_v52 = vmul.f32 %v11516_v43, %v11516_v43  ;;  %v13197_v57 = vld [vmem:[#allocation28_spill] sm:$0xff] }
 0x542   :  { %v6646_v14 = vadd.f32 %v6645_v7, %v6583_v1  ;;  %v11534_v7 = vsub.f32 %v11187_v61, %v11314_v47 }
 0x544   :  { %v6647_v30 = vadd.f32 %v6646_v14, %v6584_v16  ;;  %v13195_v14 = vld [vmem:[#allocation21_spill] sm:$0xff]  ;;  %v6593_v61 = vmul.f32 %v11534_v7, %v11534_v7 }
 0x546   :  { %v6648_v59 = vadd.f32 %v6647_v30, %v6585_v56  ;;  %v11540_v56 = vsub.f32 %v13195_v14, %v11314_v47  ;;  %v6592_v30 = vmul.f32 %v11528_v49, %v11528_v49 }
 0x548   :  { %v6649_v0 = vadd.f32 %v6648_v59, %v6586_v60  ;;  %v11546_v59 = vsub.f32 %v11197_v12, %v11314_v47 }
 0x54a   :  { %v6650_v32 = vadd.f32 %v6649_v0, %v6587_v54  ;;  %v13196_v0 = vld [vmem:[#allocation27_spill] sm:$0xff]  ;;  %v6595_v12 = vmul.f32 %v11546_v59, %v11546_v59 }
 0x54b   :  { %v11552_v20 = vsub.f32 %v13196_v0, %v11314_v47  ;;  %v13201_v0 = vld [vmem:[#allocation23_spill] sm:$0xff] }
 0x54c   :  { %v6651_v44 = vadd.f32 %v6650_v32, %v6588_v38  ;;  %v6594_v38 = vmul.f32 %v11540_v56, %v11540_v56 }
 0x54e   :  { %v6652_v1 = vadd.f32 %v6651_v44, %v6589_v13  ;;  %v11558_v13 = vsub.f32 %v11207_v34, %v11314_v47 }
 0x550   :  { %v6653_v16 = vadd.f32 %v6652_v1, %v6590_v52  ;;  %v11564_v52 = vsub.f32 %v13197_v57, %v11314_v47  ;;  %v6596_v1 = vmul.f32 %v11552_v20, %v11552_v20  ;;  %v6597_v34 = vmul.f32 %v11558_v13, %v11558_v13 }
 0x552   :  { %v6654_v60 = vadd.f32 %v6653_v16, %v6591_v8  ;;  %v11570_v16 = vsub.f32 %v11217_v21, %v11314_v47 }
 0x554   :  { %v6655_v54 = vadd.f32 %v6654_v60, %v6592_v30  ;;  %13198 = vst [vmem:[#allocation19_spill] sm:$0xff] %v11570_v16  ;;  %v13199_v30 = vld [vmem:[#allocation22_spill] sm:$0xff]  ;;  %v6599_v21 = vmul.f32 %v11570_v16, %v11570_v16 }
 0x555   :  { %v11576_v60 = vsub.f32 %v13199_v30, %v11314_v47 }
 0x556   :  { %v6656_v32 = vadd.f32 %v6655_v54, %v6593_v61  ;;  %v6598_v61 = vmul.f32 %v11564_v52, %v11564_v52 }
 0x557   :  { %13200 = vst [vmem:[#allocation20_spill] sm:$0xff] %v11576_v60  ;;  %v6600_v57 = vmul.f32 %v11576_v60, %v11576_v60 }
 0x558   :  { %v6657_v44 = vadd.f32 %v6656_v32, %v6594_v38  ;;  %v11582_v38 = vsub.f32 %v13201_v0, %v11314_v47  ;;  %v13207_v0 = vld [vmem:[#allocation26_spill] sm:$0xff] }
 0x559   :  { %v11600_v16 = vsub.f32 %v13207_v0, %v11314_v47  ;;  %v13213_v0 = vld [vmem:[#allocation4_spill] sm:$0xff] }
 0x55a   :  { %v6658_v8 = vadd.f32 %v6657_v44, %v6595_v12  ;;  %13202 = vst [vmem:[#allocation21_spill] sm:$0xff] %v11582_v38  ;;  %v13203_v12 = vld [vmem:[#allocation24_spill] sm:$0xff] }
 0x55b   :  { %v11588_v44 = vsub.f32 %v13203_v12, %v11314_v47  ;;  %13208 = vst [vmem:[#allocation22_spill] sm:$0xff] %v11600_v16  ;;  %v13209_v12 = vld [vmem:[#allocation2_spill] sm:$0xff] }
 0x55c   :  { %v6659_v14 = vadd.f32 %v6658_v8, %v6596_v1  ;;  %v13205_v8 = vld [vmem:[#allocation25_spill] sm:$0xff]  ;;  %v11606_v60 = vsub.f32 %v13209_v12, %v11314_v47 }
 0x55d   :  { %13204 = vst [vmem:[#allocation27_spill] sm:$0xff] %v11588_v44  ;;  %v11594_v30 = vsub.f32 %v13205_v8, %v11314_v47  ;;  %v13211_v8 = vld [vmem:[#allocation3_spill] sm:$0xff]  ;;  %v13215_v12 = vld [vmem:[#allocation5_spill] sm:$0xff] }
 0x55e   :  { %v6660_v54 = vadd.f32 %v6659_v14, %v6597_v34  ;;  %v6601_v34 = vmul.f32 %v11582_v38, %v11582_v38  ;;  %13210 = vst [vmem:[#allocation23_spill] sm:$0xff] %v11606_v60  ;;  %v11612_v38 = vsub.f32 %v13211_v8, %v11314_v47  ;;  %v13217_v8 = vld [vmem:[#allocation6_spill] sm:$0xff] }
 0x55f   :  { %13206 = vst [vmem:[#allocation28_spill] sm:$0xff] %v11594_v30 }
 0x560   :  { %v6661_v32 = vadd.f32 %v6660_v54, %v6598_v61  ;;  %v6602_v61 = vmul.f32 %v11588_v44, %v11588_v44  ;;  %13212 = vst [vmem:[#allocation24_spill] sm:$0xff] %v11612_v38  ;;  %v11618_v44 = vsub.f32 %v13213_v0, %v11314_v47  ;;  %v13219_v0 = vld [vmem:[#allocation7_spill] sm:$0xff] }
 0x562   :  { %v6662_v1 = vadd.f32 %v6661_v32, %v6599_v21  ;;  %v6603_v21 = vmul.f32 %v11594_v30, %v11594_v30  ;;  %13214 = vst [vmem:[#allocation25_spill] sm:$0xff] %v11618_v44  ;;  %v11624_v30 = vsub.f32 %v13215_v12, %v11314_v47  ;;  %v13221_v12 = vld [vmem:[#allocation8_spill] sm:$0xff] }
 0x564   :  { %v6663_v14 = vadd.f32 %v6662_v1, %v6600_v57  ;;  %v6604_v57 = vmul.f32 %v11600_v16, %v11600_v16  ;;  %13216 = vst [vmem:[#allocation26_spill] sm:$0xff] %v11624_v30  ;;  %v11630_v16 = vsub.f32 %v13217_v8, %v11314_v47  ;;  %v13222_v8 = vld [vmem:[#allocation9_spill] sm:$0xff] }
 0x566   :  { %v6664_v54 = vadd.f32 %v6663_v14, %v6601_v34  ;;  %v6605_v34 = vmul.f32 %v11606_v60, %v11606_v60  ;;  %13218 = vst [vmem:[#allocation2_spill] sm:$0xff] %v11630_v16  ;;  %v11636_v60 = vsub.f32 %v13219_v0, %v11314_v47  ;;  %v13224_v0 = vld [vmem:[#allocation10_spill] sm:$0xff] }
 0x568   :  { %v6665_v32 = vadd.f32 %v6664_v54, %v6602_v61  ;;  %v6606_v61 = vmul.f32 %v11612_v38, %v11612_v38  ;;  %13220 = vst [vmem:[#allocation3_spill] sm:$0xff] %v11636_v60  ;;  %v11642_v38 = vsub.f32 %v13221_v12, %v11314_v47  ;;  %v13225_v12 = vld [vmem:[#allocation11_spill] sm:$0xff] }
 0x56a   :  { %v6666_v1 = vadd.f32 %v6665_v32, %v6603_v21  ;;  %v6607_v21 = vmul.f32 %v11618_v44, %v11618_v44  ;;  %v11648_v44 = vsub.f32 %v13222_v8, %v11314_v47  ;;  %v13226_v8 = vld [vmem:[#allocation12_spill] sm:$0xff] }
 0x56c   :  { %v6667_v14 = vadd.f32 %v6666_v1, %v6604_v57  ;;  %v6608_v57 = vmul.f32 %v11624_v30, %v11624_v30  ;;  %13223 = vst [vmem:[#allocation4_spill] sm:$0xff] %v11648_v44  ;;  %v11654_v30 = vsub.f32 %v13224_v0, %v11314_v47 }
 0x56e   :  { %v6668_v54 = vadd.f32 %v6667_v14, %v6605_v34  ;;  %v6609_v34 = vmul.f32 %v11630_v16, %v11630_v16  ;;  %v11660_v16 = vsub.f32 %v13225_v12, %v11314_v47 }
 0x570   :  { %v6669_v32 = vadd.f32 %v6668_v54, %v6606_v61  ;;  %v6610_v61 = vmul.f32 %v11636_v60, %v11636_v60  ;;  %v11666_v60 = vsub.f32 %v13226_v8, %v11314_v47  ;;  %v6614_v0 = vmul.f32 %v11660_v16, %v11660_v16 }
 0x571   :  { %v6617_v47 = vmul.f32 %v11321_v26, %v11321_v26  ;;  %v6618_v8 = vmul.f32 %v11324_v25, %v11324_v25 }
 0x572   :  { %v6670_v1 = vadd.f32 %v6669_v32, %v6607_v21  ;;  %v6611_v21 = vmul.f32 %v11642_v38, %v11642_v38 }
 0x574   :  { %v6671_v14 = vadd.f32 %v6670_v1, %v6608_v57  ;;  %v6612_v57 = vmul.f32 %v11648_v44, %v11648_v44  ;;  %v6616_v44 = vmul.f32 %v11318_v2, %v11318_v2 }
 0x576   :  { %v6672_v54 = vadd.f32 %v6671_v14, %v6609_v34  ;;  %v6613_v34 = vmul.f32 %v11654_v30, %v11654_v30 }
 0x578   :  { %v6673_v32 = vadd.f32 %v6672_v54, %v6610_v61  ;;  %v6615_v54 = vmul.f32 %v11666_v60, %v11666_v60 }
 0x57a   :  { %v6674_v1 = vadd.f32 %v6673_v32, %v6611_v21 }
 0x57c   :  { %v6675_v14 = vadd.f32 %v6674_v1, %v6612_v57  ;;  %v6619_v1 = vmul.f32 %v11327_v33, %v11327_v33 }
 0x57e   :  { %v6676_v61 = vadd.f32 %v6675_v14, %v6613_v34  ;;  %v6620_v14 = vmul.f32 %v11330_v53, %v11330_v53 }
 0x580   :  { %v6677_v12 = vadd.f32 %v6676_v61, %v6614_v0  ;;  %v6621_v61 = vmul.f32 %v11333_v4, %v11333_v4 }
 0x582   :  { %v6678_v21 = vadd.f32 %v6677_v12, %v6615_v54  ;;  %v6622_v12 = vmul.f32 %v11336_v58, %v11336_v58 }
 0x584   :  { %v6679_v32 = vadd.f32 %v6678_v21, %v6616_v44  ;;  %v6623_v21 = vmul.f32 %v11339_v3, %v11339_v3 }
 0x586   :  { %v6680_v57 = vadd.f32 %v6679_v32, %v6617_v47  ;;  %v6624_v32 = vmul.f32 %v11342_v39, %v11342_v39 }
 0x588   :  { %v6681_v34 = vadd.f32 %v6680_v57, %v6618_v8 }
 0x58a   :  { %v6682_v0 = vadd.f32 %v6681_v34, %v6619_v1 }
 0x58c   :  { %v6683_v54 = vadd.f32 %v6682_v0, %v6620_v14 }
 0x58e   :  { %v6684_v44 = vadd.f32 %v6683_v54, %v6621_v61 }
 0x590   :  { %v6685_v47 = vadd.f32 %v6684_v44, %v6622_v12  ;;  %v6707_v44 = vlaneseq }
 0x592   :  { %v6686_v8 = vadd.f32 %v6685_v47, %v6623_v21  ;;  %v6708_v21 = vshrl.u32 %v6707_v44, 7  ;;  %v13233_v44 = vld [vmem:[#allocation23_spill] sm:$0xff] }
 0x594   :  { %v6687_v57 = vadd.f32 %v6686_v8, %v6624_v32 }
 0x596   :  { %v6688_v33 = vrot.slane %v6687_v57, 4 }
 0x598   :  { %v6689_v53 = vadd.f32 %v6688_v33, %v6687_v57  ;;  %v6695_v33 = vld [vmem:[%s12953_s2] sm:$0x1] }
 0x59a   :  { %v6690_v1 = vrot.slane %v6689_v53, 2 }
 0x59c   :  { %v6691_v34 = vadd.f32 %v6690_v1, %v6689_v53  ;;  %v13227_v1 = vld [vmem:[#allocation19_spill] sm:$0xff] }
 0x59e   :  { %v6692_v25 = vrot.slane %v6691_v34, 1 }
 0x5a0   :  { %v6693_v4 = vadd.f32 %v6692_v25, %v6691_v34  ;;  %v6709_v25 = vsub.s32 0, %v6708_v21  ;;  %v13228_v34 = vld [vmem:[#allocation20_spill] sm:$0xff] }
 0x5a2   :  { %v6694_v14 = vmul.f32 0.001953125, %v6693_v4 }
 0x5a4   :  { %v6696_v0 = vadd.f32 1e-05, %v6694_v14  ;;  %v13229_v14 = vld [vmem:[#allocation21_spill] sm:$0xff] }
 0x5a6   :  { %8452 = vrsqrt.f32 %v6696_v0  ;;  %vm6699_vm0 = vcmp.eq.f32.partialorder %v6696_v0, inf  ;;  %v6702_v3 = vand.u32 2147483648, %v6696_v0  ;;  %vm6701_vm1 = vcmp.eq.f32.partialorder %v6696_v0, 0.0 }
 0x5b3   :  { %v8453_v58 = vpop.eup %8452 }
 0x5b4   :  { %v6698_v61 = vmul.f32 %v8453_v58, %v6696_v0 }
 0x5b6   :  { %v6700_v54 = vsel %vm6699_vm0, %v6696_v0, %v6698_v61  ;;  %v13230_v0 = vld [vmem:[#allocation27_spill] sm:$0xff]  ;;  %v13231_v61 = vld [vmem:[#allocation28_spill] sm:$0xff] }
 0x5b7   :  { %v6703_v12 = vsel %vm6701_vm1, %v6702_v3, %v6700_v54  ;;  %v13232_v54 = vld [vmem:[#allocation22_spill] sm:$0xff] }
 0x5b8   :  { %8454 = vrcp.f32 %v6703_v12 }
 0x5c5   :  { %v8455_v47 = vpop.eup %8454 }
 0x5c6   :  { %v6705_v53 = vmul.f32 %v8455_v47, %v6695_v33  ;;  %v13234_v47 = vld [vmem:[#allocation24_spill] sm:$0xff] }
 0x5c8   :  { %v11695_v4 = vrot.slane %v6705_v53, %v6709_v25  ;;  %v13235_v53 = vld [vmem:[#allocation25_spill] sm:$0xff] }
 0x5ca   :  { %v11699_v58 = vmul.f32 %v11695_v4, %v11346_v51  ;;  %v11703_v32 = vmul.f32 %v11695_v4, %v11350_v9  ;;  %v11707_v3 = vmul.f32 %v11695_v4, %v11354_v19  ;;  %v11711_v8 = vmul.f32 %v11695_v4, %v11362_v41 }
 0x5cb   :  { %v11715_v57 = vmul.f32 %v11695_v4, %v11366_v17  ;;  %v11719_v51 = vmul.f32 %v11695_v4, %v11372_v36  ;;  %v11723_v9 = vmul.f32 %v11695_v4, %v11378_v55  ;;  %v11727_v19 = vmul.f32 %v11695_v4, %v11384_v22 }
 0x5cc   :  { %v11731_v41 = vmul.f32 %v11695_v4, %v11390_v63  ;;  %v11735_v17 = vmul.f32 %v11695_v4, %v11396_v48  ;;  %v11739_v36 = vmul.f32 %v11695_v4, %v11402_v45  ;;  %v11743_v55 = vmul.f32 %v11695_v4, %v11408_v42 }
 0x5cd   :  { %v11747_v22 = vmul.f32 %v11695_v4, %v11414_v27  ;;  %v11751_v63 = vmul.f32 %v11695_v4, %v11420_v5  ;;  %v11755_v48 = vmul.f32 %v11695_v4, %v11426_v50  ;;  %v11759_v45 = vmul.f32 %v11695_v4, %v11432_v28 }
 0x5ce   :  { %v11763_v42 = vmul.f32 %v11695_v4, %v11438_v6  ;;  %v11767_v27 = vmul.f32 %v11695_v4, %v11444_v35  ;;  %v11771_v5 = vmul.f32 %v11695_v4, %v11450_v11  ;;  %v11775_v50 = vmul.f32 %v11695_v4, %v11456_v62 }
 0x5cf   :  { %v11779_v28 = vmul.f32 %v11695_v4, %v11462_v37  ;;  %v11783_v6 = vmul.f32 %v11695_v4, %v11468_v40  ;;  %v11787_v35 = vmul.f32 %v11695_v4, %v11474_v31  ;;  %v11791_v11 = vmul.f32 %v11695_v4, %v11480_v23 }
 0x5d0   :  { %v11795_v62 = vmul.f32 %v11695_v4, %v11486_v29  ;;  %v11799_v37 = vmul.f32 %v11695_v4, %v11492_v24  ;;  %v11803_v40 = vmul.f32 %v11695_v4, %v11498_v18  ;;  %v11807_v31 = vmul.f32 %v11695_v4, %v11504_v10 }
 0x5d1   :  { %v11811_v23 = vmul.f32 %v11695_v4, %v11510_v46  ;;  %v11815_v29 = vmul.f32 %v11695_v4, %v11516_v43  ;;  %v11819_v24 = vmul.f32 %v11695_v4, %v11522_v15  ;;  %v11823_v18 = vmul.f32 %v11695_v4, %v11528_v49 }
 0x5d2   :  { %v11827_v10 = vmul.f32 %v11695_v4, %v11534_v7  ;;  %v11831_v46 = vmul.f32 %v11695_v4, %v11540_v56  ;;  %v11835_v43 = vmul.f32 %v11695_v4, %v11546_v59  ;;  %v11839_v15 = vmul.f32 %v11695_v4, %v11552_v20 }
 0x5d3   :  { %v11843_v49 = vmul.f32 %v11695_v4, %v11558_v13  ;;  %v11847_v7 = vmul.f32 %v11695_v4, %v11564_v52  ;;  %v11851_v56 = vmul.f32 %v11695_v4, %v13227_v1  ;;  %v11855_v59 = vmul.f32 %v11695_v4, %v13228_v34  ;;  %v13236_v1 = vld [vmem:[#allocation26_spill] sm:$0xff] }
 0x5d4   :  { %v11859_v20 = vmul.f32 %v11695_v4, %v13229_v14  ;;  %v11863_v13 = vmul.f32 %v11695_v4, %v13230_v0  ;;  %v11867_v52 = vmul.f32 %v11695_v4, %v13231_v61  ;;  %v11871_v12 = vmul.f32 %v11695_v4, %v13232_v54  ;;  %v13237_v14 = vld [vmem:[#allocation2_spill] sm:$0xff]  ;;  %v13238_v61 = vld [vmem:[#allocation3_spill] sm:$0xff] }
 0x5d5   :  { %v11875_v21 = vmul.f32 %v11695_v4, %v13233_v44  ;;  %v11879_v33 = vmul.f32 %v11695_v4, %v13234_v47  ;;  %v11883_v25 = vmul.f32 %v11695_v4, %v13235_v53  ;;  %v11887_v34 = vmul.f32 %v11695_v4, %v13236_v1  ;;  %v13240_v47 = vld [vmem:[#allocation4_spill] sm:$0xff] }
 0x5d6   :  { %v11891_v0 = vmul.f32 %v11695_v4, %v13237_v14  ;;  %v11895_v54 = vmul.f32 %v11695_v4, %v13238_v61  ;;  %v11899_v44 = vmul.f32 %v11695_v4, %v11642_v38  ;;  %v11903_v53 = vmul.f32 %v11695_v4, %v13240_v47  ;;  %v11920_v38 = vld [vmem:[%s12954_s3] ss:$0 sm:$0xff] }
 0x5d7   :  { %v11907_v1 = vmul.f32 %v11695_v4, %v11654_v30  ;;  %v11911_v14 = vmul.f32 %v11695_v4, %v11660_v16  ;;  %v11915_v61 = vmul.f32 %v11695_v4, %v11666_v60  ;;  %v11924_v47 = vmul.f32 %v11695_v4, %v11318_v2 }
 0x5d8   :  { %13239 = vst [vmem:[#allocation5_spill] sm:$0xff] %v11899_v44  ;;  %13241 = vst [vmem:[#allocation6_spill] sm:$0xff] %v11903_v53  ;;  %v11928_v30 = vmul.f32 %v11695_v4, %v11321_v26  ;;  %v13250_v44 = vld [vmem:[#allocation16_spill] sm:$0xff] }
 0x5d9   :  { %13242 = vst [vmem:[#allocation7_spill] sm:$0xff] %v11907_v1  ;;  %13243 = vst [vmem:[#allocation8_spill] sm:$0xff] %v11911_v14  ;;  %v13247_v1 = vld [vmem:[#allocation13_spill] sm:$0xff]  ;;  %v13248_v14 = vld [vmem:[#allocation14_spill] sm:$0xff]  ;;  %v11944_v2 = vmul.f32 %v11695_v4, %v13250_v44  ;;  %v11964_v44 = vadd.f32 %v11920_v38, %v11703_v32  ;;  %v11988_v32 = vadd.f32 %v11920_v38, %v11727_v19 }
 0x5da   :  { %13244 = vst [vmem:[#allocation9_spill] sm:$0xff] %v11915_v61  ;;  %13245 = vst [vmem:[#allocation10_spill] sm:$0xff] %v11924_v47  ;;  %v11932_v16 = vmul.f32 %v11695_v4, %v13247_v1  ;;  %v11936_v60 = vmul.f32 %v11695_v4, %v13248_v14  ;;  %v13249_v61 = vld [vmem:[#allocation15_spill] sm:$0xff]  ;;  %v13251_v47 = vld [vmem:[#allocation17_spill] sm:$0xff]  ;;  %v11956_v14 = vmul.f32 %v11695_v4, %v11342_v39 }
 0x5db   :  { %13246 = vst [vmem:[#allocation11_spill] sm:$0xff] %v11928_v30  ;;  %v11940_v53 = vmul.f32 %v11695_v4, %v13249_v61  ;;  %v11948_v26 = vmul.f32 %v11695_v4, %v13251_v47  ;;  %v13252_v30 = vld [vmem:[#allocation18_spill] sm:$0xff]  ;;  %v11960_v61 = vadd.f32 %v11920_v38, %v11699_v58  ;;  %v11968_v47 = vadd.f32 %v11920_v38, %v11707_v3 }
 0x5dc   :  { %v11952_v1 = vmul.f32 %v11695_v4, %v13252_v30  ;;  %v11972_v30 = vadd.f32 %v11920_v38, %v11711_v8  ;;  %v11976_v39 = vadd.f32 %v11920_v38, %v11715_v57  ;;  %v11980_v4 = vadd.f32 %v11920_v38, %v11719_v51 }
 0x5dd   :  { %v11984_v58 = vadd.f32 %v11920_v38, %v11723_v9  ;;  %v11992_v3 = vadd.f32 %v11920_v38, %v11731_v41  ;;  %v11996_v8 = vadd.f32 %v11920_v38, %v11735_v17  ;;  %v12000_v57 = vadd.f32 %v11920_v38, %v11739_v36 }
 0x5de   :  { %v12004_v51 = vadd.f32 %v11920_v38, %v11743_v55  ;;  %v12008_v9 = vadd.f32 %v11920_v38, %v11747_v22  ;;  %v12012_v19 = vadd.f32 %v11920_v38, %v11751_v63  ;;  %v12016_v41 = vadd.f32 %v11920_v38, %v11755_v48 }
 0x5df   :  { %v12020_v17 = vadd.f32 %v11920_v38, %v11759_v45  ;;  %v12024_v36 = vadd.f32 %v11920_v38, %v11763_v42  ;;  %v12028_v55 = vadd.f32 %v11920_v38, %v11767_v27  ;;  %v12032_v22 = vadd.f32 %v11920_v38, %v11771_v5 }
 0x5e0   :  { %v12036_v63 = vadd.f32 %v11920_v38, %v11775_v50  ;;  %v12040_v48 = vadd.f32 %v11920_v38, %v11779_v28  ;;  %v12044_v45 = vadd.f32 %v11920_v38, %v11783_v6  ;;  %v12048_v42 = vadd.f32 %v11920_v38, %v11787_v35 }
 0x5e1   :  { %v12052_v27 = vadd.f32 %v11920_v38, %v11791_v11  ;;  %v12056_v5 = vadd.f32 %v11920_v38, %v11795_v62  ;;  %v12060_v50 = vadd.f32 %v11920_v38, %v11799_v37  ;;  %v12064_v28 = vadd.f32 %v11920_v38, %v11803_v40 }
 0x5e2   :  { %v12068_v6 = vadd.f32 %v11920_v38, %v11807_v31  ;;  %v12072_v35 = vadd.f32 %v11920_v38, %v11811_v23  ;;  %v12076_v11 = vadd.f32 %v11920_v38, %v11815_v29  ;;  %v12080_v62 = vadd.f32 %v11920_v38, %v11819_v24 }
 0x5e3   :  { %v12084_v37 = vadd.f32 %v11920_v38, %v11823_v18  ;;  %v12088_v40 = vadd.f32 %v11920_v38, %v11827_v10  ;;  %v12092_v31 = vadd.f32 %v11920_v38, %v11831_v46  ;;  %v12096_v23 = vadd.f32 %v11920_v38, %v11835_v43 }
 0x5e4   :  { %v12100_v29 = vadd.f32 %v11920_v38, %v11839_v15  ;;  %v12104_v24 = vadd.f32 %v11920_v38, %v11843_v49  ;;  %v12108_v18 = vadd.f32 %v11920_v38, %v11847_v7  ;;  %v12112_v10 = vadd.f32 %v11920_v38, %v11851_v56 }
 0x5e5   :  { %v12116_v46 = vadd.f32 %v11920_v38, %v11855_v59  ;;  %v12120_v43 = vadd.f32 %v11920_v38, %v11859_v20  ;;  %v12124_v15 = vadd.f32 %v11920_v38, %v11863_v13  ;;  %v12128_v49 = vadd.f32 %v11920_v38, %v11867_v52 }
 0x5e6   :  { %v12132_v7 = vadd.f32 %v11920_v38, %v11871_v12  ;;  %v12136_v56 = vadd.f32 %v11920_v38, %v11875_v21  ;;  %v12140_v59 = vadd.f32 %v11920_v38, %v11879_v33  ;;  %v12144_v20 = vadd.f32 %v11920_v38, %v11883_v25  ;;  %v13259_v21 = vld [vmem:[#allocation5_spill] sm:$0xff] }
 0x5e7   :  { %13253 = vst [vmem:[#allocation12_spill] sm:$0xff] %v12124_v15  ;;  %v12148_v13 = vadd.f32 %v11920_v38, %v11887_v34  ;;  %v12152_v52 = vadd.f32 %v11920_v38, %v11891_v0  ;;  %v12156_v12 = vadd.f32 %v11920_v38, %v11895_v54  ;;  %v12160_v33 = vadd.f32 %v11920_v38, %v13259_v21 }
 0x5e8   :  { %13254 = vst [vmem:[#allocation19_spill] sm:$0xff] %v12140_v59  ;;  %13255 = vst [vmem:[#allocation20_spill] sm:$0xff] %v12144_v20  ;;  %v13261_v59 = vld [vmem:[#allocation6_spill] sm:$0xff]  ;;  %v13263_v20 = vld [vmem:[#allocation7_spill] sm:$0xff]  ;;  %vm6847_vm2 = vcmp.ge.f32.partialorder %v11960_v61, 0.0  ;;  %vm6848_vm3 = vcmp.ge.f32.partialorder %v11964_v44, 0.0 }
 0x5e9   :  { %13256 = vst [vmem:[#allocation21_spill] sm:$0xff] %v12148_v13  ;;  %13257 = vst [vmem:[#allocation27_spill] sm:$0xff] %v12152_v52  ;;  %v12164_v25 = vadd.f32 %v11920_v38, %v13261_v59  ;;  %v12168_v34 = vadd.f32 %v11920_v38, %v13263_v20  ;;  %v13265_v13 = vld [vmem:[#allocation8_spill] sm:$0xff]  ;;  %v13267_v52 = vld [vmem:[#allocation9_spill] sm:$0xff]  ;;  %v12188_v20 = vadd.f32 %v11920_v38, %v11932_v16  ;;  %vm6849_vm4 = vcmp.ge.f32.partialorder %v11968_v47, 0.0 }
 0x5ea   :  { %13258 = vst [vmem:[#allocation28_spill] sm:$0xff] %v12156_v12  ;;  %13260 = vst [vmem:[#allocation22_spill] sm:$0xff] %v12160_v33  ;;  %v12172_v0 = vadd.f32 %v11920_v38, %v13265_v13  ;;  %v12176_v54 = vadd.f32 %v11920_v38, %v13267_v52  ;;  %v13269_v12 = vld [vmem:[#allocation10_spill] sm:$0xff]  ;;  %v13271_v33 = vld [vmem:[#allocation11_spill] sm:$0xff]  ;;  %v12192_v13 = vadd.f32 %v11920_v38, %v11936_v60  ;;  %vm6850_vm5 = vcmp.ge.f32.partialorder %v11972_v30, 0.0 }
 0x5eb   :  { %13262 = vst [vmem:[#allocation23_spill] sm:$0xff] %v12164_v25  ;;  %13264 = vst [vmem:[#allocation24_spill] sm:$0xff] %v12168_v34  ;;  %v12180_v21 = vadd.f32 %v11920_v38, %v13269_v12  ;;  %v12184_v59 = vadd.f32 %v11920_v38, %v13271_v33  ;;  %v12196_v52 = vadd.f32 %v11920_v38, %v11940_v53  ;;  %vm6851_vm6 = vcmp.ge.f32.partialorder %v11976_v39, 0.0 }
 0x5ec   :  { %13266 = vst [vmem:[#allocation25_spill] sm:$0xff] %v12172_v0  ;;  %13268 = vst [vmem:[#allocation26_spill] sm:$0xff] %v12176_v54  ;;  %v12200_v12 = vadd.f32 %v11920_v38, %v11944_v2  ;;  %v12204_v33 = vadd.f32 %v11920_v38, %v11948_v26  ;;  %vm6852_vm7 = vcmp.ge.f32.partialorder %v11980_v4, 0.0  ;;  %vm6853_vm8 = vcmp.ge.f32.partialorder %v11984_v58, 0.0 }
 0x5ed   :  { %13270 = vst [vmem:[#allocation2_spill] sm:$0xff] %v12180_v21  ;;  %13272 = vst [vmem:[#allocation3_spill] sm:$0xff] %v12184_v59  ;;  %vm6854_vm9 = vcmp.ge.f32.partialorder %v11988_v32, 0.0  ;;  %vm6855_vm10 = vcmp.ge.f32.partialorder %v11992_v3, 0.0  ;;  %v12217_v53 = vadd.f32 %v11920_v38, %v11952_v1  ;;  %vm6856_vm11 = vcmp.ge.f32.partialorder %v11996_v8, 0.0 }
 0x5ee   :  { %13273 = vst [vmem:[#allocation4_spill] sm:$0xff] %v12188_v20  ;;  %13274 = vst [vmem:[#allocation13_spill] sm:$0xff] %v12192_v13  ;;  %v6911_v16 = vmul.f32 0.2, %v11960_v61  ;;  %v6912_v60 = vmul.f32 0.2, %v11964_v44  ;;  %v12225_v26 = vadd.f32 %v11920_v38, %v11956_v14 }
 0x5ef   :  { %13275 = vst [vmem:[#allocation14_spill] sm:$0xff] %v12196_v52  ;;  %13276 = vst [vmem:[#allocation15_spill] sm:$0xff] %v12200_v12  ;;  %v6913_v2 = vmul.f32 0.2, %v11968_v47  ;;  %vm6857_vm12 = vcmp.ge.f32.partialorder %v12000_v57, 0.0  ;;  %vm6858_vm13 = vcmp.ge.f32.partialorder %v12004_v51, 0.0 }
 0x5f0   :  { %13277 = vst [vmem:[#allocation16_spill] sm:$0xff] %v12204_v33  ;;  %13278 = vst [vmem:[#allocation17_spill] sm:$0xff] %v12217_v53  ;;  %v6914_v33 = vmul.f32 0.2, %v11972_v30  ;;  %v6915_v12 = vmul.f32 0.2, %v11976_v39  ;;  %v12238_v38 = vsel %vm6847_vm2, %v11960_v61, %v6911_v16  ;;  %v12249_v59 = vsel %vm6848_vm3, %v11964_v44, %v6912_v60 }
 0x5f1   :  { %13279 = vst [vmem:[#allocation18_spill] sm:$0xff] %v12225_v26  ;;  %v6916_v1 = vmul.f32 0.2, %v11980_v4  ;;  %v6917_v53 = vmul.f32 0.2, %v11984_v58  ;;  %13280 = vst [vmem:[#allocation5_spill] sm:$0xff] %v12238_v38  ;;  %v12264_v38 = vsel %vm6849_vm4, %v11968_v47, %v6913_v2 }
 0x5f2   :  { %v6918_v52 = vmul.f32 0.2, %v11988_v32  ;;  %v6919_v13 = vmul.f32 0.2, %v11992_v3  ;;  %vm6859_vm14 = vcmp.ge.f32.partialorder %v12008_v9, 0.0  ;;  %13281 = vst [vmem:[#allocation6_spill] sm:$0xff] %v12249_v59  ;;  %v12279_v54 = vsel %vm6850_vm5, %v11972_v30, %v6914_v33 }
 0x5f3   :  { %v6920_v14 = vmul.f32 0.2, %v11996_v8  ;;  %v6921_v26 = vmul.f32 0.2, %v12000_v57  ;;  %v12244_v20 = vmul.f32 0.2, %v12004_v51 }
 0x5f4   :  { %vm6860_vm15 = vcmp.ge.f32.partialorder %v12012_v19, 0.0  ;;  %v12253_v21 = vmul.f32 0.2, %v12008_v9  ;;  %v12256_v61 = vmul.f32 0.2, %v12012_v19  ;;  %13282 = vst [vmem:[#allocation7_spill] sm:$0xff] %v12264_v38 }
 0x5f5   :  { %v12259_v16 = vmul.f32 0.2, %v12016_v41  ;;  %vm6861_vm0 = vcmp.ge.f32.partialorder %v12016_v41, 0.0  ;;  %v12268_v44 = vmul.f32 0.2, %v12020_v17  ;;  %13284 = vst [vmem:[#allocation9_spill] sm:$0xff] %v12279_v54 }
 0x5f6   :  { %v12271_v60 = vmul.f32 0.2, %v12024_v36  ;;  %v12274_v59 = vmul.f32 0.2, %v12028_v55  ;;  %vm6862_vm1 = vcmp.ge.f32.partialorder %v12020_v17, 0.0  ;;  %vm6863_vm2 = vcmp.ge.f32.partialorder %v12024_v36, 0.0 }
 0x5f7   :  { %v12283_v47 = vmul.f32 0.2, %v12032_v22  ;;  %v12286_v2 = vmul.f32 0.2, %v12036_v63  ;;  %v12289_v38 = vmul.f32 0.2, %v12040_v48 }
 0x5f8   :  { %13283 = vst [vmem:[#allocation8_spill] sm:$0xff] %v12274_v59  ;;  %v12294_v59 = vsel %vm6851_vm6, %v11976_v39, %v6915_v12  ;;  %v12298_v30 = vmul.f32 0.2, %v12044_v45  ;;  %v12301_v33 = vmul.f32 0.2, %v12048_v42  ;;  %vm6864_vm3 = vcmp.ge.f32.partialorder %v12028_v55, 0.0 }
 0x5f9   :  { %13285 = vst [vmem:[#allocation10_spill] sm:$0xff] %v12289_v38  ;;  %13286 = vst [vmem:[#allocation11_spill] sm:$0xff] %v12294_v59  ;;  %v12304_v54 = vmul.f32 0.2, %v12052_v27  ;;  %v12309_v38 = vsel %vm6852_vm7, %v11980_v4, %v6916_v1  ;;  %v12313_v39 = vmul.f32 0.2, %v12056_v5 }
 0x5fa   :  { %13288 = vst [vmem:[#allocation30_spill] sm:$0xff] %v12309_v38  ;;  %v12316_v12 = vmul.f32 0.2, %v12060_v50  ;;  %v12319_v59 = vmul.f32 0.2, %v12064_v28  ;;  %vm6865_vm4 = vcmp.ge.f32.partialorder %v12032_v22, 0.0 }
 0x5fb   :  { %13287 = vst [vmem:[#allocation29_spill] sm:$0xff] %v12304_v54  ;;  %v12324_v54 = vsel %vm6853_vm8, %v11984_v58, %v6917_v53  ;;  %v12328_v4 = vmul.f32 0.2, %v12068_v6  ;;  %v12331_v1 = vmul.f32 0.2, %v12072_v35  ;;  %vm6866_vm5 = vcmp.ge.f32.partialorder %v12036_v63, 0.0 }
 0x5fc   :  { %13289 = vst [vmem:[#allocation31_spill] sm:$0xff] %v12319_v59  ;;  %13290 = vst [vmem:[#allocation32_spill] sm:$0xff] %v12324_v54  ;;  %v12334_v38 = vmul.f32 0.2, %v12076_v11  ;;  %v12339_v59 = vsel %vm6854_vm9, %v11988_v32, %v6918_v52  ;;  %v12345_v58 = vmul.f32 0.2, %v12080_v62  ;;  %v12356_v32 = vsel %vm6855_vm10, %v11992_v3, %v6919_v13 }
 0x5fd   :  { %13291 = vst [vmem:[#allocation33_spill] sm:$0xff] %v12339_v59  ;;  %v12348_v53 = vmul.f32 0.2, %v12084_v37  ;;  %v12351_v54 = vmul.f32 0.2, %v12088_v40  ;;  %13293 = vst [vmem:[#allocation35_spill] sm:$0xff] %v12356_v32  ;;  %v12374_v3 = vsel %vm6856_vm11, %v11996_v8, %v6920_v14  ;;  %v12392_v8 = vsel %vm6857_vm12, %v12000_v57, %v6921_v26 }
 0x5fe   :  { %vm6869_vm8 = vcmp.ge.f32.partialorder %v12048_v42, 0.0  ;;  %v12363_v52 = vmul.f32 0.2, %v12092_v31  ;;  %v12366_v59 = vmul.f32 0.2, %v12096_v23  ;;  %13295 = vst [vmem:[#allocation37_spill] sm:$0xff] %v12374_v3  ;;  %v12411_v57 = vsel %vm6858_vm13, %v12004_v51, %v12244_v20 }
 0x5ff   :  { %13292 = vst [vmem:[#allocation34_spill] sm:$0xff] %v12351_v54  ;;  %v12369_v54 = vmul.f32 0.2, %v12100_v29  ;;  %vm6873_vm10 = vcmp.ge.f32.partialorder %v12064_v28, 0.0  ;;  %v12381_v13 = vmul.f32 0.2, %v12104_v24  ;;  %v12430_v51 = vsel %vm6859_vm14, %v12008_v9, %v12253_v21 }
 0x600   :  { %v12384_v32 = vmul.f32 0.2, %v12108_v18  ;;  %13297 = vst [vmem:[#allocation39_spill] sm:$0xff] %v12392_v8  ;;  %vm6877_vm11 = vcmp.ge.f32.partialorder %v12080_v62, 0.0  ;;  %v12399_v14 = vmul.f32 0.2, %v12116_v46  ;;  %v12449_v9 = vsel %vm6860_vm15, %v12012_v19, %v12256_v61 }
 0x601   :  { %13294 = vst [vmem:[#allocation36_spill] sm:$0xff] %v12369_v54  ;;  %v12387_v54 = vmul.f32 0.2, %v12112_v10  ;;  %v12402_v3 = vmul.f32 0.2, %v12120_v43  ;;  %13300 = vst [vmem:[#allocation42_spill] sm:$0xff] %v12411_v57  ;;  %v12468_v19 = vsel %vm6861_vm0, %v12016_v41, %v12259_v16  ;;  %v12487_v41 = vsel %vm6862_vm1, %v12020_v17, %v12268_v44 }
 0x602   :  { %vm6881_vm12 = vcmp.ge.f32.partialorder %v12096_v23, 0.0  ;;  %v12418_v26 = vmul.f32 0.2, %v12128_v49  ;;  %v12421_v8 = vmul.f32 0.2, %v12132_v7  ;;  %13304 = vst [vmem:[#allocation46_spill] sm:$0xff] %v12430_v51  ;;  %v12500_v17 = vsel %vm6863_vm2, %v12024_v36, %v12271_v60 }
 0x603   :  { %13296 = vst [vmem:[#allocation38_spill] sm:$0xff] %v12387_v54  ;;  %13298 = vst [vmem:[#allocation40_spill] sm:$0xff] %v12402_v3  ;;  %v12405_v54 = vmul.f32 0.2, %v12124_v15  ;;  %vm6885_vm13 = vcmp.ge.f32.partialorder %v12112_v10, 0.0  ;;  %v13305_v20 = vld [vmem:[#allocation19_spill] sm:$0xff] }
 0x604   :  { %13301 = vst [vmem:[#allocation43_spill] sm:$0xff] %v12418_v26  ;;  %13302 = vst [vmem:[#allocation44_spill] sm:$0xff] %v12421_v8  ;;  %v12437_v57 = vmul.f32 0.2, %v13305_v20  ;;  %v13307_v8 = vld [vmem:[#allocation20_spill] sm:$0xff]  ;;  %vm6889_vm14 = vcmp.ge.f32.partialorder %v12128_v49, 0.0 }
 0x605   :  { %13299 = vst [vmem:[#allocation41_spill] sm:$0xff] %v12405_v54  ;;  %v12424_v54 = vmul.f32 0.2, %v12136_v56  ;;  %v12440_v26 = vmul.f32 0.2, %v13307_v8  ;;  %13311 = vst [vmem:[#allocation47_spill] sm:$0xff] %v12449_v9 }
 0x606   :  { %13306 = vst [vmem:[#allocation19_spill] sm:$0xff] %v12437_v57  ;;  %v13312_v21 = vld [vmem:[#allocation27_spill] sm:$0xff]  ;;  %13317 = vst [vmem:[#allocation49_spill] sm:$0xff] %v12468_v19  ;;  %vm6893_vm15 = vcmp.ge.f32.partialorder %v13307_v8, 0.0  ;;  %v12475_v61 = vmul.f32 0.2, %v12164_v25 }
 0x607   :  { %13303 = vst [vmem:[#allocation45_spill] sm:$0xff] %v12424_v54  ;;  %13308 = vst [vmem:[#allocation20_spill] sm:$0xff] %v12440_v26  ;;  %v13309_v54 = vld [vmem:[#allocation21_spill] sm:$0xff]  ;;  %v12456_v51 = vmul.f32 0.2, %v13312_v21  ;;  %v13313_v26 = vld [vmem:[#allocation28_spill] sm:$0xff] }
 0x608   :  { %v12443_v3 = vmul.f32 0.2, %v13309_v54  ;;  %v12459_v57 = vmul.f32 0.2, %v13313_v26  ;;  %13318 = vst [vmem:[#allocation50_spill] sm:$0xff] %v12475_v61  ;;  %13321 = vst [vmem:[#allocation53_spill] sm:$0xff] %v12487_v41 }
 0x609   :  { %v12478_v9 = vmul.f32 0.2, %v12168_v34  ;;  %v13322_v16 = vld [vmem:[#allocation26_spill] sm:$0xff]  ;;  %v13324_v26 = vld [vmem:[#allocation3_spill] sm:$0xff]  ;;  %13325 = vst [vmem:[#allocation54_spill] sm:$0xff] %v12500_v17  ;;  %v13326_v44 = vld [vmem:[#allocation4_spill] sm:$0xff] }
 0x60a   :  { %13310 = vst [vmem:[#allocation21_spill] sm:$0xff] %v12443_v3  ;;  %13314 = vst [vmem:[#allocation27_spill] sm:$0xff] %v12459_v57  ;;  %v13315_v3 = vld [vmem:[#allocation22_spill] sm:$0xff]  ;;  %v6965_v19 = vmul.f32 0.2, %v13322_v16  ;;  %vm6901_vm1 = vcmp.ge.f32.partialorder %v13322_v16, 0.0 }
 0x60b   :  { %v12462_v15 = vmul.f32 0.2, %v13315_v3  ;;  %13319 = vst [vmem:[#allocation51_spill] sm:$0xff] %v12478_v9  ;;  %vm6897_vm0 = vcmp.ge.f32.partialorder %v13315_v3, 0.0  ;;  %v13323_v9 = vld [vmem:[#allocation2_spill] sm:$0xff]  ;;  %v13329_v57 = vld [vmem:[#allocation8_spill] sm:$0xff] }
 0x60c   :  { %v6966_v61 = vmul.f32 0.2, %v13323_v9  ;;  %v6968_v41 = vmul.f32 0.2, %v13326_v44  ;;  %v13328_v25 = vld [vmem:[#allocation14_spill] sm:$0xff]  ;;  %v12513_v36 = vsel %vm6864_vm3, %v12028_v55, %v13329_v57  ;;  %v13331_v60 = vld [vmem:[#allocation15_spill] sm:$0xff]  ;;  %v12526_v55 = vsel %vm6865_vm4, %v12032_v22, %v12283_v47 }
 0x60d   :  { %13316 = vst [vmem:[#allocation48_spill] sm:$0xff] %v12462_v15  ;;  %v12481_v15 = vmul.f32 0.2, %v12172_v0  ;;  %v13327_v0 = vld [vmem:[#allocation13_spill] sm:$0xff]  ;;  %v6970_v3 = vmul.f32 0.2, %v13328_v25  ;;  %v12553_v47 = vsel %vm6869_vm8, %v12048_v42, %v12301_v33 }
 0x60e   :  { %v6969_v34 = vmul.f32 0.2, %v13327_v0  ;;  %13330 = vst [vmem:[#allocation13_spill] sm:$0xff] %v12513_v36  ;;  %vm6905_vm2 = vcmp.ge.f32.partialorder %v13327_v0, 0.0  ;;  %vm6907_vm6 = vcmp.ge.f32.partialorder %v13331_v60, 0.0  ;;  %v13332_v17 = vld [vmem:[#allocation16_spill] sm:$0xff] }
 0x60f   :  { %13320 = vst [vmem:[#allocation52_spill] sm:$0xff] %v12481_v15  ;;  %v6967_v15 = vmul.f32 0.2, %v13324_v26  ;;  %v6971_v44 = vmul.f32 0.2, %v13331_v60  ;;  %v13333_v9 = vld [vmem:[#allocation17_spill] sm:$0xff]  ;;  %v12535_v60 = vsel %vm6866_vm5, %v12036_v63, %v12286_v2 }
 0x610   :  { %v6972_v26 = vmul.f32 0.2, %v13332_v17  ;;  %v6973_v16 = vmul.f32 0.2, %v13333_v9  ;;  %vm6909_vm3 = vcmp.ge.f32.partialorder %v13333_v9, 0.0  ;;  %v13334_v57 = vld [vmem:[#allocation18_spill] sm:$0xff] }
 0x611   :  { %vm6910_vm7 = vcmp.ge.f32.partialorder %v13334_v57, 0.0  ;;  %v6974_v36 = vmul.f32 0.2, %v13334_v57  ;;  %v13335_v17 = vld [vmem:[#allocation10_spill] sm:$0xff]  ;;  %vm13336_vm9 = vcmp.ge.f32.partialorder %v12040_v48, 0.0  ;;  %vm13337_vm4 = vcmp.ge.f32.partialorder %v12044_v45, 0.0 }
 0x612   :  { %v12541_v25 = vsel %vm13336_vm9, %v12040_v48, %v13335_v17  ;;  %v12547_v22 = vsel %vm13337_vm4, %v12044_v45, %v12298_v30  ;;  %v13338_v63 = vld [vmem:[#allocation29_spill] sm:$0xff]  ;;  %vm13339_vm5 = vcmp.ge.f32.partialorder %v12052_v27, 0.0  ;;  %vm13340_vm9 = vcmp.ge.f32.partialorder %v12056_v5, 0.0  ;;  %v13342_v42 = vld [vmem:[#allocation31_spill] sm:$0xff]  ;;  %v13373_v17 = vld [vmem:[#allocation28_spill] sm:$0xff] }
 0x613   :  { %v12559_v2 = vsel %vm13339_vm5, %v12052_v27, %v13338_v63  ;;  %v12565_v48 = vsel %vm13340_vm9, %v12056_v5, %v12313_v39  ;;  %vm13341_vm4 = vcmp.ge.f32.partialorder %v12060_v50, 0.0  ;;  %v12577_v30 = vsel %vm6873_vm10, %v12064_v28, %v13342_v42  ;;  %v13376_v42 = vld [vmem:[#allocation22_spill] sm:$0xff] }
 0x614   :  { %v12571_v45 = vsel %vm13341_vm4, %v12060_v50, %v12316_v12  ;;  %vm13343_vm8 = vcmp.ge.f32.partialorder %v12068_v6, 0.0  ;;  %vm13344_vm5 = vcmp.ge.f32.partialorder %v12072_v35, 0.0  ;;  %vm13345_vm9 = vcmp.ge.f32.partialorder %v12076_v11, 0.0  ;;  %v13359_v12 = vld [vmem:[#allocation12_spill] sm:$0xff] }
 0x615   :  { %v12583_v27 = vsel %vm13343_vm8, %v12068_v6, %v12328_v4  ;;  %v12589_v5 = vsel %vm13344_vm5, %v12072_v35, %v12331_v1  ;;  %v12595_v50 = vsel %vm13345_vm9, %v12076_v11, %v12334_v38  ;;  %v12601_v28 = vsel %vm6877_vm11, %v12080_v62, %v12345_v58  ;;  %v13347_v35 = vld [vmem:[#allocation34_spill] sm:$0xff] }
 0x616   :  { %vm13346_vm10 = vcmp.ge.f32.partialorder %v12084_v37, 0.0  ;;  %vm13348_vm4 = vcmp.ge.f32.partialorder %v12088_v40, 0.0  ;;  %vm13349_vm8 = vcmp.ge.f32.partialorder %v12092_v31, 0.0  ;;  %v12625_v62 = vsel %vm6881_vm12, %v12096_v23, %v12366_v59  ;;  %v13354_v23 = vld [vmem:[#allocation38_spill] sm:$0xff] }
 0x617   :  { %v12607_v6 = vsel %vm13346_vm10, %v12084_v37, %v12348_v53  ;;  %v12613_v33 = vsel %vm13348_vm4, %v12088_v40, %v13347_v35  ;;  %v12619_v11 = vsel %vm13349_vm8, %v12092_v31, %v12363_v52  ;;  %v13350_v37 = vld [vmem:[#allocation36_spill] sm:$0xff]  ;;  %vm13351_vm11 = vcmp.ge.f32.partialorder %v12100_v29, 0.0 }
 0x618   :  { %v12631_v38 = vsel %vm13351_vm11, %v12100_v29, %v13350_v37  ;;  %vm13352_vm5 = vcmp.ge.f32.partialorder %v12104_v24, 0.0  ;;  %vm13353_vm9 = vcmp.ge.f32.partialorder %v12108_v18, 0.0  ;;  %v12649_v59 = vsel %vm6885_vm13, %v12112_v10, %v13354_v23  ;;  %v13361_v10 = vld [vmem:[#allocation43_spill] sm:$0xff] }
 0x619   :  { %v12637_v40 = vsel %vm13352_vm5, %v12104_v24, %v12381_v13  ;;  %v12643_v31 = vsel %vm13353_vm9, %v12108_v18, %v12384_v32  ;;  %vm13355_vm12 = vcmp.ge.f32.partialorder %v12116_v46, 0.0  ;;  %v13356_v24 = vld [vmem:[#allocation40_spill] sm:$0xff]  ;;  %vm13357_vm10 = vcmp.ge.f32.partialorder %v12120_v43, 0.0  ;;  %v13358_v18 = vld [vmem:[#allocation41_spill] sm:$0xff]  ;;  %v13366_v32 = vld [vmem:[#allocation19_spill] sm:$0xff] }
 0x61a   :  { %v12655_v29 = vsel %vm13355_vm12, %v12116_v46, %v12399_v14  ;;  %v12661_v39 = vsel %vm13357_vm10, %v12120_v43, %v13356_v24  ;;  %vm13360_vm4 = vcmp.ge.f32.partialorder %v13359_v12, 0.0  ;;  %v12673_v1 = vsel %vm6889_vm14, %v12128_v49, %v13361_v10  ;;  %v13362_v46 = vld [vmem:[#allocation44_spill] sm:$0xff]  ;;  %v13364_v43 = vld [vmem:[#allocation45_spill] sm:$0xff]  ;;  %v13378_v37 = vld [vmem:[#allocation23_spill] sm:$0xff] }
 0x61b   :  { %v12667_v4 = vsel %vm13360_vm4, %v13359_v12, %v13358_v18  ;;  %vm13363_vm13 = vcmp.ge.f32.partialorder %v12132_v7, 0.0  ;;  %vm13365_vm8 = vcmp.ge.f32.partialorder %v12136_v56, 0.0  ;;  %vm13367_vm11 = vcmp.ge.f32.partialorder %v13305_v20, 0.0  ;;  %v13368_v49 = vld [vmem:[#allocation20_spill] sm:$0xff]  ;;  %v13384_v12 = vld [vmem:[#allocation25_spill] sm:$0xff] }
 0x61c   :  { %v12679_v58 = vsel %vm13363_vm13, %v12132_v7, %v13362_v46  ;;  %v12685_v53 = vsel %vm13365_vm8, %v12136_v56, %v13364_v43  ;;  %v12691_v52 = vsel %vm13367_vm11, %v13305_v20, %v13366_v32  ;;  %v12697_v13 = vsel %vm6893_vm15, %v13307_v8, %v13368_v49  ;;  %v13369_v7 = vld [vmem:[#allocation21_spill] sm:$0xff]  ;;  %v13372_v20 = vld [vmem:[#allocation27_spill] sm:$0xff]  ;;  %v13375_v8 = vld [vmem:[#allocation48_spill] sm:$0xff] }
 0x61d   :  { %vm13370_vm14 = vcmp.ge.f32.partialorder %v13309_v54, 0.0  ;;  %vm13371_vm5 = vcmp.ge.f32.partialorder %v13312_v21, 0.0  ;;  %vm13374_vm9 = vcmp.ge.f32.partialorder %v13373_v17, 0.0  ;;  %v12721_v35 = vsel %vm6897_vm0, %v13376_v42, %v13375_v8  ;;  %v13383_v18 = vld [vmem:[#allocation52_spill] sm:$0xff]  ;;  %v13386_v46 = vld [vmem:[#allocation26_spill] sm:$0xff] }
 0x61e   :  { %v12703_v14 = vsel %vm13370_vm14, %v13309_v54, %v13369_v7  ;;  %v12709_v56 = vsel %vm13371_vm5, %v13312_v21, %v12456_v51  ;;  %v12715_v63 = vsel %vm13374_vm9, %v13373_v17, %v13372_v20  ;;  %v13377_v54 = vld [vmem:[#allocation50_spill] sm:$0xff]  ;;  %vm13379_vm15 = vcmp.ge.f32.partialorder %v13378_v37, 0.0  ;;  %v13380_v51 = vld [vmem:[#allocation51_spill] sm:$0xff]  ;;  %v13381_v21 = vld [vmem:[#allocation24_spill] sm:$0xff] }
 0x61f   :  { %v12727_v23 = vsel %vm13379_vm15, %v13378_v37, %v13377_v54  ;;  %vm13382_vm12 = vcmp.ge.f32.partialorder %v13381_v21, 0.0  ;;  %vm13385_vm10 = vcmp.ge.f32.partialorder %v13384_v12, 0.0  ;;  %v12744_v43 = vsel %vm6901_vm1, %v13386_v46, %v6965_v19  ;;  %v13387_v32 = vld [vmem:[#allocation2_spill] sm:$0xff]  ;;  %v13389_v7 = vld [vmem:[#allocation3_spill] sm:$0xff]  ;;  %v13391_v17 = vld [vmem:[#allocation4_spill] sm:$0xff] }
 0x620   :  { %v12733_v24 = vsel %vm13382_vm12, %v13381_v21, %v13380_v51  ;;  %v12739_v10 = vsel %vm13385_vm10, %v13384_v12, %v13383_v18  ;;  %vm13388_vm0 = vcmp.ge.f32.partialorder %v13387_v32, 0.0  ;;  %vm13390_vm4 = vcmp.ge.f32.partialorder %v13389_v7, 0.0  ;;  %v13393_v42 = vld [vmem:[#allocation14_spill] sm:$0xff]  ;;  %v13395_v54 = vld [vmem:[#allocation15_spill] sm:$0xff]  ;;  %v13396_v37 = vld [vmem:[#allocation16_spill] sm:$0xff] }
 0x621   :  { %v12749_v49 = vsel %vm13388_vm0, %v13387_v32, %v6966_v61  ;;  %v12754_v20 = vsel %vm13390_vm4, %v13389_v7, %v6967_v15  ;;  %vm13392_vm13 = vcmp.ge.f32.partialorder %v13391_v17, 0.0  ;;  %v12764_v19 = vsel %vm6905_vm2, %v13327_v0, %v6969_v34  ;;  %v13401_v51 = vld [vmem:[#allocation6_spill] sm:$0xff]  ;;  %v13403_v18 = vld [vmem:[#allocation9_spill] sm:$0xff]  ;;  %v13404_v46 = vld [vmem:[#allocation11_spill] sm:$0xff] }
 0x622   :  { %v12759_v8 = vsel %vm13392_vm13, %v13391_v17, %v6968_v41  ;;  %vm13394_vm1 = vcmp.ge.f32.partialorder %v13393_v42, 0.0  ;;  %v12774_v15 = vsel %vm6907_vm6, %v13395_v54, %v6971_v44  ;;  %vm13397_vm8 = vcmp.ge.f32.partialorder %v13396_v37, 0.0  ;;  %v13402_v44 = vld [vmem:[#allocation7_spill] sm:$0xff]  ;;  %v13405_v32 = vld [vmem:[#allocation30_spill] sm:$0xff]  ;;  %v13406_v7 = vld [vmem:[#allocation32_spill] sm:$0xff] }
 0x623   :  { %v12769_v61 = vsel %vm13394_vm1, %v13393_v42, %v6970_v3  ;;  %v12779_v41 = vsel %vm13397_vm8, %v13396_v37, %v6972_v26  ;;  %v12784_v34 = vsel %vm6909_vm3, %v13333_v9, %v6973_v16  ;;  %v12789_v0 = vsel %vm6910_vm7, %v13334_v57, %v6974_v36  ;;  %v13400_v3 = vld [vmem:[#allocation5_spill] sm:$0xff]  ;;  %v13408_v54 = vld [vmem:[#allocation35_spill] sm:$0xff]  ;;  %v13412_v36 = vld [vmem:[#allocation46_spill] sm:$0xff] }
 0x624   :  { %13398 = vst [vmem:[#allocation8_spill] sm:$0xff] %v12779_v41  ;;  %13399 = vst [vmem:[#allocation17_spill] sm:$0xff] %v12784_v34  ;;  %v8135_v21 = vpack.c.bf16 %v13401_v51, %v13400_v3  ;;  %v8140_v12 = vpack.c.bf16 %v13403_v18, %v13402_v44  ;;  %v8145_v26 = vpack.c.bf16 %v13405_v32, %v13404_v46  ;;  %v13407_v17 = vld [vmem:[#allocation33_spill] sm:$0xff]  ;;  %v13410_v37 = vld [vmem:[#allocation39_spill] sm:$0xff] }
 0x625   :  { %v8150_v42 = vpack.c.bf16 %v13407_v17, %v13406_v7  ;;  %v13409_v9 = vld [vmem:[#allocation37_spill] sm:$0xff]  ;;  %v13411_v34 = vld [vmem:[#allocation42_spill] sm:$0xff]  ;;  %v13413_v57 = vld [vmem:[#allocation47_spill] sm:$0xff] }
 0x626   :  { %v8155_v16 = vpack.c.bf16 %v13409_v9, %v13408_v54  ;;  %v8160_v41 = vpack.c.bf16 %v13411_v34, %v13410_v37  ;;  %8136 = vst [vmem:[%s12955_s4] sm:$0xff] %v8135_v21   ;;  %8292 = vst [vmem:[%s12955_s4 + $0x8] sm:$0xff] %v8140_v12   ;;  %v8165_v3 = vpack.c.bf16 %v13413_v57, %v13412_v36  ;;  %v13414_v51 = vld [vmem:[#allocation49_spill] sm:$0xff]  ;;  %v13416_v46 = vld [vmem:[#allocation54_spill] sm:$0xff] }
 0x627   :  { %v13415_v44 = vld [vmem:[#allocation53_spill] sm:$0xff]  ;;  %v8180_v34 = vpack.c.bf16 %v12535_v60, %v12526_v55  ;;  %8293 = vst [vmem:[%s12955_s4 + $0x10] sm:$0xff] %v8145_v26   ;;  %8294 = vst [vmem:[%s12955_s4 + $0x18] sm:$0xff] %v8150_v42   ;;  %v8185_v21 = vpack.c.bf16 %v12547_v22, %v12541_v25  ;;  %v8190_v60 = vpack.c.bf16 %v12559_v2, %v12553_v47 }
 0x628   :  { %v8170_v18 = vpack.c.bf16 %v13415_v44, %v13414_v51  ;;  %v13417_v32 = vld [vmem:[#allocation13_spill] sm:$0xff]  ;;  %8295 = vst [vmem:[%s12955_s4 + $0x20] sm:$0xff] %v8155_v16   ;;  %8296 = vst [vmem:[%s12955_s4 + $0x28] sm:$0xff] %v8160_v41   ;;  %v8195_v55 = vpack.c.bf16 %v12571_v45, %v12565_v48  ;;  %v8200_v12 = vpack.c.bf16 %v12583_v27, %v12577_v30 }
 0x629   :  { %v8175_v7 = vpack.c.bf16 %v13417_v32, %v13416_v46  ;;  %8297 = vst [vmem:[%s12955_s4 + $0x30] sm:$0xff] %v8165_v3   ;;  %8300 = vst [vmem:[%s12955_s4 + $0x48] sm:$0xff] %v8180_v34   ;;  %v8205_v25 = vpack.c.bf16 %v12595_v50, %v12589_v5  ;;  %v8210_v22 = vpack.c.bf16 %v12607_v6, %v12601_v28 }
 0x62a   :  { %8298 = vst [vmem:[%s12955_s4 + $0x38] sm:$0xff] %v8170_v18   ;;  %v8215_v47 = vpack.c.bf16 %v12619_v11, %v12613_v33  ;;  %v8220_v2 = vpack.c.bf16 %v12631_v38, %v12625_v62  ;;  %8301 = vst [vmem:[%s12955_s4 + $0x50] sm:$0xff] %v8185_v21   ;;  %v8225_v48 = vpack.c.bf16 %v12643_v31, %v12637_v40 }
 0x62b   :  { %8299 = vst [vmem:[%s12955_s4 + $0x40] sm:$0xff] %v8175_v7   ;;  %8302 = vst [vmem:[%s12955_s4 + $0x58] sm:$0xff] %v8190_v60   ;;  %v8230_v45 = vpack.c.bf16 %v12655_v29, %v12649_v59  ;;  %v8235_v30 = vpack.c.bf16 %v12667_v4, %v12661_v39  ;;  %v8240_v27 = vpack.c.bf16 %v12679_v58, %v12673_v1  ;;  %v13418_v40 = vld [vmem:[#allocation8_spill] sm:$0xff]  ;;  %v13419_v59 = vld [vmem:[#allocation17_spill] sm:$0xff] }
 0x62c   :  { %8303 = vst [vmem:[%s12955_s4 + $0x60] sm:$0xff] %v8195_v55   ;;  %8304 = vst [vmem:[%s12955_s4 + $0x68] sm:$0xff] %v8200_v12   ;;  %v8245_v5 = vpack.c.bf16 %v12691_v52, %v12685_v53  ;;  %v8250_v50 = vpack.c.bf16 %v12703_v14, %v12697_v13  ;;  %v8255_v28 = vpack.c.bf16 %v12715_v63, %v12709_v56 }
 0x62d   :  { %8305 = vst [vmem:[%s12955_s4 + $0x70] sm:$0xff] %v8205_v25   ;;  %8306 = vst [vmem:[%s12955_s4 + $0x78] sm:$0xff] %v8210_v22   ;;  %v8260_v6 = vpack.c.bf16 %v12727_v23, %v12721_v35  ;;  %v8265_v33 = vpack.c.bf16 %v12739_v10, %v12733_v24  ;;  %v8270_v11 = vpack.c.bf16 %v12749_v49, %v12744_v43 }
 0x62e   :  { %8307 = vst [vmem:[%s12955_s4 + $0x80] sm:$0xff] %v8215_v47   ;;  %8308 = vst [vmem:[%s12955_s4 + $0x88] sm:$0xff] %v8220_v2   ;;  %v8275_v62 = vpack.c.bf16 %v12759_v8, %v12754_v20  ;;  %v8280_v38 = vpack.c.bf16 %v12769_v61, %v12764_v19  ;;  %v8285_v31 = vpack.c.bf16 %v13418_v40, %v12774_v15 }
 0x62f   :  { %8309 = vst [vmem:[%s12955_s4 + $0x90] sm:$0xff] %v8225_v48   ;;  %8310 = vst [vmem:[%s12955_s4 + $0x98] sm:$0xff] %v8230_v45   ;;  %v8290_v29 = vpack.c.bf16 %v12789_v0, %v13419_v59 }
 0x630   :  { %8311 = vst [vmem:[%s12955_s4 + $0xa0] sm:$0xff] %v8235_v30   ;;  %8312 = vst [vmem:[%s12955_s4 + $0xa8] sm:$0xff] %v8240_v27  }
 0x631   :  { %8313 = vst [vmem:[%s12955_s4 + $0xb0] sm:$0xff] %v8245_v5   ;;  %8314 = vst [vmem:[%s12955_s4 + $0xb8] sm:$0xff] %v8250_v50  }
 0x632   :  { %8315 = vst [vmem:[%s12955_s4 + $0xc0] sm:$0xff] %v8255_v28   ;;  %8316 = vst [vmem:[%s12955_s4 + $0xc8] sm:$0xff] %v8260_v6  }
 0x633   :  { %8317 = vst [vmem:[%s12955_s4 + $0xd0] sm:$0xff] %v8265_v33   ;;  %8318 = vst [vmem:[%s12955_s4 + $0xd8] sm:$0xff] %v8270_v11  }
 0x634   :  { %8319 = vst [vmem:[%s12955_s4 + $0xe0] sm:$0xff] %v8275_v62   ;;  %8320 = vst [vmem:[%s12955_s4 + $0xe8] sm:$0xff] %v8280_v38  }
 0x635   :  { %8321 = vst [vmem:[%s12955_s4 + $0xf0] sm:$0xff] %v8285_v31   ;;  %8322 = vst [vmem:[%s12955_s4 + $0xf8] sm:$0xff] %v8290_v29  }

// kernel: discriminator_forward.6
= control target key start
LH: loop header
LB: loop body
LE: loop exit
PB: predicated region body
PF: predicated region fallthrough
CT: control target
= control target key end

     0   :  { %s4947_s1 = inlined_call_operand.vmem [shape: bf16[2048,128], index: 1, kind: input, shape index: {}]   ;;  %s4948_s0 = inlined_call_operand.vmem [shape: bf16[128,2048], index: 0, kind: input, shape index: {}]   ;;  %s4949_s2 = inlined_call_operand.vmem [shape: f32[1,128], index: 2, kind: input, shape index: {}]   ;;  %s4950_s3 = inlined_call_operand.vmem [shape: f32[1,128], index: 3, kind: input, shape index: {}]   ;;  %s4951_s4 = inlined_call_operand.vmem [shape: bf16[128,128], index: 4, kind: output, shape index: {}]  }
   0x1   :  { %v3699_v0 = vld [vmem:[%s4947_s1 + $0x78] sm:$0xff]   ;;  %v3703_v4 = vld [vmem:[%s4947_s1 + $0x70] sm:$0xff]   ;;  %v3707_v8 = vld [vmem:[%s4947_s1 + $0x68] sm:$0xff]  }
   0x2   :  { %v3700_v1 = vld [vmem:[%s4947_s1 + $0xf8] sm:$0xff]   ;;  %3187 = vmatprep.subr.bf16.mxu0 %v3699_v0  ;;  %v3704_v5 = vld [vmem:[%s4947_s1 + $0xf0] sm:$0xff]   ;;  %v3708_v9 = vld [vmem:[%s4947_s1 + $0xe8] sm:$0xff]  }
   0x3   :  { %v3701_v2 = vld [vmem:[%s4947_s1 + $0x38] sm:$0xff]   ;;  %3251 = vmatprep.subr.bf16.mxu1 %v3700_v1  ;;  %v3705_v6 = vld [vmem:[%s4947_s1 + $0x30] sm:$0xff]   ;;  %v3709_v10 = vld [vmem:[%s4947_s1 + $0x28] sm:$0xff]  }
   0x4   :  { %v3702_v3 = vld [vmem:[%s4947_s1 + $0xb8] sm:$0xff]   ;;  %3188 = vmatpush3.bf16.msra.mxu0 %v3701_v2  ;;  %v3706_v7 = vld [vmem:[%s4947_s1 + $0xb0] sm:$0xff]   ;;  %v3710_v11 = vld [vmem:[%s4947_s1 + $0xa8] sm:$0xff]  }
   0x5   :  { %3252 = vmatpush3.bf16.msra.mxu1 %v3702_v3  ;;  %3189 = vmatprep.subr.bf16.mxu0 %v3703_v4  ;;  %v3711_v12 = vld [vmem:[%s4947_s1 + $0x60] sm:$0xff]   ;;  %v3715_v16 = vld [vmem:[%s4947_s1 + $0x58] sm:$0xff]   ;;  %v3719_v20 = vld [vmem:[%s4947_s1 + $0x50] sm:$0xff]  }
   0x6   :  { %3253 = vmatprep.subr.bf16.mxu1 %v3704_v5  ;;  %v3712_v13 = vld [vmem:[%s4947_s1 + $0xe0] sm:$0xff]   ;;  %v3716_v17 = vld [vmem:[%s4947_s1 + $0xd8] sm:$0xff]   ;;  %v3720_v21 = vld [vmem:[%s4947_s1 + $0xd0] sm:$0xff]  }
   0x7   :  { %v3713_v14 = vld [vmem:[%s4947_s1 + $0x20] sm:$0xff]   ;;  %v3717_v18 = vld [vmem:[%s4947_s1 + $0x18] sm:$0xff]   ;;  %v3721_v22 = vld [vmem:[%s4947_s1 + $0x10] sm:$0xff]  }
   0x8   :  { %3190 = vmatpush3.bf16.msra.mxu0 %v3705_v6  ;;  %v3714_v15 = vld [vmem:[%s4947_s1 + $0xa0] sm:$0xff]   ;;  %v3718_v19 = vld [vmem:[%s4947_s1 + $0x98] sm:$0xff]   ;;  %v3722_v23 = vld [vmem:[%s4947_s1 + $0x90] sm:$0xff]  }
   0x9   :  { %3254 = vmatpush3.bf16.msra.mxu1 %v3706_v7  ;;  %3191 = vmatprep.subr.bf16.mxu0 %v3707_v8  ;;  %v3723_v24 = vld [vmem:[%s4947_s1 + $0x48] sm:$0xff]   ;;  %v3727_v28 = vld [vmem:[%s4947_s1 + $0x40] sm:$0xff]   ;;  %v3731_v40 = vld [vmem:[%s4947_s1 + $0x178] sm:$0xff]  }
   0xa   :  { %3255 = vmatprep.subr.bf16.mxu1 %v3708_v9  ;;  %v3724_v25 = vld [vmem:[%s4947_s1 + $0xc8] sm:$0xff]   ;;  %v3728_v29 = vld [vmem:[%s4947_s1 + $0xc0] sm:$0xff]   ;;  %v3732_v41 = vld [vmem:[%s4947_s1 + $0x138] sm:$0xff]  }
   0xb   :  { %v3725_v26 = vld [vmem:[%s4947_s1 + $0x8] sm:$0xff]   ;;  %v3729_v30 = vld [vmem:[%s4947_s1] sm:$0xff]   ;;  %v3733_v42 = vld [vmem:[%s4947_s1 + $0x1f8] sm:$0xff]  }
   0xc   :  { %3192 = vmatpush3.bf16.msra.mxu0 %v3709_v10  ;;  %v3726_v27 = vld [vmem:[%s4947_s1 + $0x88] sm:$0xff]   ;;  %v3730_v31 = vld [vmem:[%s4947_s1 + $0x80] sm:$0xff]   ;;  %v3734_v43 = vld [vmem:[%s4947_s1 + $0x1b8] sm:$0xff]  }
   0xd   :  { %3256 = vmatpush3.bf16.msra.mxu1 %v3710_v11  ;;  %3193 = vmatprep.subr.bf16.mxu0 %v3711_v12  ;;  %v18_v32 = vld [vmem:[%s4948_s0] sm:$0xff]  ;;  %v19_v34 = vld [vmem:[%s4948_s0 + $0x8] sm:$0xff]  ;;  %v3735_v50 = vld [vmem:[%s4947_s1 + $0x170] sm:$0xff]  }
   0xe   :  { %3257 = vmatprep.subr.bf16.mxu1 %v3712_v13  ;;  %v26_v33 = vld [vmem:[%s4948_s0 + $0x40] sm:$0xff]  ;;  %v27_v37 = vld [vmem:[%s4948_s0 + $0x48] sm:$0xff]  ;;  %v3736_v52 = vld [vmem:[%s4947_s1 + $0x130] sm:$0xff]  }
   0xf   :  { %v2851_v35 = vcombine.low %v18_v32, %v26_v33  ;;  %v2852_v36 = vcombine.high %v18_v32, %v26_v33  ;;  %v2853_v38 = vcombine.low %v19_v34, %v27_v37  ;;  %v2854_v39 = vcombine.high %v19_v34, %v27_v37  ;;  %v34_v44 = vld [vmem:[%s4948_s0 + $0x80] sm:$0xff]  ;;  %v35_v47 = vld [vmem:[%s4948_s0 + $0x88] sm:$0xff]  ;;  %v3737_v54 = vld [vmem:[%s4947_s1 + $0x1f0] sm:$0xff]  }
  0x10   :  { %3194 = vmatpush3.bf16.msra.mxu0 %v3713_v14  ;;  %v42_v45 = vld [vmem:[%s4948_s0 + $0xc0] sm:$0xff]  ;;  %v43_v48 = vld [vmem:[%s4948_s0 + $0xc8] sm:$0xff]  ;;  %v3738_v55 = vld [vmem:[%s4947_s1 + $0x1b0] sm:$0xff]  }
  0x11   :  { %3258 = vmatpush3.bf16.msra.mxu1 %v3714_v15  ;;  %3195 = vmatprep.subr.bf16.mxu0 %v3715_v16  ;;  %v2868_v46 = vcombine.high %v34_v44, %v42_v45  ;;  %v2870_v49 = vcombine.high %v35_v47, %v43_v48  ;;  %v2867_v51 = vcombine.low %v34_v44, %v42_v45  ;;  %v50_v56 = vld [vmem:[%s4948_s0 + $0x100] sm:$0xff]  ;;  %v51_v58 = vld [vmem:[%s4948_s0 + $0x108] sm:$0xff]  ;;  %v3753_v32 = vld [vmem:[%s4947_s1 + $0x1d0] sm:$0xff]  }
  0x12   :  { %3259 = vmatprep.subr.bf16.mxu1 %v3716_v17  ;;  %1842 = vmatprep.mubr.bf16.mxu0 %v2852_v36  ;;  %v2869_v53 = vcombine.low %v35_v47, %v43_v48  ;;  %v58_v57 = vld [vmem:[%s4948_s0 + $0x140] sm:$0xff]  ;;  %v59_v59 = vld [vmem:[%s4948_s0 + $0x148] sm:$0xff]  ;;  %v3754_v33 = vld [vmem:[%s4947_s1 + $0x190] sm:$0xff]  }
  0x13   :  { %1939 = vmatprep.mubr.bf16.mxu1 %v2854_v39  ;;  %v2884_v60 = vcombine.high %v50_v56, %v58_v57  ;;  %v2886_v61 = vcombine.high %v51_v58, %v59_v59  ;;  %v3739_v62 = vld [vmem:[%s4947_s1 + $0x168] sm:$0xff]   ;;  %v2883_v2 = vcombine.low %v50_v56, %v58_v57  ;;  %v66_v3 = vld [vmem:[%s4948_s0 + $0x180] sm:$0xff]  ;;  %v2885_v6 = vcombine.low %v51_v58, %v59_v59  ;;  %v3763_v56 = vld [vmem:[%s4947_s1 + $0x278] sm:$0xff]  }
  0x14   :  { %3196 = vmatpush3.bf16.msra.mxu0 %v3717_v18  ;;  %v3740_v63 = vld [vmem:[%s4947_s1 + $0x128] sm:$0xff]   ;;  %v74_v4 = vld [vmem:[%s4948_s0 + $0x1c0] sm:$0xff]  ;;  %v3747_v18 = vld [vmem:[%s4947_s1 + $0x158] sm:$0xff]  }
  0x15   :  { %3260 = vmatpush3.bf16.msra.mxu1 %v3718_v19  ;;  %3197 = vmatprep.subr.bf16.mxu0 %v3719_v20  ;;  %v3741_v0 = vld [vmem:[%s4947_s1 + $0x1e8] sm:$0xff]   ;;  %v2900_v7 = vcombine.high %v66_v3, %v74_v4  ;;  %v3743_v10 = vld [vmem:[%s4947_s1 + $0x160] sm:$0xff]   ;;  %v2899_v19 = vcombine.low %v66_v3, %v74_v4  ;;  %v3748_v20 = vld [vmem:[%s4947_s1 + $0x118] sm:$0xff]  }
  0x16   :  { %3261 = vmatprep.subr.bf16.mxu1 %v3720_v21  ;;  %v3742_v1 = vld [vmem:[%s4947_s1 + $0x1a8] sm:$0xff]   ;;  %v3744_v11 = vld [vmem:[%s4947_s1 + $0x120] sm:$0xff]   ;;  %v3765_v58 = vld [vmem:[%s4947_s1 + $0x2f8] sm:$0xff]  }
  0x17   :  { %v67_v5 = vld [vmem:[%s4948_s0 + $0x188] sm:$0xff]  ;;  %v3745_v12 = vld [vmem:[%s4947_s1 + $0x1e0] sm:$0xff]   ;;  %v29_v3 = vld [vmem:[%s4948_s0 + $0x58] sm:$0xff] }
  0x18   :  { %3198 = vmatpush3.bf16.msra.mxu0 %v3721_v22  ;;  %v75_v8 = vld [vmem:[%s4948_s0 + $0x1c8] sm:$0xff]  ;;  %v3746_v13 = vld [vmem:[%s4947_s1 + $0x1a0] sm:$0xff]  }
  0x19   :  { %3262 = vmatpush3.bf16.msra.mxu1 %v3722_v23  ;;  %3199 = vmatprep.subr.bf16.mxu0 %v3723_v24  ;;  %v2902_v9 = vcombine.high %v67_v5, %v75_v8  ;;  %v82_v14 = vld [vmem:[%s4948_s0 + $0x200] sm:$0xff]  ;;  %v83_v16 = vld [vmem:[%s4948_s0 + $0x208] sm:$0xff]  ;;  %v2901_v21 = vcombine.low %v67_v5, %v75_v8  ;;  %v3749_v23 = vld [vmem:[%s4947_s1 + $0x1d8] sm:$0xff]  }
  0x1a   :  { %3263 = vmatprep.subr.bf16.mxu1 %v3724_v25  ;;  %v90_v15 = vld [vmem:[%s4948_s0 + $0x240] sm:$0xff]  ;;  %v91_v17 = vld [vmem:[%s4948_s0 + $0x248] sm:$0xff]  ;;  %v3750_v25 = vld [vmem:[%s4947_s1 + $0x198] sm:$0xff]  }
  0x1b   :  { %v2916_v22 = vcombine.high %v82_v14, %v90_v15  ;;  %v2918_v24 = vcombine.high %v83_v16, %v91_v17  ;;  %v2915_v34 = vcombine.low %v82_v14, %v90_v15  ;;  %v3756_v39 = vld [vmem:[%s4947_s1 + $0x108] sm:$0xff]   ;;  %v3760_v48 = vld [vmem:[%s4947_s1 + $0x100] sm:$0xff]   ;;  %v36_v8 = vld [vmem:[%s4948_s0 + $0x90] sm:$0xff] }
  0x1c   :  { %3200 = vmatpush3.bf16.msra.mxu0 %v3725_v26  ;;  %v98_v26 = vld [vmem:[%s4948_s0 + $0x280] sm:$0xff]  ;;  %v115_v44 = vld [vmem:[%s4948_s0 + $0x308] sm:$0xff]  ;;  %v3766_v15 = vld [vmem:[%s4947_s1 + $0x2b8] sm:$0xff]  }
  0x1d   :  { %3264 = vmatpush3.bf16.msra.mxu1 %v3726_v27  ;;  %3201 = vmatprep.subr.bf16.mxu0 %v3727_v28  ;;  %v106_v27 = vld [vmem:[%s4948_s0 + $0x2c0] sm:$0xff]  ;;  %v3751_v28 = vld [vmem:[%s4947_s1 + $0x150] sm:$0xff]   ;;  %v123_v45 = vld [vmem:[%s4948_s0 + $0x348] sm:$0xff] }
  0x1e   :  { %3265 = vmatprep.subr.bf16.mxu1 %v3728_v29  ;;  %v99_v29 = vld [vmem:[%s4948_s0 + $0x288] sm:$0xff]  ;;  %v2932_v36 = vcombine.high %v98_v26, %v106_v27  ;;  %v2931_v47 = vcombine.low %v98_v26, %v106_v27 }
  0x1f   :  { %v131_v57 = vld [vmem:[%s4948_s0 + $0x388] sm:$0xff] }
  0x20   :  { %3202 = vmatpush3.bf16.msra.mxu0 %v3729_v30  ;;  %v107_v30 = vld [vmem:[%s4948_s0 + $0x2c8] sm:$0xff] }
  0x21   :  { %3266 = vmatpush3.bf16.msra.mxu1 %v3730_v31  ;;  %3315 = vmatprep.subr.bf16.mxu0 %v3731_v40  ;;  %v3752_v31 = vld [vmem:[%s4947_s1 + $0x110] sm:$0xff]   ;;  %v2934_v37 = vcombine.high %v99_v29, %v107_v30  ;;  %v3757_v40 = vld [vmem:[%s4947_s1 + $0x1c8] sm:$0xff]  }
  0x22   :  { %3379 = vmatprep.subr.bf16.mxu1 %v3733_v42  ;;  %v122_v42 = vld [vmem:[%s4948_s0 + $0x340] sm:$0xff]  ;;  %v139_v59 = vld [vmem:[%s4948_s0 + $0x3c8] sm:$0xff] }
  0x23   :  { %1843 = vmatmul.mubr.bf16.vlgmr.msra.gmra.mxu0 %v2851_v35  ;;  %v2917_v35 = vcombine.low %v83_v16, %v91_v17  ;;  %v2965_v5 = vcombine.low %v131_v57, %v139_v59  ;;  %v3767_v17 = vld [vmem:[%s4947_s1 + $0x270] sm:$0xff]   ;;  %v3771_v26 = vld [vmem:[%s4947_s1 + $0x268] sm:$0xff]  }
  0x24   :  { %1940 = vmatmul.mubr.bf16.vlgmr.msra.gmra.mxu1 %v2853_v38  ;;  %3316 = vmatpush3.bf16.msra.mxu0 %v3732_v41  ;;  %v3755_v38 = vld [vmem:[%s4947_s1 + $0x148] sm:$0xff]   ;;  %v114_v41 = vld [vmem:[%s4948_s0 + $0x300] sm:$0xff] }
  0x25   :  { %3380 = vmatpush3.bf16.msra.mxu1 %v3734_v43  ;;  %1850 = vmatprep.mubr.bf16.mxu0 %v2868_v46  ;;  %v3758_v43 = vld [vmem:[%s4947_s1 + $0x188] sm:$0xff]   ;;  %v3759_v46 = vld [vmem:[%s4947_s1 + $0x140] sm:$0xff]  }
  0x26   :  { %1947 = vmatprep.mubr.bf16.mxu1 %v2870_v49  ;;  %3317 = vmatprep.subr.bf16.mxu0 %v3735_v50  ;;  %v2933_v49 = vcombine.low %v99_v29, %v107_v30  ;;  %v2948_v50 = vcombine.high %v114_v41, %v122_v42  ;;  %v3773_v27 = vld [vmem:[%s4947_s1 + $0x2e8] sm:$0xff]  }
  0x27   :  { %3381 = vmatprep.subr.bf16.mxu1 %v3737_v54  ;;  %v130_v54 = vld [vmem:[%s4948_s0 + $0x380] sm:$0xff] }
  0x28   :  { %3318 = vmatpush3.bf16.msra.mxu0 %v3736_v52  ;;  %v2950_v52 = vcombine.high %v115_v44, %v123_v45 }
  0x29   :  { %3382 = vmatpush3.bf16.msra.mxu1 %v3738_v55  ;;  %3319 = vmatprep.subr.bf16.mxu0 %v3739_v62  ;;  %v138_v55 = vld [vmem:[%s4948_s0 + $0x3c0] sm:$0xff] }
  0x2a   :  { %3383 = vmatprep.subr.bf16.mxu1 %v3741_v0  ;;  %v2964_v62 = vcombine.high %v130_v54, %v138_v55  ;;  %v20_v0 = vld [vmem:[%s4948_s0 + $0x10] sm:$0xff]  ;;  %v2963_v4 = vcombine.low %v130_v54, %v138_v55  ;;  %v85_v54 = vld [vmem:[%s4948_s0 + $0x218] sm:$0xff] }
  0x2b   :  { %1851 = vmatmul.mubr.bf16.gmra.mxu0 %v2867_v51  ;;  %v3761_v51 = vld [vmem:[%s4947_s1 + $0x1c0] sm:$0xff]   ;;  %v93_v55 = vld [vmem:[%s4948_s0 + $0x258] sm:$0xff] }
  0x2c   :  { %1948 = vmatmul.mubr.bf16.gmra.mxu1 %v2869_v53  ;;  %1858 = vmatprep.mubr.bf16.mxu0 %v2884_v60  ;;  %v3762_v53 = vld [vmem:[%s4947_s1 + $0x180] sm:$0xff]   ;;  %v2947_v60 = vcombine.low %v114_v41, %v122_v42  ;;  %v3779_v42 = vld [vmem:[%s4947_s1 + $0x258] sm:$0xff]  }
  0x2d   :  { %1955 = vmatprep.mubr.bf16.mxu1 %v2886_v61  ;;  %3320 = vmatpush3.bf16.msra.mxu0 %v3740_v63  ;;  %v2949_v61 = vcombine.low %v115_v44, %v123_v45  ;;  %v2966_v63 = vcombine.high %v131_v57, %v139_v59  ;;  %v3778_v41 = vld [vmem:[%s4947_s1 + $0x2a0] sm:$0xff]   ;;  %v3781_v44 = vld [vmem:[%s4947_s1 + $0x2d8] sm:$0xff]   ;;  %v3786_v57 = vld [vmem:[%s4947_s1 + $0x290] sm:$0xff]  }
  0x2e   :  { %3384 = vmatpush3.bf16.msra.mxu1 %v3742_v1  ;;  %3321 = vmatprep.subr.bf16.mxu0 %v3743_v10  ;;  %v28_v1 = vld [vmem:[%s4948_s0 + $0x50] sm:$0xff] }
  0x2f   :  { %3385 = vmatprep.subr.bf16.mxu1 %v3745_v12  ;;  %v2855_v10 = vcombine.low %v20_v0, %v28_v1  ;;  %v37_v12 = vld [vmem:[%s4948_s0 + $0x98] sm:$0xff] }
  0x31   :  { %3322 = vmatpush3.bf16.msra.mxu0 %v3744_v11  ;;  %v3764_v11 = vld [vmem:[%s4947_s1 + $0x238] sm:$0xff]  }
  0x32   :  { %3386 = vmatpush3.bf16.msra.mxu1 %v3746_v13  ;;  %3323 = vmatprep.subr.bf16.mxu0 %v3747_v18  ;;  %v45_v13 = vld [vmem:[%s4948_s0 + $0xd8] sm:$0xff] }
  0x33   :  { %1859 = vmatmul.mubr.bf16.gmra.mxu0 %v2883_v2  ;;  %3387 = vmatprep.subr.bf16.mxu1 %v3749_v23  ;;  %v21_v2 = vld [vmem:[%s4948_s0 + $0x18] sm:$0xff]  ;;  %v2874_v18 = vcombine.high %v37_v12, %v45_v13  ;;  %v60_v23 = vld [vmem:[%s4948_s0 + $0x150] sm:$0xff]  ;;  %v2873_v29 = vcombine.low %v37_v12, %v45_v13  ;;  %v2921_v13 = vcombine.low %v85_v54, %v93_v55 }
  0x34   :  { %1956 = vmatmul.mubr.bf16.gmra.mxu1 %v2885_v6  ;;  %1866 = vmatprep.mubr.bf16.mxu0 %v2900_v7  ;;  %v2856_v6 = vcombine.high %v20_v0, %v28_v1  ;;  %v2858_v7 = vcombine.high %v21_v2, %v29_v3  ;;  %v2857_v14 = vcombine.low %v21_v2, %v29_v3  ;;  %v3788_v0 = vld [vmem:[%s4947_s1 + $0x208] sm:$0xff]   ;;  %v3791_v2 = vld [vmem:[%s4947_s1 + $0x240] sm:$0xff]   ;;  %v100_v3 = vld [vmem:[%s4948_s0 + $0x290] sm:$0xff] }
  0x35   :  { %1963 = vmatprep.mubr.bf16.mxu1 %v2902_v9  ;;  %3324 = vmatpush3.bf16.msra.mxu0 %v3748_v20  ;;  %v44_v9 = vld [vmem:[%s4948_s0 + $0xd0] sm:$0xff]  ;;  %v3790_v1 = vld [vmem:[%s4947_s1 + $0x288] sm:$0xff]   ;;  %v3797_v12 = vld [vmem:[%s4947_s1 + $0x3f8] sm:$0xff]  }
  0x36   :  { %3388 = vmatpush3.bf16.msra.mxu1 %v3750_v25  ;;  %3325 = vmatprep.subr.bf16.mxu0 %v3751_v28  ;;  %v2872_v16 = vcombine.high %v36_v8, %v44_v9  ;;  %v3769_v20 = vld [vmem:[%s4947_s1 + $0x2f0] sm:$0xff]   ;;  %v61_v25 = vld [vmem:[%s4948_s0 + $0x158] sm:$0xff]  ;;  %v2871_v28 = vcombine.low %v36_v8, %v44_v9  ;;  %v3792_v8 = vld [vmem:[%s4947_s1 + $0x200] sm:$0xff]  }
  0x37   :  { %3389 = vmatprep.subr.bf16.mxu1 %v3753_v32  ;;  %v3772_v32 = vld [vmem:[%s4947_s1 + $0x228] sm:$0xff]   ;;  %v3794_v9 = vld [vmem:[%s4947_s1 + $0x280] sm:$0xff]  }
  0x39   :  { %3326 = vmatpush3.bf16.msra.mxu0 %v3752_v31 }
  0x3a   :  { %3390 = vmatpush3.bf16.msra.mxu1 %v3754_v33  ;;  %3327 = vmatprep.subr.bf16.mxu0 %v3755_v38  ;;  %v3774_v33 = vld [vmem:[%s4947_s1 + $0x2a8] sm:$0xff]   ;;  %v69_v38 = vld [vmem:[%s4948_s0 + $0x198] sm:$0xff] }
  0x3b   :  { %1867 = vmatmul.mubr.bf16.gmra.mxu0 %v2899_v19  ;;  %3391 = vmatprep.subr.bf16.mxu1 %v3757_v40  ;;  %v3768_v19 = vld [vmem:[%s4947_s1 + $0x230] sm:$0xff]   ;;  %v3776_v40 = vld [vmem:[%s4947_s1 + $0x220] sm:$0xff]  }
  0x3c   :  { %1964 = vmatmul.mubr.bf16.gmra.mxu1 %v2901_v21  ;;  %1874 = vmatprep.mubr.bf16.mxu0 %v2916_v22  ;;  %v3770_v21 = vld [vmem:[%s4947_s1 + $0x2b0] sm:$0xff]  }
  0x3d   :  { %1971 = vmatprep.mubr.bf16.mxu1 %v2918_v24  ;;  %3328 = vmatpush3.bf16.msra.mxu0 %v3756_v39  ;;  %v52_v22 = vld [vmem:[%s4948_s0 + $0x110] sm:$0xff]  ;;  %v53_v24 = vld [vmem:[%s4948_s0 + $0x118] sm:$0xff] }
  0x3e   :  { %3392 = vmatpush3.bf16.msra.mxu1 %v3758_v43  ;;  %3329 = vmatprep.subr.bf16.mxu0 %v3759_v46  ;;  %v2888_v30 = vcombine.high %v52_v22, %v60_v23  ;;  %v2890_v31 = vcombine.high %v53_v24, %v61_v25  ;;  %v77_v39 = vld [vmem:[%s4948_s0 + $0x1d8] sm:$0xff]  ;;  %v2887_v43 = vcombine.low %v52_v22, %v60_v23 }
  0x3f   :  { %3393 = vmatprep.subr.bf16.mxu1 %v3761_v51  ;;  %v2889_v45 = vcombine.low %v53_v24, %v61_v25  ;;  %v84_v51 = vld [vmem:[%s4948_s0 + $0x210] sm:$0xff] }
  0x40   :  { %v132_v24 = vld [vmem:[%s4948_s0 + $0x390] sm:$0xff] }
  0x41   :  { %3330 = vmatpush3.bf16.msra.mxu0 %v3760_v48  ;;  %v2906_v48 = vcombine.high %v69_v38, %v77_v39  ;;  %v140_v25 = vld [vmem:[%s4948_s0 + $0x3d0] sm:$0xff] }
  0x42   :  { %3394 = vmatpush3.bf16.msra.mxu1 %v3762_v53  ;;  %3443 = vmatprep.subr.bf16.mxu0 %v3763_v56  ;;  %v92_v53 = vld [vmem:[%s4948_s0 + $0x250] sm:$0xff] }
  0x43   :  { %1875 = vmatmul.mubr.bf16.gmra.mxu0 %v2915_v34  ;;  %3507 = vmatprep.subr.bf16.mxu1 %v3765_v58  ;;  %v3775_v34 = vld [vmem:[%s4947_s1 + $0x260] sm:$0xff]   ;;  %v3784_v56 = vld [vmem:[%s4947_s1 + $0x210] sm:$0xff]   ;;  %v3787_v58 = vld [vmem:[%s4947_s1 + $0x248] sm:$0xff]  }
  0x44   :  { %1972 = vmatmul.mubr.bf16.gmra.mxu1 %v2917_v35  ;;  %1882 = vmatprep.mubr.bf16.mxu0 %v2932_v36  ;;  %v68_v35 = vld [vmem:[%s4948_s0 + $0x190] sm:$0xff] }
  0x45   :  { %1979 = vmatprep.mubr.bf16.mxu1 %v2934_v37  ;;  %v76_v36 = vld [vmem:[%s4948_s0 + $0x1d0] sm:$0xff]  ;;  %v3777_v37 = vld [vmem:[%s4947_s1 + $0x2e0] sm:$0xff]  }
  0x46   :  { %v2904_v46 = vcombine.high %v68_v35, %v76_v36  ;;  %v2903_v59 = vcombine.low %v68_v35, %v76_v36  ;;  %v31_v35 = vld [vmem:[%s4948_s0 + $0x68] sm:$0xff]  ;;  %v2967_v36 = vcombine.low %v132_v24, %v140_v25 }
  0x4b   :  { %1883 = vmatmul.mubr.bf16.gmra.mxu0 %v2931_v47  ;;  %v3780_v47 = vld [vmem:[%s4947_s1 + $0x218] sm:$0xff]  }
  0x4c   :  { %1980 = vmatmul.mubr.bf16.gmra.mxu1 %v2933_v49  ;;  %1890 = vmatprep.mubr.bf16.mxu0 %v2948_v50  ;;  %v3782_v49 = vld [vmem:[%s4947_s1 + $0x298] sm:$0xff]   ;;  %v3783_v50 = vld [vmem:[%s4947_s1 + $0x250] sm:$0xff]  }
  0x4d   :  { %1987 = vmatprep.mubr.bf16.mxu1 %v2950_v52  ;;  %v3785_v52 = vld [vmem:[%s4947_s1 + $0x2d0] sm:$0xff]  }
  0x53   :  { %1891 = vmatmul.mubr.bf16.gmra.mxu0 %v2947_v60  ;;  %v3789_v60 = vld [vmem:[%s4947_s1 + $0x2c8] sm:$0xff]  }
  0x54   :  { %1988 = vmatmul.mubr.bf16.gmra.mxu1 %v2949_v61  ;;  %1898 = vmatprep.mubr.bf16.mxu0 %v2964_v62  ;;  %v2905_v61 = vcombine.low %v69_v38, %v77_v39  ;;  %v2920_v62 = vcombine.high %v84_v51, %v92_v53 }
  0x55   :  { %1995 = vmatprep.mubr.bf16.mxu1 %v2966_v63  ;;  %v2922_v63 = vcombine.high %v85_v54, %v93_v55  ;;  %v54_v54 = vld [vmem:[%s4948_s0 + $0x120] sm:$0xff] }
  0x56   :  { %v62_v55 = vld [vmem:[%s4948_s0 + $0x160] sm:$0xff] }
  0x5b   :  { %1899 = vmatmul.mubr.bf16.gmra.mxu0 %v2963_v4  ;;  %v108_v4 = vld [vmem:[%s4948_s0 + $0x2d0] sm:$0xff] }
  0x5c   :  { %1996 = vmatmul.mubr.bf16.gmra.mxu1 %v2965_v5  ;;  %2036 = vmatprep.mubr.bf16.mxu0 %v2856_v6  ;;  %v3793_v5 = vld [vmem:[%s4947_s1 + $0x2c0] sm:$0xff]   ;;  %v101_v6 = vld [vmem:[%s4948_s0 + $0x298] sm:$0xff] }
  0x5d   :  { %2133 = vmatprep.mubr.bf16.mxu1 %v2858_v7  ;;  %v109_v7 = vld [vmem:[%s4948_s0 + $0x2d8] sm:$0xff] }
  0x63   :  { %2037 = vmatmul.mubr.bf16.vlgmr.msra.gmra.mxu0 %v2855_v10  ;;  %v3795_v10 = vld [vmem:[%s4947_s1 + $0x378] sm:$0xff]  }
  0x64   :  { %2134 = vmatmul.mubr.bf16.vlgmr.msra.gmra.mxu1 %v2857_v14  ;;  %3444 = vmatpush3.bf16.msra.mxu0 %v3764_v11  ;;  %v2919_v11 = vcombine.low %v84_v51, %v92_v53  ;;  %v2936_v14 = vcombine.high %v100_v3, %v108_v4  ;;  %v3801_v51 = vld [vmem:[%s4947_s1 + $0x3f0] sm:$0xff]  }
  0x65   :  { %3508 = vmatpush3.bf16.msra.mxu1 %v3766_v15  ;;  %2044 = vmatprep.mubr.bf16.mxu0 %v2872_v16  ;;  %v2938_v15 = vcombine.high %v101_v6, %v109_v7  ;;  %v116_v16 = vld [vmem:[%s4948_s0 + $0x310] sm:$0xff] }
  0x66   :  { %2141 = vmatprep.mubr.bf16.mxu1 %v2874_v18  ;;  %3445 = vmatprep.subr.bf16.mxu0 %v3767_v17  ;;  %v124_v17 = vld [vmem:[%s4948_s0 + $0x350] sm:$0xff]  ;;  %v117_v18 = vld [vmem:[%s4948_s0 + $0x318] sm:$0xff] }
  0x67   :  { %3509 = vmatprep.subr.bf16.mxu1 %v3769_v20  ;;  %v2935_v20 = vcombine.low %v100_v3, %v108_v4  ;;  %v2952_v22 = vcombine.high %v116_v16, %v124_v17  ;;  %v3802_v53 = vld [vmem:[%s4947_s1 + $0x3b0] sm:$0xff]   ;;  %v3809_v3 = vld [vmem:[%s4947_s1 + $0x3e0] sm:$0xff]  }
  0x68   :  { %3446 = vmatpush3.bf16.msra.mxu0 %v3768_v19  ;;  %v125_v19 = vld [vmem:[%s4948_s0 + $0x358] sm:$0xff]  ;;  %v70_v4 = vld [vmem:[%s4948_s0 + $0x1a0] sm:$0xff] }
  0x69   :  { %3510 = vmatpush3.bf16.msra.mxu1 %v3770_v21  ;;  %3447 = vmatprep.subr.bf16.mxu0 %v3771_v26  ;;  %v2937_v21 = vcombine.low %v101_v6, %v109_v7  ;;  %v2954_v23 = vcombine.high %v117_v18, %v125_v19  ;;  %v133_v26 = vld [vmem:[%s4948_s0 + $0x398] sm:$0xff]  ;;  %v71_v6 = vld [vmem:[%s4948_s0 + $0x1a8] sm:$0xff]  ;;  %v3808_v7 = vld [vmem:[%s4947_s1 + $0x320] sm:$0xff]  }
  0x6a   :  { %3511 = vmatprep.subr.bf16.mxu1 %v3773_v27  ;;  %v141_v27 = vld [vmem:[%s4948_s0 + $0x3d8] sm:$0xff] }
  0x6b   :  { %2045 = vmatmul.mubr.bf16.gmra.mxu0 %v2871_v28  ;;  %v2951_v28 = vcombine.low %v116_v16, %v124_v17  ;;  %v3812_v16 = vld [vmem:[%s4947_s1 + $0x318] sm:$0xff]  }
  0x6c   :  { %2142 = vmatmul.mubr.bf16.gmra.mxu1 %v2873_v29  ;;  %2052 = vmatprep.mubr.bf16.mxu0 %v2888_v30  ;;  %v2953_v29 = vcombine.low %v117_v18, %v125_v19  ;;  %v2968_v30 = vcombine.high %v132_v24, %v140_v25  ;;  %v3814_v17 = vld [vmem:[%s4947_s1 + $0x398] sm:$0xff]   ;;  %v3815_v18 = vld [vmem:[%s4947_s1 + $0x350] sm:$0xff]   ;;  %v95_v24 = vld [vmem:[%s4948_s0 + $0x268] sm:$0xff] }
  0x6d   :  { %2149 = vmatprep.mubr.bf16.mxu1 %v2890_v31  ;;  %3448 = vmatpush3.bf16.msra.mxu0 %v3772_v32  ;;  %v2970_v31 = vcombine.high %v133_v26, %v141_v27  ;;  %v22_v32 = vld [vmem:[%s4948_s0 + $0x20] sm:$0xff]  ;;  %v3817_v19 = vld [vmem:[%s4947_s1 + $0x3d0] sm:$0xff]  }
  0x6e   :  { %3512 = vmatpush3.bf16.msra.mxu1 %v3774_v33  ;;  %3449 = vmatprep.subr.bf16.mxu0 %v3775_v34  ;;  %v30_v33 = vld [vmem:[%s4948_s0 + $0x60] sm:$0xff]  ;;  %v23_v34 = vld [vmem:[%s4948_s0 + $0x28] sm:$0xff]  ;;  %v3818_v25 = vld [vmem:[%s4947_s1 + $0x390] sm:$0xff]  }
  0x6f   :  { %3513 = vmatprep.subr.bf16.mxu1 %v3777_v37  ;;  %v2969_v37 = vcombine.low %v133_v26, %v141_v27  ;;  %v2860_v38 = vcombine.high %v22_v32, %v30_v33  ;;  %v2862_v39 = vcombine.high %v23_v34, %v31_v35  ;;  %v3819_v26 = vld [vmem:[%s4947_s1 + $0x348] sm:$0xff]  }
  0x71   :  { %3450 = vmatpush3.bf16.msra.mxu0 %v3776_v40  ;;  %v38_v40 = vld [vmem:[%s4948_s0 + $0xa0] sm:$0xff] }
  0x72   :  { %3514 = vmatpush3.bf16.msra.mxu1 %v3778_v41  ;;  %3451 = vmatprep.subr.bf16.mxu0 %v3779_v42  ;;  %v46_v41 = vld [vmem:[%s4948_s0 + $0xe0] sm:$0xff]  ;;  %v2859_v42 = vcombine.low %v22_v32, %v30_v33  ;;  %v3820_v32 = vld [vmem:[%s4947_s1 + $0x308] sm:$0xff]  }
  0x73   :  { %2053 = vmatmul.mubr.bf16.gmra.mxu0 %v2887_v43  ;;  %3515 = vmatprep.subr.bf16.mxu1 %v3781_v44  ;;  %v39_v43 = vld [vmem:[%s4948_s0 + $0xa8] sm:$0xff] }
  0x74   :  { %2150 = vmatmul.mubr.bf16.gmra.mxu1 %v2889_v45  ;;  %2060 = vmatprep.mubr.bf16.mxu0 %v2904_v46  ;;  %v47_v44 = vld [vmem:[%s4948_s0 + $0xe8] sm:$0xff]  ;;  %v2861_v45 = vcombine.low %v23_v34, %v31_v35  ;;  %v3796_v46 = vld [vmem:[%s4947_s1 + $0x338] sm:$0xff]   ;;  %v3823_v34 = vld [vmem:[%s4947_s1 + $0x340] sm:$0xff]  }
  0x75   :  { %2157 = vmatprep.mubr.bf16.mxu1 %v2906_v48  ;;  %3452 = vmatpush3.bf16.msra.mxu0 %v3780_v47  ;;  %v3798_v47 = vld [vmem:[%s4947_s1 + $0x3b8] sm:$0xff]   ;;  %v2876_v48 = vcombine.high %v38_v40, %v46_v41  ;;  %v3822_v33 = vld [vmem:[%s4947_s1 + $0x388] sm:$0xff]   ;;  %v3825_v35 = vld [vmem:[%s4947_s1 + $0x3c0] sm:$0xff]  }
  0x76   :  { %3516 = vmatpush3.bf16.msra.mxu1 %v3782_v49  ;;  %3453 = vmatprep.subr.bf16.mxu0 %v3783_v50  ;;  %v2878_v49 = vcombine.high %v39_v43, %v47_v44  ;;  %v3799_v50 = vld [vmem:[%s4947_s1 + $0x370] sm:$0xff]  }
  0x77   :  { %3517 = vmatprep.subr.bf16.mxu1 %v3785_v52  ;;  %v3800_v52 = vld [vmem:[%s4947_s1 + $0x330] sm:$0xff]  }
  0x79   :  { %3454 = vmatpush3.bf16.msra.mxu0 %v3784_v56  ;;  %v3803_v56 = vld [vmem:[%s4947_s1 + $0x368] sm:$0xff]  }
  0x7a   :  { %3518 = vmatpush3.bf16.msra.mxu1 %v3786_v57  ;;  %3455 = vmatprep.subr.bf16.mxu0 %v3787_v58  ;;  %v55_v57 = vld [vmem:[%s4948_s0 + $0x128] sm:$0xff] }
  0x7b   :  { %2061 = vmatmul.mubr.bf16.gmra.mxu0 %v2903_v59  ;;  %3519 = vmatprep.subr.bf16.mxu1 %v3789_v60  ;;  %v63_v58 = vld [vmem:[%s4948_s0 + $0x168] sm:$0xff]  ;;  %v2875_v60 = vcombine.low %v38_v40, %v46_v41  ;;  %v3826_v41 = vld [vmem:[%s4947_s1 + $0x380] sm:$0xff]  }
  0x7c   :  { %2158 = vmatmul.mubr.bf16.gmra.mxu1 %v2905_v61  ;;  %2068 = vmatprep.mubr.bf16.mxu0 %v2920_v62  ;;  %v3805_v59 = vld [vmem:[%s4947_s1 + $0x3e8] sm:$0xff]   ;;  %v2877_v61 = vcombine.low %v39_v43, %v47_v44  ;;  %v2892_v62 = vcombine.high %v54_v54, %v62_v55 }
  0x7d   :  { %2165 = vmatprep.mubr.bf16.mxu1 %v2922_v63  ;;  %3456 = vmatpush3.bf16.msra.mxu0 %v3788_v0  ;;  %v2894_v63 = vcombine.high %v55_v57, %v63_v58  ;;  %v3804_v0 = vld [vmem:[%s4947_s1 + $0x328] sm:$0xff]  }
  0x7e   :  { %3520 = vmatpush3.bf16.msra.mxu1 %v3790_v1  ;;  %3457 = vmatprep.subr.bf16.mxu0 %v3791_v2  ;;  %v3806_v1 = vld [vmem:[%s4947_s1 + $0x3a8] sm:$0xff]   ;;  %v3807_v2 = vld [vmem:[%s4947_s1 + $0x360] sm:$0xff]  }
  0x7f   :  { %3521 = vmatprep.subr.bf16.mxu1 %v3793_v5  ;;  %v78_v5 = vld [vmem:[%s4948_s0 + $0x1e0] sm:$0xff]  ;;  %v111_v40 = vld [vmem:[%s4948_s0 + $0x2e8] sm:$0xff] }
  0x80   :  { %v2907_v27 = vcombine.low %v70_v4, %v78_v5 }
  0x81   :  { %3458 = vmatpush3.bf16.msra.mxu0 %v3792_v8  ;;  %v79_v8 = vld [vmem:[%s4948_s0 + $0x1e8] sm:$0xff] }
  0x82   :  { %3522 = vmatpush3.bf16.msra.mxu1 %v3794_v9  ;;  %3571 = vmatprep.subr.bf16.mxu0 %v3795_v10  ;;  %v3810_v9 = vld [vmem:[%s4947_s1 + $0x3a0] sm:$0xff]   ;;  %v3811_v10 = vld [vmem:[%s4947_s1 + $0x358] sm:$0xff]  }
  0x83   :  { %2069 = vmatmul.mubr.bf16.gmra.mxu0 %v2919_v11  ;;  %3635 = vmatprep.subr.bf16.mxu1 %v3797_v12  ;;  %v2891_v11 = vcombine.low %v54_v54, %v62_v55  ;;  %v3813_v12 = vld [vmem:[%s4947_s1 + $0x3d8] sm:$0xff]   ;;  %v134_v54 = vld [vmem:[%s4948_s0 + $0x3a0] sm:$0xff] }
  0x84   :  { %2166 = vmatmul.mubr.bf16.gmra.mxu1 %v2921_v13  ;;  %2076 = vmatprep.mubr.bf16.mxu0 %v2936_v14  ;;  %v2893_v13 = vcombine.low %v55_v57, %v63_v58  ;;  %v2908_v14 = vcombine.high %v70_v4, %v78_v5  ;;  %v142_v55 = vld [vmem:[%s4948_s0 + $0x3e0] sm:$0xff]  ;;  %v143_v57 = vld [vmem:[%s4948_s0 + $0x3e8] sm:$0xff] }
  0x85   :  { %2173 = vmatprep.mubr.bf16.mxu1 %v2938_v15  ;;  %v2910_v15 = vcombine.high %v71_v6, %v79_v8 }
  0x8b   :  { %2077 = vmatmul.mubr.bf16.gmra.mxu0 %v2935_v20  ;;  %v86_v20 = vld [vmem:[%s4948_s0 + $0x220] sm:$0xff] }
  0x8c   :  { %2174 = vmatmul.mubr.bf16.gmra.mxu1 %v2937_v21  ;;  %2084 = vmatprep.mubr.bf16.mxu0 %v2952_v22  ;;  %v94_v21 = vld [vmem:[%s4948_s0 + $0x260] sm:$0xff]  ;;  %v87_v22 = vld [vmem:[%s4948_s0 + $0x228] sm:$0xff] }
  0x8d   :  { %2181 = vmatprep.mubr.bf16.mxu1 %v2954_v23  ;;  %v3816_v23 = vld [vmem:[%s4947_s1 + $0x310] sm:$0xff]   ;;  %v2925_v43 = vcombine.low %v87_v22, %v95_v24 }
  0x93   :  { %2085 = vmatmul.mubr.bf16.gmra.mxu0 %v2951_v28  ;;  %v3821_v28 = vld [vmem:[%s4947_s1 + $0x3c8] sm:$0xff]  }
  0x94   :  { %2182 = vmatmul.mubr.bf16.gmra.mxu1 %v2953_v29  ;;  %2092 = vmatprep.mubr.bf16.mxu0 %v2968_v30  ;;  %v2909_v29 = vcombine.low %v71_v6, %v79_v8  ;;  %v2924_v30 = vcombine.high %v86_v20, %v94_v21  ;;  %v40_v6 = vld [vmem:[%s4948_s0 + $0xb0] sm:$0xff]  ;;  %v41_v8 = vld [vmem:[%s4948_s0 + $0xb8] sm:$0xff] }
  0x95   :  { %2189 = vmatprep.mubr.bf16.mxu1 %v2970_v31  ;;  %v2926_v31 = vcombine.high %v87_v22, %v95_v24  ;;  %v65_v22 = vld [vmem:[%s4948_s0 + $0x178] sm:$0xff] }
  0x9b   :  { %2093 = vmatmul.mubr.bf16.gmra.mxu0 %v2967_v36  ;;  %v102_v36 = vld [vmem:[%s4948_s0 + $0x2a0] sm:$0xff] }
  0x9c   :  { %2190 = vmatmul.mubr.bf16.gmra.mxu1 %v2969_v37  ;;  %2230 = vmatprep.mubr.bf16.mxu0 %v2860_v38  ;;  %v110_v37 = vld [vmem:[%s4948_s0 + $0x2e0] sm:$0xff] }
  0x9d   :  { %2327 = vmatprep.mubr.bf16.mxu1 %v2862_v39  ;;  %v3824_v38 = vld [vmem:[%s4947_s1 + $0x300] sm:$0xff]   ;;  %v103_v39 = vld [vmem:[%s4948_s0 + $0x2a8] sm:$0xff]  ;;  %v2940_v44 = vcombine.high %v102_v36, %v110_v37 }
  0xa3   :  { %2231 = vmatmul.mubr.bf16.vlgmr.msra.gmra.mxu0 %v2859_v42  ;;  %v2923_v42 = vcombine.low %v86_v20, %v94_v21  ;;  %v57_v21 = vld [vmem:[%s4948_s0 + $0x138] sm:$0xff] }
  0xa4   :  { %2328 = vmatmul.mubr.bf16.vlgmr.msra.gmra.mxu1 %v2861_v45  ;;  %3572 = vmatpush3.bf16.msra.mxu0 %v3796_v46  ;;  %v2942_v45 = vcombine.high %v103_v39, %v111_v40  ;;  %v118_v46 = vld [vmem:[%s4948_s0 + $0x320] sm:$0xff] }
  0xa5   :  { %3636 = vmatpush3.bf16.msra.mxu1 %v3798_v47  ;;  %2238 = vmatprep.mubr.bf16.mxu0 %v2876_v48  ;;  %v126_v47 = vld [vmem:[%s4948_s0 + $0x360] sm:$0xff]  ;;  %v119_v48 = vld [vmem:[%s4948_s0 + $0x328] sm:$0xff] }
  0xa6   :  { %2335 = vmatprep.mubr.bf16.mxu1 %v2878_v49  ;;  %3573 = vmatprep.subr.bf16.mxu0 %v3799_v50  ;;  %v127_v49 = vld [vmem:[%s4948_s0 + $0x368] sm:$0xff]  ;;  %v2939_v50 = vcombine.low %v102_v36, %v110_v37  ;;  %v2955_v58 = vcombine.low %v118_v46, %v126_v47 }
  0xa7   :  { %3637 = vmatprep.subr.bf16.mxu1 %v3801_v51  ;;  %v2941_v51 = vcombine.low %v103_v39, %v111_v40  ;;  %v72_v39 = vld [vmem:[%s4948_s0 + $0x1b0] sm:$0xff] }
  0xa8   :  { %3574 = vmatpush3.bf16.msra.mxu0 %v3800_v52  ;;  %v2956_v52 = vcombine.high %v118_v46, %v126_v47  ;;  %v80_v40 = vld [vmem:[%s4948_s0 + $0x1f0] sm:$0xff] }
  0xa9   :  { %3638 = vmatpush3.bf16.msra.mxu1 %v3802_v53  ;;  %3575 = vmatprep.subr.bf16.mxu0 %v3803_v56  ;;  %v2958_v53 = vcombine.high %v119_v48, %v127_v49  ;;  %v135_v56 = vld [vmem:[%s4948_s0 + $0x3a8] sm:$0xff] }
  0xaa   :  { %3639 = vmatprep.subr.bf16.mxu1 %v3805_v59  ;;  %v2957_v59 = vcombine.low %v119_v48, %v127_v49  ;;  %v2897_v49 = vcombine.low %v57_v21, %v65_v22 }
  0xab   :  { %2239 = vmatmul.mubr.bf16.gmra.mxu0 %v2875_v60  ;;  %v2972_v60 = vcombine.high %v134_v54, %v142_v55 }
  0xac   :  { %2336 = vmatmul.mubr.bf16.gmra.mxu1 %v2877_v61  ;;  %2246 = vmatprep.mubr.bf16.mxu0 %v2892_v62  ;;  %v2974_v61 = vcombine.high %v135_v56, %v143_v57  ;;  %v24_v62 = vld [vmem:[%s4948_s0 + $0x30] sm:$0xff] }
  0xad   :  { %2343 = vmatprep.mubr.bf16.mxu1 %v2894_v63  ;;  %3576 = vmatpush3.bf16.msra.mxu0 %v3804_v0  ;;  %v32_v63 = vld [vmem:[%s4948_s0 + $0x70] sm:$0xff]  ;;  %v25_v0 = vld [vmem:[%s4948_s0 + $0x38] sm:$0xff] }
  0xae   :  { %3640 = vmatpush3.bf16.msra.mxu1 %v3806_v1  ;;  %3577 = vmatprep.subr.bf16.mxu0 %v3807_v2  ;;  %v33_v1 = vld [vmem:[%s4948_s0 + $0x78] sm:$0xff]  ;;  %v2971_v2 = vcombine.low %v134_v54, %v142_v55  ;;  %v2864_v4 = vcombine.high %v24_v62, %v32_v63 }
  0xaf   :  { %3641 = vmatprep.subr.bf16.mxu1 %v3809_v3  ;;  %v2973_v3 = vcombine.low %v135_v56, %v143_v57  ;;  %v2866_v5 = vcombine.high %v25_v0, %v33_v1 }
  0xb1   :  { %3578 = vmatpush3.bf16.msra.mxu0 %v3808_v7  ;;  %v48_v7 = vld [vmem:[%s4948_s0 + $0xf0] sm:$0xff] }
  0xb2   :  { %3642 = vmatpush3.bf16.msra.mxu1 %v3810_v9  ;;  %3579 = vmatprep.subr.bf16.mxu0 %v3811_v10  ;;  %v49_v9 = vld [vmem:[%s4948_s0 + $0xf8] sm:$0xff]  ;;  %v2863_v10 = vcombine.low %v24_v62, %v32_v63  ;;  %v96_v62 = vld [vmem:[%s4948_s0 + $0x270] sm:$0xff] }
  0xb3   :  { %2247 = vmatmul.mubr.bf16.gmra.mxu0 %v2891_v11  ;;  %3643 = vmatprep.subr.bf16.mxu1 %v3813_v12  ;;  %v2865_v11 = vcombine.low %v25_v0, %v33_v1  ;;  %v2880_v12 = vcombine.high %v40_v6, %v48_v7  ;;  %v89_v1 = vld [vmem:[%s4948_s0 + $0x238] sm:$0xff] }
  0xb4   :  { %2344 = vmatmul.mubr.bf16.gmra.mxu1 %v2893_v13  ;;  %2254 = vmatprep.mubr.bf16.mxu0 %v2908_v14  ;;  %v2882_v13 = vcombine.high %v41_v8, %v49_v9 }
  0xb5   :  { %2351 = vmatprep.mubr.bf16.mxu1 %v2910_v15  ;;  %3580 = vmatpush3.bf16.msra.mxu0 %v3812_v16 }
  0xb6   :  { %3644 = vmatpush3.bf16.msra.mxu1 %v3814_v17  ;;  %3581 = vmatprep.subr.bf16.mxu0 %v3815_v18  ;;  %v56_v17 = vld [vmem:[%s4948_s0 + $0x130] sm:$0xff] }
  0xb7   :  { %3645 = vmatprep.subr.bf16.mxu1 %v3817_v19  ;;  %v64_v18 = vld [vmem:[%s4948_s0 + $0x170] sm:$0xff] }
  0xb8   :  { %v2895_v47 = vcombine.low %v56_v17, %v64_v18 }
  0xb9   :  { %3582 = vmatpush3.bf16.msra.mxu0 %v3816_v23 }
  0xba   :  { %3646 = vmatpush3.bf16.msra.mxu1 %v3818_v25  ;;  %3583 = vmatprep.subr.bf16.mxu0 %v3819_v26  ;;  %v2879_v25 = vcombine.low %v40_v6, %v48_v7 }
  0xbb   :  { %2255 = vmatmul.mubr.bf16.gmra.mxu0 %v2907_v27  ;;  %3647 = vmatprep.subr.bf16.mxu1 %v3821_v28  ;;  %v2881_v27 = vcombine.low %v41_v8, %v49_v9  ;;  %v2896_v28 = vcombine.high %v56_v17, %v64_v18 }
  0xbc   :  { %2352 = vmatmul.mubr.bf16.gmra.mxu1 %v2909_v29  ;;  %2262 = vmatprep.mubr.bf16.mxu0 %v2924_v30 }
  0xbd   :  { %2359 = vmatprep.mubr.bf16.mxu1 %v2926_v31  ;;  %3584 = vmatpush3.bf16.msra.mxu0 %v3820_v32  ;;  %v2898_v31 = vcombine.high %v57_v21, %v65_v22 }
  0xbe   :  { %3648 = vmatpush3.bf16.msra.mxu1 %v3822_v33  ;;  %3585 = vmatprep.subr.bf16.mxu0 %v3823_v34 }
  0xbf   :  { %3649 = vmatprep.subr.bf16.mxu1 %v3825_v35 }
  0xc1   :  { %3586 = vmatpush3.bf16.msra.mxu0 %v3824_v38 }
  0xc2   :  { %3650 = vmatpush3.bf16.msra.mxu1 %v3826_v41 }
  0xc3   :  { %2263 = vmatmul.mubr.bf16.gmra.mxu0 %v2923_v42 }
  0xc4   :  { %2360 = vmatmul.mubr.bf16.gmra.mxu1 %v2925_v43  ;;  %2270 = vmatprep.mubr.bf16.mxu0 %v2940_v44  ;;  %v73_v43 = vld [vmem:[%s4948_s0 + $0x1b8] sm:$0xff] }
  0xc5   :  { %2367 = vmatprep.mubr.bf16.mxu1 %v2942_v45  ;;  %v81_v44 = vld [vmem:[%s4948_s0 + $0x1f8] sm:$0xff] }
  0xc6   :  { %v2913_v7 = vcombine.low %v73_v43, %v81_v44 }
  0xcb   :  { %2271 = vmatmul.mubr.bf16.gmra.mxu0 %v2939_v50  ;;  %v2912_v50 = vcombine.high %v72_v39, %v80_v40 }
  0xcc   :  { %2368 = vmatmul.mubr.bf16.gmra.mxu1 %v2941_v51  ;;  %2278 = vmatprep.mubr.bf16.mxu0 %v2956_v52 }
  0xcd   :  { %2375 = vmatprep.mubr.bf16.mxu1 %v2958_v53  ;;  %v2914_v53 = vcombine.high %v73_v43, %v81_v44  ;;  %v120_v43 = vld [vmem:[%s4948_s0 + $0x330] sm:$0xff] }
  0xce   :  { %v128_v44 = vld [vmem:[%s4948_s0 + $0x370] sm:$0xff] }
  0xd3   :  { %2279 = vmatmul.mubr.bf16.gmra.mxu0 %v2955_v58 }
  0xd4   :  { %2376 = vmatmul.mubr.bf16.gmra.mxu1 %v2957_v59  ;;  %2286 = vmatprep.mubr.bf16.mxu0 %v2972_v60 }
  0xd5   :  { %2383 = vmatprep.mubr.bf16.mxu1 %v2974_v61  ;;  %v88_v61 = vld [vmem:[%s4948_s0 + $0x230] sm:$0xff] }
  0xd6   :  { %v2928_v8 = vcombine.high %v88_v61, %v96_v62 }
  0xdb   :  { %2287 = vmatmul.mubr.bf16.gmra.mxu0 %v2971_v2  ;;  %v97_v2 = vld [vmem:[%s4948_s0 + $0x278] sm:$0xff] }
  0xdc   :  { %2384 = vmatmul.mubr.bf16.gmra.mxu1 %v2973_v3  ;;  %2424 = vmatprep.mubr.bf16.mxu0 %v2864_v4 }
  0xdd   :  { %2521 = vmatprep.mubr.bf16.mxu1 %v2866_v5  ;;  %v2911_v5 = vcombine.low %v72_v39, %v80_v40 }
  0xe3   :  { %v3203_v14 = vpop.f32.mrf.mxu0  ;;  %2425 = vmatmul.mubr.bf16.vlgmr.msra.gmra.mxu0 %v2863_v10 }
  0xe4   :  { %v3267_v15 = vpop.f32.mrf.mxu1  ;;  %2522 = vmatmul.mubr.bf16.vlgmr.msra.gmra.mxu1 %v2865_v11  ;;  %2432 = vmatprep.mubr.bf16.mxu0 %v2880_v12  ;;  %v2930_v11 = vcombine.high %v89_v1, %v97_v2 }
  0xe5   :  { %v3204_v16 = vpop.f32.mrf.mxu0  ;;  %2529 = vmatprep.mubr.bf16.mxu1 %v2882_v13 }
  0xe6   :  { %v3205_v19 = vadd.f32 %v3204_v16, %v3203_v14  ;;  %v3268_v20 = vpop.f32.mrf.mxu1 }
  0xe7   :  { %v3269_v23 = vadd.f32 %v3268_v20, %v3267_v15  ;;  %v3206_v24 = vpop.f32.mrf.mxu0  ;;  %v112_v20 = vld [vmem:[%s4948_s0 + $0x2f0] sm:$0xff] }
  0xe8   :  { %v3270_v26 = vpop.f32.mrf.mxu1 }
  0xe9   :  { %v4564_v29 = vadd.f32 %v3269_v23, %v3205_v19  ;;  %v3207_v30 = vpop.f32.mrf.mxu0  ;;  %v104_v19 = vld [vmem:[%s4948_s0 + $0x2b0] sm:$0xff]  ;;  %v105_v23 = vld [vmem:[%s4948_s0 + $0x2b8] sm:$0xff] }
  0xea   :  { %v3208_v32 = vadd.f32 %v3207_v30, %v3206_v24  ;;  %v3271_v33 = vpop.f32.mrf.mxu1  ;;  %v113_v24 = vld [vmem:[%s4948_s0 + $0x2f8] sm:$0xff]  ;;  %v2929_v30 = vcombine.low %v89_v1, %v97_v2 }
  0xeb   :  { %v3272_v34 = vadd.f32 %v3271_v33, %v3270_v26  ;;  %v3209_v35 = vpop.f32.mrf.mxu0  ;;  %2433 = vmatmul.mubr.bf16.gmra.mxu0 %v2879_v25 }
  0xec   :  { %v3273_v36 = vpop.f32.mrf.mxu1  ;;  %2530 = vmatmul.mubr.bf16.gmra.mxu1 %v2881_v27  ;;  %2440 = vmatprep.mubr.bf16.mxu0 %v2896_v28  ;;  %v2927_v27 = vcombine.low %v88_v61, %v96_v62 }
  0xed   :  { %v4566_v37 = vadd.f32 %v3272_v34, %v3208_v32  ;;  %v3210_v38 = vpop.f32.mrf.mxu0  ;;  %2537 = vmatprep.mubr.bf16.mxu1 %v2898_v31  ;;  %v2944_v31 = vcombine.high %v104_v19, %v112_v20  ;;  %v2946_v34 = vcombine.high %v105_v23, %v113_v24 }
  0xee   :  { %v3211_v41 = vadd.f32 %v3210_v38, %v3209_v35  ;;  %v3274_v42 = vpop.f32.mrf.mxu1 }
  0xef   :  { %v3275_v45 = vadd.f32 %v3274_v42, %v3273_v36  ;;  %v3212_v46 = vpop.f32.mrf.mxu0 }
  0xf0   :  { %v3276_v48 = vpop.f32.mrf.mxu1 }
  0xf1   :  { %v4580_v51 = vadd.f32 %v3275_v45, %v3211_v41  ;;  %v3213_v52 = vpop.f32.mrf.mxu0 }
  0xf2   :  { %v3214_v54 = vadd.f32 %v3213_v52, %v3212_v46  ;;  %v3277_v55 = vpop.f32.mrf.mxu1  ;;  %v2943_v52 = vcombine.low %v104_v19, %v112_v20 }
  0xf3   :  { %v3278_v56 = vadd.f32 %v3277_v55, %v3276_v48  ;;  %v3215_v57 = vpop.f32.mrf.mxu0  ;;  %2441 = vmatmul.mubr.bf16.gmra.mxu0 %v2895_v47  ;;  %v121_v47 = vld [vmem:[%s4948_s0 + $0x338] sm:$0xff]  ;;  %v2960_v55 = vcombine.high %v120_v43, %v128_v44 }
  0xf4   :  { %v3279_v58 = vpop.f32.mrf.mxu1  ;;  %2538 = vmatmul.mubr.bf16.gmra.mxu1 %v2897_v49  ;;  %2448 = vmatprep.mubr.bf16.mxu0 %v2912_v50  ;;  %v129_v48 = vld [vmem:[%s4948_s0 + $0x378] sm:$0xff] }
  0xf5   :  { %v4582_v59 = vadd.f32 %v3278_v56, %v3214_v54  ;;  %v3216_v60 = vpop.f32.mrf.mxu0  ;;  %2545 = vmatprep.mubr.bf16.mxu1 %v2914_v53  ;;  %v2945_v54 = vcombine.low %v105_v23, %v113_v24 }
  0xf6   :  { %v3217_v63 = vadd.f32 %v3216_v60, %v3215_v57  ;;  %v3280_v0 = vpop.f32.mrf.mxu1 }
  0xf7   :  { %v3281_v3 = vadd.f32 %v3280_v0, %v3279_v58  ;;  %v3218_v4 = vpop.f32.mrf.mxu0  ;;  %v2962_v58 = vcombine.high %v121_v47, %v129_v48 }
  0xf8   :  { %v3282_v6 = vpop.f32.mrf.mxu1 }
  0xf9   :  { %v4596_v9 = vadd.f32 %v3281_v3, %v3217_v63  ;;  %v3219_v10 = vpop.f32.mrf.mxu0  ;;  %v136_v3 = vld [vmem:[%s4948_s0 + $0x3b0] sm:$0xff] }
  0xfa   :  { %v3220_v12 = vadd.f32 %v3219_v10, %v3218_v4  ;;  %v3283_v13 = vpop.f32.mrf.mxu1  ;;  %v144_v4 = vld [vmem:[%s4948_s0 + $0x3f0] sm:$0xff] }
  0xfb   :  { %v3284_v14 = vadd.f32 %v3283_v13, %v3282_v6  ;;  %v3221_v15 = vpop.f32.mrf.mxu0  ;;  %2449 = vmatmul.mubr.bf16.gmra.mxu0 %v2911_v5 }
  0xfc   :  { %v3285_v16 = vpop.f32.mrf.mxu1  ;;  %2546 = vmatmul.mubr.bf16.gmra.mxu1 %v2913_v7  ;;  %2456 = vmatprep.mubr.bf16.mxu0 %v2928_v8  ;;  %v137_v7 = vld [vmem:[%s4948_s0 + $0x3b8] sm:$0xff] }
  0xfd   :  { %v4598_v17 = vadd.f32 %v3284_v14, %v3220_v12  ;;  %v3222_v18 = vpop.f32.mrf.mxu0  ;;  %2553 = vmatprep.mubr.bf16.mxu1 %v2930_v11  ;;  %v145_v8 = vld [vmem:[%s4948_s0 + $0x3f8] sm:$0xff]  ;;  %v2959_v12 = vcombine.low %v120_v43, %v128_v44  ;;  %v2961_v14 = vcombine.low %v121_v47, %v129_v48 }
  0xfe   :  { %v3223_v21 = vadd.f32 %v3222_v18, %v3221_v15  ;;  %v3286_v22 = vpop.f32.mrf.mxu1  ;;  %v2976_v15 = vcombine.high %v136_v3, %v144_v4  ;;  %v2978_v19 = vcombine.high %v137_v7, %v145_v8 }
  0xff   :  { %v3287_v25 = vadd.f32 %v3286_v22, %v3285_v16  ;;  %v3224_v26 = vpop.f32.mrf.mxu0 }
 0x100   :  { %v3288_v28 = vpop.f32.mrf.mxu1 }
 0x101   :  { %v4612_v32 = vadd.f32 %v3287_v25, %v3223_v21  ;;  %v3225_v33 = vpop.f32.mrf.mxu0 }
 0x102   :  { %v3226_v35 = vadd.f32 %v3225_v33, %v3224_v26  ;;  %v3289_v36 = vpop.f32.mrf.mxu1  ;;  %v2975_v33 = vcombine.low %v136_v3, %v144_v4 }
 0x103   :  { %v3290_v38 = vadd.f32 %v3289_v36, %v3288_v28  ;;  %v3227_v39 = vpop.f32.mrf.mxu0  ;;  %2457 = vmatmul.mubr.bf16.gmra.mxu0 %v2927_v27 }
 0x104   :  { %v3291_v40 = vpop.f32.mrf.mxu1  ;;  %2554 = vmatmul.mubr.bf16.gmra.mxu1 %v2929_v30  ;;  %2464 = vmatprep.mubr.bf16.mxu0 %v2944_v31 }
 0x105   :  { %v4614_v41 = vadd.f32 %v3290_v38, %v3226_v35  ;;  %v3228_v42 = vpop.f32.mrf.mxu0  ;;  %2561 = vmatprep.mubr.bf16.mxu1 %v2946_v34  ;;  %v2977_v35 = vcombine.low %v137_v7, %v145_v8 }
 0x106   :  { %v3229_v45 = vadd.f32 %v3228_v42, %v3227_v39  ;;  %v3292_v46 = vpop.f32.mrf.mxu1 }
 0x107   :  { %v3293_v49 = vadd.f32 %v3292_v46, %v3291_v40  ;;  %v3230_v50 = vpop.f32.mrf.mxu0 }
 0x108   :  { %v3294_v53 = vpop.f32.mrf.mxu1 }
 0x109   :  { %v4628_v56 = vadd.f32 %v3293_v49, %v3229_v45  ;;  %v3231_v57 = vpop.f32.mrf.mxu0 }
 0x10a   :  { %v3232_v60 = vadd.f32 %v3231_v57, %v3230_v50  ;;  %v3295_v61 = vpop.f32.mrf.mxu1 }
 0x10b   :  { %v3296_v62 = vadd.f32 %v3295_v61, %v3294_v53  ;;  %v3233_v63 = vpop.f32.mrf.mxu0  ;;  %2465 = vmatmul.mubr.bf16.gmra.mxu0 %v2943_v52 }
 0x10c   :  { %v3297_v0 = vpop.f32.mrf.mxu1  ;;  %2562 = vmatmul.mubr.bf16.gmra.mxu1 %v2945_v54  ;;  %2472 = vmatprep.mubr.bf16.mxu0 %v2960_v55 }
 0x10d   :  { %v4630_v1 = vadd.f32 %v3296_v62, %v3232_v60  ;;  %v3234_v2 = vpop.f32.mrf.mxu0  ;;  %2569 = vmatprep.mubr.bf16.mxu1 %v2962_v58 }
 0x10e   :  { %v3235_v5 = vadd.f32 %v3234_v2, %v3233_v63  ;;  %v3298_v6 = vpop.f32.mrf.mxu1 }
 0x10f   :  { %v3299_v10 = vadd.f32 %v3298_v6, %v3297_v0  ;;  %v3236_v11 = vpop.f32.mrf.mxu0 }
 0x110   :  { %v3300_v13 = vpop.f32.mrf.mxu1 }
 0x111   :  { %v4644_v16 = vadd.f32 %v3299_v10, %v3235_v5  ;;  %v3237_v18 = vpop.f32.mrf.mxu0 }
 0x112   :  { %v3238_v20 = vadd.f32 %v3237_v18, %v3236_v11  ;;  %v3301_v21 = vpop.f32.mrf.mxu1 }
 0x113   :  { %v3302_v22 = vadd.f32 %v3301_v21, %v3300_v13  ;;  %v3239_v23 = vpop.f32.mrf.mxu0  ;;  %2473 = vmatmul.mubr.bf16.gmra.mxu0 %v2959_v12 }
 0x114   :  { %v3303_v24 = vpop.f32.mrf.mxu1  ;;  %2570 = vmatmul.mubr.bf16.gmra.mxu1 %v2961_v14  ;;  %2480 = vmatprep.mubr.bf16.mxu0 %v2976_v15 }
 0x115   :  { %v4646_v25 = vadd.f32 %v3302_v22, %v3238_v20  ;;  %v3240_v26 = vpop.f32.mrf.mxu0  ;;  %2577 = vmatprep.mubr.bf16.mxu1 %v2978_v19 }
 0x116   :  { %v3241_v27 = vadd.f32 %v3240_v26, %v3239_v23  ;;  %v3304_v28 = vpop.f32.mrf.mxu1 }
 0x117   :  { %v3305_v30 = vadd.f32 %v3304_v28, %v3303_v24  ;;  %v3242_v31 = vpop.f32.mrf.mxu0 }
 0x118   :  { %v3306_v34 = vpop.f32.mrf.mxu1 }
 0x119   :  { %v4648_v36 = vadd.f32 %v3305_v30, %v3241_v27  ;;  %v3243_v38 = vpop.f32.mrf.mxu0 }
 0x11a   :  { %v3244_v39 = vadd.f32 %v3243_v38, %v3242_v31  ;;  %v3307_v40 = vpop.f32.mrf.mxu1 }
 0x11b   :  { %v3308_v42 = vadd.f32 %v3307_v40, %v3306_v34  ;;  %v3245_v43 = vpop.f32.mrf.mxu0  ;;  %2481 = vmatmul.mubr.bf16.gmra.mxu0 %v2975_v33 }
 0x11c   :  { %v3309_v44 = vpop.f32.mrf.mxu1  ;;  %2578 = vmatmul.mubr.bf16.gmra.mxu1 %v2977_v35 }
 0x11d   :  { %v4650_v45 = vadd.f32 %v3308_v42, %v3244_v39  ;;  %v3246_v46 = vpop.f32.mrf.mxu0 }
 0x11e   :  { %v3247_v47 = vadd.f32 %v3246_v46, %v3245_v43  ;;  %v3310_v48 = vpop.f32.mrf.mxu1 }
 0x11f   :  { %v3311_v49 = vadd.f32 %v3310_v48, %v3309_v44  ;;  %v3248_v50 = vpop.f32.mrf.mxu0 }
 0x120   :  { %v3312_v52 = vpop.f32.mrf.mxu1 }
 0x121   :  { %v4652_v53 = vadd.f32 %v3311_v49, %v3247_v47  ;;  %v3249_v54 = vpop.f32.mrf.mxu0 }
 0x122   :  { %v3250_v55 = vadd.f32 %v3249_v54, %v3248_v50  ;;  %v3313_v57 = vpop.f32.mrf.mxu1 }
 0x123   :  { %v3314_v58 = vadd.f32 %v3313_v57, %v3312_v52  ;;  %v3331_v60 = vpop.f32.mrf.mxu0 }
 0x124   :  { %v3395_v61 = vpop.f32.mrf.mxu1 }
 0x125   :  { %v4654_v62 = vadd.f32 %v3314_v58, %v3250_v55  ;;  %v3332_v63 = vpop.f32.mrf.mxu0 }
 0x126   :  { %v3333_v0 = vadd.f32 %v3332_v63, %v3331_v60  ;;  %v3396_v2 = vpop.f32.mrf.mxu1 }
 0x127   :  { %v3397_v3 = vadd.f32 %v3396_v2, %v3395_v61  ;;  %v3334_v4 = vpop.f32.mrf.mxu0 }
 0x128   :  { %v2039_v5 = vadd.f32 %v3333_v0, %v4564_v29  ;;  %v3398_v6 = vpop.f32.mrf.mxu1 }
 0x129   :  { %v3335_v7 = vpop.f32.mrf.mxu0 }
 0x12a   :  { %v4657_v8 = vadd.f32 %v3397_v3, %v2039_v5  ;;  %v3336_v10 = vadd.f32 %v3335_v7, %v3334_v4  ;;  %v3399_v11 = vpop.f32.mrf.mxu1 }
 0x12b   :  { %v3400_v12 = vadd.f32 %v3399_v11, %v3398_v6  ;;  %v3337_v13 = vpop.f32.mrf.mxu0 }
 0x12c   :  { %v2042_v14 = vadd.f32 %v3336_v10, %v4566_v37  ;;  %v3401_v15 = vpop.f32.mrf.mxu1 }
 0x12d   :  { %v3338_v18 = vpop.f32.mrf.mxu0 }
 0x12e   :  { %v4660_v19 = vadd.f32 %v3400_v12, %v2042_v14  ;;  %v3339_v20 = vadd.f32 %v3338_v18, %v3337_v13  ;;  %v3402_v21 = vpop.f32.mrf.mxu1 }
 0x12f   :  { %v3403_v22 = vadd.f32 %v3402_v21, %v3401_v15  ;;  %v3340_v23 = vpop.f32.mrf.mxu0 }
 0x130   :  { %v2047_v29 = vadd.f32 %v3339_v20, %v4580_v51  ;;  %v3404_v24 = vpop.f32.mrf.mxu1 }
 0x131   :  { %v3341_v26 = vpop.f32.mrf.mxu0 }
 0x132   :  { %v4663_v27 = vadd.f32 %v3403_v22, %v2047_v29  ;;  %v3342_v28 = vadd.f32 %v3341_v26, %v3340_v23  ;;  %v3405_v30 = vpop.f32.mrf.mxu1 }
 0x133   :  { %v3406_v31 = vadd.f32 %v3405_v30, %v3404_v24  ;;  %v3343_v33 = vpop.f32.mrf.mxu0 }
 0x134   :  { %v2050_v37 = vadd.f32 %v3342_v28, %v4582_v59  ;;  %v3407_v34 = vpop.f32.mrf.mxu1 }
 0x135   :  { %v3344_v35 = vpop.f32.mrf.mxu0 }
 0x136   :  { %v4666_v38 = vadd.f32 %v3406_v31, %v2050_v37  ;;  %v3345_v39 = vadd.f32 %v3344_v35, %v3343_v33  ;;  %v3408_v40 = vpop.f32.mrf.mxu1 }
 0x137   :  { %v3409_v42 = vadd.f32 %v3408_v40, %v3407_v34  ;;  %v3346_v43 = vpop.f32.mrf.mxu0 }
 0x138   :  { %v2055_v51 = vadd.f32 %v3345_v39, %v4596_v9  ;;  %v3410_v44 = vpop.f32.mrf.mxu1 }
 0x139   :  { %v3347_v46 = vpop.f32.mrf.mxu0 }
 0x13a   :  { %v4669_v47 = vadd.f32 %v3409_v42, %v2055_v51  ;;  %v3348_v48 = vadd.f32 %v3347_v46, %v3346_v43  ;;  %v3411_v49 = vpop.f32.mrf.mxu1 }
 0x13b   :  { %v3412_v50 = vadd.f32 %v3411_v49, %v3410_v44  ;;  %v3349_v52 = vpop.f32.mrf.mxu0 }
 0x13c   :  { %v2058_v59 = vadd.f32 %v3348_v48, %v4598_v17  ;;  %v3413_v54 = vpop.f32.mrf.mxu1 }
 0x13d   :  { %v3350_v55 = vpop.f32.mrf.mxu0 }
 0x13e   :  { %v4672_v57 = vadd.f32 %v3412_v50, %v2058_v59  ;;  %v3351_v58 = vadd.f32 %v3350_v55, %v3349_v52  ;;  %v3414_v60 = vpop.f32.mrf.mxu1 }
 0x13f   :  { %v3415_v61 = vadd.f32 %v3414_v60, %v3413_v54  ;;  %v3352_v63 = vpop.f32.mrf.mxu0 }
 0x140   :  { %v2063_v9 = vadd.f32 %v3351_v58, %v4612_v32  ;;  %v3416_v0 = vpop.f32.mrf.mxu1 }
 0x141   :  { %v3353_v2 = vpop.f32.mrf.mxu0 }
 0x142   :  { %v4675_v3 = vadd.f32 %v3415_v61, %v2063_v9  ;;  %v3354_v4 = vadd.f32 %v3353_v2, %v3352_v63  ;;  %v3417_v5 = vpop.f32.mrf.mxu1 }
 0x143   :  { %v3418_v6 = vadd.f32 %v3417_v5, %v3416_v0  ;;  %v3355_v7 = vpop.f32.mrf.mxu0 }
 0x144   :  { %v2066_v17 = vadd.f32 %v3354_v4, %v4614_v41  ;;  %v3419_v10 = vpop.f32.mrf.mxu1 }
 0x145   :  { %v3356_v11 = vpop.f32.mrf.mxu0 }
 0x146   :  { %v4678_v12 = vadd.f32 %v3418_v6, %v2066_v17  ;;  %v3357_v13 = vadd.f32 %v3356_v11, %v3355_v7  ;;  %v3420_v14 = vpop.f32.mrf.mxu1 }
 0x147   :  { %v3421_v15 = vadd.f32 %v3420_v14, %v3419_v10  ;;  %v3358_v18 = vpop.f32.mrf.mxu0 }
 0x148   :  { %v2071_v32 = vadd.f32 %v3357_v13, %v4628_v56  ;;  %v3422_v20 = vpop.f32.mrf.mxu1 }
 0x149   :  { %v3359_v21 = vpop.f32.mrf.mxu0 }
 0x14a   :  { %v4681_v22 = vadd.f32 %v3421_v15, %v2071_v32  ;;  %v3360_v23 = vadd.f32 %v3359_v21, %v3358_v18  ;;  %v3423_v29 = vpop.f32.mrf.mxu1 }
 0x14b   :  { %v3424_v24 = vadd.f32 %v3423_v29, %v3422_v20  ;;  %v3361_v26 = vpop.f32.mrf.mxu0 }
 0x14c   :  { %v2074_v41 = vadd.f32 %v3360_v23, %v4630_v1  ;;  %v3425_v28 = vpop.f32.mrf.mxu1 }
 0x14d   :  { %v3362_v30 = vpop.f32.mrf.mxu0 }
 0x14e   :  { %v4684_v31 = vadd.f32 %v3424_v24, %v2074_v41  ;;  %v3363_v33 = vadd.f32 %v3362_v30, %v3361_v26  ;;  %v3426_v37 = vpop.f32.mrf.mxu1 }
 0x14f   :  { %v3427_v34 = vadd.f32 %v3426_v37, %v3425_v28  ;;  %v3364_v35 = vpop.f32.mrf.mxu0 }
 0x150   :  { %v2079_v56 = vadd.f32 %v3363_v33, %v4644_v16  ;;  %v3428_v39 = vpop.f32.mrf.mxu1 }
 0x151   :  { %v3365_v40 = vpop.f32.mrf.mxu0 }
 0x152   :  { %v4687_v42 = vadd.f32 %v3427_v34, %v2079_v56  ;;  %v3366_v43 = vadd.f32 %v3365_v40, %v3364_v35  ;;  %v3429_v51 = vpop.f32.mrf.mxu1 }
 0x153   :  { %v3430_v44 = vadd.f32 %v3429_v51, %v3428_v39  ;;  %v3367_v46 = vpop.f32.mrf.mxu0 }
 0x154   :  { %v2082_v1 = vadd.f32 %v3366_v43, %v4646_v25  ;;  %v3431_v48 = vpop.f32.mrf.mxu1 }
 0x155   :  { %v3368_v49 = vpop.f32.mrf.mxu0 }
 0x156   :  { %v4690_v50 = vadd.f32 %v3430_v44, %v2082_v1  ;;  %v3369_v52 = vadd.f32 %v3368_v49, %v3367_v46  ;;  %v3432_v59 = vpop.f32.mrf.mxu1 }
 0x157   :  { %v3433_v54 = vadd.f32 %v3432_v59, %v3431_v48  ;;  %v3370_v55 = vpop.f32.mrf.mxu0 }
 0x158   :  { %v2087_v16 = vadd.f32 %v3369_v52, %v4648_v36  ;;  %v3434_v58 = vpop.f32.mrf.mxu1 }
 0x159   :  { %v3371_v60 = vpop.f32.mrf.mxu0 }
 0x15a   :  { %v4693_v61 = vadd.f32 %v3433_v54, %v2087_v16  ;;  %v3372_v63 = vadd.f32 %v3371_v60, %v3370_v55  ;;  %v3435_v9 = vpop.f32.mrf.mxu1 }
 0x15b   :  { %v3436_v0 = vadd.f32 %v3435_v9, %v3434_v58  ;;  %v3373_v2 = vpop.f32.mrf.mxu0 }
 0x15c   :  { %v2090_v25 = vadd.f32 %v3372_v63, %v4650_v45  ;;  %v3437_v4 = vpop.f32.mrf.mxu1 }
 0x15d   :  { %v3374_v5 = vpop.f32.mrf.mxu0 }
 0x15e   :  { %v4696_v6 = vadd.f32 %v3436_v0, %v2090_v25  ;;  %v3375_v7 = vadd.f32 %v3374_v5, %v3373_v2  ;;  %v3438_v17 = vpop.f32.mrf.mxu1 }
 0x15f   :  { %v3439_v10 = vadd.f32 %v3438_v17, %v3437_v4  ;;  %v3376_v11 = vpop.f32.mrf.mxu0 }
 0x160   :  { %v2095_v36 = vadd.f32 %v3375_v7, %v4652_v53  ;;  %v3440_v13 = vpop.f32.mrf.mxu1 }
 0x161   :  { %v3377_v14 = vpop.f32.mrf.mxu0 }
 0x162   :  { %v4699_v15 = vadd.f32 %v3439_v10, %v2095_v36  ;;  %v3378_v18 = vadd.f32 %v3377_v14, %v3376_v11  ;;  %v3441_v32 = vpop.f32.mrf.mxu1 }
 0x163   :  { %v3442_v20 = vadd.f32 %v3441_v32, %v3440_v13  ;;  %v3459_v21 = vpop.f32.mrf.mxu0 }
 0x164   :  { %v2098_v45 = vadd.f32 %v3378_v18, %v4654_v62  ;;  %v3523_v23 = vpop.f32.mrf.mxu1 }
 0x165   :  { %v3460_v29 = vpop.f32.mrf.mxu0 }
 0x166   :  { %v4702_v24 = vadd.f32 %v3442_v20, %v2098_v45  ;;  %v3461_v26 = vadd.f32 %v3460_v29, %v3459_v21  ;;  %v3524_v41 = vpop.f32.mrf.mxu1 }
 0x167   :  { %v3525_v28 = vadd.f32 %v3524_v41, %v3523_v23  ;;  %v3462_v30 = vpop.f32.mrf.mxu0 }
 0x168   :  { %v2233_v53 = vadd.f32 %v3461_v26, %v4657_v8  ;;  %v3526_v33 = vpop.f32.mrf.mxu1 }
 0x169   :  { %v3463_v37 = vpop.f32.mrf.mxu0 }
 0x16a   :  { %v4705_v34 = vadd.f32 %v3525_v28, %v2233_v53  ;;  %v3464_v35 = vadd.f32 %v3463_v37, %v3462_v30  ;;  %v3527_v56 = vpop.f32.mrf.mxu1 }
 0x16b   :  { %v3528_v39 = vadd.f32 %v3527_v56, %v3526_v33  ;;  %v3465_v40 = vpop.f32.mrf.mxu0 }
 0x16c   :  { %v2236_v62 = vadd.f32 %v3464_v35, %v4660_v19  ;;  %v3529_v43 = vpop.f32.mrf.mxu1 }
 0x16d   :  { %v3466_v51 = vpop.f32.mrf.mxu0 }
 0x16e   :  { %v4708_v44 = vadd.f32 %v3528_v39, %v2236_v62  ;;  %v3467_v46 = vadd.f32 %v3466_v51, %v3465_v40  ;;  %v3530_v1 = vpop.f32.mrf.mxu1 }
 0x16f   :  { %v3531_v48 = vadd.f32 %v3530_v1, %v3529_v43  ;;  %v3468_v49 = vpop.f32.mrf.mxu0 }
 0x170   :  { %v2241_v8 = vadd.f32 %v3467_v46, %v4663_v27  ;;  %v3532_v52 = vpop.f32.mrf.mxu1 }
 0x171   :  { %v3469_v59 = vpop.f32.mrf.mxu0 }
 0x172   :  { %v4711_v54 = vadd.f32 %v3531_v48, %v2241_v8  ;;  %v3470_v55 = vadd.f32 %v3469_v59, %v3468_v49  ;;  %v3533_v16 = vpop.f32.mrf.mxu1 }
 0x173   :  { %v3534_v58 = vadd.f32 %v3533_v16, %v3532_v52  ;;  %v3471_v60 = vpop.f32.mrf.mxu0 }
 0x174   :  { %v2244_v19 = vadd.f32 %v3470_v55, %v4666_v38  ;;  %v3535_v63 = vpop.f32.mrf.mxu1 }
 0x175   :  { %v3472_v9 = vpop.f32.mrf.mxu0 }
 0x176   :  { %v4714_v0 = vadd.f32 %v3534_v58, %v2244_v19  ;;  %v3473_v2 = vadd.f32 %v3472_v9, %v3471_v60  ;;  %v3536_v25 = vpop.f32.mrf.mxu1 }
 0x177   :  { %v3537_v4 = vadd.f32 %v3536_v25, %v3535_v63  ;;  %v3474_v5 = vpop.f32.mrf.mxu0 }
 0x178   :  { %v2249_v27 = vadd.f32 %v3473_v2, %v4669_v47  ;;  %v3538_v7 = vpop.f32.mrf.mxu1 }
 0x179   :  { %v3475_v17 = vpop.f32.mrf.mxu0 }
 0x17a   :  { %v4717_v10 = vadd.f32 %v3537_v4, %v2249_v27  ;;  %v3476_v11 = vadd.f32 %v3475_v17, %v3474_v5  ;;  %v3539_v36 = vpop.f32.mrf.mxu1 }
 0x17b   :  { %v3540_v13 = vadd.f32 %v3539_v36, %v3538_v7  ;;  %v3477_v14 = vpop.f32.mrf.mxu0 }
 0x17c   :  { %v2252_v38 = vadd.f32 %v3476_v11, %v4672_v57  ;;  %v3541_v18 = vpop.f32.mrf.mxu1 }
 0x17d   :  { %v3478_v32 = vpop.f32.mrf.mxu0 }
 0x17e   :  { %v4720_v20 = vadd.f32 %v3540_v13, %v2252_v38  ;;  %v3479_v21 = vadd.f32 %v3478_v32, %v3477_v14  ;;  %v3542_v45 = vpop.f32.mrf.mxu1 }
 0x17f   :  { %v3543_v23 = vadd.f32 %v3542_v45, %v3541_v18  ;;  %v3480_v29 = vpop.f32.mrf.mxu0 }
 0x180   :  { %v2257_v47 = vadd.f32 %v3479_v21, %v4675_v3  ;;  %v3544_v26 = vpop.f32.mrf.mxu1 }
 0x181   :  { %v3481_v41 = vpop.f32.mrf.mxu0 }
 0x182   :  { %v4723_v28 = vadd.f32 %v3543_v23, %v2257_v47  ;;  %v3482_v30 = vadd.f32 %v3481_v41, %v3480_v29  ;;  %v3545_v53 = vpop.f32.mrf.mxu1 }
 0x183   :  { %v3546_v33 = vadd.f32 %v3545_v53, %v3544_v26  ;;  %v3483_v37 = vpop.f32.mrf.mxu0 }
 0x184   :  { %v2260_v57 = vadd.f32 %v3482_v30, %v4678_v12  ;;  %v3547_v35 = vpop.f32.mrf.mxu1 }
 0x185   :  { %v3484_v56 = vpop.f32.mrf.mxu0 }
 0x186   :  { %v4726_v39 = vadd.f32 %v3546_v33, %v2260_v57  ;;  %v3485_v40 = vadd.f32 %v3484_v56, %v3483_v37  ;;  %v3548_v62 = vpop.f32.mrf.mxu1 }
 0x187   :  { %v3549_v43 = vadd.f32 %v3548_v62, %v3547_v35  ;;  %v3486_v51 = vpop.f32.mrf.mxu0 }
 0x188   :  { %v2265_v3 = vadd.f32 %v3485_v40, %v4681_v22  ;;  %v3550_v46 = vpop.f32.mrf.mxu1 }
 0x189   :  { %v3487_v1 = vpop.f32.mrf.mxu0 }
 0x18a   :  { %v4729_v48 = vadd.f32 %v3549_v43, %v2265_v3  ;;  %v3488_v49 = vadd.f32 %v3487_v1, %v3486_v51  ;;  %v3551_v8 = vpop.f32.mrf.mxu1 }
 0x18b   :  { %v3552_v52 = vadd.f32 %v3551_v8, %v3550_v46  ;;  %v3489_v59 = vpop.f32.mrf.mxu0 }
 0x18c   :  { %v2268_v12 = vadd.f32 %v3488_v49, %v4684_v31  ;;  %v3553_v55 = vpop.f32.mrf.mxu1 }
 0x18d   :  { %v3490_v16 = vpop.f32.mrf.mxu0 }
 0x18e   :  { %v4732_v58 = vadd.f32 %v3552_v52, %v2268_v12  ;;  %v3491_v60 = vadd.f32 %v3490_v16, %v3489_v59  ;;  %v3554_v19 = vpop.f32.mrf.mxu1 }
 0x18f   :  { %v3555_v63 = vadd.f32 %v3554_v19, %v3553_v55  ;;  %v3492_v9 = vpop.f32.mrf.mxu0 }
 0x190   :  { %v2273_v22 = vadd.f32 %v3491_v60, %v4687_v42  ;;  %v3556_v2 = vpop.f32.mrf.mxu1 }
 0x191   :  { %v3493_v25 = vpop.f32.mrf.mxu0 }
 0x192   :  { %v4735_v4 = vadd.f32 %v3555_v63, %v2273_v22  ;;  %v3494_v5 = vadd.f32 %v3493_v25, %v3492_v9  ;;  %v3557_v27 = vpop.f32.mrf.mxu1 }
 0x193   :  { %v3558_v7 = vadd.f32 %v3557_v27, %v3556_v2  ;;  %v3495_v17 = vpop.f32.mrf.mxu0 }
 0x194   :  { %v2276_v31 = vadd.f32 %v3494_v5, %v4690_v50  ;;  %v3559_v11 = vpop.f32.mrf.mxu1 }
 0x195   :  { %v3496_v36 = vpop.f32.mrf.mxu0 }
 0x196   :  { %v4738_v13 = vadd.f32 %v3558_v7, %v2276_v31  ;;  %v3497_v14 = vadd.f32 %v3496_v36, %v3495_v17  ;;  %v3560_v38 = vpop.f32.mrf.mxu1 }
 0x197   :  { %v3561_v18 = vadd.f32 %v3560_v38, %v3559_v11  ;;  %v3498_v32 = vpop.f32.mrf.mxu0 }
 0x198   :  { %v2281_v42 = vadd.f32 %v3497_v14, %v4693_v61  ;;  %v3562_v21 = vpop.f32.mrf.mxu1 }
 0x199   :  { %v3499_v45 = vpop.f32.mrf.mxu0 }
 0x19a   :  { %v4741_v23 = vadd.f32 %v3561_v18, %v2281_v42  ;;  %v3500_v29 = vadd.f32 %v3499_v45, %v3498_v32  ;;  %v3563_v47 = vpop.f32.mrf.mxu1 }
 0x19b   :  { %v3564_v26 = vadd.f32 %v3563_v47, %v3562_v21  ;;  %v3501_v41 = vpop.f32.mrf.mxu0 }
 0x19c   :  { %v2284_v50 = vadd.f32 %v3500_v29, %v4696_v6  ;;  %v3565_v30 = vpop.f32.mrf.mxu1 }
 0x19d   :  { %v3502_v53 = vpop.f32.mrf.mxu0 }
 0x19e   :  { %v4744_v33 = vadd.f32 %v3564_v26, %v2284_v50  ;;  %v3503_v37 = vadd.f32 %v3502_v53, %v3501_v41  ;;  %v3566_v57 = vpop.f32.mrf.mxu1 }
 0x19f   :  { %v4746_v35 = vpop.f32.mrf.mxu0  ;;  %v3567_v56 = vadd.f32 %v3566_v57, %v3565_v30 }
 0x1a0   :  { %v2289_v61 = vadd.f32 %v3503_v37, %v4699_v15  ;;  %v4749_v40 = vpop.f32.mrf.mxu1 }
 0x1a1   :  { %v4751_v62 = vpop.f32.mrf.mxu0 }
 0x1a2   :  { %v4753_v43 = vadd.f32 %v3567_v56, %v2289_v61  ;;  %v4755_v51 = vpop.f32.mrf.mxu1 }
 0x1a3   :  { %v3587_v6 = vpop.f32.mrf.mxu0 }
 0x1a4   :  { %v3651_v3 = vpop.f32.mrf.mxu1 }
 0x1a5   :  { %v3588_v46 = vpop.f32.mrf.mxu0 }
 0x1a6   :  { %v3589_v1 = vadd.f32 %v3588_v46, %v3587_v6  ;;  %v3652_v49 = vpop.f32.mrf.mxu1 }
 0x1a7   :  { %v3590_v8 = vpop.f32.mrf.mxu0  ;;  %v3653_v60 = vadd.f32 %v3652_v49, %v3651_v3 }
 0x1a8   :  { %v3654_v52 = vpop.f32.mrf.mxu1  ;;  %v2427_v12 = vadd.f32 %v3589_v1, %v4705_v34 }
 0x1a9   :  { %v3591_v59 = vpop.f32.mrf.mxu0 }
 0x1aa   :  { %v3592_v15 = vadd.f32 %v3591_v59, %v3590_v8  ;;  %v3655_v55 = vpop.f32.mrf.mxu1  ;;  %v4759_v2 = vadd.f32 %v3653_v60, %v2427_v12 }
 0x1ab   :  { %v3593_v16 = vpop.f32.mrf.mxu0  ;;  %v3656_v63 = vadd.f32 %v3655_v55, %v3654_v52 }
 0x1ac   :  { %v2430_v19 = vadd.f32 %v3592_v15, %v4708_v44  ;;  %v3657_v9 = vpop.f32.mrf.mxu1 }
 0x1ad   :  { %v3594_v22 = vpop.f32.mrf.mxu0 }
 0x1ae   :  { %v4761_v25 = vadd.f32 %v3656_v63, %v2430_v19  ;;  %v3595_v5 = vadd.f32 %v3594_v22, %v3593_v16  ;;  %v3658_v27 = vpop.f32.mrf.mxu1 }
 0x1af   :  { %v3596_v7 = vpop.f32.mrf.mxu0  ;;  %v3659_v31 = vadd.f32 %v3658_v27, %v3657_v9 }
 0x1b0   :  { %v2586_v17 = vadd.f32 %v4761_v25, %v4759_v2  ;;  %v2435_v34 = vadd.f32 %v3595_v5, %v4711_v54  ;;  %v3660_v11 = vpop.f32.mrf.mxu1 }
 0x1b1   :  { %v3597_v36 = vpop.f32.mrf.mxu0 }
 0x1b2   :  { %v4766_v14 = vadd.f32 %v3659_v31, %v2435_v34  ;;  %v3598_v44 = vadd.f32 %v3597_v36, %v3596_v7  ;;  %v3661_v38 = vpop.f32.mrf.mxu1 }
 0x1b3   :  { %v3599_v18 = vpop.f32.mrf.mxu0  ;;  %v3662_v21 = vadd.f32 %v3661_v38, %v3660_v11 }
 0x1b4   :  { %v2587_v32 = vadd.f32 %v2586_v17, %v4766_v14  ;;  %v2438_v42 = vadd.f32 %v3598_v44, %v4714_v0  ;;  %v3663_v45 = vpop.f32.mrf.mxu1 }
 0x1b5   :  { %v3600_v29 = vpop.f32.mrf.mxu0 }
 0x1b6   :  { %v4770_v47 = vadd.f32 %v3662_v21, %v2438_v42  ;;  %v3601_v26 = vadd.f32 %v3600_v29, %v3599_v18  ;;  %v3664_v41 = vpop.f32.mrf.mxu1 }
 0x1b7   :  { %v3602_v54 = vpop.f32.mrf.mxu0  ;;  %v3665_v53 = vadd.f32 %v3664_v41, %v3663_v45 }
 0x1b8   :  { %v2588_v50 = vadd.f32 %v2587_v32, %v4770_v47  ;;  %v2443_v30 = vadd.f32 %v3601_v26, %v4717_v10  ;;  %v3666_v37 = vpop.f32.mrf.mxu1 }
 0x1b9   :  { %v3603_v57 = vpop.f32.mrf.mxu0 }
 0x1ba   :  { %v4774_v61 = vadd.f32 %v3665_v53, %v2443_v30  ;;  %v3604_v56 = vadd.f32 %v3603_v57, %v3602_v54  ;;  %v3667_v6 = vpop.f32.mrf.mxu1 }
 0x1bb   :  { %v3605_v0 = vpop.f32.mrf.mxu0  ;;  %v3668_v1 = vadd.f32 %v3667_v6, %v3666_v37 }
 0x1bc   :  { %v2589_v3 = vadd.f32 %v2588_v50, %v4774_v61  ;;  %v2446_v46 = vadd.f32 %v3604_v56, %v4720_v20  ;;  %v3669_v49 = vpop.f32.mrf.mxu1 }
 0x1bd   :  { %v3606_v8 = vpop.f32.mrf.mxu0 }
 0x1be   :  { %v4778_v52 = vadd.f32 %v3668_v1, %v2446_v46  ;;  %v3607_v59 = vadd.f32 %v3606_v8, %v3605_v0  ;;  %v3670_v12 = vpop.f32.mrf.mxu1 }
 0x1bf   :  { %v3608_v10 = vpop.f32.mrf.mxu0  ;;  %v3671_v16 = vadd.f32 %v3670_v12, %v3669_v49 }
 0x1c0   :  { %v2590_v15 = vadd.f32 %v2589_v3, %v4778_v52  ;;  %v2451_v55 = vadd.f32 %v3607_v59, %v4723_v28  ;;  %v3672_v60 = vpop.f32.mrf.mxu1 }
 0x1c1   :  { %v3609_v19 = vpop.f32.mrf.mxu0 }
 0x1c2   :  { %v4782_v63 = vadd.f32 %v3671_v16, %v2451_v55  ;;  %v3610_v9 = vadd.f32 %v3609_v19, %v3608_v10  ;;  %v3673_v22 = vpop.f32.mrf.mxu1 }
 0x1c3   :  { %v3611_v20 = vpop.f32.mrf.mxu0  ;;  %v3674_v7 = vadd.f32 %v3673_v22, %v3672_v60 }
 0x1c4   :  { %v2591_v5 = vadd.f32 %v2590_v15, %v4782_v63  ;;  %v2454_v27 = vadd.f32 %v3610_v9, %v4726_v39  ;;  %v3675_v17 = vpop.f32.mrf.mxu1 }
 0x1c5   :  { %v3612_v34 = vpop.f32.mrf.mxu0 }
 0x1c6   :  { %v4786_v31 = vadd.f32 %v3674_v7, %v2454_v27  ;;  %v3613_v11 = vadd.f32 %v3612_v34, %v3611_v20  ;;  %v3676_v36 = vpop.f32.mrf.mxu1  ;;  %v3506_v7 = vadd.f32 %v4751_v62, %v4746_v35 }
 0x1c7   :  { %v3614_v28 = vpop.f32.mrf.mxu0  ;;  %v3677_v18 = vadd.f32 %v3676_v36, %v3675_v17 }
 0x1c8   :  { %v2592_v44 = vadd.f32 %v2591_v5, %v4786_v31  ;;  %v2459_v38 = vadd.f32 %v3613_v11, %v4729_v48  ;;  %v3678_v32 = vpop.f32.mrf.mxu1 }
 0x1c9   :  { %v3615_v42 = vpop.f32.mrf.mxu0 }
 0x1ca   :  { %v4790_v21 = vadd.f32 %v3677_v18, %v2459_v38  ;;  %v3616_v45 = vadd.f32 %v3615_v42, %v3614_v28  ;;  %v3679_v29 = vpop.f32.mrf.mxu1 }
 0x1cb   :  { %v3617_v39 = vpop.f32.mrf.mxu0  ;;  %v3680_v54 = vadd.f32 %v3679_v29, %v3678_v32  ;;  %v2292_v32 = vadd.f32 %v3506_v7, %v4702_v24 }
 0x1cc   :  { %v2593_v26 = vadd.f32 %v2592_v44, %v4790_v21  ;;  %v2462_v41 = vadd.f32 %v3616_v45, %v4732_v58  ;;  %v3681_v50 = vpop.f32.mrf.mxu1 }
 0x1cd   :  { %v3618_v30 = vpop.f32.mrf.mxu0 }
 0x1ce   :  { %v4794_v53 = vadd.f32 %v3680_v54, %v2462_v41  ;;  %v3619_v37 = vadd.f32 %v3618_v30, %v3617_v39  ;;  %v3682_v57 = vpop.f32.mrf.mxu1  ;;  %v3570_v39 = vadd.f32 %v4755_v51, %v4749_v40 }
 0x1cf   :  { %v3620_v48 = vpop.f32.mrf.mxu0  ;;  %v3683_v0 = vadd.f32 %v3682_v57, %v3681_v50 }
 0x1d0   :  { %v2594_v56 = vadd.f32 %v2593_v26, %v4794_v53  ;;  %v2467_v6 = vadd.f32 %v3619_v37, %v4735_v4  ;;  %v3684_v3 = vpop.f32.mrf.mxu1  ;;  %v2389_v50 = vadd.f32 %v3570_v39, %v2292_v32 }
 0x1d1   :  { %v3621_v46 = vpop.f32.mrf.mxu0 }
 0x1d2   :  { %v4798_v1 = vadd.f32 %v3683_v0, %v2467_v6  ;;  %v3622_v49 = vadd.f32 %v3621_v46, %v3620_v48  ;;  %v3685_v8 = vpop.f32.mrf.mxu1 }
 0x1d3   :  { %v3623_v58 = vpop.f32.mrf.mxu0  ;;  %v3686_v10 = vadd.f32 %v3685_v8, %v3684_v3 }
 0x1d4   :  { %v2595_v59 = vadd.f32 %v2594_v56, %v4798_v1  ;;  %v2470_v12 = vadd.f32 %v3622_v49, %v4738_v13  ;;  %v3687_v15 = vpop.f32.mrf.mxu1 }
 0x1d5   :  { %v3624_v55 = vpop.f32.mrf.mxu0 }
 0x1d6   :  { %v2567_v16 = vadd.f32 %v3686_v10, %v2470_v12  ;;  %v3625_v60 = vadd.f32 %v3624_v55, %v3623_v58  ;;  %v3688_v19 = vpop.f32.mrf.mxu1 }
 0x1d7   :  { %v3626_v9 = vpop.f32.mrf.mxu0  ;;  %v3689_v20 = vadd.f32 %v3688_v19, %v3687_v15 }
 0x1d8   :  { %v2596_v4 = vadd.f32 %v2595_v59, %v2567_v16  ;;  %v2475_v22 = vadd.f32 %v3625_v60, %v4741_v23  ;;  %v3690_v5 = vpop.f32.mrf.mxu1 }
 0x1d9   :  { %v3627_v27 = vpop.f32.mrf.mxu0 }
 0x1da   :  { %v2572_v17 = vadd.f32 %v3689_v20, %v2475_v22  ;;  %v3628_v34 = vadd.f32 %v3627_v27, %v3626_v9  ;;  %v3691_v11 = vpop.f32.mrf.mxu1 }
 0x1db   :  { %v3629_v13 = vpop.f32.mrf.mxu0  ;;  %v3692_v44 = vadd.f32 %v3691_v11, %v3690_v5 }
 0x1dc   :  { %v2597_v36 = vadd.f32 %v2596_v4, %v2572_v17  ;;  %v2478_v28 = vadd.f32 %v3628_v34, %v4744_v33  ;;  %v3693_v38 = vpop.f32.mrf.mxu1 }
 0x1dd   :  { %v3630_v18 = vpop.f32.mrf.mxu0 }
 0x1de   :  { %v2575_v42 = vadd.f32 %v3692_v44, %v2478_v28  ;;  %v3631_v23 = vadd.f32 %v3630_v18, %v3629_v13  ;;  %v3694_v45 = vpop.f32.mrf.mxu1 }
 0x1df   :  { %v3632_v29 = vpop.f32.mrf.mxu0  ;;  %v3695_v26 = vadd.f32 %v3694_v45, %v3693_v38 }
 0x1e0   :  { %v2598_v35 = vadd.f32 %v2597_v36, %v2575_v42  ;;  %v2483_v62 = vadd.f32 %v3631_v23, %v4753_v43  ;;  %v3696_v41 = vpop.f32.mrf.mxu1 }
 0x1e1   :  { %v3633_v54 = vpop.f32.mrf.mxu0 }
 0x1e2   :  { %v2580_v33 = vadd.f32 %v3695_v26, %v2483_v62  ;;  %v3634_v30 = vadd.f32 %v3633_v54, %v3632_v29  ;;  %v3697_v37 = vpop.f32.mrf.mxu1 }
 0x1e3   :  { %v3698_v24 = vadd.f32 %v3697_v37, %v3696_v41 }
 0x1e4   :  { %v2599_v57 = vadd.f32 %v2598_v35, %v2580_v33  ;;  %v2486_v48 = vadd.f32 %v3634_v30, %v2389_v50 }
 0x1e6   :  { %v2583_v56 = vadd.f32 %v3698_v24, %v2486_v48 }
 0x1e8   :  { %v2600_v6 = vadd.f32 %v2599_v57, %v2583_v56 }
 0x1ea   :  { %v2601_v0 = vrot.slane %v2600_v6, 4 }
 0x1ec   :  { %v2602_v3 = vadd.f32 %v2601_v0, %v2600_v6 }
 0x1ee   :  { %v2603_v46 = vrot.slane %v2602_v3, 2 }
 0x1f0   :  { %v2604_v49 = vadd.f32 %v2603_v46, %v2602_v3 }
 0x1f2   :  { %v2605_v40 = vrot.slane %v2604_v49, 1 }
 0x1f4   :  { %v2606_v51 = vadd.f32 %v2605_v40, %v2604_v49  ;;  %v2675_v49 = vlaneseq }
 0x1f6   :  { %v2608_v8 = vmul.f32 0.0078125, %v2606_v51  ;;  %v2676_v40 = vshrl.u32 %v2675_v49, 7  ;;  %v2663_v51 = vld [vmem:[%s4949_s2] sm:$0x1] }
 0x1f8   :  { %v4811_v43 = vsub.f32 %v4759_v2, %v2608_v8  ;;  %v4814_v58 = vsub.f32 %v4761_v25, %v2608_v8  ;;  %v4817_v59 = vsub.f32 %v4766_v14, %v2608_v8  ;;  %v4820_v12 = vsub.f32 %v4770_v47, %v2608_v8 }
 0x1f9   :  { %v4823_v10 = vsub.f32 %v4774_v61, %v2608_v8  ;;  %v4826_v15 = vsub.f32 %v4778_v52, %v2608_v8  ;;  %v4829_v55 = vsub.f32 %v4782_v63, %v2608_v8  ;;  %v4832_v2 = vsub.f32 %v4786_v31, %v2608_v8 }
 0x1fa   :  { %v4835_v25 = vsub.f32 %v4790_v21, %v2608_v8  ;;  %v4838_v14 = vsub.f32 %v4794_v53, %v2608_v8  ;;  %v4841_v47 = vsub.f32 %v4798_v1, %v2608_v8  ;;  %v4843_v61 = vsub.f32 %v2567_v16, %v2608_v8 }
 0x1fb   :  { %v4845_v60 = vsub.f32 %v2572_v17, %v2608_v8  ;;  %v4847_v52 = vsub.f32 %v2575_v42, %v2608_v8  ;;  %v4849_v63 = vsub.f32 %v2580_v33, %v2608_v8  ;;  %v4851_v19 = vsub.f32 %v2583_v56, %v2608_v8 }
 0x1fc   :  { %v2625_v31 = vmul.f32 %v4811_v43, %v4811_v43  ;;  %v2626_v21 = vmul.f32 %v4814_v58, %v4814_v58  ;;  %v2627_v53 = vmul.f32 %v4817_v59, %v4817_v59  ;;  %v2628_v16 = vmul.f32 %v4820_v12, %v4820_v12 }
 0x1fd   :  { %v2629_v4 = vmul.f32 %v4823_v10, %v4823_v10  ;;  %v2630_v20 = vmul.f32 %v4826_v15, %v4826_v15  ;;  %v2631_v27 = vmul.f32 %v4829_v55, %v4829_v55  ;;  %v2632_v17 = vmul.f32 %v4832_v2, %v4832_v2 }
 0x1fe   :  { %v2641_v1 = vadd.f32 %v2626_v21, %v2625_v31  ;;  %v2633_v11 = vmul.f32 %v4835_v25, %v4835_v25  ;;  %v2634_v36 = vmul.f32 %v4838_v14, %v4838_v14  ;;  %v2635_v44 = vmul.f32 %v4841_v47, %v4841_v47 }
 0x1ff   :  { %v2636_v18 = vmul.f32 %v4843_v61, %v4843_v61  ;;  %v2637_v42 = vmul.f32 %v4845_v60, %v4845_v60  ;;  %v2638_v45 = vmul.f32 %v4847_v52, %v4847_v52  ;;  %v2639_v39 = vmul.f32 %v4849_v63, %v4849_v63 }
 0x200   :  { %v2642_v9 = vadd.f32 %v2641_v1, %v2627_v53  ;;  %v2640_v62 = vmul.f32 %v4851_v19, %v4851_v19  ;;  %v2677_v8 = vsub.s32 0, %v2676_v40 }
 0x202   :  { %v2643_v22 = vadd.f32 %v2642_v9, %v2628_v16 }
 0x204   :  { %v2644_v5 = vadd.f32 %v2643_v22, %v2629_v4 }
 0x206   :  { %v2645_v7 = vadd.f32 %v2644_v5, %v2630_v20 }
 0x208   :  { %v2646_v34 = vadd.f32 %v2645_v7, %v2631_v27  ;;  %v3107_v7 = vld [vmem:[%s4950_s3] ss:$0 sm:$0xff] }
 0x20a   :  { %v2647_v13 = vadd.f32 %v2646_v34, %v2632_v17 }
 0x20c   :  { %v2648_v28 = vadd.f32 %v2647_v13, %v2633_v11 }
 0x20e   :  { %v2649_v38 = vadd.f32 %v2648_v28, %v2634_v36 }
 0x210   :  { %v2650_v32 = vadd.f32 %v2649_v38, %v2635_v44 }
 0x212   :  { %v2651_v23 = vadd.f32 %v2650_v32, %v2636_v18 }
 0x214   :  { %v2652_v29 = vadd.f32 %v2651_v23, %v2637_v42 }
 0x216   :  { %v2653_v35 = vadd.f32 %v2652_v29, %v2638_v45 }
 0x218   :  { %v2654_v26 = vadd.f32 %v2653_v35, %v2639_v39 }
 0x21a   :  { %v2655_v41 = vadd.f32 %v2654_v26, %v2640_v62 }
 0x21c   :  { %v2656_v54 = vrot.slane %v2655_v41, 4 }
 0x21e   :  { %v2657_v50 = vadd.f32 %v2656_v54, %v2655_v41 }
 0x220   :  { %v2658_v33 = vrot.slane %v2657_v50, 2 }
 0x222   :  { %v2659_v30 = vadd.f32 %v2658_v33, %v2657_v50 }
 0x224   :  { %v2660_v37 = vrot.slane %v2659_v30, 1 }
 0x226   :  { %v2661_v57 = vadd.f32 %v2660_v37, %v2659_v30 }
 0x228   :  { %v2662_v48 = vmul.f32 0.0078125, %v2661_v57 }
 0x22a   :  { %v2664_v24 = vadd.f32 1e-05, %v2662_v48 }
 0x22c   :  { %3827 = vrsqrt.f32 %v2664_v24  ;;  %vm2667_vm0 = vcmp.eq.f32.partialorder %v2664_v24, inf  ;;  %v2670_v0 = vand.u32 2147483648, %v2664_v24  ;;  %vm2669_vm1 = vcmp.eq.f32.partialorder %v2664_v24, 0.0 }
 0x239   :  { %v3828_v56 = vpop.eup %3827 }
 0x23a   :  { %v2666_v6 = vmul.f32 %v3828_v56, %v2664_v24 }
 0x23c   :  { %v2668_v3 = vsel %vm2667_vm0, %v2664_v24, %v2666_v6 }
 0x23d   :  { %v2671_v46 = vsel %vm2669_vm1, %v2670_v0, %v2668_v3 }
 0x23e   :  { %3829 = vrcp.f32 %v2671_v46 }
 0x24b   :  { %v3830_v31 = vpop.eup %3829 }
 0x24c   :  { %v2673_v21 = vmul.f32 %v3830_v31, %v2663_v51 }
 0x24e   :  { %v2678_v53 = vrot.slane %v2673_v21, %v2677_v8 }
 0x250   :  { %v2680_v1 = vmul.f32 %v2678_v53, %v4811_v43  ;;  %v2681_v16 = vmul.f32 %v2678_v53, %v4814_v58  ;;  %v2682_v9 = vmul.f32 %v2678_v53, %v4817_v59  ;;  %v2683_v4 = vmul.f32 %v2678_v53, %v4820_v12 }
 0x251   :  { %v2684_v22 = vmul.f32 %v2678_v53, %v4823_v10  ;;  %v2685_v20 = vmul.f32 %v2678_v53, %v4826_v15  ;;  %v2686_v5 = vmul.f32 %v2678_v53, %v4829_v55  ;;  %v2687_v27 = vmul.f32 %v2678_v53, %v4832_v2 }
 0x252   :  { %v2688_v43 = vmul.f32 %v2678_v53, %v4835_v25  ;;  %v2689_v58 = vmul.f32 %v2678_v53, %v4838_v14  ;;  %v2690_v59 = vmul.f32 %v2678_v53, %v4841_v47  ;;  %v2691_v12 = vmul.f32 %v2678_v53, %v4843_v61 }
 0x253   :  { %v2692_v10 = vmul.f32 %v2678_v53, %v4845_v60  ;;  %v2693_v15 = vmul.f32 %v2678_v53, %v4847_v52  ;;  %v2694_v55 = vmul.f32 %v2678_v53, %v4849_v63  ;;  %v2695_v2 = vmul.f32 %v2678_v53, %v4851_v19 }
 0x254   :  { %v2703_v17 = vadd.f32 %v3107_v7, %v2680_v1  ;;  %v2704_v34 = vadd.f32 %v3107_v7, %v2681_v16  ;;  %v2705_v11 = vadd.f32 %v3107_v7, %v2682_v9  ;;  %v2706_v13 = vadd.f32 %v3107_v7, %v2683_v4 }
 0x255   :  { %v2707_v36 = vadd.f32 %v3107_v7, %v2684_v22  ;;  %v2708_v25 = vadd.f32 %v3107_v7, %v2685_v20  ;;  %v2709_v28 = vadd.f32 %v3107_v7, %v2686_v5  ;;  %v2710_v14 = vadd.f32 %v3107_v7, %v2687_v27 }
 0x256   :  { %v2711_v44 = vadd.f32 %v3107_v7, %v2688_v43  ;;  %v2712_v47 = vadd.f32 %v3107_v7, %v2689_v58  ;;  %v2713_v38 = vadd.f32 %v3107_v7, %v2690_v59  ;;  %v2714_v61 = vadd.f32 %v3107_v7, %v2691_v12 }
 0x257   :  { %v2715_v18 = vadd.f32 %v3107_v7, %v2692_v10  ;;  %v2716_v60 = vadd.f32 %v3107_v7, %v2693_v15  ;;  %v2717_v32 = vadd.f32 %v3107_v7, %v2694_v55  ;;  %v2718_v52 = vadd.f32 %v3107_v7, %v2695_v2 }
 0x258   :  { %vm2719_vm2 = vcmp.ge.f32.partialorder %v2703_v17, 0.0  ;;  %vm2720_vm3 = vcmp.ge.f32.partialorder %v2704_v34, 0.0  ;;  %vm2721_vm4 = vcmp.ge.f32.partialorder %v2705_v11, 0.0  ;;  %vm2722_vm5 = vcmp.ge.f32.partialorder %v2706_v13, 0.0 }
 0x259   :  { %vm2723_vm6 = vcmp.ge.f32.partialorder %v2707_v36, 0.0  ;;  %vm2724_vm7 = vcmp.ge.f32.partialorder %v2708_v25, 0.0  ;;  %vm2725_vm8 = vcmp.ge.f32.partialorder %v2709_v28, 0.0  ;;  %vm2726_vm9 = vcmp.ge.f32.partialorder %v2710_v14, 0.0 }
 0x25a   :  { %vm2727_vm10 = vcmp.ge.f32.partialorder %v2711_v44, 0.0  ;;  %vm2728_vm11 = vcmp.ge.f32.partialorder %v2712_v47, 0.0  ;;  %vm2729_vm12 = vcmp.ge.f32.partialorder %v2713_v38, 0.0  ;;  %vm2730_vm13 = vcmp.ge.f32.partialorder %v2714_v61, 0.0 }
 0x25b   :  { %vm2731_vm14 = vcmp.ge.f32.partialorder %v2715_v18, 0.0  ;;  %vm2732_vm15 = vcmp.ge.f32.partialorder %v2716_v60, 0.0  ;;  %vm2733_vm0 = vcmp.ge.f32.partialorder %v2717_v32, 0.0  ;;  %vm2734_vm1 = vcmp.ge.f32.partialorder %v2718_v52, 0.0 }
 0x25c   :  { %v2735_v63 = vmul.f32 0.2, %v2703_v17  ;;  %v2736_v19 = vmul.f32 0.2, %v2704_v34  ;;  %v2737_v42 = vmul.f32 0.2, %v2705_v11 }
 0x25d   :  { %v2738_v23 = vmul.f32 0.2, %v2706_v13  ;;  %v2739_v45 = vmul.f32 0.2, %v2707_v36  ;;  %v2740_v29 = vmul.f32 0.2, %v2708_v25 }
 0x25e   :  { %v2741_v39 = vmul.f32 0.2, %v2709_v28  ;;  %v2742_v35 = vmul.f32 0.2, %v2710_v14  ;;  %v2743_v62 = vmul.f32 0.2, %v2711_v44  ;;  %v2751_v26 = vsel %vm2719_vm2, %v2703_v17, %v2735_v63 }
 0x25f   :  { %v2744_v41 = vmul.f32 0.2, %v2712_v47  ;;  %v2745_v54 = vmul.f32 0.2, %v2713_v38  ;;  %v2746_v50 = vmul.f32 0.2, %v2714_v61  ;;  %v2752_v33 = vsel %vm2720_vm3, %v2704_v34, %v2736_v19 }
 0x260   :  { %v2747_v30 = vmul.f32 0.2, %v2715_v18  ;;  %v2748_v37 = vmul.f32 0.2, %v2716_v60  ;;  %v2749_v57 = vmul.f32 0.2, %v2717_v32  ;;  %v2753_v48 = vsel %vm2721_vm4, %v2705_v11, %v2737_v42 }
 0x261   :  { %v2750_v24 = vmul.f32 0.2, %v2718_v52  ;;  %v2754_v56 = vsel %vm2722_vm5, %v2706_v13, %v2738_v23  ;;  %v2755_v6 = vsel %vm2723_vm6, %v2707_v36, %v2739_v45  ;;  %v2756_v0 = vsel %vm2724_vm7, %v2708_v25, %v2740_v29 }
 0x262   :  { %v2757_v3 = vsel %vm2725_vm8, %v2709_v28, %v2741_v39  ;;  %v2758_v46 = vsel %vm2726_vm9, %v2710_v14, %v2742_v35  ;;  %v2759_v49 = vsel %vm2727_vm10, %v2711_v44, %v2743_v62  ;;  %v2760_v40 = vsel %vm2728_vm11, %v2712_v47, %v2744_v41 }
 0x263   :  { %v2761_v51 = vsel %vm2729_vm12, %v2713_v38, %v2745_v54  ;;  %v2762_v8 = vsel %vm2730_vm13, %v2714_v61, %v2746_v50  ;;  %v2763_v31 = vsel %vm2731_vm14, %v2715_v18, %v2747_v30  ;;  %v2764_v21 = vsel %vm2732_vm15, %v2716_v60, %v2748_v37 }
 0x264   :  { %v2765_v53 = vsel %vm2733_vm0, %v2717_v32, %v2749_v57  ;;  %v2766_v1 = vsel %vm2734_vm1, %v2718_v52, %v2750_v24  ;;  %v3143_v16 = vpack.c.bf16 %v2752_v33, %v2751_v26  ;;  %v3148_v9 = vpack.c.bf16 %v2754_v56, %v2753_v48 }
 0x265   :  { %v3153_v4 = vpack.c.bf16 %v2756_v0, %v2755_v6  ;;  %v3158_v22 = vpack.c.bf16 %v2758_v46, %v2757_v3  ;;  %v3163_v20 = vpack.c.bf16 %v2760_v40, %v2759_v49  ;;  %v3168_v5 = vpack.c.bf16 %v2762_v8, %v2761_v51 }
 0x266   :  { %3144 = vst [vmem:[%s4951_s4] sm:$0xff] %v3143_v16   ;;  %3180 = vst [vmem:[%s4951_s4 + $0x8] sm:$0xff] %v3148_v9   ;;  %v3173_v27 = vpack.c.bf16 %v2764_v21, %v2763_v31  ;;  %v3178_v7 = vpack.c.bf16 %v2766_v1, %v2765_v53 }
 0x267   :  { %3181 = vst [vmem:[%s4951_s4 + $0x10] sm:$0xff] %v3153_v4   ;;  %3182 = vst [vmem:[%s4951_s4 + $0x18] sm:$0xff] %v3158_v22  }
 0x268   :  { %3183 = vst [vmem:[%s4951_s4 + $0x20] sm:$0xff] %v3163_v20   ;;  %3184 = vst [vmem:[%s4951_s4 + $0x28] sm:$0xff] %v3168_v5  }
 0x269   :  { %3185 = vst [vmem:[%s4951_s4 + $0x30] sm:$0xff] %v3173_v27   ;;  %3186 = vst [vmem:[%s4951_s4 + $0x38] sm:$0xff] %v3178_v7  }

// kernel: discriminator_forward.7
= control target key start
LH: loop header
LB: loop body
LE: loop exit
PB: predicated region body
PF: predicated region fallthrough
CT: control target
= control target key end

     0   :  { %vm2345_vm0 = vmmov 0   ;;  %vm1714_vm7 = vcmask 261120   ;;  %vm1788_vm8 = vcmask 1041408   ;;  %vm1798_vm9 = vcmask 1024   ;;  %s2890_s1 = inlined_call_operand.vmem [shape: bf16[2048,128], index: 1, kind: input, shape index: {}]   ;;  %s2891_s0 = inlined_call_operand.vmem [shape: bf16[32,2048], index: 0, kind: input, shape index: {}]   ;;  %s2892_s2 = inlined_call_operand.vmem [shape: f32[1,128], index: 2, kind: input, shape index: {}]   ;;  %s2893_s3 = inlined_call_operand.vmem [shape: f32[1,128], index: 3, kind: input, shape index: {}]   ;;  %s2894_s4 = inlined_call_operand.vmem [shape: f32[32,128], index: 4, kind: input, shape index: {}]   ;;  %s2895_s5 = inlined_call_operand.vmem [shape: f32[2,32], index: 5, kind: input, shape index: {}]   ;;  %s2896_s6 = inlined_call_operand.vmem [shape: f32[2,1], index: 6, kind: output, shape index: {}]  }
   0x1   :  { %v2208_v0 = vld [vmem:[%s2890_s1 + $0x78] sm:$0xff]   ;;  %v2212_v4 = vld [vmem:[%s2890_s1 + $0x70] sm:$0xff]   ;;  %v2216_v8 = vld [vmem:[%s2890_s1 + $0x68] sm:$0xff]  }
   0x2   :  { %v2209_v1 = vld [vmem:[%s2890_s1 + $0xf8] sm:$0xff]   ;;  %1966 = vmatprep.subr.bf16.mxu0 %v2208_v0  ;;  %v2213_v5 = vld [vmem:[%s2890_s1 + $0xf0] sm:$0xff]   ;;  %v2217_v9 = vld [vmem:[%s2890_s1 + $0xe8] sm:$0xff]  }
   0x3   :  { %v2210_v2 = vld [vmem:[%s2890_s1 + $0x38] sm:$0xff]   ;;  %1994 = vmatprep.subr.bf16.mxu1 %v2209_v1  ;;  %v2214_v6 = vld [vmem:[%s2890_s1 + $0x30] sm:$0xff]   ;;  %v2218_v10 = vld [vmem:[%s2890_s1 + $0x28] sm:$0xff]  }
   0x4   :  { %v2211_v3 = vld [vmem:[%s2890_s1 + $0xb8] sm:$0xff]   ;;  %1967 = vmatpush3.bf16.msra.mxu0 %v2210_v2  ;;  %v2215_v7 = vld [vmem:[%s2890_s1 + $0xb0] sm:$0xff]   ;;  %v2219_v11 = vld [vmem:[%s2890_s1 + $0xa8] sm:$0xff]  }
   0x5   :  { %1995 = vmatpush3.bf16.msra.mxu1 %v2211_v3  ;;  %1968 = vmatprep.subr.bf16.mxu0 %v2212_v4  ;;  %v2220_v12 = vld [vmem:[%s2890_s1 + $0x60] sm:$0xff]   ;;  %v2224_v16 = vld [vmem:[%s2890_s1 + $0x58] sm:$0xff]   ;;  %v2228_v20 = vld [vmem:[%s2890_s1 + $0x50] sm:$0xff]  }
   0x6   :  { %1996 = vmatprep.subr.bf16.mxu1 %v2213_v5  ;;  %v2221_v13 = vld [vmem:[%s2890_s1 + $0xe0] sm:$0xff]   ;;  %v2225_v17 = vld [vmem:[%s2890_s1 + $0xd8] sm:$0xff]   ;;  %v2229_v21 = vld [vmem:[%s2890_s1 + $0xd0] sm:$0xff]  }
   0x7   :  { %v2222_v14 = vld [vmem:[%s2890_s1 + $0x20] sm:$0xff]   ;;  %v2226_v18 = vld [vmem:[%s2890_s1 + $0x18] sm:$0xff]   ;;  %v2230_v22 = vld [vmem:[%s2890_s1 + $0x10] sm:$0xff]  }
   0x8   :  { %1969 = vmatpush3.bf16.msra.mxu0 %v2214_v6  ;;  %v2223_v15 = vld [vmem:[%s2890_s1 + $0xa0] sm:$0xff]   ;;  %v2227_v19 = vld [vmem:[%s2890_s1 + $0x98] sm:$0xff]   ;;  %v2231_v23 = vld [vmem:[%s2890_s1 + $0x90] sm:$0xff]  }
   0x9   :  { %1997 = vmatpush3.bf16.msra.mxu1 %v2215_v7  ;;  %1970 = vmatprep.subr.bf16.mxu0 %v2216_v8  ;;  %v2232_v24 = vld [vmem:[%s2890_s1 + $0x48] sm:$0xff]   ;;  %v2236_v28 = vld [vmem:[%s2890_s1 + $0x40] sm:$0xff]   ;;  %v2240_v40 = vld [vmem:[%s2890_s1 + $0x178] sm:$0xff]  }
   0xa   :  { %1998 = vmatprep.subr.bf16.mxu1 %v2217_v9  ;;  %v2233_v25 = vld [vmem:[%s2890_s1 + $0xc8] sm:$0xff]   ;;  %v2237_v29 = vld [vmem:[%s2890_s1 + $0xc0] sm:$0xff]   ;;  %v2241_v41 = vld [vmem:[%s2890_s1 + $0x1f8] sm:$0xff]  }
   0xb   :  { %v2234_v26 = vld [vmem:[%s2890_s1 + $0x8] sm:$0xff]   ;;  %v2238_v30 = vld [vmem:[%s2890_s1] sm:$0xff]   ;;  %v2242_v42 = vld [vmem:[%s2890_s1 + $0x138] sm:$0xff]  }
   0xc   :  { %1971 = vmatpush3.bf16.msra.mxu0 %v2218_v10  ;;  %v2235_v27 = vld [vmem:[%s2890_s1 + $0x88] sm:$0xff]   ;;  %v2239_v31 = vld [vmem:[%s2890_s1 + $0x80] sm:$0xff]   ;;  %v2243_v43 = vld [vmem:[%s2890_s1 + $0x1b8] sm:$0xff]  }
   0xd   :  { %1999 = vmatpush3.bf16.msra.mxu1 %v2219_v11  ;;  %1972 = vmatprep.subr.bf16.mxu0 %v2220_v12  ;;  %v24_v32 = vld [vmem:[%s2891_s0] sm:$0xff]  ;;  %v25_v34 = vld [vmem:[%s2891_s0 + $0x8] sm:$0xff]  ;;  %v2244_v44 = vld [vmem:[%s2890_s1 + $0x170] sm:$0xff]  }
   0xe   :  { %2000 = vmatprep.subr.bf16.mxu1 %v2221_v13  ;;  %v32_v33 = vld [vmem:[%s2891_s0 + $0x40] sm:$0xff]  ;;  %v33_v37 = vld [vmem:[%s2891_s0 + $0x48] sm:$0xff]  ;;  %v2245_v45 = vld [vmem:[%s2890_s1 + $0x1f0] sm:$0xff]  }
   0xf   :  { %v1804_v35 = vcombine.low %v24_v32, %v32_v33  ;;  %v1805_v36 = vcombine.high %v24_v32, %v32_v33  ;;  %v1806_v38 = vcombine.low %v25_v34, %v33_v37  ;;  %v1807_v39 = vcombine.high %v25_v34, %v33_v37  ;;  %v2246_v46 = vld [vmem:[%s2890_s1 + $0x130] sm:$0xff]   ;;  %v2248_v48 = vld [vmem:[%s2890_s1 + $0x168] sm:$0xff]   ;;  %v2252_v52 = vld [vmem:[%s2890_s1 + $0x160] sm:$0xff]  }
  0x10   :  { %1973 = vmatpush3.bf16.msra.mxu0 %v2222_v14  ;;  %v2247_v47 = vld [vmem:[%s2890_s1 + $0x1b0] sm:$0xff]   ;;  %v2249_v49 = vld [vmem:[%s2890_s1 + $0x1e8] sm:$0xff]   ;;  %v2253_v53 = vld [vmem:[%s2890_s1 + $0x1e0] sm:$0xff]  }
  0x11   :  { %2001 = vmatpush3.bf16.msra.mxu1 %v2223_v15  ;;  %1974 = vmatprep.subr.bf16.mxu0 %v2224_v16  ;;  %v2250_v50 = vld [vmem:[%s2890_s1 + $0x128] sm:$0xff]   ;;  %v2254_v54 = vld [vmem:[%s2890_s1 + $0x120] sm:$0xff]   ;;  %v2256_v56 = vld [vmem:[%s2890_s1 + $0x158] sm:$0xff]  }
  0x12   :  { %2002 = vmatprep.subr.bf16.mxu1 %v2225_v17  ;;  %1272 = vmatprep.mubr.bf16.mxu0 %v1805_v36  ;;  %v2251_v51 = vld [vmem:[%s2890_s1 + $0x1a8] sm:$0xff]   ;;  %v2255_v55 = vld [vmem:[%s2890_s1 + $0x1a0] sm:$0xff]   ;;  %v2257_v57 = vld [vmem:[%s2890_s1 + $0x1d8] sm:$0xff]  }
  0x13   :  { %1321 = vmatprep.mubr.bf16.mxu1 %v1807_v39  ;;  %v2258_v58 = vld [vmem:[%s2890_s1 + $0x118] sm:$0xff]   ;;  %v40_v60 = vld [vmem:[%s2891_s0 + $0x80] sm:$0xff]  ;;  %v41_v63 = vld [vmem:[%s2891_s0 + $0x88] sm:$0xff] }
  0x14   :  { %1975 = vmatpush3.bf16.msra.mxu0 %v2226_v18  ;;  %v2259_v59 = vld [vmem:[%s2890_s1 + $0x198] sm:$0xff]   ;;  %v48_v61 = vld [vmem:[%s2891_s0 + $0xc0] sm:$0xff]  ;;  %v49_v0 = vld [vmem:[%s2891_s0 + $0xc8] sm:$0xff] }
  0x15   :  { %2003 = vmatpush3.bf16.msra.mxu1 %v2227_v19  ;;  %1976 = vmatprep.subr.bf16.mxu0 %v2228_v20  ;;  %v1821_v62 = vcombine.high %v40_v60, %v48_v61  ;;  %v1820_v1 = vcombine.low %v40_v60, %v48_v61  ;;  %v1823_v2 = vcombine.high %v41_v63, %v49_v0  ;;  %v2260_v4 = vld [vmem:[%s2890_s1 + $0x150] sm:$0xff]   ;;  %v2264_v8 = vld [vmem:[%s2890_s1 + $0x148] sm:$0xff]   ;;  %v2268_v12 = vld [vmem:[%s2890_s1 + $0x140] sm:$0xff]  }
  0x16   :  { %2004 = vmatprep.subr.bf16.mxu1 %v2229_v21  ;;  %v1822_v3 = vcombine.low %v41_v63, %v49_v0  ;;  %v2261_v5 = vld [vmem:[%s2890_s1 + $0x1d0] sm:$0xff]   ;;  %v2265_v9 = vld [vmem:[%s2890_s1 + $0x1c8] sm:$0xff]   ;;  %v2269_v13 = vld [vmem:[%s2890_s1 + $0x1c0] sm:$0xff]  }
  0x17   :  { %v2262_v6 = vld [vmem:[%s2890_s1 + $0x110] sm:$0xff]   ;;  %v2266_v10 = vld [vmem:[%s2890_s1 + $0x108] sm:$0xff]   ;;  %v2270_v14 = vld [vmem:[%s2890_s1 + $0x100] sm:$0xff]  }
  0x18   :  { %1977 = vmatpush3.bf16.msra.mxu0 %v2230_v22  ;;  %v2263_v7 = vld [vmem:[%s2890_s1 + $0x190] sm:$0xff]   ;;  %v2267_v11 = vld [vmem:[%s2890_s1 + $0x188] sm:$0xff]   ;;  %v2271_v15 = vld [vmem:[%s2890_s1 + $0x180] sm:$0xff]  }
  0x19   :  { %2005 = vmatpush3.bf16.msra.mxu1 %v2231_v23  ;;  %1978 = vmatprep.subr.bf16.mxu0 %v2232_v24  ;;  %v26_v16 = vld [vmem:[%s2891_s0 + $0x10] sm:$0xff]  ;;  %v27_v18 = vld [vmem:[%s2891_s0 + $0x18] sm:$0xff]  ;;  %v2280_v36 = vld [vmem:[%s2890_s1 + $0x268] sm:$0xff]  }
  0x1a   :  { %2006 = vmatprep.subr.bf16.mxu1 %v2233_v25  ;;  %v34_v17 = vld [vmem:[%s2891_s0 + $0x50] sm:$0xff]  ;;  %v35_v19 = vld [vmem:[%s2891_s0 + $0x58] sm:$0xff]  ;;  %v2281_v37 = vld [vmem:[%s2890_s1 + $0x2e8] sm:$0xff]  }
  0x1b   :  { %v1808_v20 = vcombine.low %v26_v16, %v34_v17  ;;  %v1809_v21 = vcombine.high %v26_v16, %v34_v17  ;;  %v1810_v22 = vcombine.low %v27_v18, %v35_v19  ;;  %v1811_v23 = vcombine.high %v27_v18, %v35_v19  ;;  %v2272_v24 = vld [vmem:[%s2890_s1 + $0x278] sm:$0xff]   ;;  %v42_v32 = vld [vmem:[%s2891_s0 + $0x90] sm:$0xff]  ;;  %v2300_v60 = vld [vmem:[%s2890_s1 + $0x240] sm:$0xff]  }
  0x1c   :  { %1979 = vmatpush3.bf16.msra.mxu0 %v2234_v26  ;;  %v2273_v25 = vld [vmem:[%s2890_s1 + $0x2f8] sm:$0xff]   ;;  %v50_v33 = vld [vmem:[%s2891_s0 + $0xd0] sm:$0xff]  ;;  %v2301_v61 = vld [vmem:[%s2890_s1 + $0x2c0] sm:$0xff]  }
  0x1d   :  { %2007 = vmatpush3.bf16.msra.mxu1 %v2235_v27  ;;  %1980 = vmatprep.subr.bf16.mxu0 %v2236_v28  ;;  %v2274_v26 = vld [vmem:[%s2890_s1 + $0x238] sm:$0xff]   ;;  %v2276_v28 = vld [vmem:[%s2890_s1 + $0x270] sm:$0xff]   ;;  %v1825_v34 = vcombine.high %v42_v32, %v50_v33  ;;  %v2303_v63 = vld [vmem:[%s2890_s1 + $0x280] sm:$0xff]  }
  0x1e   :  { %2008 = vmatprep.subr.bf16.mxu1 %v2237_v29  ;;  %v2275_v27 = vld [vmem:[%s2890_s1 + $0x2b8] sm:$0xff]   ;;  %v2277_v29 = vld [vmem:[%s2890_s1 + $0x2f0] sm:$0xff]   ;;  %v28_v0 = vld [vmem:[%s2891_s0 + $0x20] sm:$0xff] }
  0x1f   :  { %v51_v39 = vld [vmem:[%s2891_s0 + $0xd8] sm:$0xff]  ;;  %v44_v16 = vld [vmem:[%s2891_s0 + $0xa0] sm:$0xff] }
  0x20   :  { %1981 = vmatpush3.bf16.msra.mxu0 %v2238_v30  ;;  %v2278_v30 = vld [vmem:[%s2890_s1 + $0x230] sm:$0xff]   ;;  %v52_v17 = vld [vmem:[%s2891_s0 + $0xe0] sm:$0xff] }
  0x21   :  { %2009 = vmatpush3.bf16.msra.mxu1 %v2239_v31  ;;  %2022 = vmatprep.subr.bf16.mxu0 %v2240_v40  ;;  %v2279_v31 = vld [vmem:[%s2890_s1 + $0x2b0] sm:$0xff]   ;;  %v1829_v18 = vcombine.high %v44_v16, %v52_v17  ;;  %v1828_v19 = vcombine.low %v44_v16, %v52_v17 }
  0x22   :  { %2050 = vmatprep.subr.bf16.mxu1 %v2241_v41  ;;  %v2282_v41 = vld [vmem:[%s2890_s1 + $0x228] sm:$0xff]  }
  0x23   :  { %1273 = vmatmul.mubr.bf16.vlgmr.msra.gmra.mxu0 %v1804_v35  ;;  %v1824_v35 = vcombine.low %v42_v32, %v50_v33  ;;  %v2320_v32 = vld [vmem:[%s2890_s1 + $0x358] sm:$0xff]  }
  0x24   :  { %1322 = vmatmul.mubr.bf16.vlgmr.msra.gmra.mxu1 %v1806_v38  ;;  %2023 = vmatpush3.bf16.msra.mxu0 %v2242_v42  ;;  %v43_v38 = vld [vmem:[%s2891_s0 + $0x98] sm:$0xff] }
  0x25   :  { %2051 = vmatpush3.bf16.msra.mxu1 %v2243_v43  ;;  %2024 = vmatprep.subr.bf16.mxu0 %v2244_v44  ;;  %v1827_v40 = vcombine.high %v43_v38, %v51_v39  ;;  %v1826_v42 = vcombine.low %v43_v38, %v51_v39  ;;  %v2283_v43 = vld [vmem:[%s2890_s1 + $0x2a8] sm:$0xff]   ;;  %v2284_v44 = vld [vmem:[%s2890_s1 + $0x260] sm:$0xff]   ;;  %v2321_v33 = vld [vmem:[%s2890_s1 + $0x3d8] sm:$0xff]  }
  0x26   :  { %2052 = vmatprep.subr.bf16.mxu1 %v2245_v45  ;;  %1280 = vmatprep.mubr.bf16.mxu0 %v1821_v62  ;;  %v2285_v45 = vld [vmem:[%s2890_s1 + $0x2e0] sm:$0xff]   ;;  %v2326_v38 = vld [vmem:[%s2890_s1 + $0x310] sm:$0xff]  }
  0x27   :  { %1329 = vmatprep.mubr.bf16.mxu1 %v1823_v2  ;;  %v2302_v62 = vld [vmem:[%s2890_s1 + $0x200] sm:$0xff]   ;;  %v2327_v39 = vld [vmem:[%s2890_s1 + $0x390] sm:$0xff]  }
  0x28   :  { %2025 = vmatpush3.bf16.msra.mxu0 %v2246_v46  ;;  %v2286_v46 = vld [vmem:[%s2890_s1 + $0x220] sm:$0xff]  }
  0x29   :  { %2053 = vmatpush3.bf16.msra.mxu1 %v2247_v47  ;;  %2026 = vmatprep.subr.bf16.mxu0 %v2248_v48  ;;  %v2287_v47 = vld [vmem:[%s2890_s1 + $0x2a0] sm:$0xff]   ;;  %v2288_v48 = vld [vmem:[%s2890_s1 + $0x258] sm:$0xff]  }
  0x2a   :  { %2054 = vmatprep.subr.bf16.mxu1 %v2249_v49  ;;  %v2289_v49 = vld [vmem:[%s2890_s1 + $0x2d8] sm:$0xff]  }
  0x2b   :  { %1281 = vmatmul.mubr.bf16.gmra.mxu0 %v1820_v1  ;;  %v36_v1 = vld [vmem:[%s2891_s0 + $0x60] sm:$0xff] }
  0x2c   :  { %2027 = vmatpush3.bf16.msra.mxu0 %v2250_v50  ;;  %1330 = vmatmul.mubr.bf16.gmra.mxu1 %v1822_v3  ;;  %v2290_v50 = vld [vmem:[%s2890_s1 + $0x218] sm:$0xff]   ;;  %v1812_v2 = vcombine.low %v28_v0, %v36_v1  ;;  %v1813_v3 = vcombine.high %v28_v0, %v36_v1 }
  0x2d   :  { %2055 = vmatpush3.bf16.msra.mxu1 %v2251_v51  ;;  %2028 = vmatprep.subr.bf16.mxu0 %v2252_v52  ;;  %v2291_v51 = vld [vmem:[%s2890_s1 + $0x298] sm:$0xff]   ;;  %v2292_v52 = vld [vmem:[%s2890_s1 + $0x250] sm:$0xff]  }
  0x2e   :  { %2056 = vmatprep.subr.bf16.mxu1 %v2253_v53  ;;  %1370 = vmatprep.mubr.bf16.mxu0 %v1809_v21  ;;  %v2293_v53 = vld [vmem:[%s2890_s1 + $0x2d0] sm:$0xff]   ;;  %v2313_v21 = vld [vmem:[%s2890_s1 + $0x3e8] sm:$0xff]  }
  0x2f   :  { %1419 = vmatprep.mubr.bf16.mxu1 %v1811_v23  ;;  %v53_v23 = vld [vmem:[%s2891_s0 + $0xe8] sm:$0xff] }
  0x30   :  { %2029 = vmatpush3.bf16.msra.mxu0 %v2254_v54  ;;  %v2294_v54 = vld [vmem:[%s2890_s1 + $0x210] sm:$0xff]  }
  0x31   :  { %2057 = vmatpush3.bf16.msra.mxu1 %v2255_v55  ;;  %2030 = vmatprep.subr.bf16.mxu0 %v2256_v56  ;;  %v2295_v55 = vld [vmem:[%s2890_s1 + $0x290] sm:$0xff]   ;;  %v2296_v56 = vld [vmem:[%s2890_s1 + $0x248] sm:$0xff]  }
  0x32   :  { %2058 = vmatprep.subr.bf16.mxu1 %v2257_v57  ;;  %v2297_v57 = vld [vmem:[%s2890_s1 + $0x2c8] sm:$0xff]  }
  0x34   :  { %2031 = vmatpush3.bf16.msra.mxu0 %v2258_v58  ;;  %v2298_v58 = vld [vmem:[%s2890_s1 + $0x208] sm:$0xff]  }
  0x35   :  { %2059 = vmatpush3.bf16.msra.mxu1 %v2259_v59  ;;  %2032 = vmatprep.subr.bf16.mxu0 %v2260_v4  ;;  %v2299_v59 = vld [vmem:[%s2890_s1 + $0x288] sm:$0xff]  }
  0x36   :  { %2060 = vmatprep.subr.bf16.mxu1 %v2261_v5  ;;  %v29_v4 = vld [vmem:[%s2891_s0 + $0x28] sm:$0xff] }
  0x37   :  { %v37_v5 = vld [vmem:[%s2891_s0 + $0x68] sm:$0xff] }
  0x38   :  { %2033 = vmatpush3.bf16.msra.mxu0 %v2262_v6  ;;  %v1814_v6 = vcombine.low %v29_v4, %v37_v5 }
  0x39   :  { %2061 = vmatpush3.bf16.msra.mxu1 %v2263_v7  ;;  %2034 = vmatprep.subr.bf16.mxu0 %v2264_v8  ;;  %v1815_v7 = vcombine.high %v29_v4, %v37_v5  ;;  %v2304_v8 = vld [vmem:[%s2890_s1 + $0x378] sm:$0xff]  }
  0x3a   :  { %2062 = vmatprep.subr.bf16.mxu1 %v2265_v9  ;;  %v2305_v9 = vld [vmem:[%s2890_s1 + $0x3f8] sm:$0xff]  }
  0x3c   :  { %2035 = vmatpush3.bf16.msra.mxu0 %v2266_v10  ;;  %v2306_v10 = vld [vmem:[%s2890_s1 + $0x338] sm:$0xff]  }
  0x3d   :  { %2063 = vmatpush3.bf16.msra.mxu1 %v2267_v11  ;;  %2036 = vmatprep.subr.bf16.mxu0 %v2268_v12  ;;  %v2307_v11 = vld [vmem:[%s2890_s1 + $0x3b8] sm:$0xff]   ;;  %v2308_v12 = vld [vmem:[%s2890_s1 + $0x370] sm:$0xff]  }
  0x3e   :  { %2064 = vmatprep.subr.bf16.mxu1 %v2269_v13  ;;  %v2309_v13 = vld [vmem:[%s2890_s1 + $0x3f0] sm:$0xff]  }
  0x40   :  { %2037 = vmatpush3.bf16.msra.mxu0 %v2270_v14  ;;  %v2310_v14 = vld [vmem:[%s2890_s1 + $0x330] sm:$0xff]  }
  0x41   :  { %2065 = vmatpush3.bf16.msra.mxu1 %v2271_v15  ;;  %2078 = vmatprep.subr.bf16.mxu0 %v2272_v24  ;;  %v2311_v15 = vld [vmem:[%s2890_s1 + $0x3b0] sm:$0xff]  }
  0x42   :  { %2106 = vmatprep.subr.bf16.mxu1 %v2273_v25  ;;  %v2314_v25 = vld [vmem:[%s2890_s1 + $0x328] sm:$0xff]  }
  0x43   :  { %1371 = vmatmul.mubr.bf16.vlgmr.msra.gmra.mxu0 %v1808_v20  ;;  %v2312_v20 = vld [vmem:[%s2890_s1 + $0x368] sm:$0xff]  }
  0x44   :  { %1420 = vmatmul.mubr.bf16.vlgmr.msra.gmra.mxu1 %v1810_v22  ;;  %2079 = vmatpush3.bf16.msra.mxu0 %v2274_v26  ;;  %v45_v22 = vld [vmem:[%s2891_s0 + $0xa8] sm:$0xff] }
  0x45   :  { %2107 = vmatpush3.bf16.msra.mxu1 %v2275_v27  ;;  %2080 = vmatprep.subr.bf16.mxu0 %v2276_v28  ;;  %v1831_v24 = vcombine.high %v45_v22, %v53_v23  ;;  %v1830_v26 = vcombine.low %v45_v22, %v53_v23  ;;  %v2315_v27 = vld [vmem:[%s2890_s1 + $0x3a8] sm:$0xff]   ;;  %v2316_v28 = vld [vmem:[%s2890_s1 + $0x360] sm:$0xff]  }
  0x46   :  { %2108 = vmatprep.subr.bf16.mxu1 %v2277_v29  ;;  %1378 = vmatprep.mubr.bf16.mxu0 %v1825_v34  ;;  %v2317_v29 = vld [vmem:[%s2890_s1 + $0x3e0] sm:$0xff]   ;;  %v2322_v34 = vld [vmem:[%s2890_s1 + $0x318] sm:$0xff]  }
  0x47   :  { %1427 = vmatprep.mubr.bf16.mxu1 %v1827_v40  ;;  %v2328_v40 = vld [vmem:[%s2890_s1 + $0x348] sm:$0xff]  }
  0x48   :  { %2081 = vmatpush3.bf16.msra.mxu0 %v2278_v30  ;;  %v2318_v30 = vld [vmem:[%s2890_s1 + $0x320] sm:$0xff]  }
  0x49   :  { %2109 = vmatpush3.bf16.msra.mxu1 %v2279_v31  ;;  %2082 = vmatprep.subr.bf16.mxu0 %v2280_v36  ;;  %v2319_v31 = vld [vmem:[%s2890_s1 + $0x3a0] sm:$0xff]   ;;  %v2324_v36 = vld [vmem:[%s2890_s1 + $0x350] sm:$0xff]  }
  0x4a   :  { %2110 = vmatprep.subr.bf16.mxu1 %v2281_v37  ;;  %v2325_v37 = vld [vmem:[%s2890_s1 + $0x3d0] sm:$0xff]  }
  0x4b   :  { %1379 = vmatmul.mubr.bf16.gmra.mxu0 %v1824_v35  ;;  %v2323_v35 = vld [vmem:[%s2890_s1 + $0x398] sm:$0xff]  }
  0x4c   :  { %2083 = vmatpush3.bf16.msra.mxu0 %v2282_v41  ;;  %1428 = vmatmul.mubr.bf16.gmra.mxu1 %v1826_v42  ;;  %v2329_v41 = vld [vmem:[%s2890_s1 + $0x3c8] sm:$0xff]  }
  0x4d   :  { %2111 = vmatpush3.bf16.msra.mxu1 %v2283_v43  ;;  %2084 = vmatprep.subr.bf16.mxu0 %v2284_v44  ;;  %v2330_v42 = vld [vmem:[%s2890_s1 + $0x308] sm:$0xff]   ;;  %v2332_v44 = vld [vmem:[%s2890_s1 + $0x340] sm:$0xff]  }
  0x4e   :  { %2112 = vmatprep.subr.bf16.mxu1 %v2285_v45  ;;  %1468 = vmatprep.mubr.bf16.mxu0 %v1813_v3  ;;  %v2331_v43 = vld [vmem:[%s2890_s1 + $0x388] sm:$0xff]   ;;  %v2333_v45 = vld [vmem:[%s2890_s1 + $0x3c0] sm:$0xff]  }
  0x4f   :  { %1517 = vmatprep.mubr.bf16.mxu1 %v1815_v7 }
  0x50   :  { %2085 = vmatpush3.bf16.msra.mxu0 %v2286_v46  ;;  %v2334_v46 = vld [vmem:[%s2890_s1 + $0x300] sm:$0xff]  }
  0x51   :  { %2113 = vmatpush3.bf16.msra.mxu1 %v2287_v47  ;;  %2086 = vmatprep.subr.bf16.mxu0 %v2288_v48  ;;  %v2335_v47 = vld [vmem:[%s2890_s1 + $0x380] sm:$0xff]   ;;  %v30_v48 = vld [vmem:[%s2891_s0 + $0x30] sm:$0xff] }
  0x52   :  { %2114 = vmatprep.subr.bf16.mxu1 %v2289_v49  ;;  %v38_v49 = vld [vmem:[%s2891_s0 + $0x70] sm:$0xff] }
  0x54   :  { %2087 = vmatpush3.bf16.msra.mxu0 %v2290_v50  ;;  %v31_v50 = vld [vmem:[%s2891_s0 + $0x38] sm:$0xff] }
  0x55   :  { %2115 = vmatpush3.bf16.msra.mxu1 %v2291_v51  ;;  %2088 = vmatprep.subr.bf16.mxu0 %v2292_v52  ;;  %v1816_v51 = vcombine.low %v30_v48, %v38_v49  ;;  %v1817_v52 = vcombine.high %v30_v48, %v38_v49 }
  0x56   :  { %2116 = vmatprep.subr.bf16.mxu1 %v2293_v53  ;;  %v39_v53 = vld [vmem:[%s2891_s0 + $0x78] sm:$0xff] }
  0x58   :  { %2089 = vmatpush3.bf16.msra.mxu0 %v2294_v54  ;;  %v46_v54 = vld [vmem:[%s2891_s0 + $0xb0] sm:$0xff] }
  0x59   :  { %2117 = vmatpush3.bf16.msra.mxu1 %v2295_v55  ;;  %2090 = vmatprep.subr.bf16.mxu0 %v2296_v56  ;;  %v54_v55 = vld [vmem:[%s2891_s0 + $0xf0] sm:$0xff]  ;;  %v1818_v56 = vcombine.low %v31_v50, %v39_v53 }
  0x5a   :  { %2118 = vmatprep.subr.bf16.mxu1 %v2297_v57  ;;  %v1819_v57 = vcombine.high %v31_v50, %v39_v53 }
  0x5c   :  { %2091 = vmatpush3.bf16.msra.mxu0 %v2298_v58  ;;  %v1833_v58 = vcombine.high %v46_v54, %v54_v55 }
  0x5d   :  { %2119 = vmatpush3.bf16.msra.mxu1 %v2299_v59  ;;  %2092 = vmatprep.subr.bf16.mxu0 %v2300_v60  ;;  %v47_v59 = vld [vmem:[%s2891_s0 + $0xb8] sm:$0xff] }
  0x5e   :  { %2120 = vmatprep.subr.bf16.mxu1 %v2301_v61  ;;  %v55_v60 = vld [vmem:[%s2891_s0 + $0xf8] sm:$0xff] }
  0x5f   :  { %v1835_v61 = vcombine.high %v47_v59, %v55_v60 }
  0x60   :  { %2093 = vmatpush3.bf16.msra.mxu0 %v2302_v62  ;;  %v1832_v62 = vcombine.low %v46_v54, %v54_v55 }
  0x61   :  { %2121 = vmatpush3.bf16.msra.mxu1 %v2303_v63  ;;  %2134 = vmatprep.subr.bf16.mxu0 %v2304_v8  ;;  %v1834_v63 = vcombine.low %v47_v59, %v55_v60 }
  0x62   :  { %2162 = vmatprep.subr.bf16.mxu1 %v2305_v9 }
  0x63   :  { %1469 = vmatmul.mubr.bf16.vlgmr.msra.gmra.mxu0 %v1812_v2 }
  0x64   :  { %1518 = vmatmul.mubr.bf16.vlgmr.msra.gmra.mxu1 %v1814_v6  ;;  %2135 = vmatpush3.bf16.msra.mxu0 %v2306_v10 }
  0x65   :  { %2163 = vmatpush3.bf16.msra.mxu1 %v2307_v11  ;;  %2136 = vmatprep.subr.bf16.mxu0 %v2308_v12 }
  0x66   :  { %2164 = vmatprep.subr.bf16.mxu1 %v2309_v13  ;;  %1476 = vmatprep.mubr.bf16.mxu0 %v1829_v18 }
  0x67   :  { %1525 = vmatprep.mubr.bf16.mxu1 %v1831_v24 }
  0x68   :  { %2137 = vmatpush3.bf16.msra.mxu0 %v2310_v14 }
  0x69   :  { %2165 = vmatpush3.bf16.msra.mxu1 %v2311_v15  ;;  %2138 = vmatprep.subr.bf16.mxu0 %v2312_v20 }
  0x6a   :  { %2166 = vmatprep.subr.bf16.mxu1 %v2313_v21 }
  0x6b   :  { %1477 = vmatmul.mubr.bf16.gmra.mxu0 %v1828_v19 }
  0x6c   :  { %2139 = vmatpush3.bf16.msra.mxu0 %v2314_v25  ;;  %1526 = vmatmul.mubr.bf16.gmra.mxu1 %v1830_v26 }
  0x6d   :  { %2167 = vmatpush3.bf16.msra.mxu1 %v2315_v27  ;;  %2140 = vmatprep.subr.bf16.mxu0 %v2316_v28 }
  0x6e   :  { %2168 = vmatprep.subr.bf16.mxu1 %v2317_v29  ;;  %1566 = vmatprep.mubr.bf16.mxu0 %v1817_v52 }
  0x6f   :  { %1615 = vmatprep.mubr.bf16.mxu1 %v1819_v57 }
  0x70   :  { %2141 = vmatpush3.bf16.msra.mxu0 %v2318_v30 }
  0x71   :  { %2169 = vmatpush3.bf16.msra.mxu1 %v2319_v31  ;;  %2142 = vmatprep.subr.bf16.mxu0 %v2320_v32 }
  0x72   :  { %2170 = vmatprep.subr.bf16.mxu1 %v2321_v33 }
  0x74   :  { %2143 = vmatpush3.bf16.msra.mxu0 %v2322_v34 }
  0x75   :  { %2171 = vmatpush3.bf16.msra.mxu1 %v2323_v35  ;;  %2144 = vmatprep.subr.bf16.mxu0 %v2324_v36  ;;  %v2344_v35 = vmov 0.0  }
  0x76   :  { %2172 = vmatprep.subr.bf16.mxu1 %v2325_v37 }
  0x78   :  { %2145 = vmatpush3.bf16.msra.mxu0 %v2326_v38 }
  0x79   :  { %2173 = vmatpush3.bf16.msra.mxu1 %v2327_v39  ;;  %2146 = vmatprep.subr.bf16.mxu0 %v2328_v40 }
  0x7a   :  { %2174 = vmatprep.subr.bf16.mxu1 %v2329_v41 }
  0x7c   :  { %2147 = vmatpush3.bf16.msra.mxu0 %v2330_v42 }
  0x7d   :  { %2175 = vmatpush3.bf16.msra.mxu1 %v2331_v43  ;;  %2148 = vmatprep.subr.bf16.mxu0 %v2332_v44 }
  0x7e   :  { %2176 = vmatprep.subr.bf16.mxu1 %v2333_v45 }
  0x80   :  { %2149 = vmatpush3.bf16.msra.mxu0 %v2334_v46 }
  0x81   :  { %2177 = vmatpush3.bf16.msra.mxu1 %v2335_v47  ;;  %2195 = vmatprep.subr.mxu0 %v2344_v35 }
  0x83   :  { %1567 = vmatmul.mubr.bf16.vlgmr.msra.gmra.mxu0 %v1816_v51 }
  0x84   :  { %1616 = vmatmul.mubr.bf16.vlgmr.msra.gmra.mxu1 %v1818_v56  ;;  %1574 = vmatprep.mubr.bf16.mxu0 %v1833_v58 }
  0x85   :  { %1623 = vmatprep.mubr.bf16.mxu1 %v1835_v61 }
  0x8b   :  { %1575 = vmatmul.mubr.bf16.gmra.mxu0 %v1832_v62 }
  0x8c   :  { %1624 = vmatmul.mubr.bf16.gmra.mxu1 %v1834_v63  ;;  %2203 = vmatprep.mubr.msk.f32.mxu0 %vm2345_vm0, %v2344_v35 }
  0xe3   :  { %v1982_v0 = vpop.f32.mrf.mxu0 }
  0xe4   :  { %v2010_v2 = vpop.f32.mrf.mxu1 }
  0xe5   :  { %v1983_v1 = vpop.f32.mrf.mxu0 }
  0xe6   :  { %v2011_v4 = vpop.f32.mrf.mxu1  ;;  %v1984_v47 = vadd.f32 %v1983_v1, %v1982_v0 }
  0xe7   :  { %v1985_v3 = vpop.f32.mrf.mxu0  ;;  %v2012_v48 = vadd.f32 %v2011_v4, %v2010_v2 }
  0xe8   :  { %v2013_v6 = vpop.f32.mrf.mxu1 }
  0xe9   :  { %v1986_v5 = vpop.f32.mrf.mxu0  ;;  %v1324_v57 = vadd.f32 %v2012_v48, %v1984_v47 }
  0xea   :  { %v2014_v8 = vpop.f32.mrf.mxu1  ;;  %v1987_v44 = vadd.f32 %v1986_v5, %v1985_v3 }
  0xeb   :  { %v1988_v7 = vpop.f32.mrf.mxu0  ;;  %v2015_v45 = vadd.f32 %v2014_v8, %v2013_v6 }
  0xec   :  { %v2016_v10 = vpop.f32.mrf.mxu1 }
  0xed   :  { %v1989_v9 = vpop.f32.mrf.mxu0  ;;  %v1327_v53 = vadd.f32 %v2015_v45, %v1987_v44 }
  0xee   :  { %v2017_v12 = vpop.f32.mrf.mxu1  ;;  %v1990_v50 = vadd.f32 %v1989_v9, %v1988_v7 }
  0xef   :  { %v1991_v11 = vpop.f32.mrf.mxu0  ;;  %v2018_v51 = vadd.f32 %v2017_v12, %v2016_v10 }
  0xf0   :  { %v2019_v14 = vpop.f32.mrf.mxu1 }
  0xf1   :  { %v1992_v13 = vpop.f32.mrf.mxu0  ;;  %v1332_v59 = vadd.f32 %v2018_v51, %v1990_v50 }
  0xf2   :  { %v2020_v16 = vpop.f32.mrf.mxu1  ;;  %v1993_v60 = vadd.f32 %v1992_v13, %v1991_v11 }
  0xf3   :  { %v2021_v61 = vadd.f32 %v2020_v16, %v2019_v14 }
  0xf5   :  { %v1335_v12 = vadd.f32 %v2021_v61, %v1993_v60 }
 0x103   :  { %v2038_v15 = vpop.f32.mrf.mxu0 }
 0x104   :  { %v2066_v18 = vpop.f32.mrf.mxu1 }
 0x105   :  { %v2039_v17 = vpop.f32.mrf.mxu0 }
 0x106   :  { %v2067_v20 = vpop.f32.mrf.mxu1  ;;  %v2040_v54 = vadd.f32 %v2039_v17, %v2038_v15 }
 0x107   :  { %v2041_v19 = vpop.f32.mrf.mxu0  ;;  %v2068_v3 = vadd.f32 %v2067_v20, %v2066_v18 }
 0x108   :  { %v2069_v22 = vpop.f32.mrf.mxu1  ;;  %v1373_v63 = vadd.f32 %v2040_v54, %v1324_v57 }
 0x109   :  { %v2042_v21 = vpop.f32.mrf.mxu0 }
 0x10a   :  { %v2070_v24 = vpop.f32.mrf.mxu1  ;;  %v2043_v49 = vadd.f32 %v2042_v21, %v2041_v19  ;;  %v1422_v19 = vadd.f32 %v2068_v3, %v1373_v63 }
 0x10b   :  { %v2044_v23 = vpop.f32.mrf.mxu0  ;;  %v2071_v5 = vadd.f32 %v2070_v24, %v2069_v22 }
 0x10c   :  { %v2072_v25 = vpop.f32.mrf.mxu1  ;;  %v1376_v58 = vadd.f32 %v2043_v49, %v1327_v53 }
 0x10d   :  { %v2045_v26 = vpop.f32.mrf.mxu0 }
 0x10e   :  { %v2073_v27 = vpop.f32.mrf.mxu1  ;;  %v2046_v56 = vadd.f32 %v2045_v26, %v2044_v23  ;;  %v1425_v8 = vadd.f32 %v2071_v5, %v1376_v58 }
 0x10f   :  { %v2047_v28 = vpop.f32.mrf.mxu0  ;;  %v2074_v2 = vadd.f32 %v2073_v27, %v2072_v25 }
 0x110   :  { %v2075_v29 = vpop.f32.mrf.mxu1  ;;  %v1381_v1 = vadd.f32 %v2046_v56, %v1332_v59 }
 0x111   :  { %v2048_v30 = vpop.f32.mrf.mxu0 }
 0x112   :  { %v2076_v32 = vpop.f32.mrf.mxu1  ;;  %v2049_v4 = vadd.f32 %v2048_v30, %v2047_v28  ;;  %v1430_v13 = vadd.f32 %v2074_v2, %v1381_v1 }
 0x113   :  { %v2077_v16 = vadd.f32 %v2076_v32, %v2075_v29 }
 0x114   :  { %v1384_v14 = vadd.f32 %v2049_v4, %v1335_v12 }
 0x123   :  { %v2094_v31 = vpop.f32.mrf.mxu0 }
 0x124   :  { %v2122_v33 = vpop.f32.mrf.mxu1 }
 0x125   :  { %v2095_v34 = vpop.f32.mrf.mxu0 }
 0x126   :  { %v2123_v36 = vpop.f32.mrf.mxu1  ;;  %v2096_v9 = vadd.f32 %v2095_v34, %v2094_v31 }
 0x127   :  { %v2097_v37 = vpop.f32.mrf.mxu0  ;;  %v2124_v22 = vadd.f32 %v2123_v36, %v2122_v33 }
 0x128   :  { %v2125_v38 = vpop.f32.mrf.mxu1  ;;  %v1471_v20 = vadd.f32 %v2096_v9, %v1422_v19 }
 0x129   :  { %v2098_v39 = vpop.f32.mrf.mxu0 }
 0x12a   :  { %v2126_v40 = vpop.f32.mrf.mxu1  ;;  %v2099_v6 = vadd.f32 %v2098_v39, %v2097_v37  ;;  %v1433_v39 = vadd.f32 %v2077_v16, %v1384_v14 }
 0x12b   :  { %v2100_v41 = vpop.f32.mrf.mxu0  ;;  %v2127_v23 = vadd.f32 %v2126_v40, %v2125_v38 }
 0x12c   :  { %v2128_v42 = vpop.f32.mrf.mxu1  ;;  %v1474_v21 = vadd.f32 %v2099_v6, %v1425_v8 }
 0x12d   :  { %v2101_v43 = vpop.f32.mrf.mxu0 }
 0x12e   :  { %v2129_v46 = vpop.f32.mrf.mxu1  ;;  %v2102_v15 = vadd.f32 %v2101_v43, %v2100_v41  ;;  %v1523_v30 = vadd.f32 %v2127_v23, %v1474_v21  ;;  %v1520_v43 = vadd.f32 %v2124_v22, %v1471_v20 }
 0x12f   :  { %v2103_v52 = vpop.f32.mrf.mxu0  ;;  %v2130_v26 = vadd.f32 %v2129_v46, %v2128_v42 }
 0x130   :  { %v2131_v55 = vpop.f32.mrf.mxu1  ;;  %v1479_v25 = vadd.f32 %v2102_v15, %v1430_v13 }
 0x131   :  { %v2104_v62 = vpop.f32.mrf.mxu0 }
 0x132   :  { %v2132_v0 = vpop.f32.mrf.mxu1  ;;  %v2105_v27 = vadd.f32 %v2104_v62, %v2103_v52  ;;  %v1528_v47 = vadd.f32 %v2130_v26, %v1479_v25 }
 0x133   :  { %v2133_v48 = vadd.f32 %v2132_v0, %v2131_v55 }
 0x134   :  { %v1482_v29 = vadd.f32 %v2105_v27, %v1433_v39 }
 0x136   :  { %v1531_v54 = vadd.f32 %v2133_v48, %v1482_v29  ;;  %v1964_v29 = vld [vmem:[%s2893_s3] ss:$0 sm:$0xff] }
 0x143   :  { %v2150_v7 = vpop.f32.mrf.mxu0 }
 0x144   :  { %v2178_v10 = vpop.f32.mrf.mxu1 }
 0x145   :  { %v2151_v17 = vpop.f32.mrf.mxu0 }
 0x146   :  { %v2179_v11 = vpop.f32.mrf.mxu1  ;;  %v2152_v31 = vadd.f32 %v2151_v17, %v2150_v7 }
 0x147   :  { %v2153_v18 = vpop.f32.mrf.mxu0  ;;  %v2180_v46 = vadd.f32 %v2179_v11, %v2178_v10 }
 0x148   :  { %v2181_v24 = vpop.f32.mrf.mxu1  ;;  %v1569_v33 = vadd.f32 %v2152_v31, %v1520_v43 }
 0x149   :  { %v2154_v28 = vpop.f32.mrf.mxu0 }
 0x14a   :  { %v2155_v34 = vadd.f32 %v2154_v28, %v2153_v18  ;;  %v2182_v37 = vpop.f32.mrf.mxu1  ;;  %v1618_v56 = vadd.f32 %v2180_v46, %v1569_v33 }
 0x14b   :  { %v2156_v41 = vpop.f32.mrf.mxu0  ;;  %v2183_v36 = vadd.f32 %v2182_v37, %v2181_v24  ;;  %v1673_v37 = vlaneseq }
 0x14c   :  { %v1572_v44 = vadd.f32 %v2155_v34, %v1523_v30  ;;  %v2184_v45 = vpop.f32.mrf.mxu1 }
 0x14d   :  { %v2157_v32 = vpop.f32.mrf.mxu0  ;;  %v1674_v39 = vshrl.u32 %v1673_v37, 7 }
 0x14e   :  { %v2158_v38 = vadd.f32 %v2157_v32, %v2156_v41  ;;  %v2185_v40 = vpop.f32.mrf.mxu1  ;;  %v1621_v49 = vadd.f32 %v2183_v36, %v1572_v44  ;;  %v1661_v41 = vld [vmem:[%s2892_s2] sm:$0x1] }
 0x14f   :  { %v2159_v42 = vpop.f32.mrf.mxu0  ;;  %v2186_v51 = vadd.f32 %v2185_v40, %v2184_v45  ;;  %v1675_v43 = vsub.s32 0, %v1674_v39 }
 0x150   :  { %v1577_v50 = vadd.f32 %v2158_v38, %v1528_v47  ;;  %v2187_v52 = vpop.f32.mrf.mxu1  ;;  %v1632_v60 = vadd.f32 %v1621_v49, %v1618_v56 }
 0x151   :  { %v2160_v53 = vpop.f32.mrf.mxu0 }
 0x152   :  { %v1626_v57 = vadd.f32 %v2186_v51, %v1577_v50  ;;  %v2161_v58 = vadd.f32 %v2160_v53, %v2159_v42  ;;  %v2188_v59 = vpop.f32.mrf.mxu1 }
 0x153   :  { %v2189_v62 = vadd.f32 %v2188_v59, %v2187_v52 }
 0x154   :  { %v1580_v61 = vadd.f32 %v2161_v58, %v1531_v54  ;;  %v1633_v55 = vadd.f32 %v1632_v60, %v1626_v57  ;;  %v1706_v60 = vld [vmem:[%s2894_s4 + $0x8] sm:$0xff] }
 0x156   :  { %v1629_v63 = vadd.f32 %v2189_v62, %v1580_v61 }
 0x158   :  { %v1634_v3 = vadd.f32 %v1633_v55, %v1629_v63  ;;  %v1705_v55 = vld [vmem:[%s2894_s4] sm:$0xff] }
 0x15a   :  { %v1635_v5 = vrot.slane %v1634_v3, 4 }
 0x15c   :  { %v1636_v6 = vadd.f32 %v1635_v5, %v1634_v3  ;;  %v1713_v5 = vld [vmem:[%s2895_s5] sm:$0x3] }
 0x15e   :  { %v1637_v0 = vrot.slane %v1636_v6, 2 }
 0x160   :  { %v1638_v1 = vadd.f32 %v1637_v0, %v1636_v6 }
 0x162   :  { %v1639_v2 = vrot.slane %v1638_v1, 1 }
 0x164   :  { %v1640_v4 = vadd.f32 %v1639_v2, %v1638_v1 }
 0x166   :  { %v1642_v7 = vmul.f32 0.03125, %v1640_v4 }
 0x168   :  { %v1643_v8 = vsub.f32 %v1618_v56, %v1642_v7  ;;  %v1644_v9 = vsub.f32 %v1621_v49, %v1642_v7  ;;  %v1645_v10 = vsub.f32 %v1626_v57, %v1642_v7  ;;  %v1646_v12 = vsub.f32 %v1629_v63, %v1642_v7  ;;  %v1708_v49 = vld [vmem:[%s2894_s4 + $0x18] sm:$0xff]  ;;  %v1707_v56 = vld [vmem:[%s2894_s4 + $0x10] sm:$0xff] }
 0x16a   :  { %v1647_v15 = vmul.f32 %v1643_v8, %v1643_v8  ;;  %v1648_v17 = vmul.f32 %v1644_v9, %v1644_v9  ;;  %v1649_v19 = vmul.f32 %v1645_v10, %v1645_v10  ;;  %v1650_v11 = vmul.f32 %v1646_v12, %v1646_v12 }
 0x16c   :  { %v1651_v21 = vadd.f32 %v1648_v17, %v1647_v15 }
 0x16e   :  { %v1652_v13 = vadd.f32 %v1651_v21, %v1649_v19 }
 0x170   :  { %v1653_v14 = vadd.f32 %v1652_v13, %v1650_v11 }
 0x172   :  { %v1654_v16 = vrot.slane %v1653_v14, 4 }
 0x174   :  { %v1655_v18 = vadd.f32 %v1654_v16, %v1653_v14 }
 0x176   :  { %v1656_v20 = vrot.slane %v1655_v18, 2 }
 0x178   :  { %v1657_v22 = vadd.f32 %v1656_v20, %v1655_v18 }
 0x17a   :  { %v1658_v23 = vrot.slane %v1657_v22, 1 }
 0x17c   :  { %v1659_v24 = vadd.f32 %v1658_v23, %v1657_v22 }
 0x17e   :  { %v1660_v25 = vmul.f32 0.03125, %v1659_v24 }
 0x180   :  { %v1662_v26 = vadd.f32 1e-05, %v1660_v25 }
 0x182   :  { %2336 = vrsqrt.f32 %v1662_v26  ;;  %vm1665_vm1 = vcmp.eq.f32.partialorder %v1662_v26, inf  ;;  %v1668_v30 = vand.u32 2147483648, %v1662_v26  ;;  %vm1667_vm2 = vcmp.eq.f32.partialorder %v1662_v26, 0.0 }
 0x18f   :  { %v2337_v27 = vpop.eup %2336 }
 0x190   :  { %v1664_v28 = vmul.f32 %v2337_v27, %v1662_v26 }
 0x192   :  { %v1666_v31 = vsel %vm1665_vm1, %v1662_v26, %v1664_v28 }
 0x193   :  { %v1669_v34 = vsel %vm1667_vm2, %v1668_v30, %v1666_v31 }
 0x194   :  { %2338 = vrcp.f32 %v1669_v34 }
 0x1a1   :  { %v2339_v44 = vpop.eup %2338 }
 0x1a2   :  { %v1671_v45 = vmul.f32 %v2339_v44, %v1661_v41 }
 0x1a4   :  { %v1676_v47 = vrot.slane %v1671_v45, %v1675_v43 }
 0x1a6   :  { %v1681_v32 = vmul.f32 %v1676_v47, %v1646_v12  ;;  %v1680_v48 = vmul.f32 %v1676_v47, %v1645_v10  ;;  %v1679_v33 = vmul.f32 %v1676_v47, %v1644_v9  ;;  %v1678_v36 = vmul.f32 %v1676_v47, %v1643_v8 }
 0x1a8   :  { %v1692_v38 = vadd.f32 %v1964_v29, %v1681_v32  ;;  %v1691_v40 = vadd.f32 %v1964_v29, %v1680_v48  ;;  %v1690_v42 = vadd.f32 %v1964_v29, %v1679_v33  ;;  %v1689_v46 = vadd.f32 %v1964_v29, %v1678_v36 }
 0x1aa   :  { %vm1696_vm3 = vcmp.ge.f32.partialorder %v1692_v38, 0.0  ;;  %v1700_v50 = vmul.f32 0.2, %v1692_v38  ;;  %vm1695_vm4 = vcmp.ge.f32.partialorder %v1691_v40, 0.0  ;;  %v1699_v51 = vmul.f32 0.2, %v1691_v40 }
 0x1ab   :  { %vm1694_vm5 = vcmp.ge.f32.partialorder %v1690_v42, 0.0  ;;  %v1698_v52 = vmul.f32 0.2, %v1690_v42  ;;  %v1697_v57 = vmul.f32 0.2, %v1689_v46  ;;  %vm1693_vm6 = vcmp.ge.f32.partialorder %v1689_v46, 0.0 }
 0x1ac   :  { %v1704_v53 = vsel %vm1696_vm3, %v1692_v38, %v1700_v50  ;;  %v1703_v54 = vsel %vm1695_vm4, %v1691_v40, %v1699_v51 }
 0x1ad   :  { %v1712_v58 = vmul.f32 %v1708_v49, %v1704_v53  ;;  %v1702_v59 = vsel %vm1694_vm5, %v1690_v42, %v1698_v52  ;;  %v1711_v61 = vmul.f32 %v1707_v56, %v1703_v54  ;;  %v1701_v62 = vsel %vm1693_vm6, %v1689_v46, %v1697_v57 }
 0x1ae   :  { %v1710_v63 = vmul.f32 %v1706_v60, %v1702_v59  ;;  %v1709_v3 = vmul.f32 %v1705_v55, %v1701_v62 }
 0x1af   :  { %2196 = vmatpush3.msra.mxu0 %v1712_v58 }
 0x1b0   :  { %2197 = vmatprep.subr.mxu0 %v2344_v35 }
 0x1b1   :  { %2198 = vmatpush3.msra.mxu0 %v1711_v61 }
 0x1b2   :  { %2199 = vmatprep.subr.mxu0 %v2344_v35 }
 0x1b3   :  { %2200 = vmatpush3.msra.mxu0 %v1710_v63 }
 0x1b4   :  { %2201 = vmatprep.subr.mxu0 %v2344_v35 }
 0x1b5   :  { %2202 = vmatpush3.msra.mxu0 %v1709_v3 }
 0x1b6   :  { %2204 = vmatmul.mubr.msk.f32.vlgmr.msra.gmra.mxu0 %vm1714_vm7, %v1713_v5 }
 0x276   :  { %v1784_v6 = vpop.f32.mrf.mxu0 }
 0x277   :  { %v1789_v0 = vsel %vm1788_vm8, %v1784_v6, 0.0 }
 0x278   :  { %v2205_v1 = vpop.f32.mrf.mxu0  ;;  %1790 = vadd.xlane.f32.xlu0 %v1789_v0 }
 0x301   :  { %v1791_v2 = vpop.xlane.xlu0 %1790 }
 0x302   :  { %v1792_v4 = vsub.f32 0.0, %v1791_v2 }
 0x304   :  { %v1793_v7 = vmul.f32 1.442695, %v1792_v4 }
 0x306   :  { %2340 = vpow2.f32 %v1793_v7 }
 0x313   :  { %v2341_v8 = vpop.eup %2340 }
 0x314   :  { %v1795_v9 = vadd.f32 1.0, %v2341_v8 }
 0x316   :  { %2342 = vrcp.f32 %v1795_v9 }
 0x323   :  { %v2343_v10 = vpop.eup %2342 }
 0x324   :  { %1799 = vst.msk [vmem:[%s2896_s6] sm:$0x3] %vm1798_vm9, %v2343_v10 }

</bundles_post_ra>
